<compile_context>
chip_gen: v7x
topology: tpu7x:2x2x1
jax: 0.10.0
libtpu: 0.0.40
codegen_flags: <defaults>
</compile_context>

<pallas_src>
import functools
import numpy as np
import jax
import jax.numpy as jnp
from jax.experimental import pallas as pl
from jax.experimental.pallas import tpu as pltpu

_SQRT_HALF = 0.7071067811865476
_VMEM_LIMIT = 48 * 1024 * 1024  # above v5e (16 MiB) / v6e (32 MiB) scoped defaults, < v7x phys


def _erf_approx(x):
    # Abramowitz & Stegun 7.1.26 (|err| <= 1.5e-7); mul/add on the VPU, exp + approx
    # reciprocal on the EUP (free slot in the pointwise epilogue).
    a1, a2, a3, a4, a5 = 0.254829592, -0.284496736, 1.421413741, -1.453152027, 1.061405429
    p = 0.3275911
    s = jnp.where(x >= 0.0, 1.0, -1.0)
    z = jnp.abs(x)
    t = pl.reciprocal(1.0 + p * z, approx=True)
    poly = ((((a5 * t + a4) * t + a3) * t + a2) * t + a1) * t
    return s * (1.0 - poly * jnp.exp(-z * z))


def _gelu(x):
    # erf-based GELU (matches torch.nn.functional.gelu default up to the approximations above)
    return 0.5 * x * (1.0 + _erf_approx(x * _SQRT_HALF))


def _inorm_f32(x, eps):
    # biased per-channel mean/var over the HW axis (matches nn.InstanceNorm2d, affine=False)
    mean = jnp.mean(x, axis=0, keepdims=True)
    d = x - mean
    var = jnp.mean(d * d, axis=0, keepdims=True)
    return d * jax.lax.rsqrt(var + eps)


# ------------------------- Pallas kernels -------------------------

def _lift_norm_kernel(x_ref, w_ref, b_ref, x_out_ref, xn_out_ref, *, eps):
    # lift (Linear 3 -> width, no activation) fused with InstanceNorm of the result
    # (the norm output feeds the next rfft2, so the standalone norm kernel is gone).
    x = jnp.dot(x_ref[...].astype(jnp.bfloat16), w_ref[...],
                preferred_element_type=jnp.float32) + b_ref[...]
    x_out_ref[...] = x.astype(x_out_ref.dtype)
    xn_out_ref[...] = _inorm_f32(x, eps).astype(xn_out_ref.dtype)


def lift_norm(x, w, b, eps=1e-5):
    """x: (B,H,W,3) f32, w: (3,C) bf16, b: (1,C) f32 -> (x, InstanceNorm(x)) both bf16."""
    B, H, W, Cin = x.shape
    C = w.shape[1]
    HW = H * W
    xspec = pl.BlockSpec((None, HW, C), lambda b: (b, 0, 0))
    xo, xn = pl.pallas_call(
        functools.partial(_lift_norm_kernel, eps=eps),
        out_shape=(jax.ShapeDtypeStruct((B, HW, C), jnp.bfloat16),
                   jax.ShapeDtypeStruct((B, HW, C), jnp.bfloat16)),
        grid=(B,),
        in_specs=[pl.BlockSpec((None, HW, Cin), lambda b: (b, 0, 0)),
                  pl.BlockSpec((Cin, C), lambda b: (0, 0)),
                  pl.BlockSpec((1, C), lambda b: (0, 0))],
        out_specs=(xspec, xspec),
        compiler_params=pltpu.CompilerParams(
            dimension_semantics=("parallel",), vmem_limit_bytes=_VMEM_LIMIT),
    )(x.reshape(B, HW, Cin), w, b)
    return xo.reshape(B, H, W, C), xn.reshape(B, H, W, C)


def _layer_tail_kernel(xc_ref, x_ref, wa_ref, ba_ref, wcat_ref, bcat_ref,
                       x_out_ref, xn_out_ref, *, eps):
    # Fused: InstanceNorm(xc) -> conv1x1+GELU -> [conv1x1 | residual 1x1] (one K=2C matmul)
    #        -> add -> GELU -> x_new ; plus InstanceNorm(x_new) for the next layer's FFT.
    xn_c = _inorm_f32(xc_ref[...].astype(jnp.float32), eps).astype(jnp.bfloat16)
    h = _gelu(jnp.dot(xn_c, wa_ref[...], preferred_element_type=jnp.float32) + ba_ref[...])
    hx = jnp.concatenate([h.astype(jnp.bfloat16), x_ref[...]], axis=-1)       # (HW, 2C)
    y = jnp.dot(hx, wcat_ref[...], preferred_element_type=jnp.float32) + bcat_ref[...]
    y = _gelu(y)                                                              # final act (i<3)
    x_out_ref[...] = y.astype(x_out_ref.dtype)
    xn_out_ref[...] = _inorm_f32(y, eps).astype(xn_out_ref.dtype)


def layer_tail(xc, x, mlp_a, wcat, bcat, eps=1e-5):
    """xc, x: (B,H,W,C) bf16; wa:(C,C), wcat:(2C,C) bf16; ba,bcat:(1,C) f32."""
    B, H, W, C = x.shape
    HW = H * W
    wa, ba = mlp_a
    xspec = pl.BlockSpec((None, HW, C), lambda b: (b, 0, 0))
    xo, xn = pl.pallas_call(
        functools.partial(_layer_tail_kernel, eps=eps),
        out_shape=(jax.ShapeDtypeStruct((B, HW, C), jnp.bfloat16),
                   jax.ShapeDtypeStruct((B, HW, C), jnp.bfloat16)),
        grid=(B,),
        in_specs=[xspec, xspec,
                  pl.BlockSpec((C, C), lambda b: (0, 0)),
                  pl.BlockSpec((1, C), lambda b: (0, 0)),
                  pl.BlockSpec((2 * C, C), lambda b: (0, 0)),
                  pl.BlockSpec((1, C), lambda b: (0, 0))],
        out_specs=(xspec, xspec),
        compiler_params=pltpu.CompilerParams(
            dimension_semantics=("parallel",), vmem_limit_bytes=_VMEM_LIMIT),
    )(xc.reshape(B, HW, C), x.reshape(B, HW, C), wa, ba, wcat, bcat)
    return xo.reshape(B, H, W, C), xn.reshape(B, H, W, C)


def _final_tail_head_kernel(xc_ref, x_ref, wa_ref, ba_ref, wcat_ref, bcat_ref,
                            qa_ref, bqa_ref, qb_ref, bqb_ref, o_ref, *, eps):
    # Last layer tail (no final GELU) fused with the q head: width -> 4*width -> GELU -> 1.
    xn_c = _inorm_f32(xc_ref[...].astype(jnp.float32), eps).astype(jnp.bfloat16)
    h = _gelu(jnp.dot(xn_c, wa_ref[...], preferred_element_type=jnp.float32) + ba_ref[...])
    hx = jnp.concatenate([h.astype(jnp.bfloat16), x_ref[...]], axis=-1)       # (HW, 2C)
    y = jnp.dot(hx, wcat_ref[...], preferred_element_type=jnp.float32) + bcat_ref[...]
    hq = _gelu(jnp.dot(y.astype(jnp.bfloat16), qa_ref[...],
                       preferred_element_type=jnp.float32) + bqa_ref[...])    # (HW, 4C) in VMEM
    o_ref[...] = jnp.dot(hq.astype(jnp.bfloat16), qb_ref[...],
                         preferred_element_type=jnp.float32) + bqb_ref[...]


def final_tail_head(xc, x, mlp_a, wcat, bcat, qa, qb, eps=1e-5):
    B, H, W, C = x.shape
    HW = H * W
    wa, ba = mlp_a
    wqa, bqa = qa
    wqb, bqb = qb
    C4 = wqa.shape[1]
    xspec = pl.BlockSpec((None, HW, C), lambda b: (b, 0, 0))
    out = pl.pallas_call(
        functools.partial(_final_tail_head_kernel, eps=eps),
        out_shape=jax.ShapeDtypeStruct((B, HW, 1), jnp.float32),
        grid=(B,),
        in_specs=[xspec, xspec,
                  pl.BlockSpec((C, C), lambda b: (0, 0)),
                  pl.BlockSpec((1, C), lambda b: (0, 0)),
                  pl.BlockSpec((2 * C, C), lambda b: (0, 0)),
                  pl.BlockSpec((1, C), lambda b: (0, 0)),
                  pl.BlockSpec((C, C4), lambda b: (0, 0)),
                  pl.BlockSpec((1, C4), lambda b: (0, 0)),
                  pl.BlockSpec((C4, 1), lambda b: (0, 0)),
                  pl.BlockSpec((1, 1), lambda b: (0, 0))],
        out_specs=pl.BlockSpec((None, HW, 1), lambda b: (b, 0, 0)),
        compiler_params=pltpu.CompilerParams(
            dimension_semantics=("parallel",), vmem_limit_bytes=_VMEM_LIMIT),
    )(xc.reshape(B, HW, C), x.reshape(B, HW, C), wa, ba, wcat, bcat, wqa, bqa, wqb, bqb)
    return out.reshape(B, H, W, 1)


def _spectral_kernel(a_ref, w_ref, o_ref):
    # a: (M, B, 2*Cin) bf16 with [real | imag] stacked along K;
    # w: (M, 2*Cin, 2*Cout) bf16 = [[wr, wi], [-wi, wr]] so one batched matmul produces
    # [real_out | imag_out] stacked on the output lanes.
    dn = (((2,), (1,)), ((0,), (0,)))               # contract K, batch over modes
    o_ref[...] = jax.lax.dot_general(a_ref[...], w_ref[...], dn,
                                     preferred_element_type=jnp.float32)


def spectral_mix(a, wcat):
    """a: (2, M, B, 2Ci) bf16; wcat: (2, M, 2Ci, 2Co) bf16. Grid over the 2 freq corners."""
    _, M, B, K2 = a.shape
    Co2 = wcat.shape[-1]
    return pl.pallas_call(
        _spectral_kernel,
        out_shape=jax.ShapeDtypeStruct((2, M, B, Co2), jnp.float32),
        grid=(2,),
        in_specs=[pl.BlockSpec((None, M, B, K2), lambda c: (c, 0, 0, 0)),
                  pl.BlockSpec((None, M, K2, Co2), lambda c: (c, 0, 0, 0))],
        out_specs=pl.BlockSpec((None, M, B, Co2), lambda c: (c, 0, 0, 0)),
        compiler_params=pltpu.CompilerParams(dimension_semantics=("parallel",)),
    )(a, wcat)


def _pack_spec_weights(wr, wi):
    # complex multiply as one stacked-K real matmul; real & imag outputs stacked on lanes
    w_real = jnp.concatenate([wr, -wi], axis=1)     # (M, 2C, Co) -> real part
    w_imag = jnp.concatenate([wi, wr], axis=1)      # (M, 2C, Co) -> imag part
    return jnp.concatenate([w_real, w_imag], axis=-1)   # (M, 2C, 2Co)


def spectral_conv(x, wr1, wi1, wr2, wi2, m1, m2):
    """SpectralConv2d: rfft2 -> per-mode complex channel mixing (Pallas) -> irfft2."""
    B, H, W, C = x.shape
    Co = wr1.shape[-1]
    M = m1 * m2
    Wh = W // 2 + 1

    x_ft = jnp.fft.rfft2(x.astype(jnp.float32), axes=(1, 2))                     # (B,H,Wh,C) c64
    slab = jnp.stack([x_ft[:, :m1, :m2, :], x_ft[:, H - m1:, :m2, :]], axis=0)   # (2,B,m1,m2,C)
    a = jnp.concatenate([jnp.real(slab), jnp.imag(slab)], axis=-1).astype(jnp.bfloat16)
    a = jnp.transpose(a.reshape(2, B, M, 2 * C), (0, 2, 1, 3))                   # (2,M,B,2C) bf16

    wcat = jnp.stack([_pack_spec_weights(wr1, wi1),
                      _pack_spec_weights(wr2, wi2)], axis=0)                     # (2,M,2C,2Co) bf16

    out = spectral_mix(a, wcat)                                                  # (2,M,B,2Co) f32
    out_c = (out[..., :Co] + 1j * out[..., Co:]).astype(jnp.complex64)
    out_c = jnp.transpose(out_c, (0, 2, 1, 3)).reshape(2, B, m1, m2, Co)

    out_ft = jnp.zeros((B, H, Wh, Co), jnp.complex64)
    out_ft = out_ft.at[:, :m1, :m2, :].set(out_c[0])
    out_ft = out_ft.at[:, H - m1:, :m2, :].set(out_c[1])
    # TODO(synk): rfft2 / irfft2 have no Pallas TPU primitive; FFTs stay in XLA.
    return jnp.fft.irfft2(out_ft, s=(H, W), axes=(1, 2)).astype(jnp.bfloat16)


# ------------------------- pure-JAX reference ops (for checking) -------------------------

def _pointwise_ref(x, w, b, activation=None):
    y = jnp.einsum("bhwc,cd->bhwd", x, w.astype(jnp.float32)) + b.reshape(1, 1, 1, -1)
    if activation == "gelu":
        y = jax.nn.gelu(y, approximate=False)
    return y


def _inorm_ref(x, eps=1e-5):
    mean = jnp.mean(x, axis=(1, 2), keepdims=True)
    var = jnp.mean((x - mean) ** 2, axis=(1, 2), keepdims=True)
    return (x - mean) / jnp.sqrt(var + eps)


def _spectral_conv_ref(x, wr1, wi1, wr2, wi2, m1, m2):
    B, H, W, C = x.shape
    Co = wr1.shape[-1]
    x_ft = jnp.fft.rfft2(x, axes=(1, 2))
    w1 = (wr1.astype(jnp.float32) + 1j * wi1.astype(jnp.float32)).reshape(m1, m2, C, Co)
    w2 = (wr2.astype(jnp.float32) + 1j * wi2.astype(jnp.float32)).reshape(m1, m2, C, Co)
    out_ft = jnp.zeros((B, H, W // 2 + 1, Co), jnp.complex64)
    out_ft = out_ft.at[:, :m1, :m2, :].set(
        jnp.einsum("bxyi,xyio->bxyo", x_ft[:, :m1, :m2, :], w1))
    out_ft = out_ft.at[:, H - m1:, :m2, :].set(
        jnp.einsum("bxyi,xyio->bxyo", x_ft[:, H - m1:, :m2, :], w2))
    return jnp.fft.irfft2(out_ft, s=(H, W), axes=(1, 2)).astype(jnp.float32)


# ------------------------- full forward -------------------------

def get_grid(B, H, W):
    gx = jnp.broadcast_to(
        jnp.linspace(0.0, 1.0, H, dtype=jnp.float32).reshape(1, H, 1, 1), (B, H, W, 1))
    gy = jnp.broadcast_to(
        jnp.linspace(0.0, 1.0, W, dtype=jnp.float32).reshape(1, 1, W, 1), (B, H, W, 1))
    return jnp.concatenate([gx, gy], axis=-1)


def fno2d_forward(x_nchw, params, modes1, modes2, use_pallas=True):
    B, _, H, W = x_nchw.shape
    x = jnp.transpose(x_nchw, (0, 2, 3, 1))                 # (B,H,W,1)
    x = jnp.concatenate([x, get_grid(B, H, W)], axis=-1)    # (B,H,W,3)

    if use_pallas:
        def stacked(i):
            wb_, bb = params[f"mlp{i}b"]
            wr, br = params[f"w{i}"]
            return jnp.concatenate([wb_, wr], axis=0), bb + br   # (2C,C) bf16, (1,C) f32

        xb, xn = lift_norm(x, *params["p"])                  # lift + InstanceNorm, both bf16
        for i in range(3):
            xc = spectral_conv(xn, *params[f"conv{i}"], modes1, modes2)
            wcat, bcat = stacked(i)
            xb, xn = layer_tail(xc, xb, params[f"mlp{i}a"], wcat, bcat)
        # last layer (no final GELU) fused with the q head
        xc = spectral_conv(xn, *params["conv3"], modes1, modes2)
        wcat, bcat = stacked(3)
        x = final_tail_head(xc, xb, params["mlp3a"], wcat, bcat,
                            params["qa"], params["qb"])      # (B,H,W,1) f32
    else:
        x = _pointwise_ref(x, *params["p"])
        for i in range(4):
            xn = _inorm_ref(x)
            xc = _spectral_conv_ref(xn, *params[f"conv{i}"], modes1, modes2)
            x1 = _pointwise_ref(_inorm_ref(xc), *params[f"mlp{i}a"], activation="gelu")
            x1 = _pointwise_ref(x1, *params[f"mlp{i}b"])
            x2 = _pointwise_ref(x, *params[f"w{i}"])
            x = x1 + x2
            if i < 3:
                x = jax.nn.gelu(x, approximate=False)
        x = _pointwise_ref(x, *params["qa"], activation="gelu")
        x = _pointwise_ref(x, *params["qb"])
    return jnp.transpose(x, (0, 3, 1, 2))                   # back to NCHW (B,1,H,W)


def init_params(key, width, modes1, modes2):
    keys = jax.random.split(key, 64)
    kit = iter(keys)

    def lin(cin, cout):
        w = (jax.random.uniform(next(kit), (cin, cout), jnp.float32, -1.0, 1.0)
             / np.sqrt(cin)).astype(jnp.bfloat16)           # bf16 weights: native MXU rate
        b = jax.random.uniform(next(kit), (1, cout), jnp.float32, -1.0, 1.0) / np.sqrt(cin)
        return w, b

    scale = 1.0 / (width * width)

    def spec_w():
        wr = (scale * jax.random.uniform(next(kit), (modes1 * modes2, width, width),
                                         jnp.float32)).astype(jnp.bfloat16)
        wi = (scale * jax.random.uniform(next(kit), (modes1 * modes2, width, width),
                                         jnp.float32)).astype(jnp.bfloat16)
        return wr, wi

    params = {"p": lin(3, width)}
    for i in range(4):
        params[f"conv{i}"] = (*spec_w(), *spec_w())
        params[f"mlp{i}a"] = lin(width, width)
        params[f"mlp{i}b"] = lin(width, width)
        params[f"w{i}"] = lin(width, width)
    params["qa"] = lin(width, 4 * width)
    params["qb"] = lin(4 * width, 1)
    return params


if __name__ == "__main__":
    modes1, modes2, width = 4, 4, 32
    B, H, W = 2, 16, 16

    key = jax.random.PRNGKey(0)
    kx, kp = jax.random.split(key)
    x = jax.random.normal(kx, (B, 1, H, W), jnp.float32)    # PyTorch-style NCHW input
    params = init_params(kp, width, modes1, modes2)

    fwd = jax.jit(functools.partial(fno2d_forward, modes1=modes1, modes2=modes2,
                                    use_pallas=True))
    out = jax.block_until_ready(fwd(x, params))
    assert out.shape == (B, 1, H, W) and out.dtype == jnp.float32

    ref = fno2d_forward(x, params, modes1, modes2, use_pallas=False)
    err = float(jnp.max(jnp.abs(out - ref)))
    ref_scale = float(jnp.max(jnp.abs(ref)))
    # kernels use bf16 MXU operands + bf16 activations at HBM boundaries (f32 accumulation
    # and f32 norm statistics) -> compare relative to output scale with a loose tolerance.
    assert err <= 7.5e-2 * max(1.0, ref_scale), f"mismatch vs reference: {err} (scale {ref_scale})"
    print("KERNEL_OK")
</pallas_src>

<mosaic_0001>
module attributes {stable_mosaic.version = 11 : i64} {
  func.func @_lift_norm_kernel(%arg0: i32, %arg1: memref<1x256x3xf32, #tpu.memory_space<vmem>>, %arg2: memref<3x32xbf16, #tpu.memory_space<vmem>>, %arg3: memref<1x32xf32, #tpu.memory_space<vmem>>, %arg4: memref<1x256x32xbf16, #tpu.memory_space<vmem>>, %arg5: memref<1x256x32xbf16, #tpu.memory_space<vmem>>) attributes {dimension_semantics = [#tpu.dimension_semantics<parallel>], iteration_bounds = array<i64: 2>, scalar_prefetch = 0 : i64, scratch_operands = 0 : i64, tpu.core_type = #tpu.core_type<tc>, window_params = [{transform_indices = @transform_0, window_bounds = array<i64: 1, 256, 3>}, {pipeline_mode = #tpu.pipeline_mode<synchronous>, transform_indices = @transform_1, window_bounds = array<i64: 3, 32>}, {pipeline_mode = #tpu.pipeline_mode<synchronous>, transform_indices = @transform_2, window_bounds = array<i64: 1, 32>}, {transform_indices = @transform_3, window_bounds = array<i64: 1, 256, 32>}, {transform_indices = @transform_4, window_bounds = array<i64: 1, 256, 32>}]} {
    %c0 = arith.constant 0 : index
    %c0_0 = arith.constant 0 : index
    %c0_1 = arith.constant 0 : index
    %0 = vector.load %arg1[%c0, %c0_0, %c0_1] : memref<1x256x3xf32, #tpu.memory_space<vmem>>, vector<1x256x3xf32>
    %1 = vector.shape_cast %0 : vector<1x256x3xf32> to vector<256x3xf32>
    %2 = arith.truncf %1 : vector<256x3xf32> to vector<256x3xbf16>
    %c0_2 = arith.constant 0 : index
    %c0_3 = arith.constant 0 : index
    %3 = vector.load %arg2[%c0_2, %c0_3] : memref<3x32xbf16, #tpu.memory_space<vmem>>, vector<3x32xbf16>
    %cst = arith.constant dense<0.000000e+00> : vector<256x32xf32>
    %4 = tpu.matmul %2, %3, %cst {dimension_numbers = #tpu.dot_dimension_numbers<[1], [0], [0], [1], [0, 0, 1, 1], [], []>} : vector<256x3xbf16>, vector<3x32xbf16>, vector<256x32xf32> -> vector<256x32xf32>
    %c0_4 = arith.constant 0 : index
    %c0_5 = arith.constant 0 : index
    %5 = vector.load %arg3[%c0_4, %c0_5] : memref<1x32xf32, #tpu.memory_space<vmem>>, vector<1x32xf32>
    %6 = vector.broadcast %5 : vector<1x32xf32> to vector<256x32xf32>
    %7 = arith.addf %4, %6 : vector<256x32xf32>
    %8 = arith.truncf %7 : vector<256x32xf32> to vector<256x32xbf16>
    %c0_6 = arith.constant 0 : index
    %c0_7 = arith.constant 0 : index
    %c0_8 = arith.constant 0 : index
    %9 = vector.load %arg4[%c0_6, %c0_7, %c0_8] : memref<1x256x32xbf16, #tpu.memory_space<vmem>>, vector<1x256x32xbf16>
    %10 = vector.shape_cast %9 : vector<1x256x32xbf16> to vector<256x32xbf16>
    %11 = vector.shape_cast %8 : vector<256x32xbf16> to vector<1x256x32xbf16>
    tpu.vector_store %arg4[%c0_6, %c0_7, %c0_8], %11 {strides = array<i32>} : memref<1x256x32xbf16, #tpu.memory_space<vmem>>, vector<1x256x32xbf16>,
    %cst_9 = arith.constant dense<0.000000e+00> : vector<32xf32>
    %12 = vector.multi_reduction <add>, %7, %cst_9 [0] : vector<256x32xf32> to vector<32xf32>
    %13 = vector.shape_cast %12 : vector<32xf32> to vector<1x32xf32>
    %cst_10 = arith.constant 2.560000e+02 : f32
    %14 = vector.broadcast %cst_10 : f32 to vector<1x32xf32>
    %15 = arith.divf %13, %14 : vector<1x32xf32>
    %16 = vector.broadcast %15 : vector<1x32xf32> to vector<256x32xf32>
    %17 = arith.subf %7, %16 : vector<256x32xf32>
    %18 = arith.mulf %17, %17 : vector<256x32xf32>
    %cst_11 = arith.constant dense<0.000000e+00> : vector<32xf32>
    %19 = vector.multi_reduction <add>, %18, %cst_11 [0] : vector<256x32xf32> to vector<32xf32>
    %20 = vector.shape_cast %19 : vector<32xf32> to vector<1x32xf32>
    %cst_12 = arith.constant 2.560000e+02 : f32
    %21 = vector.broadcast %cst_12 : f32 to vector<1x32xf32>
    %22 = arith.divf %20, %21 : vector<1x32xf32>
    %cst_13 = arith.constant 9.99999974E-6 : f32
    %23 = vector.broadcast %cst_13 : f32 to vector<1x32xf32>
    %24 = arith.addf %22, %23 : vector<1x32xf32>
    %25 = math.rsqrt %24 : vector<1x32xf32>
    %26 = vector.broadcast %25 : vector<1x32xf32> to vector<256x32xf32>
    %27 = arith.mulf %17, %26 : vector<256x32xf32>
    %28 = arith.truncf %27 : vector<256x32xf32> to vector<256x32xbf16>
    %c0_14 = arith.constant 0 : index
    %c0_15 = arith.constant 0 : index
    %c0_16 = arith.constant 0 : index
    %29 = vector.load %arg5[%c0_14, %c0_15, %c0_16] : memref<1x256x32xbf16, #tpu.memory_space<vmem>>, vector<1x256x32xbf16>
    %30 = vector.shape_cast %29 : vector<1x256x32xbf16> to vector<256x32xbf16>
    %31 = vector.shape_cast %28 : vector<256x32xbf16> to vector<1x256x32xbf16>
    tpu.vector_store %arg5[%c0_14, %c0_15, %c0_16], %31 {strides = array<i32>} : memref<1x256x32xbf16, #tpu.memory_space<vmem>>, vector<1x256x32xbf16>,
    return
  }
  func.func @transform_0(%arg0: i32) -> (i32, i32, i32) {
    %c0_i32 = arith.constant 0 : i32
    %c0_i32_0 = arith.constant 0 : i32
    %c0_i32_1 = arith.constant 0 : i32
    return %arg0, %c0_i32, %c0_i32_0 : i32, i32, i32
  }
  func.func @transform_1(%arg0: i32) -> (i32, i32) {
    %c0_i32 = arith.constant 0 : i32
    %c0_i32_0 = arith.constant 0 : i32
    %c0_i32_1 = arith.constant 0 : i32
    return %c0_i32, %c0_i32_0 : i32, i32
  }
  func.func @transform_2(%arg0: i32) -> (i32, i32) {
    %c0_i32 = arith.constant 0 : i32
    %c0_i32_0 = arith.constant 0 : i32
    %c0_i32_1 = arith.constant 0 : i32
    return %c0_i32, %c0_i32_0 : i32, i32
  }
  func.func @transform_3(%arg0: i32) -> (i32, i32, i32) {
    %c0_i32 = arith.constant 0 : i32
    %c0_i32_0 = arith.constant 0 : i32
    %c0_i32_1 = arith.constant 0 : i32
    return %arg0, %c0_i32, %c0_i32_0 : i32, i32, i32
  }
  func.func @transform_4(%arg0: i32) -> (i32, i32, i32) {
    %c0_i32 = arith.constant 0 : i32
    %c0_i32_0 = arith.constant 0 : i32
    %c0_i32_1 = arith.constant 0 : i32
    return %arg0, %c0_i32, %c0_i32_0 : i32, i32, i32
  }
}

module attributes {stable_mosaic.version = 11 : i64} {
  func.func @_spectral_kernel(%arg0: i32, %arg1: memref<1x16x2x64xbf16, #tpu.memory_space<vmem>>, %arg2: memref<1x16x64x64xbf16, #tpu.memory_space<vmem>>, %arg3: memref<1x16x2x64xf32, #tpu.memory_space<vmem>>) attributes {dimension_semantics = [#tpu.dimension_semantics<parallel>], iteration_bounds = array<i64: 2>, scalar_prefetch = 0 : i64, scratch_operands = 0 : i64, tpu.core_type = #tpu.core_type<tc>, window_params = [{transform_indices = @transform_0, window_bounds = array<i64: 1, 16, 2, 64>}, {transform_indices = @transform_1, window_bounds = array<i64: 1, 16, 64, 64>}, {transform_indices = @transform_2, window_bounds = array<i64: 1, 16, 2, 64>}]} {
    %c0 = arith.constant 0 : index
    %c0_0 = arith.constant 0 : index
    %c0_1 = arith.constant 0 : index
    %c0_2 = arith.constant 0 : index
    %0 = vector.load %arg1[%c0, %c0_0, %c0_1, %c0_2] : memref<1x16x2x64xbf16, #tpu.memory_space<vmem>>, vector<1x16x2x64xbf16>
    %1 = vector.shape_cast %0 : vector<1x16x2x64xbf16> to vector<16x2x64xbf16>
    %c0_3 = arith.constant 0 : index
    %c0_4 = arith.constant 0 : index
    %c0_5 = arith.constant 0 : index
    %c0_6 = arith.constant 0 : index
    %2 = vector.load %arg2[%c0_3, %c0_4, %c0_5, %c0_6] : memref<1x16x64x64xbf16, #tpu.memory_space<vmem>>, vector<1x16x64x64xbf16>
    %3 = vector.shape_cast %2 : vector<1x16x64x64xbf16> to vector<16x64x64xbf16>
    %cst = arith.constant dense<0.000000e+00> : vector<16x2x64xf32>
    %4 = tpu.matmul %1, %3, %cst {dimension_numbers = #tpu.dot_dimension_numbers<[2], [1], [1], [2], [0, 0, 0, 1, 1, 2], [0], [0]>} : vector<16x2x64xbf16>, vector<16x64x64xbf16>, vector<16x2x64xf32> -> vector<16x2x64xf32>
    %c0_7 = arith.constant 0 : index
    %c0_8 = arith.constant 0 : index
    %c0_9 = arith.constant 0 : index
    %c0_10 = arith.constant 0 : index
    %5 = vector.load %arg3[%c0_7, %c0_8, %c0_9, %c0_10] : memref<1x16x2x64xf32, #tpu.memory_space<vmem>>, vector<1x16x2x64xf32>
    %6 = vector.shape_cast %5 : vector<1x16x2x64xf32> to vector<16x2x64xf32>
    %7 = vector.shape_cast %4 : vector<16x2x64xf32> to vector<1x16x2x64xf32>
    tpu.vector_store %arg3[%c0_7, %c0_8, %c0_9, %c0_10], %7 {strides = array<i32>} : memref<1x16x2x64xf32, #tpu.memory_space<vmem>>, vector<1x16x2x64xf32>,
    return
  }
  func.func @transform_0(%arg0: i32) -> (i32, i32, i32, i32) {
    %c0_i32 = arith.constant 0 : i32
    %c0_i32_0 = arith.constant 0 : i32
    %c0_i32_1 = arith.constant 0 : i32
    %c0_i32_2 = arith.constant 0 : i32
    return %arg0, %c0_i32, %c0_i32_0, %c0_i32_1 : i32, i32, i32, i32
  }
  func.func @transform_1(%arg0: i32) -> (i32, i32, i32, i32) {
    %c0_i32 = arith.constant 0 : i32
    %c0_i32_0 = arith.constant 0 : i32
    %c0_i32_1 = arith.constant 0 : i32
    %c0_i32_2 = arith.constant 0 : i32
    return %arg0, %c0_i32, %c0_i32_0, %c0_i32_1 : i32, i32, i32, i32
  }
  func.func @transform_2(%arg0: i32) -> (i32, i32, i32, i32) {
    %c0_i32 = arith.constant 0 : i32
    %c0_i32_0 = arith.constant 0 : i32
    %c0_i32_1 = arith.constant 0 : i32
    %c0_i32_2 = arith.constant 0 : i32
    return %arg0, %c0_i32, %c0_i32_0, %c0_i32_1 : i32, i32, i32, i32
  }
}

module attributes {stable_mosaic.version = 11 : i64} {
  func.func @_layer_tail_kernel(%arg0: i32, %arg1: memref<1x256x32xbf16, #tpu.memory_space<vmem>>, %arg2: memref<1x256x32xbf16, #tpu.memory_space<vmem>>, %arg3: memref<32x32xbf16, #tpu.memory_space<vmem>>, %arg4: memref<1x32xf32, #tpu.memory_space<vmem>>, %arg5: memref<64x32xbf16, #tpu.memory_space<vmem>>, %arg6: memref<1x32xf32, #tpu.memory_space<vmem>>, %arg7: memref<1x256x32xbf16, #tpu.memory_space<vmem>>, %arg8: memref<1x256x32xbf16, #tpu.memory_space<vmem>>) attributes {dimension_semantics = [#tpu.dimension_semantics<parallel>], iteration_bounds = array<i64: 2>, scalar_prefetch = 0 : i64, scratch_operands = 0 : i64, tpu.core_type = #tpu.core_type<tc>, window_params = [{transform_indices = @transform_0, window_bounds = array<i64: 1, 256, 32>}, {transform_indices = @transform_1, window_bounds = array<i64: 1, 256, 32>}, {pipeline_mode = #tpu.pipeline_mode<synchronous>, transform_indices = @transform_2, window_bounds = array<i64: 32, 32>}, {pipeline_mode = #tpu.pipeline_mode<synchronous>, transform_indices = @transform_3, window_bounds = array<i64: 1, 32>}, {pipeline_mode = #tpu.pipeline_mode<synchronous>, transform_indices = @transform_4, window_bounds = array<i64: 64, 32>}, {pipeline_mode = #tpu.pipeline_mode<synchronous>, transform_indices = @transform_5, window_bounds = array<i64: 1, 32>}, {transform_indices = @transform_6, window_bounds = array<i64: 1, 256, 32>}, {transform_indices = @transform_7, window_bounds = array<i64: 1, 256, 32>}]} {
    %c0 = arith.constant 0 : index
    %c0_0 = arith.constant 0 : index
    %c0_1 = arith.constant 0 : index
    %0 = vector.load %arg1[%c0, %c0_0, %c0_1] : memref<1x256x32xbf16, #tpu.memory_space<vmem>>, vector<1x256x32xbf16>
    %1 = vector.shape_cast %0 : vector<1x256x32xbf16> to vector<256x32xbf16>
    %2 = arith.extf %1 : vector<256x32xbf16> to vector<256x32xf32>
    %cst = arith.constant dense<0.000000e+00> : vector<32xf32>
    %3 = vector.multi_reduction <add>, %2, %cst [0] : vector<256x32xf32> to vector<32xf32>
    %4 = vector.shape_cast %3 : vector<32xf32> to vector<1x32xf32>
    %cst_2 = arith.constant 2.560000e+02 : f32
    %5 = vector.broadcast %cst_2 : f32 to vector<1x32xf32>
    %6 = arith.divf %4, %5 : vector<1x32xf32>
    %7 = vector.broadcast %6 : vector<1x32xf32> to vector<256x32xf32>
    %8 = arith.subf %2, %7 : vector<256x32xf32>
    %9 = arith.mulf %8, %8 : vector<256x32xf32>
    %cst_3 = arith.constant dense<0.000000e+00> : vector<32xf32>
    %10 = vector.multi_reduction <add>, %9, %cst_3 [0] : vector<256x32xf32> to vector<32xf32>
    %11 = vector.shape_cast %10 : vector<32xf32> to vector<1x32xf32>
    %cst_4 = arith.constant 2.560000e+02 : f32
    %12 = vector.broadcast %cst_4 : f32 to vector<1x32xf32>
    %13 = arith.divf %11, %12 : vector<1x32xf32>
    %cst_5 = arith.constant 9.99999974E-6 : f32
    %14 = vector.broadcast %cst_5 : f32 to vector<1x32xf32>
    %15 = arith.addf %13, %14 : vector<1x32xf32>
    %16 = math.rsqrt %15 : vector<1x32xf32>
    %17 = vector.broadcast %16 : vector<1x32xf32> to vector<256x32xf32>
    %18 = arith.mulf %8, %17 : vector<256x32xf32>
    %19 = arith.truncf %18 : vector<256x32xf32> to vector<256x32xbf16>
    %c0_6 = arith.constant 0 : index
    %c0_7 = arith.constant 0 : index
    %20 = vector.load %arg3[%c0_6, %c0_7] : memref<32x32xbf16, #tpu.memory_space<vmem>>, vector<32x32xbf16>
    %cst_8 = arith.constant dense<0.000000e+00> : vector<256x32xf32>
    %21 = tpu.matmul %19, %20, %cst_8 {dimension_numbers = #tpu.dot_dimension_numbers<[1], [0], [0], [1], [0, 0, 1, 1], [], []>} : vector<256x32xbf16>, vector<32x32xbf16>, vector<256x32xf32> -> vector<256x32xf32>
    %c0_9 = arith.constant 0 : index
    %c0_10 = arith.constant 0 : index
    %22 = vector.load %arg4[%c0_9, %c0_10] : memref<1x32xf32, #tpu.memory_space<vmem>>, vector<1x32xf32>
    %23 = vector.broadcast %22 : vector<1x32xf32> to vector<256x32xf32>
    %24 = arith.addf %21, %23 : vector<256x32xf32>
    %cst_11 = arith.constant 5.000000e-01 : f32
    %25 = vector.broadcast %cst_11 : f32 to vector<256x32xf32>
    %26 = arith.mulf %25, %24 : vector<256x32xf32>
    %cst_12 = arith.constant 0.707106769 : f32
    %27 = vector.broadcast %cst_12 : f32 to vector<256x32xf32>
    %28 = arith.mulf %24, %27 : vector<256x32xf32>
    %cst_13 = arith.constant 0.000000e+00 : f32
    %29 = vector.broadcast %cst_13 : f32 to vector<256x32xf32>
    %30 = arith.cmpf oge, %28, %29 : vector<256x32xf32>
    %cst_14 = arith.constant 1.000000e+00 : f32
    %cst_15 = arith.constant -1.000000e+00 : f32
    %31 = vector.broadcast %cst_14 : f32 to vector<256x32xf32>
    %32 = vector.broadcast %cst_15 : f32 to vector<256x32xf32>
    %33 = arith.select %30, %31, %32 : vector<256x32xi1>, vector<256x32xf32>
    %34 = math.absf %28 : vector<256x32xf32>
    %cst_16 = arith.constant 0.327591091 : f32
    %35 = vector.broadcast %cst_16 : f32 to vector<256x32xf32>
    %36 = arith.mulf %35, %34 : vector<256x32xf32>
    %cst_17 = arith.constant 1.000000e+00 : f32
    %37 = vector.broadcast %cst_17 : f32 to vector<256x32xf32>
    %38 = arith.addf %37, %36 : vector<256x32xf32>
    %39 = tpu.reciprocal %38 {approx = true} : vector<256x32xf32> -> vector<256x32xf32>
    %cst_18 = arith.constant 1.06140542 : f32
    %40 = vector.broadcast %cst_18 : f32 to vector<256x32xf32>
    %41 = arith.mulf %40, %39 : vector<256x32xf32>
    %cst_19 = arith.constant -1.45315206 : f32
    %42 = vector.broadcast %cst_19 : f32 to vector<256x32xf32>
    %43 = arith.addf %41, %42 : vector<256x32xf32>
    %44 = arith.mulf %43, %39 : vector<256x32xf32>
    %cst_20 = arith.constant 1.42141378 : f32
    %45 = vector.broadcast %cst_20 : f32 to vector<256x32xf32>
    %46 = arith.addf %44, %45 : vector<256x32xf32>
    %47 = arith.mulf %46, %39 : vector<256x32xf32>
    %cst_21 = arith.constant -0.284496725 : f32
    %48 = vector.broadcast %cst_21 : f32 to vector<256x32xf32>
    %49 = arith.addf %47, %48 : vector<256x32xf32>
    %50 = arith.mulf %49, %39 : vector<256x32xf32>
    %cst_22 = arith.constant 0.254829586 : f32
    %51 = vector.broadcast %cst_22 : f32 to vector<256x32xf32>
    %52 = arith.addf %50, %51 : vector<256x32xf32>
    %53 = arith.mulf %52, %39 : vector<256x32xf32>
    %cst_23 = arith.constant 0.000000e+00 : f32
    %54 = vector.broadcast %cst_23 : f32 to vector<256x32xf32>
    %55 = arith.subf %54, %34 : vector<256x32xf32>
    %56 = arith.mulf %55, %34 : vector<256x32xf32>
    %57 = math.exp %56 : vector<256x32xf32>
    %58 = arith.mulf %53, %57 : vector<256x32xf32>
    %cst_24 = arith.constant 1.000000e+00 : f32
    %59 = vector.broadcast %cst_24 : f32 to vector<256x32xf32>
    %60 = arith.subf %59, %58 : vector<256x32xf32>
    %61 = arith.mulf %33, %60 : vector<256x32xf32>
    %cst_25 = arith.constant 1.000000e+00 : f32
    %62 = vector.broadcast %cst_25 : f32 to vector<256x32xf32>
    %63 = arith.addf %62, %61 : vector<256x32xf32>
    %64 = arith.mulf %26, %63 : vector<256x32xf32>
    %65 = arith.truncf %64 : vector<256x32xf32> to vector<256x32xbf16>
    %c0_26 = arith.constant 0 : index
    %c0_27 = arith.constant 0 : index
    %c0_28 = arith.constant 0 : index
    %66 = vector.load %arg2[%c0_26, %c0_27, %c0_28] : memref<1x256x32xbf16, #tpu.memory_space<vmem>>, vector<1x256x32xbf16>
    %67 = vector.shape_cast %66 : vector<1x256x32xbf16> to vector<256x32xbf16>
    %68 = tpu.concatenate %65, %67 in 1 : vector<256x32xbf16>, vector<256x32xbf16> -> vector<256x64xbf16>
    %c0_29 = arith.constant 0 : index
    %c0_30 = arith.constant 0 : index
    %69 = vector.load %arg5[%c0_29, %c0_30] : memref<64x32xbf16, #tpu.memory_space<vmem>>, vector<64x32xbf16>
    %cst_31 = arith.constant dense<0.000000e+00> : vector<256x32xf32>
    %70 = tpu.matmul %68, %69, %cst_31 {dimension_numbers = #tpu.dot_dimension_numbers<[1], [0], [0], [1], [0, 0, 1, 1], [], []>} : vector<256x64xbf16>, vector<64x32xbf16>, vector<256x32xf32> -> vector<256x32xf32>
    %c0_32 = arith.constant 0 : index
    %c0_33 = arith.constant 0 : index
    %71 = vector.load %arg6[%c0_32, %c0_33] : memref<1x32xf32, #tpu.memory_space<vmem>>, vector<1x32xf32>
    %72 = vector.broadcast %71 : vector<1x32xf32> to vector<256x32xf32>
    %73 = arith.addf %70, %72 : vector<256x32xf32>
    %cst_34 = arith.constant 5.000000e-01 : f32
    %74 = vector.broadcast %cst_34 : f32 to vector<256x32xf32>
    %75 = arith.mulf %74, %73 : vector<256x32xf32>
    %cst_35 = arith.constant 0.707106769 : f32
    %76 = vector.broadcast %cst_35 : f32 to vector<256x32xf32>
    %77 = arith.mulf %73, %76 : vector<256x32xf32>
    %cst_36 = arith.constant 0.000000e+00 : f32
    %78 = vector.broadcast %cst_36 : f32 to vector<256x32xf32>
    %79 = arith.cmpf oge, %77, %78 : vector<256x32xf32>
    %cst_37 = arith.constant 1.000000e+00 : f32
    %cst_38 = arith.constant -1.000000e+00 : f32
    %80 = vector.broadcast %cst_37 : f32 to vector<256x32xf32>
    %81 = vector.broadcast %cst_38 : f32 to vector<256x32xf32>
    %82 = arith.select %79, %80, %81 : vector<256x32xi1>, vector<256x32xf32>
    %83 = math.absf %77 : vector<256x32xf32>
    %cst_39 = arith.constant 0.327591091 : f32
    %84 = vector.broadcast %cst_39 : f32 to vector<256x32xf32>
    %85 = arith.mulf %84, %83 : vector<256x32xf32>
    %cst_40 = arith.constant 1.000000e+00 : f32
    %86 = vector.broadcast %cst_40 : f32 to vector<256x32xf32>
    %87 = arith.addf %86, %85 : vector<256x32xf32>
    %88 = tpu.reciprocal %87 {approx = true} : vector<256x32xf32> -> vector<256x32xf32>
    %cst_41 = arith.constant 1.06140542 : f32
    %89 = vector.broadcast %cst_41 : f32 to vector<256x32xf32>
    %90 = arith.mulf %89, %88 : vector<256x32xf32>
    %cst_42 = arith.constant -1.45315206 : f32
    %91 = vector.broadcast %cst_42 : f32 to vector<256x32xf32>
    %92 = arith.addf %90, %91 : vector<256x32xf32>
    %93 = arith.mulf %92, %88 : vector<256x32xf32>
    %cst_43 = arith.constant 1.42141378 : f32
    %94 = vector.broadcast %cst_43 : f32 to vector<256x32xf32>
    %95 = arith.addf %93, %94 : vector<256x32xf32>
    %96 = arith.mulf %95, %88 : vector<256x32xf32>
    %cst_44 = arith.constant -0.284496725 : f32
    %97 = vector.broadcast %cst_44 : f32 to vector<256x32xf32>
    %98 = arith.addf %96, %97 : vector<256x32xf32>
    %99 = arith.mulf %98, %88 : vector<256x32xf32>
    %cst_45 = arith.constant 0.254829586 : f32
    %100 = vector.broadcast %cst_45 : f32 to vector<256x32xf32>
    %101 = arith.addf %99, %100 : vector<256x32xf32>
    %102 = arith.mulf %101, %88 : vector<256x32xf32>
    %cst_46 = arith.constant 0.000000e+00 : f32
    %103 = vector.broadcast %cst_46 : f32 to vector<256x32xf32>
    %104 = arith.subf %103, %83 : vector<256x32xf32>
    %105 = arith.mulf %104, %83 : vector<256x32xf32>
    %106 = math.exp %105 : vector<256x32xf32>
    %107 = arith.mulf %102, %106 : vector<256x32xf32>
    %cst_47 = arith.constant 1.000000e+00 : f32
    %108 = vector.broadcast %cst_47 : f32 to vector<256x32xf32>
    %109 = arith.subf %108, %107 : vector<256x32xf32>
    %110 = arith.mulf %82, %109 : vector<256x32xf32>
    %cst_48 = arith.constant 1.000000e+00 : f32
    %111 = vector.broadcast %cst_48 : f32 to vector<256x32xf32>
    %112 = arith.addf %111, %110 : vector<256x32xf32>
    %113 = arith.mulf %75, %112 : vector<256x32xf32>
    %114 = arith.truncf %113 : vector<256x32xf32> to vector<256x32xbf16>
    %c0_49 = arith.constant 0 : index
    %c0_50 = arith.constant 0 : index
    %c0_51 = arith.constant 0 : index
    %115 = vector.load %arg7[%c0_49, %c0_50, %c0_51] : memref<1x256x32xbf16, #tpu.memory_space<vmem>>, vector<1x256x32xbf16>
    %116 = vector.shape_cast %115 : vector<1x256x32xbf16> to vector<256x32xbf16>
    %117 = vector.shape_cast %114 : vector<256x32xbf16> to vector<1x256x32xbf16>
    tpu.vector_store %arg7[%c0_49, %c0_50, %c0_51], %117 {strides = array<i32>} : memref<1x256x32xbf16, #tpu.memory_space<vmem>>, vector<1x256x32xbf16>,
    %cst_52 = arith.constant dense<0.000000e+00> : vector<32xf32>
    %118 = vector.multi_reduction <add>, %113, %cst_52 [0] : vector<256x32xf32> to vector<32xf32>
    %119 = vector.shape_cast %118 : vector<32xf32> to vector<1x32xf32>
    %cst_53 = arith.constant 2.560000e+02 : f32
    %120 = vector.broadcast %cst_53 : f32 to vector<1x32xf32>
    %121 = arith.divf %119, %120 : vector<1x32xf32>
    %122 = vector.broadcast %121 : vector<1x32xf32> to vector<256x32xf32>
    %123 = arith.subf %113, %122 : vector<256x32xf32>
    %124 = arith.mulf %123, %123 : vector<256x32xf32>
    %cst_54 = arith.constant dense<0.000000e+00> : vector<32xf32>
    %125 = vector.multi_reduction <add>, %124, %cst_54 [0] : vector<256x32xf32> to vector<32xf32>
    %126 = vector.shape_cast %125 : vector<32xf32> to vector<1x32xf32>
    %cst_55 = arith.constant 2.560000e+02 : f32
    %127 = vector.broadcast %cst_55 : f32 to vector<1x32xf32>
    %128 = arith.divf %126, %127 : vector<1x32xf32>
    %cst_56 = arith.constant 9.99999974E-6 : f32
    %129 = vector.broadcast %cst_56 : f32 to vector<1x32xf32>
    %130 = arith.addf %128, %129 : vector<1x32xf32>
    %131 = math.rsqrt %130 : vector<1x32xf32>
    %132 = vector.broadcast %131 : vector<1x32xf32> to vector<256x32xf32>
    %133 = arith.mulf %123, %132 : vector<256x32xf32>
    %134 = arith.truncf %133 : vector<256x32xf32> to vector<256x32xbf16>
    %c0_57 = arith.constant 0 : index
    %c0_58 = arith.constant 0 : index
    %c0_59 = arith.constant 0 : index
    %135 = vector.load %arg8[%c0_57, %c0_58, %c0_59] : memref<1x256x32xbf16, #tpu.memory_space<vmem>>, vector<1x256x32xbf16>
    %136 = vector.shape_cast %135 : vector<1x256x32xbf16> to vector<256x32xbf16>
    %137 = vector.shape_cast %134 : vector<256x32xbf16> to vector<1x256x32xbf16>
    tpu.vector_store %arg8[%c0_57, %c0_58, %c0_59], %137 {strides = array<i32>} : memref<1x256x32xbf16, #tpu.memory_space<vmem>>, vector<1x256x32xbf16>,
    return
  }
  func.func @transform_0(%arg0: i32) -> (i32, i32, i32) {
    %c0_i32 = arith.constant 0 : i32
    %c0_i32_0 = arith.constant 0 : i32
    %c0_i32_1 = arith.constant 0 : i32
    return %arg0, %c0_i32, %c0_i32_0 : i32, i32, i32
  }
  func.func @transform_1(%arg0: i32) -> (i32, i32, i32) {
    %c0_i32 = arith.constant 0 : i32
    %c0_i32_0 = arith.constant 0 : i32
    %c0_i32_1 = arith.constant 0 : i32
    return %arg0, %c0_i32, %c0_i32_0 : i32, i32, i32
  }
  func.func @transform_2(%arg0: i32) -> (i32, i32) {
    %c0_i32 = arith.constant 0 : i32
    %c0_i32_0 = arith.constant 0 : i32
    %c0_i32_1 = arith.constant 0 : i32
    return %c0_i32, %c0_i32_0 : i32, i32
  }
  func.func @transform_3(%arg0: i32) -> (i32, i32) {
    %c0_i32 = arith.constant 0 : i32
    %c0_i32_0 = arith.constant 0 : i32
    %c0_i32_1 = arith.constant 0 : i32
    return %c0_i32, %c0_i32_0 : i32, i32
  }
  func.func @transform_4(%arg0: i32) -> (i32, i32) {
    %c0_i32 = arith.constant 0 : i32
    %c0_i32_0 = arith.constant 0 : i32
    %c0_i32_1 = arith.constant 0 : i32
    return %c0_i32, %c0_i32_0 : i32, i32
  }
  func.func @transform_5(%arg0: i32) -> (i32, i32) {
    %c0_i32 = arith.constant 0 : i32
    %c0_i32_0 = arith.constant 0 : i32
    %c0_i32_1 = arith.constant 0 : i32
    return %c0_i32, %c0_i32_0 : i32, i32
  }
  func.func @transform_6(%arg0: i32) -> (i32, i32, i32) {
    %c0_i32 = arith.constant 0 : i32
    %c0_i32_0 = arith.constant 0 : i32
    %c0_i32_1 = arith.constant 0 : i32
    return %arg0, %c0_i32, %c0_i32_0 : i32, i32, i32
  }
  func.func @transform_7(%arg0: i32) -> (i32, i32, i32) {
    %c0_i32 = arith.constant 0 : i32
    %c0_i32_0 = arith.constant 0 : i32
    %c0_i32_1 = arith.constant 0 : i32
    return %arg0, %c0_i32, %c0_i32_0 : i32, i32, i32
  }
}

module attributes {stable_mosaic.version = 11 : i64} {
  func.func @_final_tail_head_kernel(%arg0: i32, %arg1: memref<1x256x32xbf16, #tpu.memory_space<vmem>>, %arg2: memref<1x256x32xbf16, #tpu.memory_space<vmem>>, %arg3: memref<32x32xbf16, #tpu.memory_space<vmem>>, %arg4: memref<1x32xf32, #tpu.memory_space<vmem>>, %arg5: memref<64x32xbf16, #tpu.memory_space<vmem>>, %arg6: memref<1x32xf32, #tpu.memory_space<vmem>>, %arg7: memref<32x128xbf16, #tpu.memory_space<vmem>>, %arg8: memref<1x128xf32, #tpu.memory_space<vmem>>, %arg9: memref<128x1xbf16, #tpu.memory_space<vmem>>, %arg10: memref<1x1xf32, #tpu.memory_space<vmem>>, %arg11: memref<1x256x1xf32, #tpu.memory_space<vmem>>) attributes {dimension_semantics = [#tpu.dimension_semantics<parallel>], iteration_bounds = array<i64: 2>, scalar_prefetch = 0 : i64, scratch_operands = 0 : i64, tpu.core_type = #tpu.core_type<tc>, window_params = [{transform_indices = @transform_0, window_bounds = array<i64: 1, 256, 32>}, {transform_indices = @transform_1, window_bounds = array<i64: 1, 256, 32>}, {pipeline_mode = #tpu.pipeline_mode<synchronous>, transform_indices = @transform_2, window_bounds = array<i64: 32, 32>}, {pipeline_mode = #tpu.pipeline_mode<synchronous>, transform_indices = @transform_3, window_bounds = array<i64: 1, 32>}, {pipeline_mode = #tpu.pipeline_mode<synchronous>, transform_indices = @transform_4, window_bounds = array<i64: 64, 32>}, {pipeline_mode = #tpu.pipeline_mode<synchronous>, transform_indices = @transform_5, window_bounds = array<i64: 1, 32>}, {pipeline_mode = #tpu.pipeline_mode<synchronous>, transform_indices = @transform_6, window_bounds = array<i64: 32, 128>}, {pipeline_mode = #tpu.pipeline_mode<synchronous>, transform_indices = @transform_7, window_bounds = array<i64: 1, 128>}, {pipeline_mode = #tpu.pipeline_mode<synchronous>, transform_indices = @transform_8, window_bounds = array<i64: 128, 1>}, {pipeline_mode = #tpu.pipeline_mode<synchronous>, transform_indices = @transform_9, window_bounds = array<i64: 1, 1>}, {transform_indices = @transform_10, window_bounds = array<i64: 1, 256, 1>}]} {
    %c0 = arith.constant 0 : index
    %c0_0 = arith.constant 0 : index
    %c0_1 = arith.constant 0 : index
    %0 = vector.load %arg1[%c0, %c0_0, %c0_1] : memref<1x256x32xbf16, #tpu.memory_space<vmem>>, vector<1x256x32xbf16>
    %1 = vector.shape_cast %0 : vector<1x256x32xbf16> to vector<256x32xbf16>
    %2 = arith.extf %1 : vector<256x32xbf16> to vector<256x32xf32>
    %cst = arith.constant dense<0.000000e+00> : vector<32xf32>
    %3 = vector.multi_reduction <add>, %2, %cst [0] : vector<256x32xf32> to vector<32xf32>
    %4 = vector.shape_cast %3 : vector<32xf32> to vector<1x32xf32>
    %cst_2 = arith.constant 2.560000e+02 : f32
    %5 = vector.broadcast %cst_2 : f32 to vector<1x32xf32>
    %6 = arith.divf %4, %5 : vector<1x32xf32>
    %7 = vector.broadcast %6 : vector<1x32xf32> to vector<256x32xf32>
    %8 = arith.subf %2, %7 : vector<256x32xf32>
    %9 = arith.mulf %8, %8 : vector<256x32xf32>
    %cst_3 = arith.constant dense<0.000000e+00> : vector<32xf32>
    %10 = vector.multi_reduction <add>, %9, %cst_3 [0] : vector<256x32xf32> to vector<32xf32>
    %11 = vector.shape_cast %10 : vector<32xf32> to vector<1x32xf32>
    %cst_4 = arith.constant 2.560000e+02 : f32
    %12 = vector.broadcast %cst_4 : f32 to vector<1x32xf32>
    %13 = arith.divf %11, %12 : vector<1x32xf32>
    %cst_5 = arith.constant 9.99999974E-6 : f32
    %14 = vector.broadcast %cst_5 : f32 to vector<1x32xf32>
    %15 = arith.addf %13, %14 : vector<1x32xf32>
    %16 = math.rsqrt %15 : vector<1x32xf32>
    %17 = vector.broadcast %16 : vector<1x32xf32> to vector<256x32xf32>
    %18 = arith.mulf %8, %17 : vector<256x32xf32>
    %19 = arith.truncf %18 : vector<256x32xf32> to vector<256x32xbf16>
    %c0_6 = arith.constant 0 : index
    %c0_7 = arith.constant 0 : index
    %20 = vector.load %arg3[%c0_6, %c0_7] : memref<32x32xbf16, #tpu.memory_space<vmem>>, vector<32x32xbf16>
    %cst_8 = arith.constant dense<0.000000e+00> : vector<256x32xf32>
    %21 = tpu.matmul %19, %20, %cst_8 {dimension_numbers = #tpu.dot_dimension_numbers<[1], [0], [0], [1], [0, 0, 1, 1], [], []>} : vector<256x32xbf16>, vector<32x32xbf16>, vector<256x32xf32> -> vector<256x32xf32>
    %c0_9 = arith.constant 0 : index
    %c0_10 = arith.constant 0 : index
    %22 = vector.load %arg4[%c0_9, %c0_10] : memref<1x32xf32, #tpu.memory_space<vmem>>, vector<1x32xf32>
    %23 = vector.broadcast %22 : vector<1x32xf32> to vector<256x32xf32>
    %24 = arith.addf %21, %23 : vector<256x32xf32>
    %cst_11 = arith.constant 5.000000e-01 : f32
    %25 = vector.broadcast %cst_11 : f32 to vector<256x32xf32>
    %26 = arith.mulf %25, %24 : vector<256x32xf32>
    %cst_12 = arith.constant 0.707106769 : f32
    %27 = vector.broadcast %cst_12 : f32 to vector<256x32xf32>
    %28 = arith.mulf %24, %27 : vector<256x32xf32>
    %cst_13 = arith.constant 0.000000e+00 : f32
    %29 = vector.broadcast %cst_13 : f32 to vector<256x32xf32>
    %30 = arith.cmpf oge, %28, %29 : vector<256x32xf32>
    %cst_14 = arith.constant 1.000000e+00 : f32
    %cst_15 = arith.constant -1.000000e+00 : f32
    %31 = vector.broadcast %cst_14 : f32 to vector<256x32xf32>
    %32 = vector.broadcast %cst_15 : f32 to vector<256x32xf32>
    %33 = arith.select %30, %31, %32 : vector<256x32xi1>, vector<256x32xf32>
    %34 = math.absf %28 : vector<256x32xf32>
    %cst_16 = arith.constant 0.327591091 : f32
    %35 = vector.broadcast %cst_16 : f32 to vector<256x32xf32>
    %36 = arith.mulf %35, %34 : vector<256x32xf32>
    %cst_17 = arith.constant 1.000000e+00 : f32
    %37 = vector.broadcast %cst_17 : f32 to vector<256x32xf32>
    %38 = arith.addf %37, %36 : vector<256x32xf32>
    %39 = tpu.reciprocal %38 {approx = true} : vector<256x32xf32> -> vector<256x32xf32>
    %cst_18 = arith.constant 1.06140542 : f32
    %40 = vector.broadcast %cst_18 : f32 to vector<256x32xf32>
    %41 = arith.mulf %40, %39 : vector<256x32xf32>
    %cst_19 = arith.constant -1.45315206 : f32
    %42 = vector.broadcast %cst_19 : f32 to vector<256x32xf32>
    %43 = arith.addf %41, %42 : vector<256x32xf32>
    %44 = arith.mulf %43, %39 : vector<256x32xf32>
    %cst_20 = arith.constant 1.42141378 : f32
    %45 = vector.broadcast %cst_20 : f32 to vector<256x32xf32>
    %46 = arith.addf %44, %45 : vector<256x32xf32>
    %47 = arith.mulf %46, %39 : vector<256x32xf32>
    %cst_21 = arith.constant -0.284496725 : f32
    %48 = vector.broadcast %cst_21 : f32 to vector<256x32xf32>
    %49 = arith.addf %47, %48 : vector<256x32xf32>
    %50 = arith.mulf %49, %39 : vector<256x32xf32>
    %cst_22 = arith.constant 0.254829586 : f32
    %51 = vector.broadcast %cst_22 : f32 to vector<256x32xf32>
    %52 = arith.addf %50, %51 : vector<256x32xf32>
    %53 = arith.mulf %52, %39 : vector<256x32xf32>
    %cst_23 = arith.constant 0.000000e+00 : f32
    %54 = vector.broadcast %cst_23 : f32 to vector<256x32xf32>
    %55 = arith.subf %54, %34 : vector<256x32xf32>
    %56 = arith.mulf %55, %34 : vector<256x32xf32>
    %57 = math.exp %56 : vector<256x32xf32>
    %58 = arith.mulf %53, %57 : vector<256x32xf32>
    %cst_24 = arith.constant 1.000000e+00 : f32
    %59 = vector.broadcast %cst_24 : f32 to vector<256x32xf32>
    %60 = arith.subf %59, %58 : vector<256x32xf32>
    %61 = arith.mulf %33, %60 : vector<256x32xf32>
    %cst_25 = arith.constant 1.000000e+00 : f32
    %62 = vector.broadcast %cst_25 : f32 to vector<256x32xf32>
    %63 = arith.addf %62, %61 : vector<256x32xf32>
    %64 = arith.mulf %26, %63 : vector<256x32xf32>
    %65 = arith.truncf %64 : vector<256x32xf32> to vector<256x32xbf16>
    %c0_26 = arith.constant 0 : index
    %c0_27 = arith.constant 0 : index
    %c0_28 = arith.constant 0 : index
    %66 = vector.load %arg2[%c0_26, %c0_27, %c0_28] : memref<1x256x32xbf16, #tpu.memory_space<vmem>>, vector<1x256x32xbf16>
    %67 = vector.shape_cast %66 : vector<1x256x32xbf16> to vector<256x32xbf16>
    %68 = tpu.concatenate %65, %67 in 1 : vector<256x32xbf16>, vector<256x32xbf16> -> vector<256x64xbf16>
    %c0_29 = arith.constant 0 : index
    %c0_30 = arith.constant 0 : index
    %69 = vector.load %arg5[%c0_29, %c0_30] : memref<64x32xbf16, #tpu.memory_space<vmem>>, vector<64x32xbf16>
    %cst_31 = arith.constant dense<0.000000e+00> : vector<256x32xf32>
    %70 = tpu.matmul %68, %69, %cst_31 {dimension_numbers = #tpu.dot_dimension_numbers<[1], [0], [0], [1], [0, 0, 1, 1], [], []>} : vector<256x64xbf16>, vector<64x32xbf16>, vector<256x32xf32> -> vector<256x32xf32>
    %c0_32 = arith.constant 0 : index
    %c0_33 = arith.constant 0 : index
    %71 = vector.load %arg6[%c0_32, %c0_33] : memref<1x32xf32, #tpu.memory_space<vmem>>, vector<1x32xf32>
    %72 = vector.broadcast %71 : vector<1x32xf32> to vector<256x32xf32>
    %73 = arith.addf %70, %72 : vector<256x32xf32>
    %74 = arith.truncf %73 : vector<256x32xf32> to vector<256x32xbf16>
    %c0_34 = arith.constant 0 : index
    %c0_35 = arith.constant 0 : index
    %75 = vector.load %arg7[%c0_34, %c0_35] : memref<32x128xbf16, #tpu.memory_space<vmem>>, vector<32x128xbf16>
    %cst_36 = arith.constant dense<0.000000e+00> : vector<256x128xf32>
    %76 = tpu.matmul %74, %75, %cst_36 {dimension_numbers = #tpu.dot_dimension_numbers<[1], [0], [0], [1], [0, 0, 1, 1], [], []>} : vector<256x32xbf16>, vector<32x128xbf16>, vector<256x128xf32> -> vector<256x128xf32>
    %c0_37 = arith.constant 0 : index
    %c0_38 = arith.constant 0 : index
    %77 = vector.load %arg8[%c0_37, %c0_38] : memref<1x128xf32, #tpu.memory_space<vmem>>, vector<1x128xf32>
    %78 = vector.broadcast %77 : vector<1x128xf32> to vector<256x128xf32>
    %79 = arith.addf %76, %78 : vector<256x128xf32>
    %cst_39 = arith.constant 5.000000e-01 : f32
    %80 = vector.broadcast %cst_39 : f32 to vector<256x128xf32>
    %81 = arith.mulf %80, %79 : vector<256x128xf32>
    %cst_40 = arith.constant 0.707106769 : f32
    %82 = vector.broadcast %cst_40 : f32 to vector<256x128xf32>
    %83 = arith.mulf %79, %82 : vector<256x128xf32>
    %cst_41 = arith.constant 0.000000e+00 : f32
    %84 = vector.broadcast %cst_41 : f32 to vector<256x128xf32>
    %85 = arith.cmpf oge, %83, %84 : vector<256x128xf32>
    %cst_42 = arith.constant 1.000000e+00 : f32
    %cst_43 = arith.constant -1.000000e+00 : f32
    %86 = vector.broadcast %cst_42 : f32 to vector<256x128xf32>
    %87 = vector.broadcast %cst_43 : f32 to vector<256x128xf32>
    %88 = arith.select %85, %86, %87 : vector<256x128xi1>, vector<256x128xf32>
    %89 = math.absf %83 : vector<256x128xf32>
    %cst_44 = arith.constant 0.327591091 : f32
    %90 = vector.broadcast %cst_44 : f32 to vector<256x128xf32>
    %91 = arith.mulf %90, %89 : vector<256x128xf32>
    %cst_45 = arith.constant 1.000000e+00 : f32
    %92 = vector.broadcast %cst_45 : f32 to vector<256x128xf32>
    %93 = arith.addf %92, %91 : vector<256x128xf32>
    %94 = tpu.reciprocal %93 {approx = true} : vector<256x128xf32> -> vector<256x128xf32>
    %cst_46 = arith.constant 1.06140542 : f32
    %95 = vector.broadcast %cst_46 : f32 to vector<256x128xf32>
    %96 = arith.mulf %95, %94 : vector<256x128xf32>
    %cst_47 = arith.constant -1.45315206 : f32
    %97 = vector.broadcast %cst_47 : f32 to vector<256x128xf32>
    %98 = arith.addf %96, %97 : vector<256x128xf32>
    %99 = arith.mulf %98, %94 : vector<256x128xf32>
    %cst_48 = arith.constant 1.42141378 : f32
    %100 = vector.broadcast %cst_48 : f32 to vector<256x128xf32>
    %101 = arith.addf %99, %100 : vector<256x128xf32>
    %102 = arith.mulf %101, %94 : vector<256x128xf32>
    %cst_49 = arith.constant -0.284496725 : f32
    %103 = vector.broadcast %cst_49 : f32 to vector<256x128xf32>
    %104 = arith.addf %102, %103 : vector<256x128xf32>
    %105 = arith.mulf %104, %94 : vector<256x128xf32>
    %cst_50 = arith.constant 0.254829586 : f32
    %106 = vector.broadcast %cst_50 : f32 to vector<256x128xf32>
    %107 = arith.addf %105, %106 : vector<256x128xf32>
    %108 = arith.mulf %107, %94 : vector<256x128xf32>
    %cst_51 = arith.constant 0.000000e+00 : f32
    %109 = vector.broadcast %cst_51 : f32 to vector<256x128xf32>
    %110 = arith.subf %109, %89 : vector<256x128xf32>
    %111 = arith.mulf %110, %89 : vector<256x128xf32>
    %112 = math.exp %111 : vector<256x128xf32>
    %113 = arith.mulf %108, %112 : vector<256x128xf32>
    %cst_52 = arith.constant 1.000000e+00 : f32
    %114 = vector.broadcast %cst_52 : f32 to vector<256x128xf32>
    %115 = arith.subf %114, %113 : vector<256x128xf32>
    %116 = arith.mulf %88, %115 : vector<256x128xf32>
    %cst_53 = arith.constant 1.000000e+00 : f32
    %117 = vector.broadcast %cst_53 : f32 to vector<256x128xf32>
    %118 = arith.addf %117, %116 : vector<256x128xf32>
    %119 = arith.mulf %81, %118 : vector<256x128xf32>
    %120 = arith.truncf %119 : vector<256x128xf32> to vector<256x128xbf16>
    %c0_54 = arith.constant 0 : index
    %c0_55 = arith.constant 0 : index
    %121 = vector.load %arg9[%c0_54, %c0_55] : memref<128x1xbf16, #tpu.memory_space<vmem>>, vector<128x1xbf16>
    %cst_56 = arith.constant dense<0.000000e+00> : vector<256x1xf32>
    %122 = tpu.matmul %120, %121, %cst_56 {dimension_numbers = #tpu.dot_dimension_numbers<[1], [0], [0], [1], [0, 0, 1, 1], [], []>} : vector<256x128xbf16>, vector<128x1xbf16>, vector<256x1xf32> -> vector<256x1xf32>
    %c0_57 = arith.constant 0 : index
    %c0_58 = arith.constant 0 : index
    %123 = vector.load %arg10[%c0_57, %c0_58] : memref<1x1xf32, #tpu.memory_space<vmem>>, vector<1x1xf32>
    %124 = vector.broadcast %123 : vector<1x1xf32> to vector<256x1xf32>
    %125 = arith.addf %122, %124 : vector<256x1xf32>
    %c0_59 = arith.constant 0 : index
    %c0_60 = arith.constant 0 : index
    %c0_61 = arith.constant 0 : index
    %126 = vector.load %arg11[%c0_59, %c0_60, %c0_61] : memref<1x256x1xf32, #tpu.memory_space<vmem>>, vector<1x256x1xf32>
    %127 = vector.shape_cast %126 : vector<1x256x1xf32> to vector<256x1xf32>
    %128 = vector.shape_cast %125 : vector<256x1xf32> to vector<1x256x1xf32>
    tpu.vector_store %arg11[%c0_59, %c0_60, %c0_61], %128 {strides = array<i32>} : memref<1x256x1xf32, #tpu.memory_space<vmem>>, vector<1x256x1xf32>,
    return
  }
  func.func @transform_0(%arg0: i32) -> (i32, i32, i32) {
    %c0_i32 = arith.constant 0 : i32
    %c0_i32_0 = arith.constant 0 : i32
    %c0_i32_1 = arith.constant 0 : i32
    return %arg0, %c0_i32, %c0_i32_0 : i32, i32, i32
  }
  func.func @transform_1(%arg0: i32) -> (i32, i32, i32) {
    %c0_i32 = arith.constant 0 : i32
    %c0_i32_0 = arith.constant 0 : i32
    %c0_i32_1 = arith.constant 0 : i32
    return %arg0, %c0_i32, %c0_i32_0 : i32, i32, i32
  }
  func.func @transform_2(%arg0: i32) -> (i32, i32) {
    %c0_i32 = arith.constant 0 : i32
    %c0_i32_0 = arith.constant 0 : i32
    %c0_i32_1 = arith.constant 0 : i32
    return %c0_i32, %c0_i32_0 : i32, i32
  }
  func.func @transform_3(%arg0: i32) -> (i32, i32) {
    %c0_i32 = arith.constant 0 : i32
    %c0_i32_0 = arith.constant 0 : i32
    %c0_i32_1 = arith.constant 0 : i32
    return %c0_i32, %c0_i32_0 : i32, i32
  }
  func.func @transform_4(%arg0: i32) -> (i32, i32) {
    %c0_i32 = arith.constant 0 : i32
    %c0_i32_0 = arith.constant 0 : i32
    %c0_i32_1 = arith.constant 0 : i32
    return %c0_i32, %c0_i32_0 : i32, i32
  }
  func.func @transform_5(%arg0: i32) -> (i32, i32) {
    %c0_i32 = arith.constant 0 : i32
    %c0_i32_0 = arith.constant 0 : i32
    %c0_i32_1 = arith.constant 0 : i32
    return %c0_i32, %c0_i32_0 : i32, i32
  }
  func.func @transform_6(%arg0: i32) -> (i32, i32) {
    %c0_i32 = arith.constant 0 : i32
    %c0_i32_0 = arith.constant 0 : i32
    %c0_i32_1 = arith.constant 0 : i32
    return %c0_i32, %c0_i32_0 : i32, i32
  }
  func.func @transform_7(%arg0: i32) -> (i32, i32) {
    %c0_i32 = arith.constant 0 : i32
    %c0_i32_0 = arith.constant 0 : i32
    %c0_i32_1 = arith.constant 0 : i32
    return %c0_i32, %c0_i32_0 : i32, i32
  }
  func.func @transform_8(%arg0: i32) -> (i32, i32) {
    %c0_i32 = arith.constant 0 : i32
    %c0_i32_0 = arith.constant 0 : i32
    %c0_i32_1 = arith.constant 0 : i32
    return %c0_i32, %c0_i32_0 : i32, i32
  }
  func.func @transform_9(%arg0: i32) -> (i32, i32) {
    %c0_i32 = arith.constant 0 : i32
    %c0_i32_0 = arith.constant 0 : i32
    %c0_i32_1 = arith.constant 0 : i32
    return %c0_i32, %c0_i32_0 : i32, i32
  }
  func.func @transform_10(%arg0: i32) -> (i32, i32, i32) {
    %c0_i32 = arith.constant 0 : i32
    %c0_i32_0 = arith.constant 0 : i32
    %c0_i32_1 = arith.constant 0 : i32
    return %arg0, %c0_i32, %c0_i32_0 : i32, i32, i32
  }
}

</mosaic_0001>

<bundles_post_ra>
// kernel: fno2d_forward.9
= control target key start
LH: loop header
LB: loop body
LE: loop exit
PB: predicated region body
PF: predicated region fallthrough
CT: control target
= control target key end

     0   :  { %s1393_s15 = smov 0   ;;  %s2135_s0 = inlined_call_operand.vmem [shape: f32[2,256,3], index: 0, kind: input, shape index: {}]   ;;  %s2136_s1 = inlined_call_operand.vmem [shape: bf16[3,32], index: 1, kind: input, shape index: {}]   ;;  %s2137_s2 = inlined_call_operand.vmem [shape: f32[1,32], index: 2, kind: input, shape index: {}]   ;;  %s2138_s3 = inlined_call_operand.vmem [shape: bf16[2,256,32], index: 3, kind: output, shape index: {0}]   ;;  %s2139_s4 = inlined_call_operand.vmem [shape: bf16[2,256,32], index: 4, kind: output, shape index: {1}]  }
   0x1 LB: > { %s1134_s16 = sadd.s32 4294967295, %s1365_s15   ;;  %p1138_p0 = scmp.ge.s32.totalorder %s1365_s15, 1  ;;  %s1365_s15 = sphi %s1393_s15, %s15_s15  }
   0x2   : > { %p165_p1 = scmp.lt.s32.totalorder %s1365_s15, 3 }
   0x4   : > { %p166_p2 = pnand %p1138_p0, %p165_p1 }
   0x5   : > { %v260_v0 = vld [vmem:[%s2136_s1] sm:$0x3] (!%p166_p2)  ;;  %vm317_vm0 = vcmask (!%p166_p2), 1040384   ;;  %vm318_vm1 = vcmask (!%p166_p2), 1041408   ;;  %p196_p3 = scmp.lt.s32.totalorder (!%p166_p2), %s1134_s16, 1  ;;  %v1367_v1 = vmov (!%p166_p2), 65535  }
   0x6   : > { %169 = sbr.rel (%p166_p2) target bundleno = 438 (0x1b6), region = 32  ;;  %v319_v2 = vsel (!%p166_p2), %vm317_vm0, 4294967295, %v1367_v1  ;;  %vm268_vm2 = vcmask (!%p166_p2), 23552   ;;  %v1463_v53 = vld [vmem:[%s2137_s2] ss:$0 sm:$0xff] (!%p166_p2)  ;;  %vm613_vm3 = vcmask (!%p166_p2), 257024  }
   0x7   : > { %v320_v3 = vsel (!%p166_p2), %vm318_vm1, %v319_v2, 0  ;;  %vm646_vm4 = vcmask (!%p166_p2), 261120  }
   0x8   : > { %v322_v4 = vand.u32 (!%p166_p2), %v320_v3, %v260_v0 }
   0xa   : > { %1312 = vmatprep.subr.bf16.mxu0 (!%p166_p2), %v322_v4  ;;  %1346 = vmatprep.subr.bf16.mxu1 (!%p166_p2), %v322_v4 }
   0xb   : > { %1313 = vmatpush3.bf16.msra.mxu0 (!%p166_p2), %v322_v4  ;;  %1347 = vmatpush3.bf16.msra.mxu1 (!%p166_p2), %v322_v4 }
   0xd   : > { %s2141_s16 = smov (!%p196_p3, %s1134_s16), 1 }
   0xe   : > { %s1228_s19 = sshll.u32 %s2141_s16, 8  ;;  %s1229_s25 = sshll.u32 %s2141_s16, 7 }
   0xf   : > { %s1410_s22 = scalar_lea.vmem %s2135_s0, %s1228_s19  ;;  %s1474_s28 = scalar_lea.vmem %s2138_s3, %s1229_s25 }
  0x10   : > { %v212_v5 = vld [vmem:[%s1410_s22] sm:$0xff]  ;;  %v213_v6 = vld [vmem:[%s1410_s22 + $0x8] sm:$0xff]  ;;  %v214_v7 = vld [vmem:[%s1410_s22 + $0x10] sm:$0xff]  ;;  %s2030_s5 = scalar_lea.vmem %s2139_s4, %s1229_s25 }
  0x11   : > { %v244_v8 = vpack.c.bf16 %v213_v6, %v212_v5  ;;  %v215_v9 = vld [vmem:[%s1410_s22 + $0x18] sm:$0xff]  ;;  %v216_v10 = vld [vmem:[%s1410_s22 + $0x20] sm:$0xff]  ;;  %v217_v11 = vld [vmem:[%s1410_s22 + $0x28] sm:$0xff] }
  0x12   : > { %v245_v12 = vpack.c.bf16 %v215_v9, %v214_v7  ;;  %v246_v13 = vpack.c.bf16 %v217_v11, %v216_v10  ;;  %v218_v14 = vld [vmem:[%s1410_s22 + $0x30] sm:$0xff]  ;;  %v219_v15 = vld [vmem:[%s1410_s22 + $0x38] sm:$0xff]  ;;  %v220_v16 = vld [vmem:[%s1410_s22 + $0x40] sm:$0xff] }
  0x13   : > { %1314 = vmatprep.mubr.msk.bf16.mxu0 %vm268_vm2, %v244_v8  ;;  %v221_v17 = vld [vmem:[%s1410_s22 + $0x48] sm:$0xff]  ;;  %v228_v18 = vld [vmem:[%s1410_s22 + $0x80] sm:$0xff]  ;;  %v230_v21 = vld [vmem:[%s1410_s22 + $0x90] sm:$0xff]  ;;  %v247_v26 = vpack.c.bf16 %v219_v15, %v218_v14 }
  0x14   : > { %1315 = vmatmul.mubr.msk.bf16.vlgmr.msra.gmra.mrb[0].mxu0 %vm268_vm2, %v245_v12  ;;  %v229_v19 = vld [vmem:[%s1410_s22 + $0x88] sm:$0xff]  ;;  %v231_v22 = vld [vmem:[%s1410_s22 + $0x98] sm:$0xff]  ;;  %v232_v23 = vld [vmem:[%s1410_s22 + $0xa0] sm:$0xff]  ;;  %v248_v28 = vpack.c.bf16 %v221_v17, %v220_v16 }
  0x15   : > { %1318 = vmatprep.mubr.msk.bf16.mxu0 %vm268_vm2, %v246_v13  ;;  %v252_v20 = vpack.c.bf16 %v229_v19, %v228_v18  ;;  %v253_v24 = vpack.c.bf16 %v231_v22, %v230_v21  ;;  %v233_v25 = vld [vmem:[%s1410_s22 + $0xa8] sm:$0xff]  ;;  %v234_v29 = vld [vmem:[%s1410_s22 + $0xb0] sm:$0xff]  ;;  %v235_v30 = vld [vmem:[%s1410_s22 + $0xb8] sm:$0xff] }
  0x16   : > { %v254_v27 = vpack.c.bf16 %v233_v25, %v232_v23  ;;  %v236_v31 = vld [vmem:[%s1410_s22 + $0xc0] sm:$0xff]  ;;  %v237_v32 = vld [vmem:[%s1410_s22 + $0xc8] sm:$0xff]  ;;  %v222_v33 = vld [vmem:[%s1410_s22 + $0x50] sm:$0xff]  ;;  %v255_v35 = vpack.c.bf16 %v235_v30, %v234_v29 }
  0x17   : > { %1330 = vmatprep.mubr.msk.bf16.mxu1 %vm268_vm2, %v252_v20  ;;  %v223_v34 = vld [vmem:[%s1410_s22 + $0x58] sm:$0xff]  ;;  %v224_v36 = vld [vmem:[%s1410_s22 + $0x60] sm:$0xff]  ;;  %v225_v37 = vld [vmem:[%s1410_s22 + $0x68] sm:$0xff]  ;;  %v256_v38 = vpack.c.bf16 %v237_v32, %v236_v31 }
  0x18   : > { %1331 = vmatmul.mubr.msk.bf16.vlgmr.msra.gmra.mrb[0].mxu1 %vm268_vm2, %v253_v24  ;;  %v249_v39 = vpack.c.bf16 %v223_v34, %v222_v33  ;;  %v250_v40 = vpack.c.bf16 %v225_v37, %v224_v36  ;;  %v238_v41 = vld [vmem:[%s1410_s22 + $0xd0] sm:$0xff]  ;;  %v239_v42 = vld [vmem:[%s1410_s22 + $0xd8] sm:$0xff]  ;;  %v240_v43 = vld [vmem:[%s1410_s22 + $0xe0] sm:$0xff] }
  0x19   : > { %1334 = vmatprep.mubr.msk.bf16.mxu1 %vm268_vm2, %v254_v27  ;;  %v241_v44 = vld [vmem:[%s1410_s22 + $0xe8] sm:$0xff]  ;;  %v226_v45 = vld [vmem:[%s1410_s22 + $0x70] sm:$0xff]  ;;  %v227_v46 = vld [vmem:[%s1410_s22 + $0x78] sm:$0xff]  ;;  %v257_v47 = vpack.c.bf16 %v239_v42, %v238_v41 }
  0x1a   : > { %v258_v48 = vpack.c.bf16 %v241_v44, %v240_v43  ;;  %v251_v49 = vpack.c.bf16 %v227_v46, %v226_v45  ;;  %v242_v50 = vld [vmem:[%s1410_s22 + $0xf0] sm:$0xff]  ;;  %v243_v51 = vld [vmem:[%s1410_s22 + $0xf8] sm:$0xff] }
  0x1b   : > { %v259_v52 = vpack.c.bf16 %v243_v51, %v242_v50 }
  0x1c   : > { %1319 = vmatmul.mubr.msk.bf16.gmra.mrb[4].mxu0 %vm268_vm2, %v247_v26 }
  0x1d   : > { %1322 = vmatprep.mubr.msk.bf16.mxu0 %vm268_vm2, %v248_v28 }
  0x20   : > { %1335 = vmatmul.mubr.msk.bf16.gmra.mrb[4].mxu1 %vm268_vm2, %v255_v35 }
  0x21   : > { %1338 = vmatprep.mubr.msk.bf16.mxu1 %vm268_vm2, %v256_v38 }
  0x24   : > { %1323 = vmatmul.mubr.msk.bf16.gmra.mrb[8].mxu0 %vm268_vm2, %v249_v39 }
  0x25   : > { %1326 = vmatprep.mubr.msk.bf16.mxu0 %vm268_vm2, %v250_v40 }
  0x28   : > { %1339 = vmatmul.mubr.msk.bf16.gmra.mrb[8].mxu1 %vm268_vm2, %v257_v47 }
  0x29   : > { %1342 = vmatprep.mubr.msk.bf16.mxu1 %vm268_vm2, %v258_v48 }
  0x2c   : > { %1327 = vmatmul.mubr.msk.bf16.gmra.mrb[12].mxu0 %vm268_vm2, %v251_v49 }
  0x30   : > { %1343 = vmatmul.mubr.msk.bf16.gmra.mrb[12].mxu1 %vm268_vm2, %v259_v52 }
  0xe7   : > { %v1316_v54 = vpop.f32.mrb[0].mxu0 }
  0xe8   : > { %v1467_v55 = vadd.f32 %v1316_v54, %v1463_v53  ;;  %v358_v56 = vpop.f32.mrb[1].mxu0 }
  0xe9   : > { %v1477_v57 = vadd.f32 %v1463_v53, %v358_v56  ;;  %v1317_v58 = vpop.f32.mrb[2].mxu0 }
  0xea   : > { %v1233_v59 = vpack.c.bf16 %v1467_v55, %v1467_v55  ;;  %v1482_v60 = vadd.f32 %v1317_v58, %v1463_v53  ;;  %v361_v61 = vpop.f32.mrb[3].mxu0  ;;  %v650_v10 = vsel %vm646_vm4, %v1467_v55, 0.0 }
  0xeb   : > { %v1231_v62 = vpack.c.bf16 %v1477_v57, %v1477_v57  ;;  %v1487_v63 = vadd.f32 %v1463_v53, %v361_v61  ;;  %v1332_v1 = vpop.f32.mrb[0].mxu1  ;;  %v647_v2 = vsel %vm646_vm4, %v1477_v57, 0.0 }
  0xec   : > { %616 = vst.msk [vmem:[%s1474_s28 + $0x8] sm:$0xf] %vm613_vm3, %v1233_v59  ;;  %v1234_v0 = vpack.c.bf16 %v1482_v60, %v1482_v60  ;;  %v1502_v5 = vadd.f32 %v1332_v1, %v1463_v53  ;;  %v422_v6 = vpop.f32.mrb[1].mxu1  ;;  %v652_v19 = vsel %vm646_vm4, %v1482_v60, 0.0 }
  0xed   : > { %614 = vst.msk [vmem:[%s1474_s28] sm:$0xf] %vm613_vm3, %v1231_v62  ;;  %v1232_v3 = vpack.c.bf16 %v1487_v63, %v1487_v63  ;;  %v648_v4 = vsel %vm646_vm4, %v1487_v63, 0.0  ;;  %v1507_v8 = vadd.f32 %v1463_v53, %v422_v6  ;;  %v1333_v9 = vpop.f32.mrb[2].mxu1 }
  0xee   : > { %617 = vst.msk [vmem:[%s1474_s28 + $0xc] sm:$0xf] %vm613_vm3, %v1234_v0  ;;  %v649_v7 = vadd.f32 %v648_v4, %v647_v2  ;;  %v1249_v12 = vpack.c.bf16 %v1502_v5, %v1502_v5  ;;  %v1516_v13 = vadd.f32 %v1333_v9, %v1463_v53  ;;  %v425_v14 = vpop.f32.mrb[3].mxu1 }
  0xef   : > { %615 = vst.msk [vmem:[%s1474_s28 + $0x4] sm:$0xf] %vm613_vm3, %v1232_v3  ;;  %v1320_v11 = vpop.f32.mrb[4].mxu0  ;;  %v1247_v18 = vpack.c.bf16 %v1507_v8, %v1507_v8  ;;  %v1533_v23 = vadd.f32 %v1463_v53, %v425_v14 }
  0xf0   : > { %v651_v15 = vadd.f32 %v650_v10, %v649_v7  ;;  %v1519_v16 = vadd.f32 %v1320_v11, %v1463_v53  ;;  %v374_v17 = vpop.f32.mrb[5].mxu0  ;;  %632 = vst.msk [vmem:[%s1474_s28 + $0x48] sm:$0xf] %vm613_vm3, %v1249_v12  ;;  %v1250_v22 = vpack.c.bf16 %v1516_v13, %v1516_v13 }
  0xf1   : > { %v1526_v20 = vadd.f32 %v1463_v53, %v374_v17  ;;  %v1321_v21 = vpop.f32.mrb[6].mxu0  ;;  %630 = vst.msk [vmem:[%s1474_s28 + $0x40] sm:$0xf] %vm613_vm3, %v1247_v18  ;;  %v1248_v31 = vpack.c.bf16 %v1533_v23, %v1533_v23 }
  0xf2   : > { %v1237_v24 = vpack.c.bf16 %v1519_v16, %v1519_v16  ;;  %v653_v25 = vadd.f32 %v652_v19, %v651_v15  ;;  %v1538_v26 = vadd.f32 %v1321_v21, %v1463_v53  ;;  %v377_v27 = vpop.f32.mrb[7].mxu0  ;;  %633 = vst.msk [vmem:[%s1474_s28 + $0x4c] sm:$0xf] %vm613_vm3, %v1250_v22  ;;  %v658_v42 = vsel %vm646_vm4, %v1519_v16, 0.0 }
  0xf3   : > { %v1235_v28 = vpack.c.bf16 %v1526_v20, %v1526_v20  ;;  %v654_v29 = vsel %vm646_vm4, %v1526_v20, 0.0  ;;  %v1547_v30 = vadd.f32 %v1463_v53, %v377_v27  ;;  %v1336_v34 = vpop.f32.mrb[4].mxu1  ;;  %631 = vst.msk [vmem:[%s1474_s28 + $0x44] sm:$0xf] %vm613_vm3, %v1248_v31 }
  0xf4   : > { %620 = vst.msk [vmem:[%s1474_s28 + $0x18] sm:$0xf] %vm613_vm3, %v1237_v24  ;;  %v655_v32 = vadd.f32 %v654_v29, %v653_v25  ;;  %v1238_v33 = vpack.c.bf16 %v1538_v26, %v1538_v26  ;;  %v1566_v37 = vadd.f32 %v1336_v34, %v1463_v53  ;;  %v438_v38 = vpop.f32.mrb[5].mxu1  ;;  %v660_v51 = vsel %vm646_vm4, %v1538_v26, 0.0 }
  0xf5   : > { %618 = vst.msk [vmem:[%s1474_s28 + $0x10] sm:$0xf] %vm613_vm3, %v1235_v28  ;;  %v1236_v35 = vpack.c.bf16 %v1547_v30, %v1547_v30  ;;  %v656_v36 = vsel %vm646_vm4, %v1547_v30, 0.0  ;;  %v1571_v40 = vadd.f32 %v1463_v53, %v438_v38  ;;  %v1337_v41 = vpop.f32.mrb[6].mxu1 }
  0xf6   : > { %621 = vst.msk [vmem:[%s1474_s28 + $0x1c] sm:$0xf] %vm613_vm3, %v1238_v33  ;;  %v657_v39 = vadd.f32 %v656_v36, %v655_v32  ;;  %v1253_v44 = vpack.c.bf16 %v1566_v37, %v1566_v37  ;;  %v1580_v45 = vadd.f32 %v1337_v41, %v1463_v53  ;;  %v441_v46 = vpop.f32.mrb[7].mxu1 }
  0xf7   : > { %619 = vst.msk [vmem:[%s1474_s28 + $0x14] sm:$0xf] %vm613_vm3, %v1236_v35  ;;  %v1324_v43 = vpop.f32.mrb[8].mxu0  ;;  %v1251_v50 = vpack.c.bf16 %v1571_v40, %v1571_v40  ;;  %v1597_v58 = vadd.f32 %v1463_v53, %v441_v46 }
  0xf8   : > { %v659_v47 = vadd.f32 %v658_v42, %v657_v39  ;;  %v1583_v48 = vadd.f32 %v1324_v43, %v1463_v53  ;;  %v390_v49 = vpop.f32.mrb[9].mxu0  ;;  %636 = vst.msk [vmem:[%s1474_s28 + $0x58] sm:$0xf] %vm613_vm3, %v1253_v44  ;;  %v1254_v56 = vpack.c.bf16 %v1580_v45, %v1580_v45 }
  0xf9   : > { %v1590_v52 = vadd.f32 %v1463_v53, %v390_v49  ;;  %v1325_v54 = vpop.f32.mrb[10].mxu0  ;;  %634 = vst.msk [vmem:[%s1474_s28 + $0x50] sm:$0xf] %vm613_vm3, %v1251_v50  ;;  %v1252_v4 = vpack.c.bf16 %v1597_v58, %v1597_v58 }
  0xfa   : > { %v1241_v59 = vpack.c.bf16 %v1583_v48, %v1583_v48  ;;  %v661_v61 = vadd.f32 %v660_v51, %v659_v47  ;;  %v1602_v62 = vadd.f32 %v1325_v54, %v1463_v53  ;;  %v393_v0 = vpop.f32.mrb[11].mxu0  ;;  %637 = vst.msk [vmem:[%s1474_s28 + $0x5c] sm:$0xf] %vm613_vm3, %v1254_v56  ;;  %v666_v19 = vsel %vm646_vm4, %v1583_v48, 0.0 }
  0xfb   : > { %v1239_v1 = vpack.c.bf16 %v1590_v52, %v1590_v52  ;;  %v662_v2 = vsel %vm646_vm4, %v1590_v52, 0.0  ;;  %v1611_v3 = vadd.f32 %v1463_v53, %v393_v0  ;;  %v1340_v9 = vpop.f32.mrb[8].mxu1  ;;  %635 = vst.msk [vmem:[%s1474_s28 + $0x54] sm:$0xf] %vm613_vm3, %v1252_v4 }
  0xfc   : > { %624 = vst.msk [vmem:[%s1474_s28 + $0x28] sm:$0xf] %vm613_vm3, %v1241_v59  ;;  %v663_v6 = vadd.f32 %v662_v2, %v661_v61  ;;  %v1242_v7 = vpack.c.bf16 %v1602_v62, %v1602_v62  ;;  %v1630_v12 = vadd.f32 %v1340_v9, %v1463_v53  ;;  %v454_v14 = vpop.f32.mrb[9].mxu1  ;;  %v668_v32 = vsel %vm646_vm4, %v1602_v62, 0.0 }
  0xfd   : > { %622 = vst.msk [vmem:[%s1474_s28 + $0x20] sm:$0xf] %vm613_vm3, %v1239_v1  ;;  %v1240_v10 = vpack.c.bf16 %v1611_v3, %v1611_v3  ;;  %v664_v11 = vsel %vm646_vm4, %v1611_v3, 0.0  ;;  %v1635_v17 = vadd.f32 %v1463_v53, %v454_v14  ;;  %v1341_v18 = vpop.f32.mrb[10].mxu1 }
  0xfe   : > { %625 = vst.msk [vmem:[%s1474_s28 + $0x2c] sm:$0xf] %vm613_vm3, %v1242_v7  ;;  %v665_v15 = vadd.f32 %v664_v11, %v663_v6  ;;  %v1257_v22 = vpack.c.bf16 %v1630_v12, %v1630_v12  ;;  %v1644_v24 = vadd.f32 %v1341_v18, %v1463_v53  ;;  %v457_v25 = vpop.f32.mrb[11].mxu1  ;;  %v678_v18 = vsel %vm646_vm4, %v1507_v8, 0.0 }
  0xff   : > { %623 = vst.msk [vmem:[%s1474_s28 + $0x24] sm:$0xf] %vm613_vm3, %v1240_v10  ;;  %v1328_v21 = vpop.f32.mrb[12].mxu0  ;;  %v1255_v31 = vpack.c.bf16 %v1635_v17, %v1635_v17  ;;  %v1661_v36 = vadd.f32 %v1463_v53, %v457_v25 }
 0x100   : > { %v667_v27 = vadd.f32 %v666_v19, %v665_v15  ;;  %v1647_v28 = vadd.f32 %v1328_v21, %v1463_v53  ;;  %v406_v29 = vpop.f32.mrb[13].mxu0  ;;  %640 = vst.msk [vmem:[%s1474_s28 + $0x68] sm:$0xf] %vm613_vm3, %v1257_v22  ;;  %v1258_v35 = vpack.c.bf16 %v1644_v24, %v1644_v24 }
 0x101   : > { %v1654_v33 = vadd.f32 %v1463_v53, %v406_v29  ;;  %v1329_v34 = vpop.f32.mrb[14].mxu0  ;;  %638 = vst.msk [vmem:[%s1474_s28 + $0x60] sm:$0xf] %vm613_vm3, %v1255_v31  ;;  %v1256_v47 = vpack.c.bf16 %v1661_v36, %v1661_v36  ;;  %v682_v29 = vsel %vm646_vm4, %v1502_v5, 0.0 }
 0x102   : > { %v1245_v38 = vpack.c.bf16 %v1647_v28, %v1647_v28  ;;  %v669_v39 = vadd.f32 %v668_v32, %v667_v27  ;;  %v1666_v41 = vadd.f32 %v1329_v34, %v1463_v53  ;;  %v409_v42 = vpop.f32.mrb[15].mxu0  ;;  %641 = vst.msk [vmem:[%s1474_s28 + $0x6c] sm:$0xf] %vm613_vm3, %v1258_v35  ;;  %v674_v4 = vsel %vm646_vm4, %v1647_v28, 0.0 }
 0x103   : > { %v1243_v43 = vpack.c.bf16 %v1654_v33, %v1654_v33  ;;  %v670_v44 = vsel %vm646_vm4, %v1654_v33, 0.0  ;;  %v1675_v46 = vadd.f32 %v1463_v53, %v409_v42  ;;  %v1344_v51 = vpop.f32.mrb[12].mxu1  ;;  %639 = vst.msk [vmem:[%s1474_s28 + $0x64] sm:$0xf] %vm613_vm3, %v1256_v47  ;;  %v684_v32 = vsel %vm646_vm4, %v1516_v13, 0.0 }
 0x104   : > { %628 = vst.msk [vmem:[%s1474_s28 + $0x38] sm:$0xf] %vm613_vm3, %v1245_v38  ;;  %v671_v49 = vadd.f32 %v670_v44, %v669_v39  ;;  %v1246_v50 = vpack.c.bf16 %v1666_v41, %v1666_v41  ;;  %v1694_v59 = vadd.f32 %v1344_v51, %v1463_v53  ;;  %v470_v61 = vpop.f32.mrb[13].mxu1  ;;  %v676_v15 = vsel %vm646_vm4, %v1666_v41, 0.0 }
 0x105   : > { %626 = vst.msk [vmem:[%s1474_s28 + $0x30] sm:$0xf] %vm613_vm3, %v1243_v43  ;;  %v1244_v54 = vpack.c.bf16 %v1675_v46, %v1675_v46  ;;  %v672_v56 = vsel %vm646_vm4, %v1675_v46, 0.0  ;;  %v1699_v1 = vadd.f32 %v1463_v53, %v470_v61  ;;  %v1345_v2 = vpop.f32.mrb[14].mxu1  ;;  %v686_v34 = vsel %vm646_vm4, %v1571_v40, 0.0 }
 0x106   : > { %629 = vst.msk [vmem:[%s1474_s28 + $0x3c] sm:$0xf] %vm613_vm3, %v1246_v50  ;;  %v673_v0 = vadd.f32 %v672_v56, %v671_v49  ;;  %v1261_v6 = vpack.c.bf16 %v1694_v59, %v1694_v59  ;;  %v1708_v7 = vadd.f32 %v1345_v2, %v1463_v53  ;;  %v473_v9 = vpop.f32.mrb[15].mxu1  ;;  %v688_v39 = vsel %vm646_vm4, %v1597_v58, 0.0 }
 0x107   : > { %627 = vst.msk [vmem:[%s1474_s28 + $0x34] sm:$0xf] %vm613_vm3, %v1244_v54  ;;  %v1259_v11 = vpack.c.bf16 %v1699_v1, %v1699_v1  ;;  %v474_v14 = vadd.f32 %v1463_v53, %v473_v9  ;;  %v680_v53 = vsel %vm646_vm4, %v1533_v23, 0.0  ;;  %v690_v43 = vsel %vm646_vm4, %v1566_v37, 0.0 }
 0x108   : > { %v675_v10 = vadd.f32 %v674_v4, %v673_v0  ;;  %644 = vst.msk [vmem:[%s1474_s28 + $0x78] sm:$0xf] %vm613_vm3, %v1261_v6  ;;  %v1262_v19 = vpack.c.bf16 %v1708_v7, %v1708_v7  ;;  %v692_v47 = vsel %vm646_vm4, %v1580_v45, 0.0  ;;  %v694_v49 = vsel %vm646_vm4, %v1635_v17, 0.0 }
 0x109   : > { %642 = vst.msk [vmem:[%s1474_s28 + $0x70] sm:$0xf] %vm613_vm3, %v1259_v11  ;;  %v1260_v22 = vpack.c.bf16 %v474_v14, %v474_v14  ;;  %v696_v54 = vsel %vm646_vm4, %v1661_v36, 0.0  ;;  %v698_v61 = vsel %vm646_vm4, %v1630_v12, 0.0  ;;  %v700_v2 = vsel %vm646_vm4, %v1644_v24, 0.0 }
 0x10a   : > { %v677_v21 = vadd.f32 %v676_v15, %v675_v10  ;;  %645 = vst.msk [vmem:[%s1474_s28 + $0x7c] sm:$0xf] %vm613_vm3, %v1262_v19  ;;  %v702_v4 = vsel %vm646_vm4, %v1699_v1, 0.0  ;;  %v704_v10 = vsel %vm646_vm4, %v474_v14, 0.0  ;;  %v706_v15 = vsel %vm646_vm4, %v1694_v59, 0.0 }
 0x10b   : > { %643 = vst.msk [vmem:[%s1474_s28 + $0x74] sm:$0xf] %vm613_vm3, %v1260_v22  ;;  %v708_v19 = vsel %vm646_vm4, %v1708_v7, 0.0 }
 0x10c   : > { %v679_v25 = vadd.f32 %v678_v18, %v677_v21 }
 0x10e   : > { %v681_v27 = vadd.f32 %v680_v53, %v679_v25 }
 0x110   : > { %v683_v31 = vadd.f32 %v682_v29, %v681_v27 }
 0x112   : > { %v685_v35 = vadd.f32 %v684_v32, %v683_v31 }
 0x114   : > { %v687_v38 = vadd.f32 %v686_v34, %v685_v35 }
 0x116   : > { %v689_v42 = vadd.f32 %v688_v39, %v687_v38 }
 0x118   : > { %v691_v44 = vadd.f32 %v690_v43, %v689_v42 }
 0x11a   : > { %v693_v50 = vadd.f32 %v692_v47, %v691_v44 }
 0x11c   : > { %v695_v51 = vadd.f32 %v694_v49, %v693_v50 }
 0x11e   : > { %v697_v56 = vadd.f32 %v696_v54, %v695_v51 }
 0x120   : > { %v699_v0 = vadd.f32 %v698_v61, %v697_v56 }
 0x122   : > { %v701_v6 = vadd.f32 %v700_v2, %v699_v0 }
 0x124   : > { %v703_v9 = vadd.f32 %v702_v4, %v701_v6 }
 0x126   : > { %v705_v11 = vadd.f32 %v704_v10, %v703_v9 }
 0x128   : > { %v707_v18 = vadd.f32 %v706_v15, %v705_v11 }
 0x12a   : > { %v709_v21 = vadd.f32 %v708_v19, %v707_v18 }
 0x12c   : > { %v710_v22 = vrot.slane %v709_v21, 4 }
 0x12e   : > { %v711_v25 = vadd.f32 %v710_v22, %v709_v21 }
 0x130   : > { %v712_v53 = vrot.slane %v711_v25, 2 }
 0x132   : > { %v713_v27 = vadd.f32 %v712_v53, %v711_v25 }
 0x134   : > { %v714_v29 = vrot.slane %v713_v27, 1 }
 0x136   : > { %v715_v31 = vadd.f32 %v714_v29, %v713_v27 }
 0x138   : > { %v1756_v32 = vmul.f32 0.00390625, %v715_v31 }
 0x13a   : > { %v1760_v34 = vsub.f32 %v1611_v3, %v1756_v32  ;;  %v1764_v35 = vsub.f32 %v1602_v62, %v1756_v32  ;;  %v1768_v38 = vsub.f32 %v1654_v33, %v1756_v32  ;;  %v1772_v39 = vsub.f32 %v1675_v46, %v1756_v32 }
 0x13b   : > { %v1776_v42 = vsub.f32 %v1647_v28, %v1756_v32  ;;  %v1780_v3 = vsub.f32 %v1666_v41, %v1756_v32  ;;  %v1784_v62 = vsub.f32 %v1635_v17, %v1756_v32  ;;  %v1788_v33 = vsub.f32 %v1661_v36, %v1756_v32 }
 0x13c   : > { %v1792_v46 = vsub.f32 %v1644_v24, %v1756_v32  ;;  %v1796_v28 = vsub.f32 %v1699_v1, %v1756_v32  ;;  %v1799_v43 = vsub.f32 %v474_v14, %v1756_v32  ;;  %v1803_v41 = vsub.f32 %v1694_v59, %v1756_v32 }
 0x13d   : > { %v1807_v17 = vsub.f32 %v1708_v7, %v1756_v32  ;;  %v1811_v36 = vsub.f32 %v1477_v57, %v1756_v32  ;;  %v1815_v24 = vsub.f32 %v1487_v63, %v1756_v32  ;;  %v1819_v1 = vsub.f32 %v1467_v55, %v1756_v32 }
 0x13e   : > { %v1823_v59 = vsub.f32 %v1482_v60, %v1756_v32  ;;  %v1831_v57 = vsub.f32 %v1526_v20, %v1756_v32  ;;  %v1837_v55 = vsub.f32 %v1547_v30, %v1756_v32  ;;  %v1845_v50 = vsub.f32 %v1519_v16, %v1756_v32 }
 0x13f   : > { %v750_v7 = vmul.f32 %v1811_v36, %v1811_v36  ;;  %v751_v14 = vmul.f32 %v1815_v24, %v1815_v24  ;;  %v752_v63 = vmul.f32 %v1819_v1, %v1819_v1  ;;  %v1852_v30 = vsub.f32 %v1538_v26, %v1756_v32 }
 0x140   : > { %v753_v60 = vmul.f32 %v1823_v59, %v1823_v59  ;;  %v754_v20 = vmul.f32 %v1831_v57, %v1831_v57  ;;  %v755_v56 = vmul.f32 %v1837_v55, %v1837_v55  ;;  %v1859_v16 = vsub.f32 %v1590_v52, %v1756_v32 }
 0x141   : > { %v782_v44 = vsel %vm646_vm4, %v750_v7, 0.0  ;;  %v783_v47 = vsel %vm646_vm4, %v751_v14, 0.0  ;;  %v785_v51 = vsel %vm646_vm4, %v752_v63, 0.0  ;;  %v756_v2 = vmul.f32 %v1845_v50, %v1845_v50 }
 0x142   : > { %v784_v49 = vadd.f32 %v783_v47, %v782_v44  ;;  %v787_v61 = vsel %vm646_vm4, %v753_v60, 0.0  ;;  %v789_v4 = vsel %vm646_vm4, %v754_v20, 0.0  ;;  %v757_v26 = vmul.f32 %v1852_v30, %v1852_v30 }
 0x143   : > { %v791_v9 = vsel %vm646_vm4, %v755_v56, 0.0  ;;  %v1869_v11 = vsub.f32 %v1583_v48, %v1756_v32  ;;  %v758_v52 = vmul.f32 %v1859_v16, %v1859_v16  ;;  %v793_v15 = vsel %vm646_vm4, %v756_v2, 0.0 }
 0x144   : > { %v786_v54 = vadd.f32 %v785_v51, %v784_v49  ;;  %v759_v19 = vmul.f32 %v1760_v34, %v1760_v34  ;;  %v795_v21 = vsel %vm646_vm4, %v757_v26, 0.0  ;;  %v761_v48 = vmul.f32 %v1764_v35, %v1764_v35 }
 0x145   : > { %v760_v25 = vmul.f32 %v1869_v11, %v1869_v11  ;;  %v797_v53 = vsel %vm646_vm4, %v758_v52, 0.0  ;;  %v762_v7 = vmul.f32 %v1768_v38, %v1768_v38  ;;  %v763_v60 = vmul.f32 %v1772_v39, %v1772_v39 }
 0x146   : > { %v788_v0 = vadd.f32 %v787_v61, %v786_v54  ;;  %v799_v29 = vsel %vm646_vm4, %v759_v19, 0.0  ;;  %v803_v44 = vsel %vm646_vm4, %v761_v48, 0.0  ;;  %v1891_v49 = vsub.f32 %v1507_v8, %v1756_v32 }
 0x147   : > { %v801_v14 = vsel %vm646_vm4, %v760_v25, 0.0  ;;  %v764_v20 = vmul.f32 %v1776_v42, %v1776_v42  ;;  %v805_v51 = vsel %vm646_vm4, %v762_v7, 0.0  ;;  %v1898_v56 = vsub.f32 %v1533_v23, %v1756_v32 }
 0x148   : > { %v790_v6 = vadd.f32 %v789_v4, %v788_v0  ;;  %v765_v61 = vmul.f32 %v1780_v3, %v1780_v3  ;;  %v807_v0 = vsel %vm646_vm4, %v763_v60, 0.0  ;;  %v1905_v8 = vsub.f32 %v1502_v5, %v1756_v32 }
 0x149   : > { %v766_v4 = vmul.f32 %v1891_v49, %v1891_v49  ;;  %v1912_v23 = vsub.f32 %v1516_v13, %v1756_v32  ;;  %v1919_v5 = vsub.f32 %v1571_v40, %v1756_v32  ;;  %v1926_v13 = vsub.f32 %v1597_v58, %v1756_v32 }
 0x14a   : > { %v792_v10 = vadd.f32 %v791_v9, %v790_v6  ;;  %v809_v6 = vsel %vm646_vm4, %v764_v20, 0.0  ;;  %v767_v9 = vmul.f32 %v1898_v56, %v1898_v56  ;;  %v1933_v40 = vsub.f32 %v1566_v37, %v1756_v32 }
 0x14b   : > { %v1940_v58 = vsub.f32 %v1580_v45, %v1756_v32  ;;  %v1953_v45 = vsub.f32 %v1630_v12, %v1756_v32  ;;  %v774_v20 = vmul.f32 %v1784_v62, %v1784_v62  ;;  %v777_v12 = vmul.f32 %v1792_v46, %v1792_v46 }
 0x14c   : > { %v794_v18 = vadd.f32 %v793_v15, %v792_v10  ;;  %v811_v10 = vsel %vm646_vm4, %v765_v61, 0.0  ;;  %v768_v15 = vmul.f32 %v1905_v8, %v1905_v8  ;;  %v772_v37 = vmul.f32 %v1933_v40, %v1933_v40 }
 0x14d   : > { %v773_v60 = vmul.f32 %v1940_v58, %v1940_v58  ;;  %v775_v61 = vmul.f32 %v1788_v33, %v1788_v33 }
 0x14e   : > { %v796_v22 = vadd.f32 %v795_v21, %v794_v18  ;;  %v813_v18 = vsel %vm646_vm4, %v766_v4, 0.0  ;;  %v769_v21 = vmul.f32 %v1912_v23, %v1912_v23  ;;  %v776_v4 = vmul.f32 %v1953_v45, %v1953_v45 }
 0x14f   : > { %v831_v32 = vsel %vm646_vm4, %v775_v61, 0.0 }
 0x150   : > { %v798_v27 = vadd.f32 %v797_v53, %v796_v22  ;;  %v815_v22 = vsel %vm646_vm4, %v767_v9, 0.0  ;;  %v770_v53 = vmul.f32 %v1919_v5, %v1919_v5 }
 0x152   : > { %v800_v31 = vadd.f32 %v799_v29, %v798_v27  ;;  %v817_v27 = vsel %vm646_vm4, %v768_v15, 0.0  ;;  %v771_v29 = vmul.f32 %v1926_v13, %v1926_v13 }
 0x154   : > { %v802_v63 = vadd.f32 %v801_v14, %v800_v31  ;;  %v819_v31 = vsel %vm646_vm4, %v769_v21, 0.0  ;;  %v821_v14 = vsel %vm646_vm4, %v770_v53, 0.0 }
 0x156   : > { %v804_v47 = vadd.f32 %v803_v44, %v802_v63  ;;  %v823_v44 = vsel %vm646_vm4, %v771_v29, 0.0 }
 0x158   : > { %v806_v54 = vadd.f32 %v805_v51, %v804_v47  ;;  %v825_v51 = vsel %vm646_vm4, %v772_v37, 0.0 }
 0x15a   : > { %v808_v2 = vadd.f32 %v807_v0, %v806_v54  ;;  %v827_v0 = vsel %vm646_vm4, %v773_v60, 0.0 }
 0x15c   : > { %v810_v26 = vadd.f32 %v809_v6, %v808_v2  ;;  %v829_v6 = vsel %vm646_vm4, %v774_v20, 0.0 }
 0x15e   : > { %v812_v52 = vadd.f32 %v811_v10, %v810_v26  ;;  %v778_v10 = vmul.f32 %v1796_v28, %v1796_v28 }
 0x160   : > { %v814_v19 = vadd.f32 %v813_v18, %v812_v52  ;;  %v833_v52 = vsel %vm646_vm4, %v776_v4, 0.0  ;;  %v779_v18 = vmul.f32 %v1799_v43, %v1799_v43 }
 0x162   : > { %v816_v25 = vadd.f32 %v815_v22, %v814_v19  ;;  %v835_v19 = vsel %vm646_vm4, %v777_v12, 0.0  ;;  %v780_v22 = vmul.f32 %v1803_v41, %v1803_v41 }
 0x164   : > { %v818_v48 = vadd.f32 %v817_v27, %v816_v25  ;;  %v837_v25 = vsel %vm646_vm4, %v778_v10, 0.0  ;;  %v781_v27 = vmul.f32 %v1807_v17, %v1807_v17 }
 0x166   : > { %v820_v7 = vadd.f32 %v819_v31, %v818_v48  ;;  %v839_v48 = vsel %vm646_vm4, %v779_v18, 0.0  ;;  %v841_v31 = vsel %vm646_vm4, %v780_v22, 0.0  ;;  %v843_v37 = vsel %vm646_vm4, %v781_v27, 0.0 }
 0x168   : > { %v822_v63 = vadd.f32 %v821_v14, %v820_v7 }
 0x16a   : > { %v824_v47 = vadd.f32 %v823_v44, %v822_v63 }
 0x16c   : > { %v826_v54 = vadd.f32 %v825_v51, %v824_v47 }
 0x16e   : > { %v828_v2 = vadd.f32 %v827_v0, %v826_v54 }
 0x170   : > { %v830_v26 = vadd.f32 %v829_v6, %v828_v2 }
 0x172   : > { %v832_v9 = vadd.f32 %v831_v32, %v830_v26 }
 0x174   : > { %v834_v15 = vadd.f32 %v833_v52, %v832_v9 }
 0x176   : > { %v836_v21 = vadd.f32 %v835_v19, %v834_v15 }
 0x178   : > { %v838_v53 = vadd.f32 %v837_v25, %v836_v21 }
 0x17a   : > { %v840_v29 = vadd.f32 %v839_v48, %v838_v53 }
 0x17c   : > { %v842_v7 = vadd.f32 %v841_v31, %v840_v29 }
 0x17e   : > { %v844_v14 = vadd.f32 %v843_v37, %v842_v7 }
 0x180   : > { %v845_v63 = vrot.slane %v844_v14, 4 }
 0x182   : > { %v846_v60 = vadd.f32 %v845_v63, %v844_v14 }
 0x184   : > { %v847_v44 = vrot.slane %v846_v60, 2 }
 0x186   : > { %v848_v47 = vadd.f32 %v847_v44, %v846_v60 }
 0x188   : > { %v849_v20 = vrot.slane %v848_v47, 1 }
 0x18a   : > { %v850_v51 = vadd.f32 %v849_v20, %v848_v47 }
 0x18c   : > { %v851_v54 = vmul.f32 0.00390625, %v850_v51 }
 0x18e   : > { %v852_v61 = vadd.f32 1e-05, %v851_v54 }
 0x190   : > { %1357 = vrsqrt.f32 %v852_v61 }
 0x19a   : > { %v1358_v0 = vpop.eup %1357 }
 0x19b   : > { %v854_v2 = vmul.f32 %v1358_v0, %v1811_v36  ;;  %v855_v4 = vmul.f32 %v1358_v0, %v1815_v24  ;;  %v856_v6 = vmul.f32 %v1358_v0, %v1819_v1  ;;  %v857_v26 = vmul.f32 %v1358_v0, %v1823_v59 }
 0x19c   : > { %v858_v12 = vmul.f32 %v1358_v0, %v1831_v57  ;;  %v859_v32 = vmul.f32 %v1358_v0, %v1837_v55  ;;  %v860_v9 = vmul.f32 %v1358_v0, %v1845_v50  ;;  %v861_v10 = vmul.f32 %v1358_v0, %v1852_v30 }
 0x19d   : > { %v862_v52 = vmul.f32 %v1358_v0, %v1859_v16  ;;  %v863_v15 = vmul.f32 %v1358_v0, %v1760_v34  ;;  %v864_v36 = vmul.f32 %v1358_v0, %v1869_v11  ;;  %v865_v24 = vmul.f32 %v1358_v0, %v1764_v35 }
 0x19e   : > { %v866_v1 = vmul.f32 %v1358_v0, %v1768_v38  ;;  %v867_v59 = vmul.f32 %v1358_v0, %v1772_v39  ;;  %v868_v57 = vmul.f32 %v1358_v0, %v1776_v42  ;;  %v869_v55 = vmul.f32 %v1358_v0, %v1780_v3 }
 0x19f   : > { %v870_v50 = vmul.f32 %v1358_v0, %v1891_v49  ;;  %v871_v30 = vmul.f32 %v1358_v0, %v1898_v56  ;;  %v872_v16 = vmul.f32 %v1358_v0, %v1905_v8  ;;  %v873_v34 = vmul.f32 %v1358_v0, %v1912_v23 }
 0x1a0   : > { %v2002_v11 = vmul.f32 %v1358_v0, %v1919_v5  ;;  %v2005_v35 = vmul.f32 %v1358_v0, %v1926_v13  ;;  %v2008_v38 = vmul.f32 %v1358_v0, %v1933_v40  ;;  %v2011_v39 = vmul.f32 %v1358_v0, %v1940_v58 }
 0x1a1   : > { %v2014_v42 = vmul.f32 %v1358_v0, %v1784_v62  ;;  %v2017_v3 = vmul.f32 %v1358_v0, %v1788_v33  ;;  %v2020_v49 = vmul.f32 %v1358_v0, %v1953_v45  ;;  %v2023_v56 = vmul.f32 %v1358_v0, %v1792_v46 }
 0x1a2   : > { %v2033_v8 = vmul.f32 %v1358_v0, %v1796_v28  ;;  %v2036_v62 = vmul.f32 %v1358_v0, %v1799_v43  ;;  %v2039_v33 = vmul.f32 %v1358_v0, %v1803_v41  ;;  %v2042_v46 = vmul.f32 %v1358_v0, %v1807_v17 }
 0x1a3   : > { %v1263_v23 = vpack.c.bf16 %v854_v2, %v854_v2  ;;  %v1264_v5 = vpack.c.bf16 %v855_v4, %v855_v4  ;;  %v1265_v13 = vpack.c.bf16 %v856_v6, %v856_v6  ;;  %v1266_v40 = vpack.c.bf16 %v857_v26, %v857_v26 }
 0x1a4   : > { %v1267_v58 = vpack.c.bf16 %v858_v12, %v858_v12  ;;  %v1268_v28 = vpack.c.bf16 %v859_v32, %v859_v32  ;;  %v1269_v45 = vpack.c.bf16 %v860_v9, %v860_v9  ;;  %v1270_v43 = vpack.c.bf16 %v861_v10, %v861_v10 }
 0x1a5   : > { %v1271_v18 = vpack.c.bf16 %v862_v52, %v862_v52  ;;  %v1272_v41 = vpack.c.bf16 %v863_v15, %v863_v15  ;;  %v1273_v19 = vpack.c.bf16 %v864_v36, %v864_v36  ;;  %v1274_v21 = vpack.c.bf16 %v865_v24, %v865_v24  ;;  %1014 = vst.msk [vmem:[%s2030_s5] sm:$0xf] %vm613_vm3, %v1263_v23 }
 0x1a6   : > { %1015 = vst.msk [vmem:[%s2030_s5 + $0x4] sm:$0xf] %vm613_vm3, %v1264_v5  ;;  %1016 = vst.msk [vmem:[%s2030_s5 + $0x8] sm:$0xf] %vm613_vm3, %v1265_v13  ;;  %v1275_v17 = vpack.c.bf16 %v866_v1, %v866_v1  ;;  %v1276_v22 = vpack.c.bf16 %v867_v59, %v867_v59  ;;  %v1277_v25 = vpack.c.bf16 %v868_v57, %v868_v57 }
 0x1a7   : > { %1017 = vst.msk [vmem:[%s2030_s5 + $0xc] sm:$0xf] %vm613_vm3, %v1266_v40  ;;  %v1278_v53 = vpack.c.bf16 %v869_v55, %v869_v55  ;;  %1018 = vst.msk [vmem:[%s2030_s5 + $0x10] sm:$0xf] %vm613_vm3, %v1267_v58  ;;  %v1279_v27 = vpack.c.bf16 %v870_v50, %v870_v50  ;;  %v1280_v48 = vpack.c.bf16 %v871_v30, %v871_v30 }
 0x1a8   : > { %1019 = vst.msk [vmem:[%s2030_s5 + $0x14] sm:$0xf] %vm613_vm3, %v1268_v28  ;;  %1020 = vst.msk [vmem:[%s2030_s5 + $0x18] sm:$0xf] %vm613_vm3, %v1269_v45  ;;  %v1281_v29 = vpack.c.bf16 %v872_v16, %v872_v16  ;;  %v1282_v31 = vpack.c.bf16 %v873_v34, %v873_v34  ;;  %v1283_v7 = vpack.c.bf16 %v2002_v11, %v2002_v11 }
 0x1a9   : > { %1021 = vst.msk [vmem:[%s2030_s5 + $0x1c] sm:$0xf] %vm613_vm3, %v1270_v43  ;;  %1022 = vst.msk [vmem:[%s2030_s5 + $0x20] sm:$0xf] %vm613_vm3, %v1271_v18  ;;  %v1284_v37 = vpack.c.bf16 %v2005_v35, %v2005_v35  ;;  %v1285_v14 = vpack.c.bf16 %v2008_v38, %v2008_v38  ;;  %v1286_v63 = vpack.c.bf16 %v2011_v39, %v2011_v39 }
 0x1aa   : > { %1023 = vst.msk [vmem:[%s2030_s5 + $0x24] sm:$0xf] %vm613_vm3, %v1272_v41  ;;  %1024 = vst.msk [vmem:[%s2030_s5 + $0x28] sm:$0xf] %vm613_vm3, %v1273_v19  ;;  %v1287_v60 = vpack.c.bf16 %v2014_v42, %v2014_v42  ;;  %v1288_v44 = vpack.c.bf16 %v2017_v3, %v2017_v3  ;;  %v1289_v47 = vpack.c.bf16 %v2020_v49, %v2020_v49 }
 0x1ab   : > { %1025 = vst.msk [vmem:[%s2030_s5 + $0x2c] sm:$0xf] %vm613_vm3, %v1274_v21  ;;  %1026 = vst.msk [vmem:[%s2030_s5 + $0x30] sm:$0xf] %vm613_vm3, %v1275_v17  ;;  %v1290_v20 = vpack.c.bf16 %v2023_v56, %v2023_v56  ;;  %v1291_v51 = vpack.c.bf16 %v2033_v8, %v2033_v8  ;;  %v1292_v54 = vpack.c.bf16 %v2036_v62, %v2036_v62 }
 0x1ac   : > { %1027 = vst.msk [vmem:[%s2030_s5 + $0x34] sm:$0xf] %vm613_vm3, %v1276_v22  ;;  %1028 = vst.msk [vmem:[%s2030_s5 + $0x38] sm:$0xf] %vm613_vm3, %v1277_v25  ;;  %v1293_v61 = vpack.c.bf16 %v2039_v33, %v2039_v33  ;;  %v1294_v0 = vpack.c.bf16 %v2042_v46, %v2042_v46 }
 0x1ad   : > { %1029 = vst.msk [vmem:[%s2030_s5 + $0x3c] sm:$0xf] %vm613_vm3, %v1278_v53  ;;  %1030 = vst.msk [vmem:[%s2030_s5 + $0x40] sm:$0xf] %vm613_vm3, %v1279_v27 }
 0x1ae   : > { %1031 = vst.msk [vmem:[%s2030_s5 + $0x44] sm:$0xf] %vm613_vm3, %v1280_v48  ;;  %1032 = vst.msk [vmem:[%s2030_s5 + $0x48] sm:$0xf] %vm613_vm3, %v1281_v29 }
 0x1af   : > { %1033 = vst.msk [vmem:[%s2030_s5 + $0x4c] sm:$0xf] %vm613_vm3, %v1282_v31  ;;  %1034 = vst.msk [vmem:[%s2030_s5 + $0x50] sm:$0xf] %vm613_vm3, %v1283_v7 }
 0x1b0   : > { %1035 = vst.msk [vmem:[%s2030_s5 + $0x54] sm:$0xf] %vm613_vm3, %v1284_v37  ;;  %1036 = vst.msk [vmem:[%s2030_s5 + $0x58] sm:$0xf] %vm613_vm3, %v1285_v14 }
 0x1b1   : > { %1037 = vst.msk [vmem:[%s2030_s5 + $0x5c] sm:$0xf] %vm613_vm3, %v1286_v63  ;;  %1038 = vst.msk [vmem:[%s2030_s5 + $0x60] sm:$0xf] %vm613_vm3, %v1287_v60 }
 0x1b2   : > { %1039 = vst.msk [vmem:[%s2030_s5 + $0x64] sm:$0xf] %vm613_vm3, %v1288_v44  ;;  %1040 = vst.msk [vmem:[%s2030_s5 + $0x68] sm:$0xf] %vm613_vm3, %v1289_v47 }
 0x1b3   : > { %1041 = vst.msk [vmem:[%s2030_s5 + $0x6c] sm:$0xf] %vm613_vm3, %v1290_v20  ;;  %1042 = vst.msk [vmem:[%s2030_s5 + $0x70] sm:$0xf] %vm613_vm3, %v1291_v51 }
 0x1b4   : > { %1043 = vst.msk [vmem:[%s2030_s5 + $0x74] sm:$0xf] %vm613_vm3, %v1292_v54  ;;  %1044 = vst.msk [vmem:[%s2030_s5 + $0x78] sm:$0xf] %vm613_vm3, %v1293_v61 }
 0x1b5   : > { %1045 = vst.msk [vmem:[%s2030_s5 + $0x7c] sm:$0xf] %vm613_vm3, %v1294_v0 }
 0x1b6 PF: > { %s15_s15 = sadd.s32 1, %s1365_s15  }
 0x1b7   : > { %p12_p4 = scmp.ge.s32.totalorder %s15_s15, 4  }
 0x1b9   :  { %14 = sbr.rel (!%p12_p4) target bundleno = 1 (0x1), region = 74 }

// kernel: neg.8
= control target key start
LH: loop header
LB: loop body
LE: loop exit
PB: predicated region body
PF: predicated region fallthrough
CT: control target
= control target key end

     0   :  { %v831_v27 = vmov 0.0   ;;  %s1324_s0 = inlined_call_operand.vmem [shape: bf16[16,32,32], index: 0, kind: input, shape index: {}]   ;;  %s1325_s1 = inlined_call_operand.vmem [shape: bf16[16,32,32], index: 1, kind: output, shape index: {}]  }
   0x1   :  { %v845_v0 = vld [vmem:[%s1324_s0] sm:$0xff]   ;;  %v850_v1 = vld [vmem:[%s1324_s0 + $0x10] sm:$0xff]  }
   0x2   :  { %v855_v2 = vld [vmem:[%s1324_s0 + $0x20] sm:$0xff]   ;;  %v3_v3 = vunpack.c.l.bf16 %v845_v0  ;;  %v13_v4 = vunpack.c.l.bf16 %v850_v1  ;;  %v863_v6 = vld [vmem:[%s1324_s0 + $0x30] sm:$0xff]   ;;  %v178_v9 = vunpack.c.h.bf16 %v845_v0  ;;  %v189_v15 = vunpack.c.h.bf16 %v850_v1 }
   0x3   :  { %v24_v5 = vunpack.c.l.bf16 %v855_v2  ;;  %v868_v7 = vld [vmem:[%s1324_s0 + $0x40] sm:$0xff]   ;;  %v873_v8 = vld [vmem:[%s1324_s0 + $0x50] sm:$0xff]   ;;  %v35_v10 = vunpack.c.l.bf16 %v863_v6  ;;  %v200_v2 = vunpack.c.h.bf16 %v855_v2  ;;  %v211_v6 = vunpack.c.h.bf16 %v863_v6 }
   0x4   :  { %v46_v11 = vunpack.c.l.bf16 %v868_v7  ;;  %v57_v12 = vunpack.c.l.bf16 %v873_v8  ;;  %v882_v13 = vld [vmem:[%s1324_s0 + $0x60] sm:$0xff]   ;;  %v887_v14 = vld [vmem:[%s1324_s0 + $0x70] sm:$0xff]   ;;  %v7_v16 = vxor.u32 2147483648, %v3_v3  ;;  %v17_v17 = vxor.u32 2147483648, %v13_v4 }
   0x5   :  { %v28_v18 = vxor.u32 2147483648, %v24_v5  ;;  %v68_v19 = vunpack.c.l.bf16 %v882_v13  ;;  %v39_v20 = vxor.u32 2147483648, %v35_v10  ;;  %v79_v23 = vunpack.c.l.bf16 %v887_v14  ;;  %v895_v24 = vld [vmem:[%s1324_s0 + $0x80] sm:$0xff]   ;;  %v900_v25 = vld [vmem:[%s1324_s0 + $0x90] sm:$0xff]  }
   0x6   :  { %v50_v21 = vxor.u32 2147483648, %v46_v11  ;;  %v61_v22 = vxor.u32 2147483648, %v57_v12  ;;  %v905_v26 = vld [vmem:[%s1324_s0 + $0xa0] sm:$0xff]   ;;  %v9_v28 = vpack.c.bf16 %v831_v27, %v7_v16  ;;  %v20_v29 = vpack.c.bf16 %v831_v27, %v17_v17  ;;  %v913_v32 = vld [vmem:[%s1324_s0 + $0xb0] sm:$0xff]  }
   0x7   :  { %v31_v30 = vpack.c.bf16 %v831_v27, %v28_v18  ;;  %v72_v31 = vxor.u32 2147483648, %v68_v19  ;;  %v918_v33 = vld [vmem:[%s1324_s0 + $0xc0] sm:$0xff]   ;;  %v923_v34 = vld [vmem:[%s1324_s0 + $0xd0] sm:$0xff]   ;;  %v42_v35 = vpack.c.bf16 %v831_v27, %v39_v20  ;;  %v83_v38 = vxor.u32 2147483648, %v79_v23 }
   0x8   :  { %v53_v36 = vpack.c.bf16 %v831_v27, %v50_v21  ;;  %v64_v37 = vpack.c.bf16 %v831_v27, %v61_v22  ;;  %v931_v39 = vld [vmem:[%s1324_s0 + $0xe0] sm:$0xff]   ;;  %10 = vst [vmem:[%s1325_s1] sm:$0xf] %v9_v28  ;;  %705 = vst [vmem:[%s1325_s1 + $0x10] sm:$0xf] %v20_v29  ;;  %v90_v41 = vunpack.c.l.bf16 %v895_v24  ;;  %v101_v42 = vunpack.c.l.bf16 %v900_v25  ;;  %v949_v44 = vld [vmem:[%s1324_s0 + $0xf0] sm:$0xff]  }
   0x9   :  { %707 = vst [vmem:[%s1325_s1 + $0x20] sm:$0xf] %v31_v30  ;;  %v75_v40 = vpack.c.bf16 %v831_v27, %v72_v31  ;;  %v112_v43 = vunpack.c.l.bf16 %v905_v26  ;;  %709 = vst [vmem:[%s1325_s1 + $0x30] sm:$0xf] %v42_v35  ;;  %v86_v45 = vpack.c.bf16 %v831_v27, %v83_v38  ;;  %v123_v46 = vunpack.c.l.bf16 %v913_v32  ;;  %v1052_v35 = vld [vmem:[%s1324_s0 + $0x18] sm:$0xff]  }
   0xa   :  { %711 = vst [vmem:[%s1325_s1 + $0x40] sm:$0xf] %v53_v36  ;;  %713 = vst [vmem:[%s1325_s1 + $0x50] sm:$0xf] %v64_v37  ;;  %v134_v47 = vunpack.c.l.bf16 %v918_v33  ;;  %v145_v48 = vunpack.c.l.bf16 %v923_v34  ;;  %v94_v49 = vxor.u32 2147483648, %v90_v41  ;;  %v105_v50 = vxor.u32 2147483648, %v101_v42 }
   0xb   :  { %715 = vst [vmem:[%s1325_s1 + $0x60] sm:$0xf] %v75_v40  ;;  %v116_v51 = vxor.u32 2147483648, %v112_v43  ;;  %v156_v52 = vunpack.c.l.bf16 %v931_v39  ;;  %717 = vst [vmem:[%s1325_s1 + $0x70] sm:$0xf] %v86_v45  ;;  %v127_v53 = vxor.u32 2147483648, %v123_v46  ;;  %v167_v56 = vunpack.c.l.bf16 %v949_v44 }
   0xc   :  { %v138_v54 = vxor.u32 2147483648, %v134_v47  ;;  %v149_v55 = vxor.u32 2147483648, %v145_v48  ;;  %v97_v57 = vpack.c.bf16 %v831_v27, %v94_v49  ;;  %v108_v58 = vpack.c.bf16 %v831_v27, %v105_v50  ;;  %v1081_v49 = vld [vmem:[%s1324_s0 + $0x38] sm:$0xff]   ;;  %v1086_v50 = vld [vmem:[%s1324_s0 + $0x48] sm:$0xff]  }
   0xd   :  { %v119_v59 = vpack.c.bf16 %v831_v27, %v116_v51  ;;  %v160_v60 = vxor.u32 2147483648, %v156_v52  ;;  %v130_v61 = vpack.c.bf16 %v831_v27, %v127_v53  ;;  %v171_v1 = vxor.u32 2147483648, %v167_v56  ;;  %v1091_v51 = vld [vmem:[%s1324_s0 + $0x58] sm:$0xff]   ;;  %v1099_v56 = vld [vmem:[%s1324_s0 + $0x68] sm:$0xff]  }
   0xe   :  { %v141_v62 = vpack.c.bf16 %v831_v27, %v138_v54  ;;  %v152_v63 = vpack.c.bf16 %v831_v27, %v149_v55  ;;  %719 = vst [vmem:[%s1325_s1 + $0x80] sm:$0xf] %v97_v57  ;;  %721 = vst [vmem:[%s1325_s1 + $0x90] sm:$0xf] %v108_v58  ;;  %v182_v0 = vxor.u32 2147483648, %v178_v9  ;;  %v193_v4 = vxor.u32 2147483648, %v189_v15 }
   0xf   :  { %723 = vst [vmem:[%s1325_s1 + $0xa0] sm:$0xf] %v119_v59  ;;  %v163_v3 = vpack.c.bf16 %v831_v27, %v160_v60  ;;  %725 = vst [vmem:[%s1325_s1 + $0xb0] sm:$0xf] %v130_v61  ;;  %v174_v5 = vpack.c.bf16 %v831_v27, %v171_v1  ;;  %v222_v7 = vunpack.c.h.bf16 %v868_v7  ;;  %v233_v8 = vunpack.c.h.bf16 %v873_v8  ;;  %v1109_v61 = vld [vmem:[%s1324_s0 + $0x78] sm:$0xff]  }
  0x10   :  { %727 = vst [vmem:[%s1325_s1 + $0xc0] sm:$0xf] %v141_v62  ;;  %729 = vst [vmem:[%s1325_s1 + $0xd0] sm:$0xf] %v152_v63  ;;  %v185_v9 = vpack.c.bf16 %v831_v27, %v182_v0  ;;  %v196_v10 = vpack.c.bf16 %v831_v27, %v193_v4  ;;  %v204_v11 = vxor.u32 2147483648, %v200_v2  ;;  %v244_v12 = vunpack.c.h.bf16 %v882_v13  ;;  %v1127_v0 = vld [vmem:[%s1324_s0 + $0x88] sm:$0xff]  }
  0x11   :  { %731 = vst [vmem:[%s1325_s1 + $0xe0] sm:$0xf] %v163_v3  ;;  %733 = vst [vmem:[%s1325_s1 + $0xf0] sm:$0xf] %v174_v5  ;;  %v215_v13 = vxor.u32 2147483648, %v211_v6  ;;  %v226_v15 = vxor.u32 2147483648, %v222_v7  ;;  %v255_v14 = vunpack.c.h.bf16 %v887_v14  ;;  %v266_v19 = vunpack.c.h.bf16 %v895_v24 }
  0x12   :  { %v237_v16 = vxor.u32 2147483648, %v233_v8  ;;  %735 = vst [vmem:[%s1325_s1 + $0x4] sm:$0xf] %v185_v9  ;;  %737 = vst [vmem:[%s1325_s1 + $0x14] sm:$0xf] %v196_v10  ;;  %v207_v17 = vpack.c.bf16 %v831_v27, %v204_v11  ;;  %v248_v18 = vxor.u32 2147483648, %v244_v12  ;;  %v277_v20 = vunpack.c.h.bf16 %v900_v25 }
  0x13   :  { %v218_v21 = vpack.c.bf16 %v831_v27, %v215_v13  ;;  %v229_v22 = vpack.c.bf16 %v831_v27, %v226_v15  ;;  %v259_v24 = vxor.u32 2147483648, %v255_v14  ;;  %v270_v28 = vxor.u32 2147483648, %v266_v19  ;;  %v1132_v4 = vld [vmem:[%s1324_s0 + $0x98] sm:$0xff]   ;;  %v1147_v12 = vld [vmem:[%s1324_s0 + $0xa8] sm:$0xff]  }
  0x14   :  { %v240_v23 = vpack.c.bf16 %v831_v27, %v237_v16  ;;  %739 = vst [vmem:[%s1325_s1 + $0x24] sm:$0xf] %v207_v17  ;;  %v251_v25 = vpack.c.bf16 %v831_v27, %v248_v18  ;;  %v281_v29 = vxor.u32 2147483648, %v277_v20  ;;  %v288_v26 = vunpack.c.h.bf16 %v905_v26  ;;  %v1161_v17 = vld [vmem:[%s1324_s0 + $0xb8] sm:$0xff]   ;;  %v1166_v18 = vld [vmem:[%s1324_s0 + $0xc8] sm:$0xff]  }
  0x15   :  { %741 = vst [vmem:[%s1325_s1 + $0x34] sm:$0xf] %v218_v21  ;;  %743 = vst [vmem:[%s1325_s1 + $0x44] sm:$0xf] %v229_v22  ;;  %v262_v30 = vpack.c.bf16 %v831_v27, %v259_v24  ;;  %v299_v31 = vunpack.c.h.bf16 %v913_v32  ;;  %v310_v32 = vunpack.c.h.bf16 %v918_v33  ;;  %v321_v33 = vunpack.c.h.bf16 %v923_v34  ;;  %v1047_v34 = vld [vmem:[%s1324_s0 + $0x8] sm:$0xff]   ;;  %v1171_v19 = vld [vmem:[%s1324_s0 + $0xd8] sm:$0xff]  }
  0x16   :  { %745 = vst [vmem:[%s1325_s1 + $0x54] sm:$0xf] %v240_v23  ;;  %747 = vst [vmem:[%s1325_s1 + $0x64] sm:$0xf] %v251_v25  ;;  %v273_v36 = vpack.c.bf16 %v831_v27, %v270_v28  ;;  %v284_v37 = vpack.c.bf16 %v831_v27, %v281_v29  ;;  %v292_v38 = vxor.u32 2147483648, %v288_v26  ;;  %v332_v39 = vunpack.c.h.bf16 %v931_v39  ;;  %v1179_v24 = vld [vmem:[%s1324_s0 + $0xe8] sm:$0xff]  }
  0x17   :  { %749 = vst [vmem:[%s1325_s1 + $0x74] sm:$0xf] %v262_v30  ;;  %v303_v40 = vxor.u32 2147483648, %v299_v31  ;;  %v314_v41 = vxor.u32 2147483648, %v310_v32  ;;  %v325_v42 = vxor.u32 2147483648, %v321_v33  ;;  %v343_v43 = vunpack.c.h.bf16 %v949_v44  ;;  %v1067_v44 = vld [vmem:[%s1324_s0 + $0x28] sm:$0xff]  }
  0x18   :  { %751 = vst [vmem:[%s1325_s1 + $0x84] sm:$0xf] %v273_v36  ;;  %753 = vst [vmem:[%s1325_s1 + $0x94] sm:$0xf] %v284_v37  ;;  %v295_v45 = vpack.c.bf16 %v831_v27, %v292_v38  ;;  %v336_v46 = vxor.u32 2147483648, %v332_v39  ;;  %v354_v47 = vunpack.c.l.bf16 %v1047_v34  ;;  %v365_v48 = vunpack.c.l.bf16 %v1052_v35  ;;  %v1189_v30 = vld [vmem:[%s1324_s0 + $0xf8] sm:$0xff]  }
  0x19   :  { %v306_v52 = vpack.c.bf16 %v831_v27, %v303_v40  ;;  %v317_v53 = vpack.c.bf16 %v831_v27, %v314_v41  ;;  %v328_v54 = vpack.c.bf16 %v831_v27, %v325_v42  ;;  %v347_v55 = vxor.u32 2147483648, %v343_v43 }
  0x1a   :  { %755 = vst [vmem:[%s1325_s1 + $0xa4] sm:$0xf] %v295_v45  ;;  %v339_v57 = vpack.c.bf16 %v831_v27, %v336_v46  ;;  %v358_v58 = vxor.u32 2147483648, %v354_v47  ;;  %v369_v59 = vxor.u32 2147483648, %v365_v48  ;;  %v376_v60 = vunpack.c.l.bf16 %v1067_v44 }
  0x1b   :  { %757 = vst [vmem:[%s1325_s1 + $0xb4] sm:$0xf] %v306_v52  ;;  %759 = vst [vmem:[%s1325_s1 + $0xc4] sm:$0xf] %v317_v53  ;;  %v350_v62 = vpack.c.bf16 %v831_v27, %v347_v55  ;;  %v387_v63 = vunpack.c.l.bf16 %v1081_v49  ;;  %v398_v1 = vunpack.c.l.bf16 %v1086_v50  ;;  %v409_v3 = vunpack.c.l.bf16 %v1091_v51 }
  0x1c   :  { %761 = vst [vmem:[%s1325_s1 + $0xd4] sm:$0xf] %v328_v54  ;;  %763 = vst [vmem:[%s1325_s1 + $0xe4] sm:$0xf] %v339_v57  ;;  %v361_v2 = vpack.c.bf16 %v831_v27, %v358_v58  ;;  %v372_v5 = vpack.c.bf16 %v831_v27, %v369_v59  ;;  %v380_v6 = vxor.u32 2147483648, %v376_v60  ;;  %v420_v7 = vunpack.c.l.bf16 %v1099_v56 }
  0x1d   :  { %765 = vst [vmem:[%s1325_s1 + $0xf4] sm:$0xf] %v350_v62  ;;  %v391_v8 = vxor.u32 2147483648, %v387_v63  ;;  %v402_v9 = vxor.u32 2147483648, %v398_v1  ;;  %v413_v10 = vxor.u32 2147483648, %v409_v3  ;;  %v431_v11 = vunpack.c.l.bf16 %v1109_v61 }
  0x1e   :  { %767 = vst [vmem:[%s1325_s1 + $0x8] sm:$0xf] %v361_v2  ;;  %769 = vst [vmem:[%s1325_s1 + $0x18] sm:$0xf] %v372_v5  ;;  %v383_v13 = vpack.c.bf16 %v831_v27, %v380_v6  ;;  %v424_v15 = vxor.u32 2147483648, %v420_v7  ;;  %v442_v16 = vunpack.c.l.bf16 %v1127_v0  ;;  %v453_v14 = vunpack.c.l.bf16 %v1132_v4 }
  0x1f   :  { %v394_v20 = vpack.c.bf16 %v831_v27, %v391_v8  ;;  %v405_v21 = vpack.c.bf16 %v831_v27, %v402_v9  ;;  %v416_v22 = vpack.c.bf16 %v831_v27, %v413_v10  ;;  %v435_v23 = vxor.u32 2147483648, %v431_v11 }
  0x20   :  { %771 = vst [vmem:[%s1325_s1 + $0x28] sm:$0xf] %v383_v13  ;;  %v427_v25 = vpack.c.bf16 %v831_v27, %v424_v15  ;;  %v446_v28 = vxor.u32 2147483648, %v442_v16  ;;  %v457_v29 = vxor.u32 2147483648, %v453_v14  ;;  %v464_v26 = vunpack.c.l.bf16 %v1147_v12 }
  0x21   :  { %773 = vst [vmem:[%s1325_s1 + $0x38] sm:$0xf] %v394_v20  ;;  %775 = vst [vmem:[%s1325_s1 + $0x48] sm:$0xf] %v405_v21  ;;  %v438_v31 = vpack.c.bf16 %v831_v27, %v435_v23  ;;  %v475_v32 = vunpack.c.l.bf16 %v1161_v17  ;;  %v486_v33 = vunpack.c.l.bf16 %v1166_v18  ;;  %v497_v36 = vunpack.c.l.bf16 %v1171_v19 }
  0x22   :  { %777 = vst [vmem:[%s1325_s1 + $0x58] sm:$0xf] %v416_v22  ;;  %779 = vst [vmem:[%s1325_s1 + $0x68] sm:$0xf] %v427_v25  ;;  %v449_v37 = vpack.c.bf16 %v831_v27, %v446_v28  ;;  %v460_v38 = vpack.c.bf16 %v831_v27, %v457_v29  ;;  %v468_v39 = vxor.u32 2147483648, %v464_v26  ;;  %v508_v40 = vunpack.c.l.bf16 %v1179_v24 }
  0x23   :  { %781 = vst [vmem:[%s1325_s1 + $0x78] sm:$0xf] %v438_v31  ;;  %v479_v41 = vxor.u32 2147483648, %v475_v32  ;;  %v490_v42 = vxor.u32 2147483648, %v486_v33  ;;  %v501_v43 = vxor.u32 2147483648, %v497_v36  ;;  %v519_v45 = vunpack.c.l.bf16 %v1189_v30 }
  0x24   :  { %783 = vst [vmem:[%s1325_s1 + $0x88] sm:$0xf] %v449_v37  ;;  %785 = vst [vmem:[%s1325_s1 + $0x98] sm:$0xf] %v460_v38  ;;  %v471_v46 = vpack.c.bf16 %v831_v27, %v468_v39  ;;  %v512_v47 = vxor.u32 2147483648, %v508_v40  ;;  %v530_v34 = vunpack.c.h.bf16 %v1047_v34  ;;  %v541_v35 = vunpack.c.h.bf16 %v1052_v35 }
  0x25   :  { %v482_v48 = vpack.c.bf16 %v831_v27, %v479_v41  ;;  %v493_v52 = vpack.c.bf16 %v831_v27, %v490_v42  ;;  %v504_v53 = vpack.c.bf16 %v831_v27, %v501_v43  ;;  %v523_v54 = vxor.u32 2147483648, %v519_v45 }
  0x26   :  { %787 = vst [vmem:[%s1325_s1 + $0xa8] sm:$0xf] %v471_v46  ;;  %v515_v55 = vpack.c.bf16 %v831_v27, %v512_v47  ;;  %v534_v57 = vxor.u32 2147483648, %v530_v34  ;;  %v545_v58 = vxor.u32 2147483648, %v541_v35  ;;  %v552_v44 = vunpack.c.h.bf16 %v1067_v44 }
  0x27   :  { %789 = vst [vmem:[%s1325_s1 + $0xb8] sm:$0xf] %v482_v48  ;;  %791 = vst [vmem:[%s1325_s1 + $0xc8] sm:$0xf] %v493_v52  ;;  %v526_v59 = vpack.c.bf16 %v831_v27, %v523_v54  ;;  %v563_v49 = vunpack.c.h.bf16 %v1081_v49  ;;  %v574_v50 = vunpack.c.h.bf16 %v1086_v50  ;;  %v585_v51 = vunpack.c.h.bf16 %v1091_v51 }
  0x28   :  { %793 = vst [vmem:[%s1325_s1 + $0xd8] sm:$0xf] %v504_v53  ;;  %795 = vst [vmem:[%s1325_s1 + $0xe8] sm:$0xf] %v515_v55  ;;  %v537_v60 = vpack.c.bf16 %v831_v27, %v534_v57  ;;  %v548_v62 = vpack.c.bf16 %v831_v27, %v545_v58  ;;  %v556_v63 = vxor.u32 2147483648, %v552_v44  ;;  %v596_v56 = vunpack.c.h.bf16 %v1099_v56 }
  0x29   :  { %797 = vst [vmem:[%s1325_s1 + $0xf8] sm:$0xf] %v526_v59  ;;  %v567_v1 = vxor.u32 2147483648, %v563_v49  ;;  %v578_v3 = vxor.u32 2147483648, %v574_v50  ;;  %v589_v2 = vxor.u32 2147483648, %v585_v51  ;;  %v607_v61 = vunpack.c.h.bf16 %v1109_v61 }
  0x2a   :  { %799 = vst [vmem:[%s1325_s1 + $0xc] sm:$0xf] %v537_v60  ;;  %801 = vst [vmem:[%s1325_s1 + $0x1c] sm:$0xf] %v548_v62  ;;  %v559_v5 = vpack.c.bf16 %v831_v27, %v556_v63  ;;  %v600_v6 = vxor.u32 2147483648, %v596_v56  ;;  %v618_v0 = vunpack.c.h.bf16 %v1127_v0  ;;  %v629_v4 = vunpack.c.h.bf16 %v1132_v4 }
  0x2b   :  { %v570_v7 = vpack.c.bf16 %v831_v27, %v567_v1  ;;  %v581_v8 = vpack.c.bf16 %v831_v27, %v578_v3  ;;  %v592_v9 = vpack.c.bf16 %v831_v27, %v589_v2  ;;  %v611_v10 = vxor.u32 2147483648, %v607_v61 }
  0x2c   :  { %803 = vst [vmem:[%s1325_s1 + $0x2c] sm:$0xf] %v559_v5  ;;  %v603_v11 = vpack.c.bf16 %v831_v27, %v600_v6  ;;  %v622_v13 = vxor.u32 2147483648, %v618_v0  ;;  %v633_v15 = vxor.u32 2147483648, %v629_v4  ;;  %v640_v12 = vunpack.c.h.bf16 %v1147_v12 }
  0x2d   :  { %805 = vst [vmem:[%s1325_s1 + $0x3c] sm:$0xf] %v570_v7  ;;  %807 = vst [vmem:[%s1325_s1 + $0x4c] sm:$0xf] %v581_v8  ;;  %v614_v16 = vpack.c.bf16 %v831_v27, %v611_v10  ;;  %v651_v14 = vunpack.c.h.bf16 %v1161_v17  ;;  %v662_v17 = vunpack.c.h.bf16 %v1166_v18  ;;  %v673_v18 = vunpack.c.h.bf16 %v1171_v19 }
  0x2e   :  { %809 = vst [vmem:[%s1325_s1 + $0x5c] sm:$0xf] %v592_v9  ;;  %811 = vst [vmem:[%s1325_s1 + $0x6c] sm:$0xf] %v603_v11  ;;  %v625_v19 = vpack.c.bf16 %v831_v27, %v622_v13  ;;  %v636_v20 = vpack.c.bf16 %v831_v27, %v633_v15  ;;  %v644_v21 = vxor.u32 2147483648, %v640_v12  ;;  %v684_v22 = vunpack.c.h.bf16 %v1179_v24 }
  0x2f   :  { %813 = vst [vmem:[%s1325_s1 + $0x7c] sm:$0xf] %v614_v16  ;;  %v655_v23 = vxor.u32 2147483648, %v651_v14  ;;  %v666_v24 = vxor.u32 2147483648, %v662_v17  ;;  %v677_v25 = vxor.u32 2147483648, %v673_v18  ;;  %v695_v28 = vunpack.c.h.bf16 %v1189_v30 }
  0x30   :  { %815 = vst [vmem:[%s1325_s1 + $0x8c] sm:$0xf] %v625_v19  ;;  %817 = vst [vmem:[%s1325_s1 + $0x9c] sm:$0xf] %v636_v20  ;;  %v647_v29 = vpack.c.bf16 %v831_v27, %v644_v21  ;;  %v688_v26 = vxor.u32 2147483648, %v684_v22 }
  0x31   :  { %v658_v30 = vpack.c.bf16 %v831_v27, %v655_v23  ;;  %v669_v31 = vpack.c.bf16 %v831_v27, %v666_v24  ;;  %v680_v32 = vpack.c.bf16 %v831_v27, %v677_v25  ;;  %v699_v33 = vxor.u32 2147483648, %v695_v28 }
  0x32   :  { %819 = vst [vmem:[%s1325_s1 + $0xac] sm:$0xf] %v647_v29  ;;  %v691_v36 = vpack.c.bf16 %v831_v27, %v688_v26 }
  0x33   :  { %821 = vst [vmem:[%s1325_s1 + $0xbc] sm:$0xf] %v658_v30  ;;  %823 = vst [vmem:[%s1325_s1 + $0xcc] sm:$0xf] %v669_v31  ;;  %v702_v27 = vpack.c.bf16 %v831_v27, %v699_v33 }
  0x34   :  { %825 = vst [vmem:[%s1325_s1 + $0xdc] sm:$0xf] %v680_v32  ;;  %827 = vst [vmem:[%s1325_s1 + $0xec] sm:$0xf] %v691_v36 }
  0x35   :  { %829 = vst [vmem:[%s1325_s1 + $0xfc] sm:$0xf] %v702_v27 }

// kernel: fno2d_forward.10
= control target key start
LH: loop header
LB: loop body
LE: loop exit
PB: predicated region body
PF: predicated region fallthrough
CT: control target
= control target key end

     0   :  { %s1928_s9 = smov 0   ;;  %s2183_s0 = inlined_call_operand.vmem [shape: bf16[2,16,2,64], index: 0, kind: input, shape index: {}]   ;;  %s2184_s1 = inlined_call_operand.vmem [shape: bf16[2,16,64,64], index: 1, kind: input, shape index: {}]   ;;  %s2185_s2 = inlined_call_operand.vmem [shape: f32[2,16,2,64], index: 2, kind: output, shape index: {}]  }
   0x1 LB: > { %s1463_s10 = sadd.s32 4294967295, %s1909_s9   ;;  %p1467_p0 = scmp.ge.s32.totalorder %s1909_s9, 1  ;;  %s1909_s9 = sphi %s1928_s9, %s12_s9  }
   0x2   : > { %p121_p1 = scmp.lt.s32.totalorder %s1909_s9, 3 }
   0x4   : > { %p122_p2 = pnand %p1467_p0, %p121_p1 }
   0x5   : > { %p147_p3 = scmp.lt.s32.totalorder (!%p122_p2), %s1463_s10, 1  ;;  %v1911_v0 = vmov (!%p122_p2), 0.0   ;;  %vm1912_vm0 = vmmov (!%p122_p2), 0   ;;  %vm330_vm1 = vcmask (!%p122_p2), 523264   ;;  %vm1379_vm2 = vcmask (!%p122_p2), 517120  }
   0x6   : > { %125 = sbr.rel (%p122_p2) target bundleno = 360 (0x168), region = 28  ;;  %1637 = vmatprep.subr.bf16.mxu0 (!%p122_p2), %v1911_v0  ;;  %1649 = vmatprep.subr.bf16.mxu1 (!%p122_p2), %v1911_v0 }
   0x7   : > { %1645 = vmatprep.mubr.msk.bf16.mxu0 (!%p122_p2), %vm1912_vm0, %v1911_v0  ;;  %1657 = vmatprep.mubr.msk.bf16.mxu1 (!%p122_p2), %vm1912_vm0, %v1911_v0 }
   0xd   : > { %s2187_s10 = smov (!%p147_p3, %s1463_s10), 1 }
   0xe   : > { %s1555_s11 = sshll.u32 %s2187_s10, 9  ;;  %s1468_s15 = sshll.u32 %s2187_s10, 4 }
   0xf   : > { %s1948_s14 = scalar_lea.vmem %s2184_s1, %s1555_s11  ;;  %s1964_s18 = scalar_lea.vmem %s2183_s0, %s1468_s15 }
  0x10   : > { %v1839_v1 = vld [vmem:[%s1948_s14] sm:$0xff]   ;;  %v1841_v3 = vld [vmem:[%s1948_s14 + $0x8] sm:$0xff]   ;;  %v1843_v5 = vld [vmem:[%s1948_s14 + $0x10] sm:$0xff]   ;;  %s1556_s19 = sshll.u32 %s2187_s10, 5 }
  0x11   : > { %v1840_v2 = vld [vmem:[%s1948_s14 + $0x20] sm:$0xff]   ;;  %1638 = vmatpush3.bf16.msra.mxu0 %v1839_v1  ;;  %v1842_v4 = vld [vmem:[%s1948_s14 + $0x28] sm:$0xff]   ;;  %v1844_v6 = vld [vmem:[%s1948_s14 + $0x30] sm:$0xff]   ;;  %s2146_s22 = scalar_lea.vmem %s2185_s2, %s1556_s19 }
  0x12   : > { %1650 = vmatpush3.bf16.msra.mxu1 %v1840_v2  ;;  %1639 = vmatprep.subr.bf16.mxu0 %v1911_v0  ;;  %v1845_v7 = vld [vmem:[%s1948_s14 + $0x18] sm:$0xff]   ;;  %v162_v9 = vld [vmem:[%s1964_s18] sm:$0x1]  ;;  %v163_v10 = vld [vmem:[%s1964_s18 + $0x1] sm:$0x1] }
  0x13   : > { %1651 = vmatprep.subr.bf16.mxu1 %v1911_v0  ;;  %v1846_v8 = vld [vmem:[%s1948_s14 + $0x38] sm:$0xff]   ;;  %v1847_v11 = vld [vmem:[%s1948_s14 + $0x40] sm:$0xff]   ;;  %v1849_v13 = vld [vmem:[%s1948_s14 + $0x48] sm:$0xff]  }
  0x14   : > { %v1848_v12 = vld [vmem:[%s1948_s14 + $0x60] sm:$0xff]   ;;  %v1850_v14 = vld [vmem:[%s1948_s14 + $0x68] sm:$0xff]   ;;  %v1851_v15 = vld [vmem:[%s1948_s14 + $0x50] sm:$0xff]  }
  0x15   : > { %1640 = vmatpush3.bf16.msra.mxu0 %v1841_v3  ;;  %v1852_v16 = vld [vmem:[%s1948_s14 + $0x70] sm:$0xff]   ;;  %v1853_v17 = vld [vmem:[%s1948_s14 + $0x58] sm:$0xff]   ;;  %v164_v19 = vld [vmem:[%s1964_s18 + $0x2] sm:$0x1] }
  0x16   : > { %1652 = vmatpush3.bf16.msra.mxu1 %v1842_v4  ;;  %1641 = vmatprep.subr.bf16.mxu0 %v1911_v0  ;;  %v1854_v18 = vld [vmem:[%s1948_s14 + $0x78] sm:$0xff]   ;;  %v165_v20 = vld [vmem:[%s1964_s18 + $0x3] sm:$0x1]  ;;  %v1857_v23 = vld [vmem:[%s1948_s14 + $0x88] sm:$0xff]  }
  0x17   : > { %1653 = vmatprep.subr.bf16.mxu1 %v1911_v0  ;;  %v1855_v21 = vld [vmem:[%s1948_s14 + $0x80] sm:$0xff]   ;;  %v1858_v24 = vld [vmem:[%s1948_s14 + $0xa8] sm:$0xff]   ;;  %v1859_v25 = vld [vmem:[%s1948_s14 + $0x90] sm:$0xff]  }
  0x18   : > { %v1856_v22 = vld [vmem:[%s1948_s14 + $0xa0] sm:$0xff]   ;;  %v1860_v26 = vld [vmem:[%s1948_s14 + $0xb0] sm:$0xff]   ;;  %v1861_v27 = vld [vmem:[%s1948_s14 + $0x98] sm:$0xff]  }
  0x19   : > { %1642 = vmatpush3.bf16.msra.mxu0 %v1843_v5  ;;  %v1862_v28 = vld [vmem:[%s1948_s14 + $0xb8] sm:$0xff]   ;;  %v166_v29 = vld [vmem:[%s1964_s18 + $0x4] sm:$0x1]  ;;  %v167_v30 = vld [vmem:[%s1964_s18 + $0x5] sm:$0x1] }
  0x1a   : > { %1654 = vmatpush3.bf16.msra.mxu1 %v1844_v6  ;;  %1643 = vmatprep.subr.bf16.mxu0 %v1911_v0  ;;  %v1863_v31 = vld [vmem:[%s1948_s14 + $0xc0] sm:$0xff]   ;;  %v1865_v33 = vld [vmem:[%s1948_s14 + $0xc8] sm:$0xff]   ;;  %v1867_v35 = vld [vmem:[%s1948_s14 + $0xd0] sm:$0xff]  }
  0x1b   : > { %1655 = vmatprep.subr.bf16.mxu1 %v1911_v0  ;;  %v1864_v32 = vld [vmem:[%s1948_s14 + $0xe0] sm:$0xff]   ;;  %v1866_v34 = vld [vmem:[%s1948_s14 + $0xe8] sm:$0xff]   ;;  %v1868_v36 = vld [vmem:[%s1948_s14 + $0xf0] sm:$0xff]  }
  0x1c   : > { %v1869_v37 = vld [vmem:[%s1948_s14 + $0xd8] sm:$0xff]   ;;  %v168_v39 = vld [vmem:[%s1964_s18 + $0x6] sm:$0x1]  ;;  %v169_v40 = vld [vmem:[%s1964_s18 + $0x7] sm:$0x1] }
  0x1d   : > { %1644 = vmatpush3.bf16.msra.mxu0 %v1845_v7  ;;  %v1870_v38 = vld [vmem:[%s1948_s14 + $0xf8] sm:$0xff]   ;;  %v1871_v41 = vld [vmem:[%s1948_s14 + $0x100] sm:$0xff]   ;;  %v1873_v43 = vld [vmem:[%s1948_s14 + $0x108] sm:$0xff]  }
  0x1e   : > { %1656 = vmatpush3.bf16.msra.mxu1 %v1846_v8  ;;  %1661 = vmatprep.subr.bf16.mxu0 %v1911_v0  ;;  %v1872_v42 = vld [vmem:[%s1948_s14 + $0x120] sm:$0xff]   ;;  %v1874_v44 = vld [vmem:[%s1948_s14 + $0x128] sm:$0xff]   ;;  %v1875_v45 = vld [vmem:[%s1948_s14 + $0x110] sm:$0xff]  }
  0x1f   : > { %1673 = vmatprep.subr.bf16.mxu1 %v1911_v0  ;;  %v1876_v46 = vld [vmem:[%s1948_s14 + $0x130] sm:$0xff]   ;;  %v1877_v47 = vld [vmem:[%s1948_s14 + $0x118] sm:$0xff]   ;;  %v170_v49 = vld [vmem:[%s1964_s18 + $0x8] sm:$0x1] }
  0x20   : > { %1646 = vmatmul.mubr.msk.bf16.vlgmr.msra.gmra.mrb[0].mxu0 %vm330_vm1, %v162_v9  ;;  %v1878_v48 = vld [vmem:[%s1948_s14 + $0x138] sm:$0xff]   ;;  %v1879_v50 = vld [vmem:[%s1948_s14 + $0x140] sm:$0xff]   ;;  %v171_v51 = vld [vmem:[%s1964_s18 + $0x9] sm:$0x1] }
  0x21   : > { %1658 = vmatmul.mubr.msk.bf16.vlgmr.msra.gmra.mrb[0].mxu1 %vm330_vm1, %v163_v10  ;;  %1662 = vmatpush3.bf16.msra.mxu0 %v1847_v11  ;;  %v1880_v52 = vld [vmem:[%s1948_s14 + $0x160] sm:$0xff]   ;;  %v1881_v53 = vld [vmem:[%s1948_s14 + $0x148] sm:$0xff]   ;;  %v1883_v55 = vld [vmem:[%s1948_s14 + $0x150] sm:$0xff]  }
  0x22   : > { %1674 = vmatpush3.bf16.msra.mxu1 %v1848_v12  ;;  %1663 = vmatprep.subr.bf16.mxu0 %v1911_v0  ;;  %v1882_v54 = vld [vmem:[%s1948_s14 + $0x168] sm:$0xff]   ;;  %v1884_v56 = vld [vmem:[%s1948_s14 + $0x170] sm:$0xff]   ;;  %v1885_v57 = vld [vmem:[%s1948_s14 + $0x158] sm:$0xff]  }
  0x23   : > { %1675 = vmatprep.subr.bf16.mxu1 %v1911_v0  ;;  %1669 = vmatprep.mubr.msk.bf16.mxu0 %vm1912_vm0, %v1911_v0  ;;  %v1886_v58 = vld [vmem:[%s1948_s14 + $0x178] sm:$0xff]   ;;  %v172_v59 = vld [vmem:[%s1964_s18 + $0xa] sm:$0x1]  ;;  %v1887_v60 = vld [vmem:[%s1948_s14 + $0x180] sm:$0xff]  }
  0x24   : > { %1681 = vmatprep.mubr.msk.bf16.mxu1 %vm1912_vm0, %v1911_v0  ;;  %v173_v61 = vld [vmem:[%s1964_s18 + $0xb] sm:$0x1]  ;;  %v1888_v62 = vld [vmem:[%s1948_s14 + $0x1a0] sm:$0xff]   ;;  %v1891_v2 = vld [vmem:[%s1948_s14 + $0x190] sm:$0xff]  }
  0x25   : > { %1664 = vmatpush3.bf16.msra.mxu0 %v1849_v13  ;;  %v1889_v63 = vld [vmem:[%s1948_s14 + $0x188] sm:$0xff]   ;;  %v1892_v3 = vld [vmem:[%s1948_s14 + $0x1b0] sm:$0xff]   ;;  %v1893_v4 = vld [vmem:[%s1948_s14 + $0x198] sm:$0xff]  }
  0x26   : > { %1676 = vmatpush3.bf16.msra.mxu1 %v1850_v14  ;;  %1665 = vmatprep.subr.bf16.mxu0 %v1911_v0  ;;  %v1890_v1 = vld [vmem:[%s1948_s14 + $0x1a8] sm:$0xff]   ;;  %v1894_v5 = vld [vmem:[%s1948_s14 + $0x1b8] sm:$0xff]   ;;  %v1895_v7 = vld [vmem:[%s1948_s14 + $0x1c0] sm:$0xff]  }
  0x27   : > { %1677 = vmatprep.subr.bf16.mxu1 %v1911_v0  ;;  %v174_v6 = vld [vmem:[%s1964_s18 + $0xc] sm:$0x1]  ;;  %v175_v8 = vld [vmem:[%s1964_s18 + $0xd] sm:$0x1]  ;;  %v1896_v9 = vld [vmem:[%s1948_s14 + $0x1e0] sm:$0xff]  }
  0x28   : > { %v1897_v10 = vld [vmem:[%s1948_s14 + $0x1c8] sm:$0xff]   ;;  %v1899_v12 = vld [vmem:[%s1948_s14 + $0x1d0] sm:$0xff]   ;;  %v1901_v14 = vld [vmem:[%s1948_s14 + $0x1d8] sm:$0xff]  }
  0x29   : > { %1666 = vmatpush3.bf16.msra.mxu0 %v1851_v15  ;;  %v1898_v11 = vld [vmem:[%s1948_s14 + $0x1e8] sm:$0xff]   ;;  %v1900_v13 = vld [vmem:[%s1948_s14 + $0x1f0] sm:$0xff]   ;;  %v1902_v15 = vld [vmem:[%s1948_s14 + $0x1f8] sm:$0xff]  }
  0x2a   : > { %1678 = vmatpush3.bf16.msra.mxu1 %v1852_v16  ;;  %1667 = vmatprep.subr.bf16.mxu0 %v1911_v0  ;;  %v176_v16 = vld [vmem:[%s1964_s18 + $0xe] sm:$0x1] }
  0x2b   : > { %1679 = vmatprep.subr.bf16.mxu1 %v1911_v0 }
  0x2d   : > { %1668 = vmatpush3.bf16.msra.mxu0 %v1853_v17  ;;  %v177_v17 = vld [vmem:[%s1964_s18 + $0xf] sm:$0x1] }
  0x2e   : > { %1680 = vmatpush3.bf16.msra.mxu1 %v1854_v18  ;;  %1685 = vmatprep.subr.bf16.mxu0 %v1911_v0 }
  0x2f   : > { %1697 = vmatprep.subr.bf16.mxu1 %v1911_v0 }
  0x30   : > { %1670 = vmatmul.mubr.msk.bf16.vlgmr.msra.gmra.mrb[4].mxu0 %vm330_vm1, %v164_v19 }
  0x31   : > { %1682 = vmatmul.mubr.msk.bf16.vlgmr.msra.gmra.mrb[4].mxu1 %vm330_vm1, %v165_v20  ;;  %1686 = vmatpush3.bf16.msra.mxu0 %v1855_v21 }
  0x32   : > { %1698 = vmatpush3.bf16.msra.mxu1 %v1856_v22  ;;  %1687 = vmatprep.subr.bf16.mxu0 %v1911_v0 }
  0x33   : > { %1699 = vmatprep.subr.bf16.mxu1 %v1911_v0  ;;  %1693 = vmatprep.mubr.msk.bf16.mxu0 %vm1912_vm0, %v1911_v0 }
  0x34   : > { %1705 = vmatprep.mubr.msk.bf16.mxu1 %vm1912_vm0, %v1911_v0 }
  0x35   : > { %1688 = vmatpush3.bf16.msra.mxu0 %v1857_v23 }
  0x36   : > { %1700 = vmatpush3.bf16.msra.mxu1 %v1858_v24  ;;  %1689 = vmatprep.subr.bf16.mxu0 %v1911_v0 }
  0x37   : > { %1701 = vmatprep.subr.bf16.mxu1 %v1911_v0 }
  0x39   : > { %1690 = vmatpush3.bf16.msra.mxu0 %v1859_v25 }
  0x3a   : > { %1702 = vmatpush3.bf16.msra.mxu1 %v1860_v26  ;;  %1691 = vmatprep.subr.bf16.mxu0 %v1911_v0 }
  0x3b   : > { %1703 = vmatprep.subr.bf16.mxu1 %v1911_v0 }
  0x3d   : > { %1692 = vmatpush3.bf16.msra.mxu0 %v1861_v27 }
  0x3e   : > { %1704 = vmatpush3.bf16.msra.mxu1 %v1862_v28  ;;  %1709 = vmatprep.subr.bf16.mxu0 %v1911_v0 }
  0x3f   : > { %1721 = vmatprep.subr.bf16.mxu1 %v1911_v0 }
  0x40   : > { %1694 = vmatmul.mubr.msk.bf16.vlgmr.msra.gmra.mrb[8].mxu0 %vm330_vm1, %v166_v29 }
  0x41   : > { %1706 = vmatmul.mubr.msk.bf16.vlgmr.msra.gmra.mrb[8].mxu1 %vm330_vm1, %v167_v30  ;;  %1710 = vmatpush3.bf16.msra.mxu0 %v1863_v31 }
  0x42   : > { %1722 = vmatpush3.bf16.msra.mxu1 %v1864_v32  ;;  %1711 = vmatprep.subr.bf16.mxu0 %v1911_v0 }
  0x43   : > { %1723 = vmatprep.subr.bf16.mxu1 %v1911_v0  ;;  %1717 = vmatprep.mubr.msk.bf16.mxu0 %vm1912_vm0, %v1911_v0 }
  0x44   : > { %1729 = vmatprep.mubr.msk.bf16.mxu1 %vm1912_vm0, %v1911_v0 }
  0x45   : > { %1712 = vmatpush3.bf16.msra.mxu0 %v1865_v33 }
  0x46   : > { %1724 = vmatpush3.bf16.msra.mxu1 %v1866_v34  ;;  %1713 = vmatprep.subr.bf16.mxu0 %v1911_v0 }
  0x47   : > { %1725 = vmatprep.subr.bf16.mxu1 %v1911_v0 }
  0x49   : > { %1714 = vmatpush3.bf16.msra.mxu0 %v1867_v35 }
  0x4a   : > { %1726 = vmatpush3.bf16.msra.mxu1 %v1868_v36  ;;  %1715 = vmatprep.subr.bf16.mxu0 %v1911_v0 }
  0x4b   : > { %1727 = vmatprep.subr.bf16.mxu1 %v1911_v0 }
  0x4d   : > { %1716 = vmatpush3.bf16.msra.mxu0 %v1869_v37 }
  0x4e   : > { %1728 = vmatpush3.bf16.msra.mxu1 %v1870_v38  ;;  %1733 = vmatprep.subr.bf16.mxu0 %v1911_v0 }
  0x4f   : > { %1745 = vmatprep.subr.bf16.mxu1 %v1911_v0 }
  0x50   : > { %1718 = vmatmul.mubr.msk.bf16.vlgmr.msra.gmra.mrb[12].mxu0 %vm330_vm1, %v168_v39 }
  0x51   : > { %1730 = vmatmul.mubr.msk.bf16.vlgmr.msra.gmra.mrb[12].mxu1 %vm330_vm1, %v169_v40  ;;  %1734 = vmatpush3.bf16.msra.mxu0 %v1871_v41 }
  0x52   : > { %1746 = vmatpush3.bf16.msra.mxu1 %v1872_v42  ;;  %1735 = vmatprep.subr.bf16.mxu0 %v1911_v0 }
  0x53   : > { %1747 = vmatprep.subr.bf16.mxu1 %v1911_v0  ;;  %1741 = vmatprep.mubr.msk.bf16.mxu0 %vm1912_vm0, %v1911_v0 }
  0x54   : > { %1753 = vmatprep.mubr.msk.bf16.mxu1 %vm1912_vm0, %v1911_v0 }
  0x55   : > { %1736 = vmatpush3.bf16.msra.mxu0 %v1873_v43 }
  0x56   : > { %1748 = vmatpush3.bf16.msra.mxu1 %v1874_v44  ;;  %1737 = vmatprep.subr.bf16.mxu0 %v1911_v0 }
  0x57   : > { %1749 = vmatprep.subr.bf16.mxu1 %v1911_v0 }
  0x59   : > { %1738 = vmatpush3.bf16.msra.mxu0 %v1875_v45 }
  0x5a   : > { %1750 = vmatpush3.bf16.msra.mxu1 %v1876_v46  ;;  %1739 = vmatprep.subr.bf16.mxu0 %v1911_v0 }
  0x5b   : > { %1751 = vmatprep.subr.bf16.mxu1 %v1911_v0 }
  0x5d   : > { %1740 = vmatpush3.bf16.msra.mxu0 %v1877_v47 }
  0x5e   : > { %1752 = vmatpush3.bf16.msra.mxu1 %v1878_v48  ;;  %1757 = vmatprep.subr.bf16.mxu0 %v1911_v0 }
  0x5f   : > { %1769 = vmatprep.subr.bf16.mxu1 %v1911_v0 }
  0x60   : > { %1742 = vmatmul.mubr.msk.bf16.vlgmr.msra.gmra.mrb[16].mxu0 %vm330_vm1, %v170_v49 }
  0x61   : > { %1754 = vmatmul.mubr.msk.bf16.vlgmr.msra.gmra.mrb[16].mxu1 %vm330_vm1, %v171_v51  ;;  %1758 = vmatpush3.bf16.msra.mxu0 %v1879_v50 }
  0x62   : > { %1770 = vmatpush3.bf16.msra.mxu1 %v1880_v52  ;;  %1759 = vmatprep.subr.bf16.mxu0 %v1911_v0 }
  0x63   : > { %1771 = vmatprep.subr.bf16.mxu1 %v1911_v0  ;;  %1765 = vmatprep.mubr.msk.bf16.mxu0 %vm1912_vm0, %v1911_v0 }
  0x64   : > { %1777 = vmatprep.mubr.msk.bf16.mxu1 %vm1912_vm0, %v1911_v0 }
  0x65   : > { %1760 = vmatpush3.bf16.msra.mxu0 %v1881_v53 }
  0x66   : > { %1772 = vmatpush3.bf16.msra.mxu1 %v1882_v54  ;;  %1761 = vmatprep.subr.bf16.mxu0 %v1911_v0 }
  0x67   : > { %1773 = vmatprep.subr.bf16.mxu1 %v1911_v0 }
  0x69   : > { %1762 = vmatpush3.bf16.msra.mxu0 %v1883_v55 }
  0x6a   : > { %1774 = vmatpush3.bf16.msra.mxu1 %v1884_v56  ;;  %1763 = vmatprep.subr.bf16.mxu0 %v1911_v0 }
  0x6b   : > { %1775 = vmatprep.subr.bf16.mxu1 %v1911_v0 }
  0x6d   : > { %1764 = vmatpush3.bf16.msra.mxu0 %v1885_v57 }
  0x6e   : > { %1776 = vmatpush3.bf16.msra.mxu1 %v1886_v58  ;;  %1781 = vmatprep.subr.bf16.mxu0 %v1911_v0 }
  0x6f   : > { %1793 = vmatprep.subr.bf16.mxu1 %v1911_v0 }
  0x70   : > { %1766 = vmatmul.mubr.msk.bf16.vlgmr.msra.gmra.mrb[20].mxu0 %vm330_vm1, %v172_v59 }
  0x71   : > { %1778 = vmatmul.mubr.msk.bf16.vlgmr.msra.gmra.mrb[20].mxu1 %vm330_vm1, %v173_v61  ;;  %1782 = vmatpush3.bf16.msra.mxu0 %v1887_v60 }
  0x72   : > { %1794 = vmatpush3.bf16.msra.mxu1 %v1888_v62  ;;  %1783 = vmatprep.subr.bf16.mxu0 %v1911_v0 }
  0x73   : > { %1795 = vmatprep.subr.bf16.mxu1 %v1911_v0  ;;  %1789 = vmatprep.mubr.msk.bf16.mxu0 %vm1912_vm0, %v1911_v0 }
  0x74   : > { %1801 = vmatprep.mubr.msk.bf16.mxu1 %vm1912_vm0, %v1911_v0 }
  0x75   : > { %1784 = vmatpush3.bf16.msra.mxu0 %v1889_v63 }
  0x76   : > { %1796 = vmatpush3.bf16.msra.mxu1 %v1890_v1  ;;  %1785 = vmatprep.subr.bf16.mxu0 %v1911_v0 }
  0x77   : > { %1797 = vmatprep.subr.bf16.mxu1 %v1911_v0 }
  0x79   : > { %1786 = vmatpush3.bf16.msra.mxu0 %v1891_v2 }
  0x7a   : > { %1798 = vmatpush3.bf16.msra.mxu1 %v1892_v3  ;;  %1787 = vmatprep.subr.bf16.mxu0 %v1911_v0 }
  0x7b   : > { %1799 = vmatprep.subr.bf16.mxu1 %v1911_v0 }
  0x7d   : > { %1788 = vmatpush3.bf16.msra.mxu0 %v1893_v4 }
  0x7e   : > { %1800 = vmatpush3.bf16.msra.mxu1 %v1894_v5  ;;  %1805 = vmatprep.subr.bf16.mxu0 %v1911_v0 }
  0x7f   : > { %1817 = vmatprep.subr.bf16.mxu1 %v1911_v0 }
  0x80   : > { %1790 = vmatmul.mubr.msk.bf16.vlgmr.msra.gmra.mrb[24].mxu0 %vm330_vm1, %v174_v6 }
  0x81   : > { %1802 = vmatmul.mubr.msk.bf16.vlgmr.msra.gmra.mrb[24].mxu1 %vm330_vm1, %v175_v8  ;;  %1806 = vmatpush3.bf16.msra.mxu0 %v1895_v7 }
  0x82   : > { %1818 = vmatpush3.bf16.msra.mxu1 %v1896_v9  ;;  %1807 = vmatprep.subr.bf16.mxu0 %v1911_v0 }
  0x83   : > { %1819 = vmatprep.subr.bf16.mxu1 %v1911_v0  ;;  %1813 = vmatprep.mubr.msk.bf16.mxu0 %vm1912_vm0, %v1911_v0 }
  0x84   : > { %1825 = vmatprep.mubr.msk.bf16.mxu1 %vm1912_vm0, %v1911_v0 }
  0x85   : > { %1808 = vmatpush3.bf16.msra.mxu0 %v1897_v10 }
  0x86   : > { %1820 = vmatpush3.bf16.msra.mxu1 %v1898_v11  ;;  %1809 = vmatprep.subr.bf16.mxu0 %v1911_v0 }
  0x87   : > { %1821 = vmatprep.subr.bf16.mxu1 %v1911_v0 }
  0x89   : > { %1810 = vmatpush3.bf16.msra.mxu0 %v1899_v12 }
  0x8a   : > { %1822 = vmatpush3.bf16.msra.mxu1 %v1900_v13  ;;  %1811 = vmatprep.subr.bf16.mxu0 %v1911_v0 }
  0x8b   : > { %1823 = vmatprep.subr.bf16.mxu1 %v1911_v0 }
  0x8d   : > { %1812 = vmatpush3.bf16.msra.mxu0 %v1901_v14 }
  0x8e   : > { %1824 = vmatpush3.bf16.msra.mxu1 %v1902_v15 }
  0x90   : > { %1814 = vmatmul.mubr.msk.bf16.vlgmr.msra.gmra.mrb[28].mxu0 %vm330_vm1, %v176_v16 }
  0x91   : > { %1826 = vmatmul.mubr.msk.bf16.vlgmr.msra.gmra.mrb[28].mxu1 %vm330_vm1, %v177_v17 }
  0xf3   : > { %v368_v0 = vpop.f32.mrb[0].mxu0 }
  0xf4   : > { %1380 = vst.msk [vmem:[%s2146_s22] sm:$0x3] %vm1379_vm2, %v368_v0  ;;  %v435_v18 = vpop.f32.mrb[0].mxu1  ;;  %v1647_v19 = vpop.f32.mrb[1].mxu0 }
  0xf5   : > { %1381 = vst.msk [vmem:[%s2146_s22 + $0x2] sm:$0x3] %vm1379_vm2, %v435_v18  ;;  %v1659_v20 = vpop.f32.mrb[1].mxu1  ;;  %v371_v21 = vpop.f32.mrb[2].mxu0 }
  0xf6   : > { %v438_v22 = vpop.f32.mrb[2].mxu1  ;;  %v1648_v23 = vpop.f32.mrb[3].mxu0 }
  0xf7   : > { %v1660_v24 = vpop.f32.mrb[3].mxu1 }
 0x103   : > { %v502_v25 = vpop.f32.mrb[4].mxu0 }
 0x104   : > { %1382 = vst.msk [vmem:[%s2146_s22 + $0x4] sm:$0x3] %vm1379_vm2, %v502_v25  ;;  %v569_v26 = vpop.f32.mrb[4].mxu1  ;;  %v1671_v27 = vpop.f32.mrb[5].mxu0 }
 0x105   : > { %1383 = vst.msk [vmem:[%s2146_s22 + $0x6] sm:$0x3] %vm1379_vm2, %v569_v26  ;;  %v1683_v28 = vpop.f32.mrb[5].mxu1  ;;  %v505_v29 = vpop.f32.mrb[6].mxu0 }
 0x106   : > { %v572_v30 = vpop.f32.mrb[6].mxu1  ;;  %v1672_v31 = vpop.f32.mrb[7].mxu0 }
 0x107   : > { %v1684_v32 = vpop.f32.mrb[7].mxu1 }
 0x113   : > { %v636_v33 = vpop.f32.mrb[8].mxu0 }
 0x114   : > { %1384 = vst.msk [vmem:[%s2146_s22 + $0x8] sm:$0x3] %vm1379_vm2, %v636_v33  ;;  %v703_v34 = vpop.f32.mrb[8].mxu1  ;;  %v1695_v35 = vpop.f32.mrb[9].mxu0 }
 0x115   : > { %1385 = vst.msk [vmem:[%s2146_s22 + $0xa] sm:$0x3] %vm1379_vm2, %v703_v34  ;;  %v1707_v36 = vpop.f32.mrb[9].mxu1  ;;  %v639_v37 = vpop.f32.mrb[10].mxu0 }
 0x116   : > { %v706_v38 = vpop.f32.mrb[10].mxu1  ;;  %v1696_v39 = vpop.f32.mrb[11].mxu0 }
 0x117   : > { %v1708_v40 = vpop.f32.mrb[11].mxu1 }
 0x123   : > { %v770_v41 = vpop.f32.mrb[12].mxu0 }
 0x124   : > { %1386 = vst.msk [vmem:[%s2146_s22 + $0xc] sm:$0x3] %vm1379_vm2, %v770_v41  ;;  %v837_v42 = vpop.f32.mrb[12].mxu1  ;;  %v1719_v43 = vpop.f32.mrb[13].mxu0 }
 0x125   : > { %1387 = vst.msk [vmem:[%s2146_s22 + $0xe] sm:$0x3] %vm1379_vm2, %v837_v42  ;;  %v1731_v44 = vpop.f32.mrb[13].mxu1  ;;  %v773_v45 = vpop.f32.mrb[14].mxu0 }
 0x126   : > { %v840_v46 = vpop.f32.mrb[14].mxu1  ;;  %v1720_v47 = vpop.f32.mrb[15].mxu0 }
 0x127   : > { %v1732_v48 = vpop.f32.mrb[15].mxu1 }
 0x133   : > { %v904_v49 = vpop.f32.mrb[16].mxu0 }
 0x134   : > { %1388 = vst.msk [vmem:[%s2146_s22 + $0x10] sm:$0x3] %vm1379_vm2, %v904_v49  ;;  %v971_v50 = vpop.f32.mrb[16].mxu1  ;;  %v1743_v51 = vpop.f32.mrb[17].mxu0 }
 0x135   : > { %1389 = vst.msk [vmem:[%s2146_s22 + $0x12] sm:$0x3] %vm1379_vm2, %v971_v50  ;;  %v1755_v52 = vpop.f32.mrb[17].mxu1  ;;  %v907_v53 = vpop.f32.mrb[18].mxu0 }
 0x136   : > { %v974_v54 = vpop.f32.mrb[18].mxu1  ;;  %v1744_v55 = vpop.f32.mrb[19].mxu0 }
 0x137   : > { %v1756_v56 = vpop.f32.mrb[19].mxu1 }
 0x143   : > { %v1038_v57 = vpop.f32.mrb[20].mxu0 }
 0x144   : > { %1390 = vst.msk [vmem:[%s2146_s22 + $0x14] sm:$0x3] %vm1379_vm2, %v1038_v57  ;;  %v1105_v58 = vpop.f32.mrb[20].mxu1  ;;  %v1767_v59 = vpop.f32.mrb[21].mxu0 }
 0x145   : > { %1391 = vst.msk [vmem:[%s2146_s22 + $0x16] sm:$0x3] %vm1379_vm2, %v1105_v58  ;;  %v1779_v60 = vpop.f32.mrb[21].mxu1  ;;  %v1041_v61 = vpop.f32.mrb[22].mxu0 }
 0x146   : > { %v1108_v62 = vpop.f32.mrb[22].mxu1  ;;  %v1768_v63 = vpop.f32.mrb[23].mxu0 }
 0x147   : > { %v1780_v1 = vpop.f32.mrb[23].mxu1 }
 0x153   : > { %v1172_v2 = vpop.f32.mrb[24].mxu0 }
 0x154   : > { %1392 = vst.msk [vmem:[%s2146_s22 + $0x18] sm:$0x3] %vm1379_vm2, %v1172_v2  ;;  %v1239_v3 = vpop.f32.mrb[24].mxu1  ;;  %v1791_v4 = vpop.f32.mrb[25].mxu0 }
 0x155   : > { %1393 = vst.msk [vmem:[%s2146_s22 + $0x1a] sm:$0x3] %vm1379_vm2, %v1239_v3  ;;  %v1803_v5 = vpop.f32.mrb[25].mxu1  ;;  %v1175_v6 = vpop.f32.mrb[26].mxu0 }
 0x156   : > { %v1242_v7 = vpop.f32.mrb[26].mxu1  ;;  %v1792_v8 = vpop.f32.mrb[27].mxu0 }
 0x157   : > { %v1804_v9 = vpop.f32.mrb[27].mxu1 }
 0x163   : > { %v1306_v10 = vpop.f32.mrb[28].mxu0 }
 0x164   : > { %1394 = vst.msk [vmem:[%s2146_s22 + $0x1c] sm:$0x3] %vm1379_vm2, %v1306_v10  ;;  %v1373_v11 = vpop.f32.mrb[28].mxu1  ;;  %v1815_v12 = vpop.f32.mrb[29].mxu0 }
 0x165   : > { %1395 = vst.msk [vmem:[%s2146_s22 + $0x1e] sm:$0x3] %vm1379_vm2, %v1373_v11  ;;  %v1827_v13 = vpop.f32.mrb[29].mxu1  ;;  %v1309_v14 = vpop.f32.mrb[30].mxu0 }
 0x166   : > { %v1376_v15 = vpop.f32.mrb[30].mxu1  ;;  %v1816_v16 = vpop.f32.mrb[31].mxu0 }
 0x167   : > { %v1828_v17 = vpop.f32.mrb[31].mxu1 }
 0x168 PF: > { %s12_s9 = sadd.s32 1, %s1909_s9  }
 0x169   : > { %p9_p4 = scmp.ge.s32.totalorder %s12_s9, 4  }
 0x16b   :  { %11 = sbr.rel (!%p9_p4) target bundleno = 1 (0x1), region = 61 }

// kernel: reverse.8
= control target key start
LH: loop header
LB: loop body
LE: loop exit
PB: predicated region body
PF: predicated region fallthrough
CT: control target
= control target key end

     0   :  { %s344_s0 = inlined_call_operand.vmem [shape: f32[2,32,16,7], index: 0, kind: input, shape index: {}]   ;;  %s345_s1 = inlined_call_operand.vmem [shape: f32[2,32,16,7], index: 1, kind: output, shape index: {}]  }
   0x1   :  { %v112_v0 = vld [vmem:[%s344_s0 + $0x60] sm:$0xff]  ;;  %v113_v1 = vld [vmem:[%s344_s0 + $0xd0] sm:$0xff]  ;;  %v138_v14 = vld [vmem:[%s344_s0 + $0x68] sm:$0xff] }
   0x2   :  { %v115_v2 = vld [vmem:[%s344_s0 + $0x50] sm:$0xff]  ;;  %4 = vst [vmem:[%s345_s1] sm:$0xff] %v112_v0  ;;  %114 = vst [vmem:[%s345_s1 + $0x70] sm:$0xff] %v113_v1  ;;  %v117_v3 = vld [vmem:[%s344_s0 + $0xc0] sm:$0xff] }
   0x3   :  { %116 = vst [vmem:[%s345_s1 + $0x10] sm:$0xff] %v115_v2  ;;  %v119_v4 = vld [vmem:[%s344_s0 + $0x40] sm:$0xff]  ;;  %v121_v5 = vld [vmem:[%s344_s0 + $0xb0] sm:$0xff]  ;;  %118 = vst [vmem:[%s345_s1 + $0x80] sm:$0xff] %v117_v3 }
   0x4   :  { %120 = vst [vmem:[%s345_s1 + $0x20] sm:$0xff] %v119_v4  ;;  %122 = vst [vmem:[%s345_s1 + $0x90] sm:$0xff] %v121_v5  ;;  %v123_v6 = vld [vmem:[%s344_s0 + $0x30] sm:$0xff]  ;;  %v125_v7 = vld [vmem:[%s344_s0 + $0xa0] sm:$0xff] }
   0x5   :  { %v127_v8 = vld [vmem:[%s344_s0 + $0x20] sm:$0xff]  ;;  %124 = vst [vmem:[%s345_s1 + $0x30] sm:$0xff] %v123_v6  ;;  %126 = vst [vmem:[%s345_s1 + $0xa0] sm:$0xff] %v125_v7  ;;  %v129_v9 = vld [vmem:[%s344_s0 + $0x90] sm:$0xff] }
   0x6   :  { %128 = vst [vmem:[%s345_s1 + $0x40] sm:$0xff] %v127_v8  ;;  %v131_v10 = vld [vmem:[%s344_s0 + $0x10] sm:$0xff]  ;;  %v133_v11 = vld [vmem:[%s344_s0 + $0x80] sm:$0xff]  ;;  %130 = vst [vmem:[%s345_s1 + $0xb0] sm:$0xff] %v129_v9 }
   0x7   :  { %132 = vst [vmem:[%s345_s1 + $0x50] sm:$0xff] %v131_v10  ;;  %134 = vst [vmem:[%s345_s1 + $0xc0] sm:$0xff] %v133_v11  ;;  %v49_v12 = vld [vmem:[%s344_s0] sm:$0xff]  ;;  %v136_v13 = vld [vmem:[%s344_s0 + $0x70] sm:$0xff] }
   0x8   :  { %135 = vst [vmem:[%s345_s1 + $0x60] sm:$0xff] %v49_v12  ;;  %137 = vst [vmem:[%s345_s1 + $0xd0] sm:$0xff] %v136_v13  ;;  %v140_v15 = vld [vmem:[%s344_s0 + $0xd8] sm:$0xff]  ;;  %v144_v17 = vld [vmem:[%s344_s0 + $0xc8] sm:$0xff] }
   0x9   :  { %139 = vst [vmem:[%s345_s1 + $0x8] sm:$0xff] %v138_v14  ;;  %v142_v16 = vld [vmem:[%s344_s0 + $0x58] sm:$0xff]  ;;  %141 = vst [vmem:[%s345_s1 + $0x78] sm:$0xff] %v140_v15  ;;  %v146_v18 = vld [vmem:[%s344_s0 + $0x48] sm:$0xff] }
   0xa   :  { %143 = vst [vmem:[%s345_s1 + $0x18] sm:$0xff] %v142_v16  ;;  %145 = vst [vmem:[%s345_s1 + $0x88] sm:$0xff] %v144_v17  ;;  %v148_v19 = vld [vmem:[%s344_s0 + $0xb8] sm:$0xff]  ;;  %v152_v21 = vld [vmem:[%s344_s0 + $0xa8] sm:$0xff] }
   0xb   :  { %v150_v20 = vld [vmem:[%s344_s0 + $0x38] sm:$0xff]  ;;  %147 = vst [vmem:[%s345_s1 + $0x28] sm:$0xff] %v146_v18  ;;  %149 = vst [vmem:[%s345_s1 + $0x98] sm:$0xff] %v148_v19  ;;  %v154_v22 = vld [vmem:[%s344_s0 + $0x28] sm:$0xff] }
   0xc   :  { %151 = vst [vmem:[%s345_s1 + $0x38] sm:$0xff] %v150_v20  ;;  %v156_v23 = vld [vmem:[%s344_s0 + $0x98] sm:$0xff]  ;;  %153 = vst [vmem:[%s345_s1 + $0xa8] sm:$0xff] %v152_v21  ;;  %v160_v25 = vld [vmem:[%s344_s0 + $0x88] sm:$0xff] }
   0xd   :  { %155 = vst [vmem:[%s345_s1 + $0x48] sm:$0xff] %v154_v22  ;;  %157 = vst [vmem:[%s345_s1 + $0xb8] sm:$0xff] %v156_v23  ;;  %v158_v24 = vld [vmem:[%s344_s0 + $0x18] sm:$0xff]  ;;  %v162_v26 = vld [vmem:[%s344_s0 + $0x8] sm:$0xff] }
   0xe   :  { %159 = vst [vmem:[%s345_s1 + $0x58] sm:$0xff] %v158_v24  ;;  %161 = vst [vmem:[%s345_s1 + $0xc8] sm:$0xff] %v160_v25  ;;  %v164_v27 = vld [vmem:[%s344_s0 + $0x78] sm:$0xff] }
   0xf   :  { %163 = vst [vmem:[%s345_s1 + $0x68] sm:$0xff] %v162_v26  ;;  %165 = vst [vmem:[%s345_s1 + $0xd8] sm:$0xff] %v164_v27 }

// kernel: fno2d_forward.11
= control target key start
LH: loop header
LB: loop body
LE: loop exit
PB: predicated region body
PF: predicated region fallthrough
CT: control target
= control target key end

     0   :  { %s4369_s24 = smov 0   ;;  %s7362_s0 = inlined_call_operand.vmem [shape: bf16[2,256,32], index: 0, kind: input, shape index: {}]   ;;  %s7363_s1 = inlined_call_operand.vmem [shape: bf16[2,256,32], index: 1, kind: input, shape index: {}]   ;;  %s7364_s2 = inlined_call_operand.vmem [shape: bf16[32,32], index: 2, kind: input, shape index: {}]   ;;  %s7365_s3 = inlined_call_operand.vmem [shape: f32[1,32], index: 3, kind: input, shape index: {}]   ;;  %s7366_s4 = inlined_call_operand.vmem [shape: bf16[64,32], index: 4, kind: input, shape index: {}]   ;;  %s7367_s5 = inlined_call_operand.vmem [shape: f32[1,32], index: 5, kind: input, shape index: {}]   ;;  %s7368_s6 = inlined_call_operand.vmem [shape: bf16[2,256,32], index: 6, kind: output, shape index: {0}]   ;;  %s7369_s7 = inlined_call_operand.vmem [shape: bf16[2,256,32], index: 7, kind: output, shape index: {1}]  }
   0x1 LB: > { %s3629_s25 = sadd.s32 4294967295, %s4325_s24   ;;  %p3633_p0 = scmp.ge.s32.totalorder %s4325_s24, 1  ;;  %s4325_s24 = sphi %s4369_s24, %s18_s24  }
   0x2   : > { %p250_p1 = scmp.lt.s32.totalorder %s4325_s24, 3 }
   0x4   : > { %p251_p2 = pnand %p3633_p0, %p250_p1 }
   0x6   : > { %254 = sbr.rel (%p251_p2) target bundleno = 1202 (0x4b2), region = 44 }
   0xd   : > { %v4035_v0 = vld [vmem:[%s7364_s2] sm:$0xff]   ;;  %p292_p3 = scmp.lt.s32.totalorder %s3629_s25, 1  ;;  %v4036_v1 = vld [vmem:[%s7364_s2 + $0x8] sm:$0xff]   ;;  %vm377_vm0 = vcmask 261120   ;;  %s4327_s14 = smov 32  }
   0xe   : > { %3949 = vmatprep.subr.bf16.mxu0 %v4035_v0 }
   0xf   : > { %s7420_s25 = smov (!%p292_p3, %s3629_s25), 1  ;;  %3950 = vmatpush3.bf16.msra.mxu0 %v4035_v0 }
  0x10   : > { %3951 = vmatprep.subr.bf16.mxu0 %v4036_v1  ;;  %s4383_s30 = sshll.u32 %s7420_s25, 7 }
  0x11   : > { %s4389_s10 = scalar_lea.vmem %s7362_s0, %s4383_s30  ;;  %s4401_s13 = scalar_lea.vmem %s7363_s1, %s4383_s30 }
  0x12   : > { %v4392_v2 = vld [vmem:[%s4389_s10] sm:$0xff]   ;;  %v4395_v3 = vld [vmem:[%s4389_s10 + $0x8] sm:$0xff]   ;;  %v4407_v7 = vld [vmem:[%s4389_s10 + $0x10] sm:$0xff]   ;;  %s7257_s15 = scalar_lea.vmem %s7369_s7, %s4383_s30 }
  0x13   : > { %3952 = vmatpush3.bf16.msra.mxu0 %v4036_v1  ;;  %v3834_v4 = vunpack.c.l.bf16 %v4392_v2  ;;  %v3835_v5 = vunpack.c.h.bf16 %v4392_v2  ;;  %v3838_v6 = vunpack.c.l.bf16 %v4395_v3  ;;  %v3839_v8 = vunpack.c.h.bf16 %v4395_v3  ;;  %v4421_v13 = vld [vmem:[%s4389_s10 + $0x18] sm:$0xff]   ;;  %v4424_v14 = vld [vmem:[%s4389_s10 + $0x20] sm:$0xff]   ;;  %v4440_v26 = vld [vmem:[%s4389_s10 + $0x28] sm:$0xff]  }
  0x14   : > { %v3842_v9 = vunpack.c.l.bf16 %v4407_v7  ;;  %v3843_v16 = vunpack.c.h.bf16 %v4407_v7  ;;  %v3846_v19 = vunpack.c.l.bf16 %v4421_v13  ;;  %v3847_v20 = vunpack.c.h.bf16 %v4421_v13  ;;  %v4454_v34 = vld [vmem:[%s4389_s10 + $0x30] sm:$0xff]   ;;  %v4465_v41 = vld [vmem:[%s4389_s10 + $0x38] sm:$0xff]   ;;  %v4476_v48 = vld [vmem:[%s4389_s10 + $0x40] sm:$0xff]  }
  0x15   : > { %v378_v10 = vsel %vm377_vm0, %v3834_v4, 0.0  ;;  %v379_v11 = vsel %vm377_vm0, %v3835_v5, 0.0  ;;  %v381_v12 = vsel %vm377_vm0, %v3838_v6, 0.0  ;;  %v383_v17 = vsel %vm377_vm0, %v3839_v8, 0.0  ;;  %v4487_v55 = vld [vmem:[%s4389_s10 + $0x48] sm:$0xff]   ;;  %v4498_v62 = vld [vmem:[%s4389_s10 + $0x50] sm:$0xff]  }
  0x16   : > { %v380_v15 = vadd.f32 %v379_v11, %v378_v10  ;;  %v3850_v21 = vunpack.c.l.bf16 %v4424_v14  ;;  %v385_v22 = vsel %vm377_vm0, %v3842_v9, 0.0  ;;  %v387_v24 = vsel %vm377_vm0, %v3843_v16, 0.0 }
  0x17   : > { %v389_v27 = vsel %vm377_vm0, %v3846_v19, 0.0  ;;  %v391_v28 = vsel %vm377_vm0, %v3847_v20, 0.0  ;;  %v3851_v31 = vunpack.c.h.bf16 %v4424_v14  ;;  %v3854_v33 = vunpack.c.l.bf16 %v4440_v26 }
  0x18   : > { %v382_v18 = vadd.f32 %v381_v12, %v380_v15  ;;  %v393_v29 = vsel %vm377_vm0, %v3850_v21, 0.0  ;;  %v3855_v36 = vunpack.c.h.bf16 %v4440_v26  ;;  %v3858_v39 = vunpack.c.l.bf16 %v4454_v34  ;;  %v4509_v15 = vld [vmem:[%s4389_s10 + $0x58] sm:$0xff]  }
  0x19   : > { %v395_v37 = vsel %vm377_vm0, %v3851_v31, 0.0  ;;  %v397_v40 = vsel %vm377_vm0, %v3854_v33, 0.0  ;;  %v3859_v43 = vunpack.c.h.bf16 %v4454_v34  ;;  %v3862_v46 = vunpack.c.l.bf16 %v4465_v41 }
  0x1a   : > { %v384_v23 = vadd.f32 %v383_v17, %v382_v18  ;;  %v399_v44 = vsel %vm377_vm0, %v3855_v36, 0.0  ;;  %v401_v47 = vsel %vm377_vm0, %v3858_v39, 0.0  ;;  %v3863_v50 = vunpack.c.h.bf16 %v4465_v41 }
  0x1b   : > { %v403_v51 = vsel %vm377_vm0, %v3859_v43, 0.0  ;;  %v3866_v53 = vunpack.c.l.bf16 %v4476_v48  ;;  %v405_v54 = vsel %vm377_vm0, %v3862_v46, 0.0  ;;  %v3867_v57 = vunpack.c.h.bf16 %v4476_v48 }
  0x1c   : > { %v386_v25 = vadd.f32 %v385_v22, %v384_v23  ;;  %v407_v58 = vsel %vm377_vm0, %v3863_v50, 0.0  ;;  %v3870_v60 = vunpack.c.l.bf16 %v4487_v55  ;;  %v3871_v0 = vunpack.c.h.bf16 %v4487_v55 }
  0x1d   : > { %v409_v61 = vsel %vm377_vm0, %v3866_v53, 0.0  ;;  %v411_v1 = vsel %vm377_vm0, %v3867_v57, 0.0  ;;  %v3874_v11 = vunpack.c.l.bf16 %v4498_v62  ;;  %v3875_v18 = vunpack.c.h.bf16 %v4498_v62 }
  0x1e   : > { %v388_v30 = vadd.f32 %v387_v24, %v386_v25  ;;  %v413_v12 = vsel %vm377_vm0, %v3870_v60, 0.0  ;;  %v415_v22 = vsel %vm377_vm0, %v3871_v0, 0.0  ;;  %v3878_v24 = vunpack.c.l.bf16 %v4509_v15 }
  0x1f   : > { %v417_v25 = vsel %vm377_vm0, %v3874_v11, 0.0 }
  0x20   : > { %v390_v32 = vadd.f32 %v389_v27, %v388_v30  ;;  %v4520_v27 = vld [vmem:[%s4389_s10 + $0x60] sm:$0xff]   ;;  %v419_v30 = vsel %vm377_vm0, %v3875_v18, 0.0 }
  0x22   : > { %v392_v35 = vadd.f32 %v391_v28, %v390_v32 }
  0x24   : > { %v394_v38 = vadd.f32 %v393_v29, %v392_v35  ;;  %v3879_v29 = vunpack.c.h.bf16 %v4509_v15  ;;  %v3882_v35 = vunpack.c.l.bf16 %v4520_v27 }
  0x26   : > { %v396_v42 = vadd.f32 %v395_v37, %v394_v38  ;;  %v421_v37 = vsel %vm377_vm0, %v3878_v24, 0.0  ;;  %v4531_v38 = vld [vmem:[%s4389_s10 + $0x68] sm:$0xff]  }
  0x28   : > { %v398_v45 = vadd.f32 %v397_v40, %v396_v42  ;;  %v3883_v42 = vunpack.c.h.bf16 %v4520_v27 }
  0x2a   : > { %v400_v49 = vadd.f32 %v399_v44, %v398_v45  ;;  %v423_v44 = vsel %vm377_vm0, %v3879_v29, 0.0 }
  0x2c   : > { %v402_v52 = vadd.f32 %v401_v47, %v400_v49  ;;  %v3886_v47 = vunpack.c.l.bf16 %v4531_v38  ;;  %v425_v49 = vsel %vm377_vm0, %v3882_v35, 0.0 }
  0x2e   : > { %v404_v56 = vadd.f32 %v403_v51, %v402_v52  ;;  %v4542_v51 = vld [vmem:[%s4389_s10 + $0x70] sm:$0xff]  }
  0x30   : > { %v406_v59 = vadd.f32 %v405_v54, %v404_v56  ;;  %v3887_v54 = vunpack.c.h.bf16 %v4531_v38  ;;  %v427_v56 = vsel %vm377_vm0, %v3883_v42, 0.0 }
  0x32   : > { %v408_v63 = vadd.f32 %v407_v58, %v406_v59  ;;  %v3890_v59 = vunpack.c.l.bf16 %v4542_v51 }
  0x34   : > { %v410_v10 = vadd.f32 %v409_v61, %v408_v63  ;;  %v429_v61 = vsel %vm377_vm0, %v3886_v47, 0.0  ;;  %v4553_v63 = vld [vmem:[%s4389_s10 + $0x78] sm:$0xff]   ;;  %s6119_s10 = scalar_lea.vmem %s7368_s6, %s4383_s30 }
  0x36   : > { %v412_v17 = vadd.f32 %v411_v1, %v410_v10  ;;  %v3891_v10 = vunpack.c.h.bf16 %v4542_v51  ;;  %v4051_v51 = vld [vmem:[%s4401_s13 + $0x78] sm:$0xff]  }
  0x38   : > { %v414_v23 = vadd.f32 %v413_v12, %v412_v17  ;;  %v431_v12 = vsel %vm377_vm0, %v3887_v54, 0.0 }
  0x3a   : > { %v416_v28 = vadd.f32 %v415_v22, %v414_v23  ;;  %v3894_v22 = vunpack.c.l.bf16 %v4553_v63  ;;  %v433_v23 = vsel %vm377_vm0, %v3890_v59, 0.0 }
  0x3c   : > { %v418_v32 = vadd.f32 %v417_v25, %v416_v28  ;;  %v3895_v28 = vunpack.c.h.bf16 %v4553_v63 }
  0x3e   : > { %v420_v40 = vadd.f32 %v419_v30, %v418_v32  ;;  %v435_v30 = vsel %vm377_vm0, %v3891_v10, 0.0 }
  0x40   : > { %v422_v45 = vadd.f32 %v421_v37, %v420_v40  ;;  %v437_v37 = vsel %vm377_vm0, %v3894_v22, 0.0 }
  0x42   : > { %v424_v52 = vadd.f32 %v423_v44, %v422_v45  ;;  %v439_v44 = vsel %vm377_vm0, %v3895_v28, 0.0 }
  0x44   : > { %v426_v58 = vadd.f32 %v425_v49, %v424_v52 }
  0x46   : > { %v428_v1 = vadd.f32 %v427_v56, %v426_v58 }
  0x48   : > { %v430_v17 = vadd.f32 %v429_v61, %v428_v1 }
  0x4a   : > { %v432_v25 = vadd.f32 %v431_v12, %v430_v17 }
  0x4c   : > { %v434_v32 = vadd.f32 %v433_v23, %v432_v25 }
  0x4e   : > { %v436_v40 = vadd.f32 %v435_v30, %v434_v32 }
  0x50   : > { %v438_v45 = vadd.f32 %v437_v37, %v436_v40 }
  0x52   : > { %v440_v49 = vadd.f32 %v439_v44, %v438_v45 }
  0x54   : > { %v441_v52 = vrot.slane %v440_v49, 4 }
  0x56   : > { %v442_v56 = vadd.f32 %v441_v52, %v440_v49 }
  0x58   : > { %v443_v58 = vrot.slane %v442_v56, 2 }
  0x5a   : > { %v444_v61 = vadd.f32 %v443_v58, %v442_v56 }
  0x5c   : > { %v445_v1 = vrot.slane %v444_v61, 1 }
  0x5e   : > { %v446_v12 = vadd.f32 %v445_v1, %v444_v61 }
  0x60   : > { %v4573_v17 = vmul.f32 0.00390625, %v446_v12 }
  0x62   : > { %v4578_v23 = vsub.f32 %v3834_v4, %v4573_v17  ;;  %v4583_v25 = vsub.f32 %v3835_v5, %v4573_v17  ;;  %v4588_v30 = vsub.f32 %v3838_v6, %v4573_v17  ;;  %v4593_v32 = vsub.f32 %v3839_v8, %v4573_v17 }
  0x63   : > { %v4598_v4 = vsub.f32 %v3842_v9, %v4573_v17  ;;  %v4609_v3 = vsub.f32 %v3843_v16, %v4573_v17  ;;  %v4616_v9 = vsub.f32 %v3846_v19, %v4573_v17  ;;  %v4626_v16 = vsub.f32 %v3847_v20, %v4573_v17 }
  0x64   : > { %v481_v2 = vmul.f32 %v4578_v23, %v4578_v23  ;;  %v482_v5 = vmul.f32 %v4583_v25, %v4583_v25  ;;  %v483_v6 = vmul.f32 %v4588_v30, %v4588_v30  ;;  %v484_v8 = vmul.f32 %v4593_v32, %v4593_v32 }
  0x65   : > { %v485_v37 = vmul.f32 %v4598_v4, %v4598_v4  ;;  %v486_v49 = vmul.f32 %v4609_v3, %v4609_v3  ;;  %v4634_v56 = vsub.f32 %v3850_v21, %v4573_v17  ;;  %v487_v58 = vmul.f32 %v4616_v9, %v4616_v9 }
  0x66   : > { %v513_v40 = vsel %vm377_vm0, %v481_v2, 0.0  ;;  %v514_v44 = vsel %vm377_vm0, %v482_v5, 0.0  ;;  %v516_v45 = vsel %vm377_vm0, %v483_v6, 0.0  ;;  %v518_v19 = vsel %vm377_vm0, %v484_v8, 0.0 }
  0x67   : > { %v515_v7 = vadd.f32 %v514_v44, %v513_v40  ;;  %v520_v61 = vsel %vm377_vm0, %v485_v37, 0.0  ;;  %v4642_v13 = vsub.f32 %v3851_v31, %v4573_v17  ;;  %v488_v20 = vmul.f32 %v4626_v16, %v4626_v16 }
  0x68   : > { %v522_v12 = vsel %vm377_vm0, %v486_v49, 0.0  ;;  %v4650_v21 = vsub.f32 %v3854_v33, %v4573_v17  ;;  %v489_v5 = vmul.f32 %v4634_v56, %v4634_v56  ;;  %v524_v6 = vsel %vm377_vm0, %v487_v58, 0.0 }
  0x69   : > { %v517_v52 = vadd.f32 %v516_v45, %v515_v7  ;;  %v4658_v14 = vsub.f32 %v3855_v36, %v4573_v17  ;;  %v490_v31 = vmul.f32 %v4642_v13, %v4642_v13  ;;  %v526_v37 = vsel %vm377_vm0, %v488_v20, 0.0 }
  0x6a   : > { %v4666_v33 = vsub.f32 %v3858_v39, %v4573_v17  ;;  %v491_v44 = vmul.f32 %v4650_v21, %v4650_v21  ;;  %v528_v45 = vsel %vm377_vm0, %v489_v5, 0.0  ;;  %v4674_v26 = vsub.f32 %v3859_v43, %v4573_v17 }
  0x6b   : > { %v519_v1 = vadd.f32 %v518_v19, %v517_v52  ;;  %v492_v36 = vmul.f32 %v4658_v14, %v4658_v14  ;;  %v530_v49 = vsel %vm377_vm0, %v490_v31, 0.0  ;;  %v4682_v39 = vsub.f32 %v3862_v46, %v4573_v17  ;;  %v4039_v31 = vld [vmem:[%s4401_s13 + $0x10] sm:$0xff]  }
  0x6c   : > { %v493_v52 = vmul.f32 %v4666_v33, %v4666_v33  ;;  %v532_v34 = vsel %vm377_vm0, %v491_v44, 0.0  ;;  %v4690_v58 = vsub.f32 %v3863_v50, %v4573_v17  ;;  %v4698_v20 = vsub.f32 %v3866_v53, %v4573_v17  ;;  %v4038_v44 = vld [vmem:[%s4401_s13 + $0x8] sm:$0xff]   ;;  %1829 = vrot.lane.b32.xlu1 %v4039_v31, %s4327_s14 }
  0x6d   : > { %v521_v2 = vadd.f32 %v520_v61, %v519_v1  ;;  %v494_v61 = vmul.f32 %v4674_v26, %v4674_v26  ;;  %v534_v1 = vsel %vm377_vm0, %v492_v36, 0.0  ;;  %v4706_v50 = vsub.f32 %v3867_v57, %v4573_v17 }
  0x6e   : > { %v496_v5 = vmul.f32 %v4690_v58, %v4690_v58  ;;  %v4776_v31 = vsub.f32 %v3882_v35, %v4573_v17 }
  0x6f   : > { %v523_v8 = vadd.f32 %v522_v12, %v521_v2  ;;  %v495_v12 = vmul.f32 %v4682_v39, %v4682_v39  ;;  %v536_v2 = vsel %vm377_vm0, %v493_v52, 0.0 }
  0x70   : > { %v542_v36 = vsel %vm377_vm0, %v496_v5, 0.0  ;;  %v4044_v5 = vld [vmem:[%s4401_s13 + $0x30] sm:$0xff]  }
  0x71   : > { %v525_v40 = vadd.f32 %v524_v6, %v523_v8  ;;  %v538_v6 = vsel %vm377_vm0, %v494_v61, 0.0  ;;  %v4037_v8 = vld [vmem:[%s4401_s13] sm:$0xff]   ;;  %v540_v48 = vsel %vm377_vm0, %v495_v12, 0.0  ;;  %v4748_v61 = vsub.f32 %v3875_v18, %v4573_v17  ;;  %v4043_v18 = vld [vmem:[%s4401_s13 + $0x38] sm:$0xff]  }
  0x72   : > { %1825 = vrot.lane.b32.xlu0 %v4037_v8, %s4327_s14  ;;  %v4756_v12 = vsub.f32 %v3878_v24, %v4573_v17 }
  0x73   : > { %v527_v7 = vadd.f32 %v526_v37, %v525_v40  ;;  %v4716_v37 = vsub.f32 %v3870_v60, %v4573_v17  ;;  %v497_v40 = vmul.f32 %v4698_v20, %v4698_v20  ;;  %v4728_v60 = vsub.f32 %v3871_v0, %v4573_v17  ;;  %v4041_v0 = vld [vmem:[%s4401_s13 + $0x28] sm:$0xff]  }
  0x74   : > { %v502_v24 = vmul.f32 %v4748_v61, %v4748_v61 }
  0x75   : > { %v529_v19 = vadd.f32 %v528_v45, %v527_v7  ;;  %v4040_v45 = vld [vmem:[%s4401_s13 + $0x18] sm:$0xff]   ;;  %v498_v7 = vmul.f32 %v4706_v50, %v4706_v50  ;;  %v499_v52 = vmul.f32 %v4716_v37, %v4716_v37 }
  0x76   : > { %1827 = vrot.lane.b32.xlu0 %v4038_v44, %s4327_s14  ;;  %1831 = vrot.lane.b32.xlu1 %v4040_v45, %s4327_s14  ;;  %v4788_v44 = vsub.f32 %v3883_v42, %v4573_v17  ;;  %v554_v45 = vsel %vm377_vm0, %v502_v24, 0.0  ;;  %v4047_v42 = vld [vmem:[%s4401_s13 + $0x58] sm:$0xff]  }
  0x77   : > { %v531_v43 = vadd.f32 %v530_v49, %v529_v19  ;;  %v4736_v19 = vsub.f32 %v3874_v11, %v4573_v17  ;;  %v500_v11 = vmul.f32 %v4728_v60, %v4728_v60 }
  0x79   : > { %v533_v46 = vadd.f32 %v532_v34, %v531_v43  ;;  %v544_v34 = vsel %vm377_vm0, %v497_v40, 0.0  ;;  %v4042_v43 = vld [vmem:[%s4401_s13 + $0x20] sm:$0xff]   ;;  %v503_v40 = vmul.f32 %v4756_v12, %v4756_v12 }
  0x7a   : > { %1835 = vrot.lane.b32.xlu1 %v4041_v0, %s4327_s14  ;;  %1833 = vrot.lane.b32.xlu0 %v4042_v43, %s4327_s14 }
  0x7b   : > { %v535_v41 = vadd.f32 %v534_v1, %v533_v46  ;;  %v546_v1 = vsel %vm377_vm0, %v498_v7, 0.0 }
  0x7d   : > { %v537_v53 = vadd.f32 %v536_v2, %v535_v41  ;;  %v501_v2 = vmul.f32 %v4736_v19, %v4736_v19  ;;  %v548_v41 = vsel %vm377_vm0, %v499_v52, 0.0  ;;  %v556_v52 = vsel %vm377_vm0, %v503_v40, 0.0 }
  0x7e   : > { %1839 = vrot.lane.b32.xlu1 %v4043_v18, %s4327_s14  ;;  %1837 = vrot.lane.b32.xlu0 %v4044_v5, %s4327_s14  ;;  %v4836_v5 = vsub.f32 %v3894_v22, %v4573_v17  ;;  %v4848_v40 = vsub.f32 %v3895_v28, %v4573_v17 }
  0x7f   : > { %v539_v57 = vadd.f32 %v538_v6, %v537_v53  ;;  %v4768_v6 = vsub.f32 %v3879_v29, %v4573_v17  ;;  %v550_v53 = vsel %vm377_vm0, %v500_v11, 0.0  ;;  %v4045_v29 = vld [vmem:[%s4401_s13 + $0x48] sm:$0xff]   ;;  %v4816_v11 = vsub.f32 %v3890_v59, %v4573_v17 }
  0x80   : > { %v512_v63 = vmul.f32 %v4848_v40, %v4848_v40 }
  0x81   : > { %v541_v49 = vadd.f32 %v540_v48, %v539_v57  ;;  %v552_v48 = vsel %vm377_vm0, %v501_v2, 0.0  ;;  %v4046_v57 = vld [vmem:[%s4401_s13 + $0x40] sm:$0xff]   ;;  %v504_v35 = vmul.f32 %v4768_v6, %v4768_v6  ;;  %v509_v24 = vmul.f32 %v4816_v11, %v4816_v11 }
  0x82   : > { %1843 = vrot.lane.b32.xlu1 %v4045_v29, %s4327_s14  ;;  %1841 = vrot.lane.b32.xlu0 %v4046_v57, %s4327_s14  ;;  %v4050_v2 = vld [vmem:[%s4401_s13 + $0x60] sm:$0xff]   ;;  %v511_v29 = vmul.f32 %v4836_v5, %v4836_v5 }
  0x83   : > { %v543_v55 = vadd.f32 %v542_v36, %v541_v49  ;;  %v4796_v36 = vsub.f32 %v3886_v47, %v4573_v17  ;;  %v505_v49 = vmul.f32 %v4776_v31, %v4776_v31  ;;  %v506_v47 = vmul.f32 %v4788_v44, %v4788_v44 }
  0x84   : > { %v558_v0 = vsel %vm377_vm0, %v504_v35, 0.0  ;;  %v568_v57 = vsel %vm377_vm0, %v509_v24, 0.0 }
  0x85   : > { %v545_v46 = vadd.f32 %v544_v34, %v543_v55  ;;  %v4048_v34 = vld [vmem:[%s4401_s13 + $0x50] sm:$0xff]   ;;  %v4808_v55 = vsub.f32 %v3887_v54, %v4573_v17  ;;  %v4049_v54 = vld [vmem:[%s4401_s13 + $0x68] sm:$0xff]  }
  0x86   : > { %1847 = vrot.lane.b32.xlu1 %v4047_v42, %s4327_s14  ;;  %1845 = vrot.lane.b32.xlu0 %v4048_v34, %s4327_s14 }
  0x87   : > { %v547_v62 = vadd.f32 %v546_v1, %v545_v46  ;;  %v507_v1 = vmul.f32 %v4796_v36, %v4796_v36  ;;  %v560_v46 = vsel %vm377_vm0, %v505_v49, 0.0  ;;  %v508_v59 = vmul.f32 %v4808_v55, %v4808_v55 }
  0x88   : > { %v574_v49 = vsel %vm377_vm0, %v512_v63, 0.0 }
  0x89   : > { %v549_v8 = vadd.f32 %v548_v41, %v547_v62  ;;  %v4828_v41 = vsub.f32 %v3891_v10, %v4573_v17  ;;  %v562_v62 = vsel %vm377_vm0, %v506_v47, 0.0  ;;  %v4052_v10 = vld [vmem:[%s4401_s13 + $0x70] sm:$0xff]  }
  0x8a   : > { %1851 = vrot.lane.b32.xlu1 %v4049_v54, %s4327_s14  ;;  %1849 = vrot.lane.b32.xlu0 %v4050_v2, %s4327_s14 }
  0x8b   : > { %v551_v15 = vadd.f32 %v550_v53, %v549_v8  ;;  %v564_v53 = vsel %vm377_vm0, %v507_v1, 0.0  ;;  %v510_v22 = vmul.f32 %v4828_v41, %v4828_v41 }
  0x8d   : > { %v553_v7 = vadd.f32 %v552_v48, %v551_v15  ;;  %v566_v48 = vsel %vm377_vm0, %v508_v59, 0.0  ;;  %v570_v28 = vsel %vm377_vm0, %v510_v22, 0.0 }
  0x8e   : > { %1855 = vrot.lane.b32.xlu1 %v4051_v51, %s4327_s14  ;;  %1853 = vrot.lane.b32.xlu0 %v4052_v10, %s4327_s14 }
  0x8f   : > { %v555_v27 = vadd.f32 %v554_v45, %v553_v7  ;;  %v572_v45 = vsel %vm377_vm0, %v511_v29, 0.0 }
  0x91   : > { %v557_v43 = vadd.f32 %v556_v52, %v555_v27 }
  0x93   : > { %v559_v38 = vadd.f32 %v558_v0, %v557_v43 }
  0x95   : > { %v561_v18 = vadd.f32 %v560_v46, %v559_v38 }
  0x97   : > { %v563_v8 = vadd.f32 %v562_v62, %v561_v18 }
  0x99   : > { %v565_v15 = vadd.f32 %v564_v53, %v563_v8 }
  0x9b   : > { %v567_v35 = vadd.f32 %v566_v48, %v565_v15 }
  0x9d   : > { %v569_v17 = vadd.f32 %v568_v57, %v567_v35 }
  0x9f   : > { %v571_v7 = vadd.f32 %v570_v28, %v569_v17 }
  0xa1   : > { %v573_v52 = vadd.f32 %v572_v45, %v571_v7 }
  0xa3   : > { %v575_v27 = vadd.f32 %v574_v49, %v573_v52 }
  0xa5   : > { %v576_v42 = vrot.slane %v575_v27, 4 }
  0xa7   : > { %v577_v34 = vadd.f32 %v576_v42, %v575_v27 }
  0xa9   : > { %v578_v47 = vrot.slane %v577_v34, 2 }
  0xab   : > { %v579_v0 = vadd.f32 %v578_v47, %v577_v34 }
  0xad   : > { %v580_v43 = vrot.slane %v579_v0, 1 }
  0xaf   : > { %v581_v1 = vadd.f32 %v580_v43, %v579_v0 }
  0xb1   : > { %v582_v46 = vmul.f32 0.00390625, %v581_v1 }
  0xb3   : > { %v583_v38 = vadd.f32 1e-05, %v582_v46 }
  0xb5   : > { %4057 = vrsqrt.f32 %v583_v38 }
  0xbf   : > { %v4058_v54 = vpop.eup %4057 }
  0xc0   : > { %v585_v2 = vmul.f32 %v4058_v54, %v4578_v23  ;;  %v586_v59 = vmul.f32 %v4058_v54, %v4583_v25  ;;  %v587_v62 = vmul.f32 %v4058_v54, %v4588_v30  ;;  %v588_v18 = vmul.f32 %v4058_v54, %v4593_v32 }
  0xc1   : > { %v589_v24 = vmul.f32 %v4058_v54, %v4598_v4  ;;  %v590_v53 = vmul.f32 %v4058_v54, %v4609_v3  ;;  %v591_v22 = vmul.f32 %v4058_v54, %v4616_v9  ;;  %v592_v23 = vmul.f32 %v4058_v54, %v4626_v16 }
  0xc2   : > { %v617_v8 = vpack.c.bf16 %v586_v59, %v585_v2  ;;  %v618_v51 = vpack.c.bf16 %v588_v18, %v587_v62  ;;  %v593_v25 = vmul.f32 %v4058_v54, %v4634_v56  ;;  %v594_v30 = vmul.f32 %v4058_v54, %v4642_v13 }
  0xc3   : > { %v619_v10 = vpack.c.bf16 %v590_v53, %v589_v24  ;;  %v620_v32 = vpack.c.bf16 %v592_v23, %v591_v22  ;;  %v595_v3 = vmul.f32 %v4058_v54, %v4650_v21  ;;  %v596_v48 = vmul.f32 %v4058_v54, %v4658_v14 }
  0xc4   : > { %3953 = vmatprep.mubr.msk.bf16.mxu0 %vm377_vm0, %v617_v8  ;;  %v621_v4 = vpack.c.bf16 %v594_v30, %v593_v25  ;;  %v597_v9 = vmul.f32 %v4058_v54, %v4666_v33  ;;  %v598_v16 = vmul.f32 %v4058_v54, %v4674_v26  ;;  %v599_v56 = vmul.f32 %v4058_v54, %v4682_v39 }
  0xc5   : > { %3954 = vmatmul.mubr.msk.bf16.vlgmr.msra.gmra.mrb[0].mxu0 %vm377_vm0, %v618_v51  ;;  %v622_v15 = vpack.c.bf16 %v596_v48, %v595_v3  ;;  %v600_v13 = vmul.f32 %v4058_v54, %v4690_v58  ;;  %v601_v21 = vmul.f32 %v4058_v54, %v4698_v20  ;;  %v602_v14 = vmul.f32 %v4058_v54, %v4706_v50 }
  0xc6   : > { %3957 = vmatprep.mubr.msk.bf16.mxu0 %vm377_vm0, %v619_v10  ;;  %v623_v29 = vpack.c.bf16 %v598_v16, %v597_v9  ;;  %v603_v33 = vmul.f32 %v4058_v54, %v4716_v37  ;;  %v604_v26 = vmul.f32 %v4058_v54, %v4728_v60  ;;  %v605_v39 = vmul.f32 %v4058_v54, %v4736_v19  ;;  %v4054_v10 = vld [vmem:[%s7366_s4 + $0x8] sm:$0xff]  }
  0xc7   : > { %v624_v57 = vpack.c.bf16 %v600_v13, %v599_v56  ;;  %v625_v35 = vpack.c.bf16 %v602_v14, %v601_v21  ;;  %v606_v58 = vmul.f32 %v4058_v54, %v4748_v61  ;;  %v607_v20 = vmul.f32 %v4058_v54, %v4756_v12 }
  0xc8   : > { %v626_v63 = vpack.c.bf16 %v604_v26, %v603_v33  ;;  %v608_v50 = vmul.f32 %v4058_v54, %v4768_v6  ;;  %v609_v37 = vmul.f32 %v4058_v54, %v4776_v31  ;;  %v610_v60 = vmul.f32 %v4058_v54, %v4788_v44 }
  0xc9   : > { %v627_v28 = vpack.c.bf16 %v606_v58, %v605_v39  ;;  %v611_v19 = vmul.f32 %v4058_v54, %v4796_v36  ;;  %v612_v61 = vmul.f32 %v4058_v54, %v4808_v55  ;;  %v613_v12 = vmul.f32 %v4058_v54, %v4816_v11  ;;  %v4914_v36 = vld [vmem:[%s7365_s3] ss:$0 sm:$0xff] }
  0xca   : > { %v628_v17 = vpack.c.bf16 %v608_v50, %v607_v20  ;;  %v629_v45 = vpack.c.bf16 %v610_v60, %v609_v37  ;;  %v614_v6 = vmul.f32 %v4058_v54, %v4828_v41  ;;  %v615_v31 = vmul.f32 %v4058_v54, %v4836_v5  ;;  %v4053_v55 = vld [vmem:[%s7366_s4] sm:$0xff]   ;;  %v4055_v50 = vld [vmem:[%s7366_s4 + $0x10] sm:$0xff]  }
  0xcb   : > { %v630_v7 = vpack.c.bf16 %v612_v61, %v611_v19  ;;  %v616_v44 = vmul.f32 %v4058_v54, %v4848_v40  ;;  %3985 = vmatprep.subr.bf16.mxu1 %v4053_v55  ;;  %v7370_v37 = vmov -1.0  }
  0xcc   : > { %v631_v49 = vpack.c.bf16 %v614_v6, %v613_v12  ;;  %3986 = vmatpush3.bf16.msra.mxu1 %v4053_v55 }
  0xcd   : > { %3958 = vmatmul.mubr.msk.bf16.gmra.mrb[4].mxu0 %vm377_vm0, %v620_v32  ;;  %v632_v52 = vpack.c.bf16 %v616_v44, %v615_v31  ;;  %3987 = vmatprep.subr.bf16.mxu1 %v4054_v10 }
  0xce   : > { %3961 = vmatprep.mubr.msk.bf16.mxu0 %vm377_vm0, %v621_v4 }
  0xd0   : > { %3988 = vmatpush3.bf16.msra.mxu1 %v4054_v10 }
  0xd1   : > { %3989 = vmatprep.subr.bf16.mxu1 %v4055_v50 }
  0xd4   : > { %3990 = vmatpush3.bf16.msra.mxu1 %v4055_v50 }
  0xd5   : > { %3962 = vmatmul.mubr.msk.bf16.gmra.mrb[8].mxu0 %vm377_vm0, %v622_v15 }
  0xd6   : > { %3965 = vmatprep.mubr.msk.bf16.mxu0 %vm377_vm0, %v623_v29 }
  0xdd   : > { %3966 = vmatmul.mubr.msk.bf16.gmra.mrb[12].mxu0 %vm377_vm0, %v624_v57 }
  0xde   : > { %3969 = vmatprep.mubr.msk.bf16.mxu0 %vm377_vm0, %v625_v35 }
  0xe5   : > { %3970 = vmatmul.mubr.msk.bf16.gmra.mrb[16].mxu0 %vm377_vm0, %v626_v63 }
  0xe6   : > { %3973 = vmatprep.mubr.msk.bf16.mxu0 %vm377_vm0, %v627_v28 }
  0xed   : > { %3974 = vmatmul.mubr.msk.bf16.gmra.mrb[20].mxu0 %vm377_vm0, %v628_v17 }
  0xee   : > { %3977 = vmatprep.mubr.msk.bf16.mxu0 %vm377_vm0, %v629_v45 }
  0xf5   : > { %3978 = vmatmul.mubr.msk.bf16.gmra.mrb[24].mxu0 %vm377_vm0, %v630_v7 }
  0xf6   : > { %3981 = vmatprep.mubr.msk.bf16.mxu0 %vm377_vm0, %v631_v49 }
  0xfd   : > { %3982 = vmatmul.mubr.msk.bf16.gmra.mrb[28].mxu0 %vm377_vm0, %v632_v52 }
 0x198   : > { %v3955_v11 = vpop.f32.mrb[0].mxu0 }
 0x199   : > { %v747_v41 = vadd.f32 %v3955_v11, %v4914_v36  ;;  %v738_v5 = vpop.f32.mrb[1].mxu0 }
 0x19a   : > { %v739_v40 = vadd.f32 %v4914_v36, %v738_v5  ;;  %v3956_v27 = vpop.f32.mrb[2].mxu0 }
 0x19b   : > { %v899_v42 = vmul.f32 0.70710677, %v747_v41  ;;  %v750_v34 = vadd.f32 %v3956_v27, %v4914_v36  ;;  %v741_v47 = vpop.f32.mrb[3].mxu0  ;;  %v4947_v15 = vmul.f32 0.5, %v747_v41 }
 0x19c   : > { %v4922_v0 = vmul.f32 0.70710677, %v739_v40  ;;  %v742_v46 = vadd.f32 %v4914_v36, %v741_v47  ;;  %v4967_v58 = vmul.f32 0.5, %v739_v40 }
 0x19d   : > { %v995_v43 = vand.u32 2147483647, %v899_v42  ;;  %v4924_v1 = vmul.f32 0.70710677, %v750_v34  ;;  %vm931_vm1 = vcmp.ge.f32.partialorder %v899_v42, 0.0  ;;  %v4969_v63 = vmul.f32 0.5, %v750_v34 }
 0x19e   : > { %v993_v38 = vand.u32 2147483647, %v4922_v0  ;;  %v4929_v18 = vmul.f32 0.70710677, %v742_v46  ;;  %v4981_v60 = vsel %vm931_vm1, 1.0, %v7370_v37  ;;  %vm929_vm2 = vcmp.ge.f32.partialorder %v4922_v0, 0.0 }
 0x19f   : > { %v1027_v54 = vmul.f32 0.3275911, %v995_v43  ;;  %v996_v59 = vand.u32 2147483647, %v4924_v1  ;;  %v1411_v32 = vsub.f32 0.0, %v995_v43  ;;  %v4984_v17 = vmul.f32 0.5, %v742_v46 }
 0x1a0   : > { %v1025_v2 = vmul.f32 0.3275911, %v993_v38  ;;  %v3959_v24 = vpop.f32.mrb[4].mxu0  ;;  %v4935_v22 = vand.u32 2147483647, %v4929_v18  ;;  %v1409_v21 = vsub.f32 0.0, %v993_v38 }
 0x1a1   : > { %v1059_v62 = vadd.f32 1.0, %v1027_v54  ;;  %v1028_v8 = vmul.f32 0.3275911, %v996_v59  ;;  %v754_v51 = vpop.f32.mrb[5].mxu0  ;;  %v4939_v3 = vadd.f32 %v3959_v24, %v4914_v36  ;;  %v1443_v13 = vmul.f32 %v1411_v32, %v995_v43 }
 0x1a2   : > { %v1057_v53 = vadd.f32 1.0, %v1025_v2  ;;  %v3960_v23 = vpop.f32.mrb[6].mxu0  ;;  %v1026_v4 = vmul.f32 0.3275911, %v4935_v22  ;;  %v4942_v48 = vadd.f32 %v4914_v36, %v754_v51  ;;  %v1412_v35 = vsub.f32 0.0, %v996_v59 }
 0x1a3   : > { %4059 = vrcp.f32 %v1059_v62  ;;  %v1060_v25 = vadd.f32 1.0, %v1028_v8  ;;  %v757_v30 = vpop.f32.mrb[7].mxu0  ;;  %v4945_v16 = vadd.f32 %v3960_v23, %v4914_v36  ;;  %v4950_v29 = vmul.f32 0.70710677, %v4939_v3 }
 0x1a4   : > { %4061 = vrcp.f32 %v1057_v53  ;;  %v1058_v9 = vadd.f32 1.0, %v1026_v4  ;;  %v4955_v14 = vmul.f32 0.70710677, %v4942_v48  ;;  %v1477_v61 = vmul.f32 1.442695, %v1443_v13 }
 0x1a5   : > { %4063 = vrcp.f32 %v1060_v25  ;;  %v4960_v33 = vand.u32 2147483647, %v4950_v29  ;;  %v4963_v26 = vmul.f32 0.70710677, %v4945_v16  ;;  %v1441_v12 = vmul.f32 %v1409_v21, %v993_v38 }
 0x1a6   : > { %4065 = vrcp.f32 %v1058_v9  ;;  %v4972_v28 = vand.u32 2147483647, %v4955_v14  ;;  %v1444_v44 = vmul.f32 %v1412_v35, %v996_v59  ;;  %v1410_v52 = vsub.f32 0.0, %v4935_v22 }
 0x1a7   : > { %v1031_v45 = vmul.f32 0.3275911, %v4960_v33  ;;  %v4991_v7 = vand.u32 2147483647, %v4963_v26  ;;  %v5000_v40 = vadd.f32 %v4914_v36, %v757_v30  ;;  %v5005_v42 = vsel %vm929_vm2, 1.0, %v7370_v37 }
 0x1a8   : > { %v4952_v56 = vpop.f32.mrb[8].mxu0  ;;  %v1029_v6 = vmul.f32 0.3275911, %v4972_v28  ;;  %vm932_vm3 = vcmp.ge.f32.partialorder %v4924_v1, 0.0  ;;  %v1473_v46 = vmul.f32 1.442695, %v1441_v12  ;;  %v1442_v8 = vmul.f32 %v1410_v52, %v4935_v22 }
 0x1a9   : > { %v4957_v57 = vpop.f32.mrb[9].mxu0  ;;  %v1063_v55 = vadd.f32 1.0, %v1031_v45  ;;  %v1032_v5 = vmul.f32 0.3275911, %v4991_v7  ;;  %v1479_v0 = vmul.f32 1.442695, %v1444_v44 }
 0x1aa   : > { %v4965_v39 = vpop.f32.mrb[10].mxu0  ;;  %v1061_v41 = vadd.f32 1.0, %v1029_v6  ;;  %vm930_vm4 = vcmp.ge.f32.partialorder %v4929_v18, 0.0  ;;  %v5024_v51 = vmul.f32 0.70710677, %v5000_v40  ;;  %v5032_v32 = vsel %vm932_vm3, 1.0, %v7370_v37 }
 0x1ab   : > { %v4974_v20 = vpop.f32.mrb[11].mxu0  ;;  %4067 = vrcp.f32 %v1063_v55  ;;  %v1064_v38 = vadd.f32 1.0, %v1032_v5  ;;  %v5035_v4 = vsel %vm930_vm4, 1.0, %v7370_v37  ;;  %v1475_v35 = vmul.f32 1.442695, %v1442_v8 }
 0x1ac   : > { %4069 = vrcp.f32 %v1061_v41  ;;  %v5041_v50 = vmul.f32 0.5, %v4939_v3  ;;  %v5044_v45 = vand.u32 2147483647, %v5024_v51  ;;  %v5048_v6 = vmul.f32 0.5, %v4942_v48 }
 0x1ad   : > { %v4987_v19 = vpop.eup %4059  ;;  %4071 = vpow2.f32 %v1477_v61  ;;  %v5053_v52 = vmul.f32 0.5, %v4945_v16  ;;  %v5058_v3 = vadd.f32 %v4952_v56, %v4914_v36  ;;  %vm935_vm5 = vcmp.ge.f32.partialorder %v4950_v29, 0.0 }
 0x1ae   : > { %v4993_v49 = vpop.eup %4061  ;;  %v1123_v31 = vmul.f32 1.0614054, %v4987_v19  ;;  %4073 = vrcp.f32 %v1064_v38  ;;  %v1030_v55 = vmul.f32 0.3275911, %v5044_v45  ;;  %v1413_v56 = vsub.f32 0.0, %v4972_v28 }
 0x1af   : > { %v1121_v11 = vmul.f32 1.0614054, %v4993_v49  ;;  %v5010_v47 = vpop.eup %4063  ;;  %4075 = vpow2.f32 %v1473_v46  ;;  %vm933_vm6 = vcmp.ge.f32.partialorder %v4955_v14, 0.0  ;;  %vm936_vm7 = vcmp.ge.f32.partialorder %v4963_v26, 0.0 }
 0x1b0   : > { %v1155_v27 = vadd.f32 -1.4531521, %v1123_v31  ;;  %v5008_v34 = vpop.f32.mrb[12].mxu0  ;;  %v1124_v59 = vmul.f32 1.0614054, %v5010_v47  ;;  %v5019_v24 = vpop.eup %4065  ;;  %4077 = vpow2.f32 %v1479_v0  ;;  %v1062_v38 = vadd.f32 1.0, %v1030_v55 }
 0x1b1   : > { %v1153_v43 = vadd.f32 -1.4531521, %v1121_v11  ;;  %v5012_v54 = vpop.f32.mrb[13].mxu0  ;;  %v1122_v30 = vmul.f32 1.0614054, %v5019_v24  ;;  %vm934_vm8 = vcmp.ge.f32.partialorder %v5024_v51, 0.0 }
 0x1b2   : > { %v1187_v2 = vmul.f32 %v4987_v19, %v1155_v27  ;;  %v5017_v62 = vpop.f32.mrb[14].mxu0  ;;  %v1156_v25 = vadd.f32 -1.4531521, %v1124_v59  ;;  %v1415_v27 = vsub.f32 0.0, %v4960_v33  ;;  %4079 = vrcp.f32 %v1062_v38 }
 0x1b3   : > { %v1185_v53 = vmul.f32 %v4993_v49, %v1153_v43  ;;  %v5026_v10 = vpop.f32.mrb[15].mxu0  ;;  %v1154_v13 = vadd.f32 -1.4531521, %v1122_v30  ;;  %4081 = vpow2.f32 %v1475_v35  ;;  %v5160_v51 = vmul.f32 0.5, %v5000_v40 }
 0x1b4   : > { %v1219_v23 = vadd.f32 1.4214138, %v1187_v2  ;;  %v1188_v9 = vmul.f32 %v5010_v47, %v1156_v25 }
 0x1b5   : > { %v1217_v18 = vadd.f32 1.4214138, %v1185_v53  ;;  %v1186_v12 = vmul.f32 %v5019_v24, %v1154_v13  ;;  %v5060_v11 = vpop.eup %4067  ;;  %v1447_v13 = vmul.f32 %v1415_v27, %v4960_v33  ;;  %v1445_v27 = vmul.f32 %v1413_v56, %v4972_v28 }
 0x1b6   : > { %v1251_v22 = vmul.f32 %v4987_v19, %v1219_v23  ;;  %v1220_v61 = vadd.f32 1.4214138, %v1188_v9  ;;  %v5067_v46 = vpop.eup %4069  ;;  %v1127_v16 = vmul.f32 1.0614054, %v5060_v11 }
 0x1b7   : > { %v1249_v21 = vmul.f32 %v4993_v49, %v1217_v18  ;;  %v1218_v48 = vadd.f32 1.4214138, %v1186_v12  ;;  %v1125_v8 = vmul.f32 1.0614054, %v5067_v46  ;;  %v4072_v23 = vpop.eup %4071  ;;  %v5078_v18 = vmul.f32 0.70710677, %v5058_v3 }
 0x1b8   : > { %v1283_v1 = vadd.f32 -0.28449672, %v1251_v22  ;;  %v5050_v31 = vpop.f32.mrb[16].mxu0  ;;  %v1252_v5 = vmul.f32 %v5010_v47, %v1220_v61  ;;  %v1159_v30 = vadd.f32 -1.4531521, %v1127_v16  ;;  %v5080_v22 = vpop.eup %4073  ;;  %v5092_v16 = vsel %vm935_vm5, 1.0, %v7370_v37 }
 0x1b9   : > { %v1281_v44 = vadd.f32 -0.28449672, %v1249_v21  ;;  %v5065_v43 = vpop.f32.mrb[17].mxu0  ;;  %v1250_v53 = vmul.f32 %v5019_v24, %v1218_v48  ;;  %v1157_v21 = vadd.f32 -1.4531521, %v1125_v8  ;;  %v4076_v12 = vpop.eup %4075  ;;  %vm939_vm9 = vcmp.ge.f32.partialorder %v5078_v18, 0.0 }
 0x1ba   : > { %v1315_v41 = vmul.f32 %v4987_v19, %v1283_v1  ;;  %v5072_v2 = vpop.f32.mrb[18].mxu0  ;;  %v1284_v0 = vadd.f32 -0.28449672, %v1252_v5  ;;  %v1416_v1 = vsub.f32 0.0, %v4991_v7  ;;  %v1191_v55 = vmul.f32 %v5060_v11, %v1159_v30  ;;  %v4078_v5 = vpop.eup %4077 }
 0x1bb   : > { %v1313_v59 = vmul.f32 %v4993_v49, %v1281_v44  ;;  %v1282_v9 = vadd.f32 -0.28449672, %v1250_v53  ;;  %v5084_v61 = vpop.f32.mrb[19].mxu0  ;;  %v1189_v33 = vmul.f32 %v5067_v46, %v1157_v21  ;;  %v5100_v8 = vand.u32 2147483647, %v5078_v18 }
 0x1bc   : > { %v1347_v25 = vadd.f32 0.2548296, %v1315_v41  ;;  %7378 = vst [vmem:[#allocation2_spill] sm:$0xff] %v5084_v61  ;;  %v1316_v44 = vmul.f32 %v5010_v47, %v1284_v0  ;;  %v1128_v41 = vmul.f32 1.0614054, %v5080_v22  ;;  %v1448_v29 = vmul.f32 %v1416_v1, %v4991_v7 }
 0x1bd   : > { %v1345_v48 = vadd.f32 0.2548296, %v1313_v59  ;;  %v1223_v35 = vadd.f32 1.4214138, %v1191_v55  ;;  %v1314_v59 = vmul.f32 %v5019_v24, %v1282_v9  ;;  %v1485_v30 = vmul.f32 1.442695, %v1447_v13 }
 0x1be   : > { %v1379_v0 = vmul.f32 %v4987_v19, %v1347_v25  ;;  %v1160_v53 = vadd.f32 -1.4531521, %v1128_v41  ;;  %v1221_v61 = vadd.f32 1.4214138, %v1189_v33  ;;  %v1348_v21 = vadd.f32 0.2548296, %v1316_v44 }
 0x1bf   : > { %v1255_v28 = vmul.f32 %v5060_v11, %v1223_v35  ;;  %v1035_v19 = vmul.f32 0.3275911, %v5100_v8  ;;  %v4056_v55 = vld [vmem:[%s7366_s4 + $0x18] sm:$0xff]   ;;  %v1377_v9 = vmul.f32 %v4993_v49, %v1345_v48  ;;  %v1346_v35 = vadd.f32 0.2548296, %v1314_v59 }
 0x1c0   : > { %v5096_v38 = vpop.f32.mrb[20].mxu0  ;;  %v1192_v56 = vmul.f32 %v5080_v22, %v1160_v53  ;;  %v1253_v7 = vmul.f32 %v5067_v46, %v1221_v61  ;;  %v1539_v1 = vmul.f32 %v4072_v23, %v1379_v0  ;;  %3991 = vmatprep.subr.bf16.mxu1 %v4056_v55  ;;  %4083 = vpow2.f32 %v1485_v30 }
 0x1c1   : > { %7379 = vst [vmem:[#allocation3_spill] sm:$0xff] %v5096_v38  ;;  %v5104_v37 = vpop.f32.mrb[21].mxu0  ;;  %v1287_v44 = vadd.f32 -0.28449672, %v1255_v28  ;;  %v1067_v33 = vadd.f32 1.0, %v1035_v19  ;;  %3992 = vmatpush3.bf16.msra.mxu1 %v4056_v55  ;;  %v1380_v49 = vmul.f32 %v5010_v47, %v1348_v21  ;;  %v1537_v38 = vmul.f32 %v4076_v12, %v1377_v9 }
 0x1c2   : > { %7380 = vst [vmem:[#allocation4_spill] sm:$0xff] %v5104_v37  ;;  %v5109_v25 = vpop.f32.mrb[22].mxu0  ;;  %v1224_v41 = vadd.f32 1.4214138, %v1192_v56  ;;  %v1285_v53 = vadd.f32 -0.28449672, %v1253_v7  ;;  %v5120_v37 = vpop.eup %4079  ;;  %v5128_v59 = vadd.f32 %v4914_v36, %v4957_v57 }
 0x1c3   : > { %7381 = vst [vmem:[#allocation5_spill] sm:$0xff] %v5109_v25  ;;  %v5118_v13 = vpop.f32.mrb[23].mxu0  ;;  %v1481_v25 = vmul.f32 1.442695, %v1445_v27  ;;  %v1487_v48 = vmul.f32 1.442695, %v1448_v29  ;;  %4085 = vrcp.f32 %v1067_v33  ;;  %v1319_v23 = vmul.f32 %v5060_v11, %v1287_v44  ;;  %v4082_v27 = vpop.eup %4081 }
 0x1c4   : > { %v1256_v61 = vmul.f32 %v5080_v22, %v1224_v41  ;;  %v1414_v0 = vsub.f32 0.0, %v5044_v45  ;;  %v1571_v28 = vsub.f32 1.0, %v1539_v1  ;;  %v1317_v56 = vmul.f32 %v5067_v46, %v1285_v53 }
 0x1c5   : > { %v1126_v21 = vmul.f32 1.0614054, %v5120_v37  ;;  %v1378_v29 = vmul.f32 %v5019_v24, %v1346_v35  ;;  %v7382_v12 = vmov -1.0   ;;  %4087 = vpow2.f32 %v1481_v25 }
 0x1c6   : > { %v1288_v47 = vadd.f32 -0.28449672, %v1256_v61  ;;  %v5138_v19 = vsel %vm933_vm6, 1.0, %v7382_v12  ;;  %v5143_v57 = vsel %vm936_vm7, 1.0, %v7382_v12  ;;  %v1540_v9 = vmul.f32 %v4078_v5, %v1380_v49 }
 0x1c7   : > { %v1158_v1 = vadd.f32 -1.4531521, %v1126_v21  ;;  %v1569_v44 = vsub.f32 1.0, %v1537_v38  ;;  %v1351_v14 = vadd.f32 0.2548296, %v1319_v23  ;;  %4089 = vpow2.f32 %v1487_v48 }
 0x1c8   : > { %v5130_v30 = vpop.f32.mrb[24].mxu0  ;;  %v1320_v7 = vmul.f32 %v5080_v22, %v1288_v47  ;;  %v1446_v25 = vmul.f32 %v1414_v0, %v5044_v45  ;;  %v1603_v26 = vmul.f32 %v1571_v28, %v4981_v60  ;;  %v1349_v33 = vadd.f32 0.2548296, %v1317_v56 }
 0x1c9   : > { %v5145_v55 = vpop.f32.mrb[25].mxu0  ;;  %v1190_v35 = vmul.f32 %v5120_v37, %v1158_v1  ;;  %v5157_v5 = vmul.f32 0.70710677, %v5128_v59  ;;  %v1538_v53 = vmul.f32 %v4082_v27, %v1378_v29  ;;  %v5163_v38 = vsel %vm934_vm8, 1.0, %v7382_v12 }
 0x1ca   : > { %v5149_v24 = vpop.f32.mrb[26].mxu0  ;;  %v5166_v49 = vmul.f32 0.5, %v5058_v3  ;;  %v1572_v45 = vsub.f32 1.0, %v1540_v9  ;;  %v1352_v61 = vadd.f32 0.2548296, %v1320_v7  ;;  %v5170_v60 = vadd.f32 %v4965_v39, %v4914_v36  ;;  %v4084_v23 = vpop.eup %4083 }
 0x1cb   : > { %v5152_v41 = vpop.f32.mrb[27].mxu0  ;;  %v1222_v48 = vadd.f32 1.4214138, %v1190_v35  ;;  %v1383_v0 = vmul.f32 %v5060_v11, %v1351_v14  ;;  %v1483_v27 = vmul.f32 1.442695, %v1446_v25  ;;  %v1635_v56 = vadd.f32 1.0, %v1603_v26 }
 0x1cc   : > { %v5175_v40 = vand.u32 2147483647, %v5157_v5  ;;  %v1601_v47 = vmul.f32 %v1569_v44, %v5005_v42  ;;  %v1381_v21 = vmul.f32 %v5067_v46, %v1349_v33  ;;  %v1570_v11 = vsub.f32 1.0, %v1538_v53 }
 0x1cd   : > { %v5179_v3 = vpop.eup %4085  ;;  %v1254_v39 = vmul.f32 %v5120_v37, %v1222_v48  ;;  %v1419_v7 = vsub.f32 0.0, %v5100_v8  ;;  %v1604_v14 = vmul.f32 %v1572_v45, %v5032_v32  ;;  %v1384_v25 = vmul.f32 %v5080_v22, %v1352_v61 }
 0x1ce   : > { %v1131_v9 = vmul.f32 1.0614054, %v5179_v3  ;;  %v1033_v1 = vmul.f32 0.3275911, %v5175_v40  ;;  %v5192_v42 = vmul.f32 0.70710677, %v5170_v60  ;;  %v1543_v44 = vmul.f32 %v4084_v23, %v1383_v0 }
 0x1cf   : > { %v1286_v26 = vadd.f32 -0.28449672, %v1254_v39  ;;  %v4088_v46 = vpop.eup %4087  ;;  %v5197_v33 = vsel %vm939_vm9, 1.0, %v7382_v12  ;;  %4091 = vpow2.f32 %v1483_v27  ;;  %v1602_v45 = vmul.f32 %v1570_v11, %v5035_v4 }
 0x1d0   : > { %v5177_v28 = vpop.f32.mrb[28].mxu0  ;;  %v1163_v35 = vadd.f32 -1.4531521, %v1131_v9  ;;  %v1065_v53 = vadd.f32 1.0, %v1033_v1  ;;  %v1451_v23 = vmul.f32 %v1419_v7, %v5100_v8  ;;  %v5206_v18 = vmul.f32 %v1635_v56, %v4947_v15 }
 0x1d1   : > { %7383 = vst [vmem:[#allocation6_spill] sm:$0xff] %v5177_v28  ;;  %v5184_v29 = vpop.f32.mrb[29].mxu0  ;;  %v1541_v28 = vmul.f32 %v4088_v46, %v1381_v21  ;;  %v1318_v32 = vmul.f32 %v5120_v37, %v1286_v26  ;;  %v4090_v22 = vpop.eup %4089  ;;  %v1636_v0 = vadd.f32 1.0, %v1604_v14  ;;  %v1004_v9 = vand.u32 2147483647, %v5192_v42 }
 0x1d2   : > { %7384 = vst [vmem:[#allocation7_spill] sm:$0xff] %v5184_v29  ;;  %v5199_v48 = vpop.f32.mrb[30].mxu0  ;;  %v1633_v29 = vadd.f32 1.0, %v1601_v47  ;;  %v1195_v61 = vmul.f32 %v5179_v3, %v1163_v35  ;;  %4093 = vrcp.f32 %v1065_v53  ;;  %v1544_v39 = vmul.f32 %v4090_v22, %v1384_v25 }
 0x1d3   : > { %7385 = vst [vmem:[#allocation8_spill] sm:$0xff] %v5199_v48  ;;  %v1575_v47 = vsub.f32 1.0, %v1543_v44  ;;  %v5211_v27 = vadd.f32 %v4914_v36, %v4974_v20  ;;  %v5215_v4 = vadd.f32 %v5008_v34, %v4914_v36  ;;  %v5217_v11 = vpop.f32.mrb[31].mxu0  ;;  %v1573_v15 = vsub.f32 1.0, %v1541_v28 }
 0x1d4   : > { %v1227_v21 = vadd.f32 1.4214138, %v1195_v61  ;;  %7386 = vst [vmem:[#allocation9_spill] sm:$0xff] %v5217_v11  ;;  %v5220_v8 = vmul.f32 %v1633_v29, %v4967_v58  ;;  %v1350_v56 = vadd.f32 0.2548296, %v1318_v32  ;;  %v1634_v1 = vadd.f32 1.0, %v1602_v45 }
 0x1d5   : > { %v1036_v7 = vmul.f32 0.3275911, %v1004_v9  ;;  %v1493_v25 = vmul.f32 1.442695, %v1451_v23  ;;  %v5224_v26 = vmul.f32 0.70710677, %v5211_v27  ;;  %v5231_v58 = vmul.f32 %v1636_v0, %v4969_v63 }
 0x1d6   : > { %v1259_v14 = vmul.f32 %v5179_v3, %v1227_v21  ;;  %v1576_v20 = vsub.f32 1.0, %v1544_v39  ;;  %v1417_v46 = vsub.f32 0.0, %v5175_v40  ;;  %v5228_v44 = vmul.f32 0.70710677, %v5215_v4 }
 0x1d7   : > { %v1068_v34 = vadd.f32 1.0, %v1036_v7  ;;  %v1607_v28 = vmul.f32 %v1575_v47, %v5092_v16  ;;  %v5235_v29 = vmul.f32 0.5, %v5128_v59  ;;  %v1002_v35 = vand.u32 2147483647, %v5224_v26 }
 0x1d8   : > { %v1605_v53 = vmul.f32 %v1573_v15, %v5138_v19  ;;  %v1382_v32 = vmul.f32 %v5120_v37, %v1350_v56  ;;  %vm937_vm10 = vcmp.ge.f32.partialorder %v5157_v5, 0.0  ;;  %v5242_v22 = vmul.f32 %v1634_v1, %v4984_v17 }
 0x1d9   : > { %4095 = vrcp.f32 %v1068_v34  ;;  %v1291_v45 = vadd.f32 -0.28449672, %v1259_v14  ;;  %v1034_v63 = vmul.f32 0.3275911, %v1002_v35  ;;  %v5246_v16 = vadd.f32 %v4914_v36, %v5012_v54  ;;  %v4092_v59 = vpop.eup %4091 }
 0x1da   : > { %v1608_v61 = vmul.f32 %v1576_v20, %v5143_v57  ;;  %4097 = vpow2.f32 %v1493_v25  ;;  %v1449_v19 = vmul.f32 %v1417_v46, %v5175_v40  ;;  %v5251_v37 = vand.u32 2147483647, %v5228_v44 }
 0x1db   : > { %v1639_v23 = vadd.f32 1.0, %v1607_v28  ;;  %v5256_v17 = vsel %vm937_vm10, 1.0, %v7382_v12  ;;  %v1420_v0 = vsub.f32 0.0, %v1004_v9  ;;  %v1066_v39 = vadd.f32 1.0, %v1034_v63 }
 0x1dc   : > { %v5253_v5 = vpop.eup %4093  ;;  %v1637_v47 = vadd.f32 1.0, %v1605_v53  ;;  %v1542_v54 = vmul.f32 %v4092_v59, %v1382_v32  ;;  %v1039_v57 = vmul.f32 0.3275911, %v5251_v37  ;;  %v1323_v15 = vmul.f32 %v5179_v3, %v1291_v45 }
 0x1dd   : > { %v1129_v21 = vmul.f32 1.0614054, %v5253_v5  ;;  %vm940_vm11 = vcmp.ge.f32.partialorder %v5192_v42, 0.0  ;;  %4099 = vrcp.f32 %v1066_v39  ;;  %v5263_v40 = vmul.f32 0.70710677, %v5246_v16 }
 0x1de   : > { %v1640_v56 = vadd.f32 1.0, %v1608_v61  ;;  %v1489_v1 = vmul.f32 1.442695, %v1449_v19  ;;  %v1071_v14 = vadd.f32 1.0, %v1039_v57  ;;  %v5266_v25 = vmul.f32 %v1639_v23, %v5041_v50 }
 0x1df   : > { %v1161_v7 = vadd.f32 -1.4531521, %v1129_v21  ;;  %v5269_v20 = vmul.f32 0.5, %v5170_v60  ;;  %v1452_v46 = vmul.f32 %v1420_v0, %v1004_v9  ;;  %v5272_v34 = vand.u32 2147483647, %v5263_v40 }
 0x1e0   : > { %7387 = vst [vmem:[#allocation10_spill] sm:$0xff] %v5266_v25  ;;  %v5275_v28 = vmul.f32 %v1637_v47, %v5048_v6  ;;  %v1574_v53 = vsub.f32 1.0, %v1542_v54  ;;  %4101 = vrcp.f32 %v1071_v14  ;;  %v1355_v45 = vadd.f32 0.2548296, %v1323_v15 }
 0x1e1   : > { %v1193_v32 = vmul.f32 %v5253_v5, %v1161_v7  ;;  %v5281_v50 = vsel %vm940_vm11, 1.0, %v7382_v12  ;;  %v1037_v60 = vmul.f32 0.3275911, %v5272_v34  ;;  %v5286_v9 = vadd.f32 %v5017_v62, %v4914_v36 }
 0x1e2   : > { %7388 = vst [vmem:[#allocation11_spill] sm:$0xff] %v5275_v28  ;;  %v5291_v6 = vmul.f32 %v1640_v56, %v5053_v52  ;;  %4103 = vpow2.f32 %v1489_v1  ;;  %v1418_v61 = vsub.f32 0.0, %v1002_v35  ;;  %v1495_v23 = vmul.f32 1.442695, %v1452_v46 }
 0x1e3   : > { %v5288_v63 = vpop.eup %4095  ;;  %v1225_v59 = vadd.f32 1.4214138, %v1193_v32  ;;  %vm938_vm12 = vcmp.ge.f32.partialorder %v5224_v26, 0.0  ;;  %v1069_v42 = vadd.f32 1.0, %v1037_v60  ;;  %v1606_v39 = vmul.f32 %v1574_v53, %v5163_v38 }
 0x1e4   : > { %7389 = vst [vmem:[#allocation12_spill] sm:$0xff] %v5291_v6  ;;  %v1132_v19 = vmul.f32 1.0614054, %v5288_v63  ;;  %v4098_v0 = vpop.eup %4097  ;;  %v1423_v47 = vsub.f32 0.0, %v5251_v37  ;;  %v5299_v54 = vmul.f32 0.70710677, %v5286_v9  ;;  %v1387_v52 = vmul.f32 %v5179_v3, %v1355_v45 }
 0x1e5   : > { %v1257_v62 = vmul.f32 %v5253_v5, %v1225_v59  ;;  %4105 = vrcp.f32 %v1069_v42  ;;  %v5304_v57 = vadd.f32 %v4914_v36, %v5026_v10  ;;  %v5307_v15 = vmul.f32 0.5, %v5211_v27 }
 0x1e6   : > { %v1164_v21 = vadd.f32 -1.4531521, %v1132_v19  ;;  %v1450_v56 = vmul.f32 %v1418_v61, %v1002_v35  ;;  %v5310_v38 = vmul.f32 0.5, %v5215_v4  ;;  %v5313_v7 = vand.u32 2147483647, %v5299_v54 }
 0x1e7   : > { %v5315_v1 = vpop.eup %4099  ;;  %v1289_v14 = vadd.f32 -0.28449672, %v1257_v62  ;;  %v5321_v10 = vsel %vm938_vm12, 1.0, %v7382_v12  ;;  %vm943_vm13 = vcmp.ge.f32.partialorder %v5228_v44, 0.0  ;;  %v1638_v27 = vadd.f32 1.0, %v1606_v39 }
 0x1e8   : > { %v1196_v3 = vmul.f32 %v5288_v63, %v1164_v21  ;;  %4107 = vpow2.f32 %v1495_v23  ;;  %v1130_v4 = vmul.f32 1.0614054, %v5315_v1  ;;  %v1040_v35 = vmul.f32 0.3275911, %v5313_v7 }
 0x1e9   : > { %v1547_v46 = vmul.f32 %v4098_v0, %v1387_v52  ;;  %v1455_v32 = vmul.f32 %v1423_v47, %v5251_v37  ;;  %v5328_v45 = vmul.f32 0.70710677, %v5304_v57  ;;  %v1491_v59 = vmul.f32 1.442695, %v1450_v56 }
 0x1ea   : > { %v1228_v53 = vadd.f32 1.4214138, %v1196_v3  ;;  %v5330_v60 = vpop.eup %4101  ;;  %v1162_v26 = vadd.f32 -1.4531521, %v1130_v4  ;;  %v5333_v61 = vsel %vm943_vm13, 1.0, %v7382_v12  ;;  %v1072_v44 = vadd.f32 1.0, %v1040_v35 }
 0x1eb   : > { %v1321_v19 = vmul.f32 %v5253_v5, %v1289_v14  ;;  %v1135_v23 = vmul.f32 1.0614054, %v5330_v60  ;;  %v1006_v42 = vand.u32 2147483647, %v5328_v45  ;;  %v811_v37 = vadd.f32 %v5050_v31, %v4914_v36 }
 0x1ec   : > { %v4104_v0 = vpop.eup %4103  ;;  %v1260_v39 = vmul.f32 %v5288_v63, %v1228_v53  ;;  %v1194_v62 = vmul.f32 %v5315_v1, %v1162_v26  ;;  %v5343_v47 = vmul.f32 0.5, %v5246_v16  ;;  %4109 = vrcp.f32 %v1072_v44 }
 0x1ed   : > { %v5346_v52 = vmul.f32 %v1638_v27, %v5160_v51  ;;  %v1579_v21 = vsub.f32 1.0, %v1547_v46  ;;  %v1167_v56 = vadd.f32 -1.4531521, %v1135_v23  ;;  %v1501_v14 = vmul.f32 1.442695, %v1455_v32 }
 0x1ee   : > { %v1226_v3 = vadd.f32 1.4214138, %v1194_v62  ;;  %vm941_vm14 = vcmp.ge.f32.partialorder %v5263_v40, 0.0  ;;  %v1421_v31 = vsub.f32 0.0, %v5272_v34  ;;  %v1038_v4 = vmul.f32 0.3275911, %v1006_v42 }
 0x1ef   : > { %7390 = vst [vmem:[#allocation13_spill] sm:$0xff] %v5346_v52  ;;  %v5350_v35 = vpop.eup %4105  ;;  %v1353_v53 = vadd.f32 0.2548296, %v1321_v19  ;;  %4111 = vpow2.f32 %v1491_v59  ;;  %v1199_v16 = vmul.f32 %v5330_v60, %v1167_v56  ;;  %v5353_v26 = vmul.f32 0.70710677, %v811_v37 }
 0x1f0   : > { %v1292_v44 = vadd.f32 -0.28449672, %v1260_v39  ;;  %v1258_v51 = vmul.f32 %v5315_v1, %v1226_v3  ;;  %v1133_v27 = vmul.f32 1.0614054, %v5350_v35  ;;  %v1070_v46 = vadd.f32 1.0, %v1038_v4 }
 0x1f1   : > { %v1611_v32 = vmul.f32 %v1579_v21, %v5197_v33  ;;  %v1231_v40 = vadd.f32 1.4214138, %v1199_v16  ;;  %4113 = vpow2.f32 %v1501_v14  ;;  %v5359_v23 = vsel %vm941_vm14, 1.0, %v7382_v12 }
 0x1f2   : > { %v4108_v62 = vpop.eup %4107  ;;  %v1165_v19 = vadd.f32 -1.4531521, %v1133_v27  ;;  %v1453_v59 = vmul.f32 %v1421_v31, %v5272_v34  ;;  %v1424_v56 = vsub.f32 0.0, %v5313_v7  ;;  %4115 = vrcp.f32 %v1070_v46 }
 0x1f3   : > { %v1385_v39 = vmul.f32 %v5253_v5, %v1353_v53  ;;  %v1290_v3 = vadd.f32 -0.28449672, %v1258_v51  ;;  %v1263_v11 = vmul.f32 %v5330_v60, %v1231_v40  ;;  %v5366_v4 = vmul.f32 0.5, %v5286_v9 }
 0x1f4   : > { %v1324_v33 = vmul.f32 %v5288_v63, %v1292_v44  ;;  %v1197_v21 = vmul.f32 %v5350_v35, %v1165_v19  ;;  %v5371_v14 = vand.u32 2147483647, %v5353_v26  ;;  %v5375_v34 = vadd.f32 %v4914_v36, %v5065_v43 }
 0x1f5   : > { %v1643_v31 = vadd.f32 1.0, %v1611_v32  ;;  %v1295_v16 = vadd.f32 -0.28449672, %v1263_v11  ;;  %v5378_v5 = vmul.f32 0.5, %v5304_v57  ;;  %v1422_v53 = vsub.f32 0.0, %v1006_v42 }
 0x1f6   : > { %v5380_v51 = vpop.eup %4109  ;;  %v1229_v9 = vadd.f32 1.4214138, %v1197_v21  ;;  %v1497_v27 = vmul.f32 1.442695, %v1453_v59  ;;  %v1456_v44 = vmul.f32 %v1424_v56, %v5313_v7  ;;  %v1043_v46 = vmul.f32 0.3275911, %v5371_v14 }
 0x1f7   : > { %v1545_v40 = vmul.f32 %v4104_v0, %v1385_v39  ;;  %v1322_v19 = vmul.f32 %v5315_v1, %v1290_v3  ;;  %v1327_v43 = vmul.f32 %v5330_v60, %v1295_v16  ;;  %v1136_v32 = vmul.f32 1.0614054, %v5380_v51 }
 0x1f8   : > { %v1356_v11 = vadd.f32 0.2548296, %v1324_v33  ;;  %v1261_v57 = vmul.f32 %v5350_v35, %v1229_v9  ;;  %v1075_v6 = vadd.f32 1.0, %v1043_v46  ;;  %v5389_v25 = vmul.f32 0.70710677, %v5375_v34 }
 0x1f9   : > { %v4112_v21 = vpop.eup %4111  ;;  %vm944_vm15 = vcmp.ge.f32.partialorder %v5299_v54, 0.0  ;;  %v1168_v7 = vadd.f32 -1.4531521, %v1136_v32  ;;  %v1454_v59 = vmul.f32 %v1422_v53, %v1006_v42  ;;  %v5392_v56 = vmul.f32 0.5, %v811_v37 }
 0x1fa   : > { %v5395_v0 = vmul.f32 %v1643_v31, %v5166_v49  ;;  %v1293_v39 = vadd.f32 -0.28449672, %v1261_v57  ;;  %v1503_v3 = vmul.f32 1.442695, %v1456_v44  ;;  %4117 = vrcp.f32 %v1075_v6 }
 0x1fb   : > { %v4114_v33 = vpop.eup %4113  ;;  %v1577_v16 = vsub.f32 1.0, %v1545_v40  ;;  %v1354_v9 = vadd.f32 0.2548296, %v1322_v19  ;;  %v1359_v46 = vadd.f32 0.2548296, %v1327_v43  ;;  %v1200_v48 = vmul.f32 %v5380_v51, %v1168_v7 }
 0x1fc   : > { %v5398_v52 = vpop.eup %4115  ;;  %v1388_v28 = vmul.f32 %v5288_v63, %v1356_v11  ;;  %v1325_v42 = vmul.f32 %v5350_v35, %v1293_v39  ;;  %v5403_v37 = vand.u32 2147483647, %v5389_v25  ;;  %v5407_v49 = vadd.f32 %v5072_v2, %v4914_v36 }
 0x1fd   : > { %4119 = vpow2.f32 %v1497_v27  ;;  %v1232_v6 = vadd.f32 1.4214138, %v1200_v48  ;;  %v1134_v31 = vmul.f32 1.0614054, %v5398_v52  ;;  %v1499_v53 = vmul.f32 1.442695, %v1454_v59 }
 0x1fe   : > { %4121 = vpow2.f32 %v1503_v3  ;;  %vm942_vm1 = vcmp.ge.f32.partialorder %v5328_v45, 0.0  ;;  %vm947_vm2 = vcmp.ge.f32.partialorder %v5353_v26, 0.0  ;;  %v1041_v63 = vmul.f32 0.3275911, %v5403_v37 }
 0x1ff   : > { %v1386_v44 = vmul.f32 %v5315_v1, %v1354_v9  ;;  %v1391_v40 = vmul.f32 %v5330_v60, %v1359_v46  ;;  %v1264_v19 = vmul.f32 %v5380_v51, %v1232_v6  ;;  %v1166_v2 = vadd.f32 -1.4531521, %v1134_v31  ;;  %v7391_v9 = vld [vmem:[#allocation2_spill] sm:$0xff] }
 0x200   : > { %v1548_v43 = vmul.f32 %v4108_v62, %v1388_v28  ;;  %v1357_v27 = vadd.f32 0.2548296, %v1325_v42  ;;  %v1073_v48 = vadd.f32 1.0, %v1041_v63  ;;  %v5417_v32 = vmul.f32 0.70710677, %v5407_v49 }
 0x201   : > { %v1609_v11 = vmul.f32 %v1577_v16, %v5256_v17  ;;  %v1296_v57 = vadd.f32 -0.28449672, %v1264_v19  ;;  %v1198_v7 = vmul.f32 %v5398_v52, %v1166_v2  ;;  %4123 = vpow2.f32 %v1499_v53 }
 0x202   : > { %v5424_v1 = vsel %vm944_vm15, 1.0, %v7382_v12  ;;  %v5429_v28 = vsel %vm942_vm1, 1.0, %v7382_v12  ;;  %v1427_v60 = vsub.f32 0.0, %v5371_v14  ;;  %4125 = vrcp.f32 %v1073_v48 }
 0x203   : > { %v1546_v62 = vmul.f32 %v4112_v21, %v1386_v44  ;;  %v1551_v59 = vmul.f32 %v4114_v33, %v1391_v40  ;;  %v1230_v17 = vadd.f32 1.4214138, %v1198_v7  ;;  %v5435_v39 = vsel %vm947_vm2, 1.0, %v7382_v12  ;;  %v7392_v7 = vld [vmem:[#allocation3_spill] sm:$0xff] }
 0x204   : > { %v5437_v3 = vpop.eup %4117  ;;  %v1580_v54 = vsub.f32 1.0, %v1548_v43  ;;  %v1389_v16 = vmul.f32 %v5350_v35, %v1357_v27  ;;  %v5441_v45 = vand.u32 2147483647, %v5417_v32  ;;  %v5445_v46 = vadd.f32 %v4914_v36, %v7391_v9 }
 0x205   : > { %v1641_v21 = vadd.f32 1.0, %v1609_v11  ;;  %v1328_v33 = vmul.f32 %v5380_v51, %v1296_v57  ;;  %v1262_v42 = vmul.f32 %v5398_v52, %v1230_v17  ;;  %v1139_v26 = vmul.f32 1.0614054, %v5437_v3  ;;  %v5467_v57 = vld [vmem:[%s7365_s3] ss:$0 sm:$0xff] }
 0x206   : > { %v1459_v6 = vmul.f32 %v1427_v60, %v5371_v14  ;;  %v5452_v31 = vmul.f32 0.5, %v5375_v34  ;;  %vm945_vm3 = vcmp.ge.f32.partialorder %v5389_v25, 0.0  ;;  %v1044_v35 = vmul.f32 0.3275911, %v5441_v45 }
 0x207   : > { %v4120_v53 = vpop.eup %4119  ;;  %v1578_v63 = vsub.f32 1.0, %v1546_v62  ;;  %v1583_v36 = vsub.f32 1.0, %v1551_v59  ;;  %v1294_v44 = vadd.f32 -0.28449672, %v1262_v42  ;;  %v1171_v40 = vadd.f32 -1.4531521, %v1139_v26 }
 0x208   : > { %v4122_v19 = vpop.eup %4121  ;;  %v1612_v2 = vmul.f32 %v1580_v54, %v5281_v50  ;;  %v1549_v43 = vmul.f32 %v4120_v53, %v1389_v16  ;;  %v1076_v27 = vadd.f32 1.0, %v1044_v35  ;;  %v5458_v48 = vmul.f32 0.70710677, %v5445_v46 }
 0x209   : > { %v5461_v14 = vmul.f32 %v1641_v21, %v5235_v29  ;;  %v1360_v34 = vadd.f32 0.2548296, %v1328_v33  ;;  %v1203_v11 = vmul.f32 %v5437_v3, %v1171_v40  ;;  %v5471_v60 = vadd.f32 %v5467_v57, %v7392_v7 }
 0x20a   : > { %v1326_v50 = vmul.f32 %v5398_v52, %v1294_v44  ;;  %v1509_v62 = vmul.f32 1.442695, %v1459_v6  ;;  %v5477_v29 = vsel %vm945_vm3, 1.0, %v7382_v12  ;;  %4127 = vrcp.f32 %v1076_v27 }
 0x20b   : > { %v4124_v59 = vpop.eup %4123  ;;  %v1610_v17 = vmul.f32 %v1578_v63, %v5321_v10  ;;  %v1615_v54 = vmul.f32 %v1583_v36, %v5333_v61  ;;  %v1235_v16 = vadd.f32 1.4214138, %v1203_v11  ;;  %v1425_v9 = vsub.f32 0.0, %v5403_v37 }
 0x20c   : > { %v5482_v21 = vpop.eup %4125  ;;  %v1644_v33 = vadd.f32 1.0, %v1612_v2  ;;  %v1581_v42 = vsub.f32 1.0, %v1549_v43  ;;  %v5485_v26 = vand.u32 2147483647, %v5458_v48  ;;  %v5488_v25 = vmul.f32 0.70710677, %v5471_v60 }
 0x20d   : > { %v1392_v6 = vmul.f32 %v5380_v51, %v1360_v34  ;;  %v1267_v35 = vmul.f32 %v5437_v3, %v1235_v16  ;;  %v1137_v10 = vmul.f32 1.0614054, %v5482_v21  ;;  %v5494_v61 = vmul.f32 0.5, %v5407_v49 }
 0x20e   : > { %v1358_v53 = vadd.f32 0.2548296, %v1326_v50  ;;  %4129 = vpow2.f32 %v1509_v62  ;;  %v1042_v63 = vmul.f32 0.3275911, %v5485_v26  ;;  %v5498_v36 = vand.u32 2147483647, %v5488_v25 }
 0x20f   : > { %v1642_v44 = vadd.f32 1.0, %v1610_v17  ;;  %v1647_v40 = vadd.f32 1.0, %v1615_v54  ;;  %v1169_v2 = vadd.f32 -1.4531521, %v1137_v10  ;;  %v1457_v43 = vmul.f32 %v1425_v9, %v5403_v37  ;;  %v7393_v9 = vld [vmem:[#allocation4_spill] sm:$0xff] }
 0x210   : > { %v1613_v51 = vmul.f32 %v1581_v42, %v5359_v23  ;;  %v1299_v27 = vadd.f32 -0.28449672, %v1267_v35  ;;  %v1074_v34 = vadd.f32 1.0, %v1042_v63  ;;  %v1047_v11 = vmul.f32 0.3275911, %v5498_v36 }
 0x211   : > { %v1552_v49 = vmul.f32 %v4122_v19, %v1392_v6  ;;  %v1201_v7 = vmul.f32 %v5482_v21, %v1169_v2  ;;  %vm948_vm4 = vcmp.ge.f32.partialorder %v5417_v32, 0.0  ;;  %v1428_v50 = vsub.f32 0.0, %v5441_v45 }
 0x212   : > { %v5507_v62 = vmul.f32 %v1644_v33, %v5269_v20  ;;  %v1390_v17 = vmul.f32 %v5398_v52, %v1358_v53  ;;  %4131 = vrcp.f32 %v1074_v34  ;;  %v1079_v37 = vadd.f32 1.0, %v1047_v11 }
 0x213   : > { %v5511_v23 = vmul.f32 %v1642_v44, %v5307_v15  ;;  %v1233_v54 = vadd.f32 1.4214138, %v1201_v7  ;;  %v1505_v16 = vmul.f32 1.442695, %v1457_v43  ;;  %v5515_v19 = vadd.f32 %v5467_v57, %v7393_v9 }
 0x214   : > { %v5517_v42 = vpop.eup %4127  ;;  %v5520_v32 = vmul.f32 %v1647_v40, %v5310_v38  ;;  %v1645_v20 = vadd.f32 1.0, %v1613_v51  ;;  %v1331_v33 = vmul.f32 %v5437_v3, %v1299_v27  ;;  %v5524_v52 = vsel %vm948_vm4, 1.0, %v7382_v12  ;;  %v7394_v38 = vld [vmem:[#allocation5_spill] sm:$0xff] }
 0x215   : > { %v1584_v6 = vsub.f32 1.0, %v1552_v49  ;;  %v1265_v15 = vmul.f32 %v5482_v21, %v1233_v54  ;;  %v1140_v35 = vmul.f32 1.0614054, %v5517_v42  ;;  %v1460_v10 = vmul.f32 %v1428_v50, %v5441_v45 }
 0x216   : > { %v1550_v53 = vmul.f32 %v4124_v59, %v1390_v17  ;;  %4133 = vrcp.f32 %v1079_v37  ;;  %v5530_v63 = vmul.f32 0.70710677, %v5515_v19  ;;  %v5534_v44 = vadd.f32 %v5467_v57, %v7394_v38 }
 0x217   : > { %4135 = vpow2.f32 %v1505_v16  ;;  %v1172_v40 = vadd.f32 -1.4531521, %v1140_v35  ;;  %v5537_v2 = vmul.f32 0.5, %v5445_v46  ;;  %vm946_vm5 = vcmp.ge.f32.partialorder %v5458_v48, 0.0 }
 0x218   : > { %v4130_v43 = vpop.eup %4129  ;;  %v5541_v51 = vmul.f32 %v1645_v20, %v5343_v47  ;;  %v1363_v45 = vadd.f32 0.2548296, %v1331_v33  ;;  %v1297_v59 = vadd.f32 -0.28449672, %v1265_v15  ;;  %v5544_v27 = vand.u32 2147483647, %v5530_v63 }
 0x219   : > { %v1616_v34 = vmul.f32 %v1584_v6, %v5424_v1  ;;  %v1204_v11 = vmul.f32 %v5517_v42, %v1172_v40  ;;  %v1511_v49 = vmul.f32 1.442695, %v1460_v10  ;;  %v1426_v7 = vsub.f32 0.0, %v5485_v26 }
 0x21a   : > { %v1582_v46 = vsub.f32 1.0, %v1550_v53  ;;  %v1045_v50 = vmul.f32 0.3275911, %v5544_v27  ;;  %v5551_v48 = vmul.f32 0.70710677, %v5534_v44  ;;  %v5555_v47 = vadd.f32 %v5467_v57, %v5118_v13 }
 0x21b   : > { %v1236_v17 = vadd.f32 1.4214138, %v1204_v11  ;;  %v5558_v37 = vsel %vm946_vm5, 1.0, %v7382_v12  ;;  %vm951_vm6 = vcmp.ge.f32.partialorder %v5488_v25, 0.0  ;;  %v1431_v1 = vsub.f32 0.0, %v5498_v36 }
 0x21c   : > { %v5562_v54 = vpop.eup %4131  ;;  %v1395_v16 = vmul.f32 %v5437_v3, %v1363_v45  ;;  %v1329_v9 = vmul.f32 %v5482_v21, %v1297_v59  ;;  %v1077_v20 = vadd.f32 1.0, %v1045_v50  ;;  %v5567_v33 = vand.u32 2147483647, %v5551_v48 }
 0x21d   : > { %v1648_v13 = vadd.f32 1.0, %v1616_v34  ;;  %v1268_v6 = vmul.f32 %v5517_v42, %v1236_v17  ;;  %v1138_v15 = vmul.f32 1.0614054, %v5562_v54  ;;  %v1458_v35 = vmul.f32 %v1426_v7, %v5485_v26 }
 0x21e   : > { %v1614_v10 = vmul.f32 %v1582_v46, %v5429_v28  ;;  %4137 = vrcp.f32 %v1077_v20  ;;  %v1048_v53 = vmul.f32 0.3275911, %v5567_v33  ;;  %v5575_v3 = vmul.f32 0.70710677, %v5555_v47 }
 0x21f   : > { %v1300_v38 = vadd.f32 -0.28449672, %v1268_v6  ;;  %4139 = vpow2.f32 %v1511_v49  ;;  %v1170_v40 = vadd.f32 -1.4531521, %v1138_v15  ;;  %v1463_v45 = vmul.f32 %v1431_v1, %v5498_v36 }
 0x220   : > { %v5578_v59 = vpop.eup %4133  ;;  %v1555_v34 = vmul.f32 %v4130_v43, %v1395_v16  ;;  %v1361_v11 = vadd.f32 0.2548296, %v1329_v9  ;;  %v5581_v50 = vmul.f32 0.5, %v5471_v60  ;;  %v1080_v26 = vadd.f32 1.0, %v1048_v53 }
 0x221   : > { %v4136_v28 = vpop.eup %4135  ;;  %v1202_v7 = vmul.f32 %v5562_v54, %v1170_v40  ;;  %v1507_v46 = vmul.f32 1.442695, %v1458_v35  ;;  %v5587_v17 = vsel %vm951_vm6, 1.0, %v7382_v12  ;;  %v1143_v49 = vmul.f32 1.0614054, %v5578_v59 }
 0x222   : > { %v5591_v36 = vmul.f32 %v1648_v13, %v5366_v4  ;;  %v1646_v43 = vadd.f32 1.0, %v1614_v10  ;;  %4141 = vrcp.f32 %v1080_v26  ;;  %v5594_v60 = vand.u32 2147483647, %v5575_v3 }
 0x223   : > { %v1332_v1 = vmul.f32 %v5517_v42, %v1300_v38  ;;  %v1234_v16 = vadd.f32 1.4214138, %v1202_v7  ;;  %v1175_v9 = vadd.f32 -1.4531521, %v1143_v49  ;;  %v1517_v20 = vmul.f32 1.442695, %v1463_v45 }
 0x224   : > { %v1587_v6 = vsub.f32 1.0, %v1555_v34  ;;  %v1393_v25 = vmul.f32 %v5482_v21, %v1361_v11  ;;  %v1046_v15 = vmul.f32 0.3275911, %v5594_v60  ;;  %v5601_v35 = vadd.f32 %v5467_v57, %v5130_v30 }
 0x225   : > { %v1266_v4 = vmul.f32 %v5562_v54, %v1234_v16  ;;  %4143 = vpow2.f32 %v1507_v46  ;;  %v1207_v13 = vmul.f32 %v5578_v59, %v1175_v9  ;;  %v5606_v10 = vmul.f32 0.5, %v5515_v19 }
 0x226   : > { %v5609_v53 = vmul.f32 %v1646_v43, %v5378_v5  ;;  %vm949_vm7 = vcmp.ge.f32.partialorder %v5530_v63, 0.0  ;;  %v1429_v21 = vsub.f32 0.0, %v5544_v27  ;;  %v1078_v38 = vadd.f32 1.0, %v1046_v15 }
 0x227   : > { %v1364_v40 = vadd.f32 0.2548296, %v1332_v1  ;;  %v1298_v45 = vadd.f32 -0.28449672, %v1266_v4  ;;  %v1239_v30 = vadd.f32 1.4214138, %v1207_v13  ;;  %4145 = vpow2.f32 %v1517_v20 }
 0x228   : > { %v5613_v34 = vpop.eup %4137  ;;  %v1619_v11 = vmul.f32 %v1587_v6, %v5435_v39  ;;  %v1553_v26 = vmul.f32 %v4136_v28, %v1393_v25  ;;  %4147 = vrcp.f32 %v1078_v38  ;;  %v5617_v19 = vmul.f32 0.70710677, %v5601_v35 }
 0x229   : > { %v4140_v5 = vpop.eup %4139  ;;  %v1330_v7 = vmul.f32 %v5562_v54, %v1298_v45  ;;  %v1271_v46 = vmul.f32 %v5578_v59, %v1239_v30  ;;  %v1141_v49 = vmul.f32 1.0614054, %v5613_v34  ;;  %v5624_v43 = vadd.f32 %v5467_v57, %v5145_v55 }
 0x22a   : > { %v5629_v39 = vsel %vm949_vm7, 1.0, %v7382_v12  ;;  %v5632_v28 = vmul.f32 0.5, %v5534_v44  ;;  %v1432_v1 = vsub.f32 0.0, %v5567_v33  ;;  %v5636_v16 = vand.u32 2147483647, %v5617_v19 }
 0x22b   : > { %7395 = vst [vmem:[#allocation2_spill] sm:$0xff] %v5624_v43  ;;  %v1396_v9 = vmul.f32 %v5517_v42, %v1364_v40  ;;  %v1303_v20 = vadd.f32 -0.28449672, %v1271_v46  ;;  %v1173_v6 = vadd.f32 -1.4531521, %v1141_v49  ;;  %v1461_v55 = vmul.f32 %v1429_v21, %v5544_v27 }
 0x22c   : > { %v5640_v25 = vpop.eup %4141  ;;  %v1585_v15 = vsub.f32 1.0, %v1553_v26  ;;  %vm952_vm8 = vcmp.ge.f32.partialorder %v5551_v48, 0.0  ;;  %v5644_v63 = vmul.f32 0.5, %v5555_v47  ;;  %v1051_v44 = vmul.f32 0.3275911, %v5636_v16 }
 0x22d   : > { %v1651_v4 = vadd.f32 1.0, %v1619_v11  ;;  %v1362_v13 = vadd.f32 0.2548296, %v1330_v7  ;;  %v1205_v38 = vmul.f32 %v5613_v34, %v1173_v6  ;;  %v5649_v42 = vmul.f32 0.70710677, %v5624_v43 }
 0x22e   : > { %v1335_v40 = vmul.f32 %v5578_v59, %v1303_v20  ;;  %v1144_v27 = vmul.f32 1.0614054, %v5640_v25  ;;  %v1464_v21 = vmul.f32 %v1432_v1, %v5567_v33  ;;  %v1083_v45 = vadd.f32 1.0, %v1051_v44 }
 0x22f   : > { %v4144_v48 = vpop.eup %4143  ;;  %v1556_v30 = vmul.f32 %v4140_v5, %v1396_v9  ;;  %v1237_v47 = vadd.f32 1.4214138, %v1205_v38  ;;  %v1513_v26 = vmul.f32 1.442695, %v1461_v55  ;;  %v5655_v46 = vsel %vm952_vm8, 1.0, %v7382_v12 }
 0x230   : > { %v1617_v11 = vmul.f32 %v1585_v15, %v5477_v29  ;;  %v1176_v7 = vadd.f32 -1.4531521, %v1144_v27  ;;  %v1430_v49 = vsub.f32 0.0, %v5594_v60  ;;  %4149 = vrcp.f32 %v1083_v45 }
 0x231   : > { %v4146_v6 = vpop.eup %4145  ;;  %v1394_v20 = vmul.f32 %v5562_v54, %v1362_v13  ;;  %v1269_v43 = vmul.f32 %v5613_v34, %v1237_v47  ;;  %vm950_vm9 = vcmp.ge.f32.partialorder %v5575_v3, 0.0  ;;  %v1017_v33 = vand.u32 2147483647, %v5649_v42 }
 0x232   : > { %v5663_v5 = vpop.eup %4147  ;;  %v1367_v1 = vadd.f32 0.2548296, %v1335_v40  ;;  %v1208_v9 = vmul.f32 %v5640_v25, %v1176_v7  ;;  %v1519_v55 = vmul.f32 1.442695, %v1464_v21  ;;  %v5668_v29 = vadd.f32 %v5467_v57, %v5149_v24 }
 0x233   : > { %v5671_v15 = vmul.f32 %v1651_v4, %v5392_v56  ;;  %v1588_v54 = vsub.f32 1.0, %v1556_v30  ;;  %4151 = vpow2.f32 %v1513_v26  ;;  %v1142_v44 = vmul.f32 1.0614054, %v5663_v5 }
 0x234   : > { %v1649_v13 = vadd.f32 1.0, %v1617_v11  ;;  %v1240_v38 = vadd.f32 1.4214138, %v1208_v9  ;;  %v1462_v27 = vmul.f32 %v1430_v49, %v5594_v60  ;;  %v1049_v45 = vmul.f32 0.3275911, %v1017_v33 }
 0x235   : > { %v1554_v40 = vmul.f32 %v4144_v48, %v1394_v20  ;;  %v1301_v47 = vadd.f32 -0.28449672, %v1269_v43  ;;  %v5678_v21 = vsel %vm950_vm9, 1.0, %v7382_v12  ;;  %v1174_v24 = vadd.f32 -1.4531521, %v1142_v44 }
 0x236   : > { %v1399_v56 = vmul.f32 %v5578_v59, %v1367_v1  ;;  %4153 = vpow2.f32 %v1519_v55  ;;  %v1081_v4 = vadd.f32 1.0, %v1049_v45  ;;  %v5682_v30 = vmul.f32 0.70710677, %v5668_v29 }
 0x237   : > { %v1620_v26 = vmul.f32 %v1588_v54, %v5524_v52  ;;  %v1272_v60 = vmul.f32 %v5640_v25, %v1240_v38  ;;  %v1206_v48 = vmul.f32 %v5663_v5, %v1174_v24  ;;  %v5688_v43 = vmul.f32 0.5, %v5601_v35 }
 0x238   : > { %v5691_v3 = vmul.f32 %v1649_v13, %v5452_v31  ;;  %v1515_v11 = vmul.f32 1.442695, %v1462_v27  ;;  %v1435_v59 = vsub.f32 0.0, %v5636_v16  ;;  %4155 = vrcp.f32 %v1081_v4 }
 0x239   : > { %v1586_v7 = vsub.f32 1.0, %v1554_v40  ;;  %v1333_v49 = vmul.f32 %v5613_v34, %v1301_v47  ;;  %v1238_v20 = vadd.f32 1.4214138, %v1206_v48  ;;  %vm955_vm10 = vcmp.ge.f32.partialorder %v5617_v19, 0.0 }
 0x23a   : > { %v5696_v52 = vpop.eup %4149  ;;  %v1559_v1 = vmul.f32 %v4146_v6, %v1399_v56  ;;  %v1433_v9 = vsub.f32 0.0, %v1017_v33  ;;  %v5699_v35 = vand.u32 2147483647, %v5682_v30  ;;  %v5703_v31 = vadd.f32 %v5467_v57, %v5152_v41 }
 0x23b   : > { %v1652_v55 = vadd.f32 1.0, %v1620_v26  ;;  %v1304_v54 = vadd.f32 -0.28449672, %v1272_v60  ;;  %v1270_v44 = vmul.f32 %v5663_v5, %v1238_v20  ;;  %v1147_v13 = vmul.f32 1.0614054, %v5696_v52 }
 0x23c   : > { %v1467_v38 = vmul.f32 %v1435_v59, %v5636_v16  ;;  %vm953_vm11 = vcmp.ge.f32.partialorder %v5649_v42, 0.0  ;;  %v1052_v6 = vmul.f32 0.3275911, %v5699_v35  ;;  %v1698_v27 = vpack.c.bf16 %v5231_v58, %v5206_v18 }
 0x23d   : > { %v4152_v45 = vpop.eup %4151  ;;  %v1618_v40 = vmul.f32 %v1586_v7, %v5558_v37  ;;  %v1365_v41 = vadd.f32 0.2548296, %v1333_v49  ;;  %v1302_v47 = vadd.f32 -0.28449672, %v1270_v44  ;;  %v1179_v24 = vadd.f32 -1.4531521, %v1147_v13 }
 0x23e   : > { %v1591_v56 = vsub.f32 1.0, %v1559_v1  ;;  %v1465_v4 = vmul.f32 %v1433_v9, %v1017_v33  ;;  %v1084_v26 = vadd.f32 1.0, %v1052_v6  ;;  %v5714_v60 = vmul.f32 0.70710677, %v5703_v31  ;;  %v7396_v33 = vld [vmem:[#allocation6_spill] sm:$0xff] }
 0x23f   : > { %v1336_v16 = vmul.f32 %v5640_v25, %v1304_v54  ;;  %4157 = vpow2.f32 %v1515_v11  ;;  %v5720_v48 = vsel %vm955_vm10, 1.0, %v7382_v12  ;;  %v1211_v59 = vmul.f32 %v5696_v52, %v1179_v24 }
 0x240   : > { %v4154_v37 = vpop.eup %4153  ;;  %v1334_v7 = vmul.f32 %v5663_v5, %v1302_v47  ;;  %v1525_v49 = vmul.f32 1.442695, %v1467_v38  ;;  %4159 = vrcp.f32 %v1084_v26  ;;  %v5726_v20 = vadd.f32 %v5467_v57, %v7396_v33  ;;  %v1826_v38 = vpop.permute.xlu0 %1825 }
 0x241   : > { %v5729_v1 = vmul.f32 %v1652_v55, %v5494_v61  ;;  %v1397_v11 = vmul.f32 %v5613_v34, %v1365_v41  ;;  %v1243_v9 = vadd.f32 1.4214138, %v1211_v59  ;;  %v5735_v19 = vsel %vm953_vm11, 1.0, %v7382_v12 }
 0x242   : > { %v5737_v54 = vpop.eup %4155  ;;  %v1650_v44 = vadd.f32 1.0, %v1618_v40  ;;  %v1623_v13 = vmul.f32 %v1591_v56, %v5587_v17  ;;  %v1521_v6 = vmul.f32 1.442695, %v1465_v4  ;;  %v5741_v47 = vand.u32 2147483647, %v5714_v60 }
 0x243   : > { %v1368_v61 = vadd.f32 0.2548296, %v1336_v16  ;;  %v1275_v55 = vmul.f32 %v5696_v52, %v1243_v9  ;;  %v1145_v34 = vmul.f32 1.0614054, %v5737_v54  ;;  %vm956_vm12 = vcmp.ge.f32.partialorder %v5682_v30, 0.0 }
 0x244   : > { %v1366_v42 = vadd.f32 0.2548296, %v1334_v7  ;;  %4161 = vpow2.f32 %v1525_v49  ;;  %v1050_v41 = vmul.f32 0.3275911, %v5741_v47  ;;  %v5748_v40 = vmul.f32 0.70710677, %v5726_v20 }
 0x245   : > { %v1557_v17 = vmul.f32 %v4152_v45, %v1397_v11  ;;  %v1307_v24 = vadd.f32 -0.28449672, %v1275_v55  ;;  %v1177_v56 = vadd.f32 -1.4531521, %v1145_v34  ;;  %v1697_v4 = vpack.c.bf16 %v5242_v22, %v5220_v8  ;;  %v1828_v22 = vpop.permute.xlu0 %1827 }
 0x246   : > { %v5753_v26 = vmul.f32 %v1650_v44, %v5537_v2  ;;  %v5756_v16 = vmul.f32 0.5, %v5668_v29  ;;  %v1436_v59 = vsub.f32 0.0, %v5699_v35  ;;  %v1082_v7 = vadd.f32 1.0, %v1050_v41 }
 0x247   : > { %v1655_v49 = vadd.f32 1.0, %v1623_v13  ;;  %v1400_v33 = vmul.f32 %v5640_v25, %v1368_v61  ;;  %v1339_v9 = vmul.f32 %v5696_v52, %v1307_v24  ;;  %v1209_v45 = vmul.f32 %v5737_v54, %v1177_v56  ;;  %v7397_v24 = vld [vmem:[#allocation11_spill] sm:$0xff]  ;;  %v7398_v56 = vld [vmem:[#allocation13_spill] sm:$0xff] }
 0x248   : > { %v1398_v11 = vmul.f32 %v5663_v5, %v1366_v42  ;;  %v5766_v8 = vsel %vm956_vm12, 1.0, %v7382_v12  ;;  %4163 = vrcp.f32 %v1082_v7  ;;  %v1023_v2 = vand.u32 2147483647, %v5748_v40 }
 0x249   : > { %v4158_v29 = vpop.eup %4157  ;;  %v1589_v44 = vsub.f32 1.0, %v1557_v17  ;;  %v1241_v13 = vadd.f32 1.4214138, %v1209_v45  ;;  %4165 = vpow2.f32 %v1521_v6  ;;  %v1859_v25 = vsel %vm377_vm0, %v1697_v4, %v1826_v38 }
 0x24a   : > { %v5770_v61 = vpop.eup %4159  ;;  %v1371_v55 = vadd.f32 0.2548296, %v1339_v9  ;;  %v1468_v5 = vmul.f32 %v1436_v59, %v5699_v35  ;;  %v1055_v34 = vmul.f32 0.3275911, %v1023_v2  ;;  %vm1944_vm13 = vcmask 523264   ;;  %v7399_v35 = vld [vmem:[#allocation7_spill] sm:$0xff] }
 0x24b   : > { %v1560_v30 = vmul.f32 %v4154_v37, %v1400_v33  ;;  %v1273_v42 = vmul.f32 %v5737_v54, %v1241_v13  ;;  %v1148_v41 = vmul.f32 1.0614054, %v5770_v61  ;;  %v1862_v17 = vsel %vm377_vm0, %v1698_v27, %v1828_v22  ;;  %3993 = vmatprep.mubr.msk.bf16.mxu1 %vm1944_vm13, %v1859_v25  ;;  %v1830_v27 = vpop.permute.xlu1 %1829 }
 0x24c   : > { %v1558_v38 = vmul.f32 %v4158_v29, %v1398_v11  ;;  %v1087_v6 = vadd.f32 1.0, %v1055_v34  ;;  %v1699_v4 = vpack.c.bf16 %v7398_v56, %v7397_v24  ;;  %v5784_v59 = vadd.f32 %v5467_v57, %v7399_v35  ;;  %3994 = vmatmul.mubr.msk.bf16.vlgmr.msra.gmra.mrb[0].mxu1 %vm1944_vm13, %v1862_v17  ;;  %v7400_v34 = vld [vmem:[#allocation8_spill] sm:$0xff] }
 0x24d   : > { %v5788_v37 = vmul.f32 %v1655_v49, %v5581_v50  ;;  %v1305_v7 = vadd.f32 -0.28449672, %v1273_v42  ;;  %v1180_v18 = vadd.f32 -1.4531521, %v1148_v41  ;;  %v1434_v58 = vsub.f32 0.0, %v5741_v47 }
 0x24e   : > { %v4162_v33 = vpop.eup %4161  ;;  %v1403_v9 = vmul.f32 %v5696_v52, %v1371_v55  ;;  %v1527_v45 = vmul.f32 1.442695, %v1468_v5  ;;  %4167 = vrcp.f32 %v1087_v6  ;;  %v1865_v11 = vsel %vm377_vm0, %v1699_v4, %v1830_v27  ;;  %v7401_v55 = vld [vmem:[#allocation10_spill] sm:$0xff]  ;;  %v7402_v5 = vld [vmem:[#allocation12_spill] sm:$0xff] }
 0x24f   : > { %v1621_v22 = vmul.f32 %v1589_v44, %v5629_v39  ;;  %v1592_v29 = vsub.f32 1.0, %v1560_v30  ;;  %v1212_v13 = vmul.f32 %v5770_v61, %v1180_v18  ;;  %v5796_v50 = vmul.f32 0.70710677, %v5784_v59  ;;  %3997 = vmatprep.mubr.msk.bf16.mxu1 %vm1944_vm13, %v1865_v11 }
 0x250   : > { %v1590_v49 = vsub.f32 1.0, %v1558_v38  ;;  %v1337_v25 = vmul.f32 %v5737_v54, %v1305_v7  ;;  %v5802_v52 = vadd.f32 %v5467_v57, %v7400_v34  ;;  %v1700_v42 = vpack.c.bf16 %v7402_v5, %v7401_v55  ;;  %v1832_v5 = vpop.permute.xlu1 %1831 }
 0x251   : > { %v1244_v41 = vadd.f32 1.4214138, %v1212_v13  ;;  %vm954_vm14 = vcmp.ge.f32.partialorder %v5714_v60, 0.0  ;;  %v1466_v39 = vmul.f32 %v1434_v58, %v5741_v47  ;;  %v1439_v44 = vsub.f32 0.0, %v1023_v2 }
 0x252   : > { %v5808_v30 = vpop.eup %4163  ;;  %v1563_v17 = vmul.f32 %v4162_v33, %v1403_v9  ;;  %4169 = vpow2.f32 %v1527_v45  ;;  %v5811_v38 = vand.u32 2147483647, %v5796_v50  ;;  %v5814_v6 = vmul.f32 0.70710677, %v5802_v52 }
 0x253   : > { %v4166_v24 = vpop.eup %4165  ;;  %v1653_v56 = vadd.f32 1.0, %v1621_v22  ;;  %v1624_v4 = vmul.f32 %v1592_v29, %v5655_v46  ;;  %v1276_v35 = vmul.f32 %v5770_v61, %v1244_v41  ;;  %v1146_v7 = vmul.f32 1.0614054, %v5808_v30  ;;  %v7403_v29 = vld [vmem:[#allocation9_spill] sm:$0xff] }
 0x254   : > { %v1622_v47 = vmul.f32 %v1590_v49, %v5678_v21  ;;  %v1369_v18 = vadd.f32 0.2548296, %v1337_v25  ;;  %v1053_v58 = vmul.f32 0.3275911, %v5811_v38  ;;  %v5822_v27 = vand.u32 2147483647, %v5814_v6 }
 0x255   : > { %v1308_v33 = vadd.f32 -0.28449672, %v1276_v35  ;;  %v1178_v9 = vadd.f32 -1.4531521, %v1146_v7  ;;  %v1523_v45 = vmul.f32 1.442695, %v1466_v39  ;;  %v1471_v11 = vmul.f32 %v1439_v44, %v1023_v2 }
 0x256   : > { %v1595_v13 = vsub.f32 1.0, %v1563_v17  ;;  %v1085_v22 = vadd.f32 1.0, %v1053_v58  ;;  %v1056_v46 = vmul.f32 0.3275911, %v5822_v27  ;;  %v5827_v34 = vadd.f32 %v5467_v57, %v7403_v29 }
 0x257   : > { %v1656_v55 = vadd.f32 1.0, %v1624_v4  ;;  %v1340_v21 = vmul.f32 %v5770_v61, %v1308_v33  ;;  %v5833_v49 = vsel %vm954_vm14, 1.0, %v7382_v12  ;;  %v1210_v25 = vmul.f32 %v5808_v30, %v1178_v9 }
 0x258   : > { %v5836_v2 = vpop.eup %4167  ;;  %v1654_v41 = vadd.f32 1.0, %v1622_v47  ;;  %v1401_v39 = vmul.f32 %v5737_v54, %v1369_v18  ;;  %4171 = vrcp.f32 %v1085_v22  ;;  %v1088_v44 = vadd.f32 1.0, %v1056_v46 }
 0x259   : > { %v1372_v57 = vadd.f32 0.2548296, %v1340_v21  ;;  %v1242_v17 = vadd.f32 1.4214138, %v1210_v25  ;;  %4173 = vpow2.f32 %v1523_v45  ;;  %v1151_v4 = vmul.f32 1.0614054, %v5836_v2  ;;  %v1834_v25 = vpop.permute.xlu0 %1833 }
 0x25a   : > { %v1627_v35 = vmul.f32 %v1595_v13, %v5720_v48  ;;  %v1533_v60 = vmul.f32 1.442695, %v1471_v11  ;;  %v5842_v7 = vmul.f32 0.70710677, %v5827_v34  ;;  %v1868_v58 = vsel %vm377_vm0, %v1700_v42, %v1832_v5 }
 0x25b   : > { %v5846_v33 = vmul.f32 %v1653_v56, %v5606_v10  ;;  %v1404_v54 = vmul.f32 %v5770_v61, %v1372_v57  ;;  %v1274_v47 = vmul.f32 %v5808_v30, %v1242_v17  ;;  %v1183_v18 = vadd.f32 -1.4531521, %v1151_v4  ;;  %3998 = vmatmul.mubr.msk.bf16.gmra.mrb[4].mxu1 %vm1944_vm13, %v1868_v58 }
 0x25c   : > { %v4170_v9 = vpop.eup %4169  ;;  %v5852_v45 = vmul.f32 %v1656_v55, %v5632_v28  ;;  %v1561_v48 = vmul.f32 %v4166_v24, %v1401_v39  ;;  %4175 = vrcp.f32 %v1088_v44  ;;  %v5855_v11 = vand.u32 2147483647, %v5842_v7  ;;  %v1836_v55 = vpop.permute.xlu1 %1835 }
 0x25d   : > { %v1564_v42 = vmul.f32 %v4170_v9, %v1404_v54  ;;  %v1306_v13 = vadd.f32 -0.28449672, %v1274_v47  ;;  %v1215_v10 = vmul.f32 %v5836_v2, %v1183_v18  ;;  %v1437_v61 = vsub.f32 0.0, %v5811_v38  ;;  %v1838_v58 = vpop.permute.xlu0 %1837 }
 0x25e   : > { %v5860_v56 = vmul.f32 %v1654_v41, %v5644_v63  ;;  %v1659_v22 = vadd.f32 1.0, %v1627_v35  ;;  %4177 = vpow2.f32 %v1533_v60  ;;  %v1054_v46 = vmul.f32 0.3275911, %v5855_v11 }
 0x25f   : > { %v1596_v28 = vsub.f32 1.0, %v1564_v42  ;;  %v1338_v24 = vmul.f32 %v5808_v30, %v1306_v13  ;;  %v1247_v29 = vadd.f32 1.4214138, %v1215_v10  ;;  %v1702_v21 = vpack.c.bf16 %v5507_v62, %v5395_v0 }
 0x260   : > { %v1593_v5 = vsub.f32 1.0, %v1561_v48  ;;  %v1086_v39 = vadd.f32 1.0, %v1054_v46  ;;  %v1701_v44 = vpack.c.bf16 %v5511_v23, %v5461_v14  ;;  %v1704_v63 = vpack.c.bf16 %v5591_v36, %v5520_v32 }
 0x261   : > { %v1628_v41 = vmul.f32 %v1596_v28, %v5766_v8  ;;  %v1370_v57 = vadd.f32 0.2548296, %v1338_v24  ;;  %v1279_v17 = vmul.f32 %v5836_v2, %v1247_v29  ;;  %v1469_v4 = vmul.f32 %v1437_v61, %v5811_v38  ;;  %v1842_v10 = vpop.permute.xlu0 %1841 }
 0x262   : > { %v5873_v35 = vpop.eup %4171  ;;  %v1440_v0 = vsub.f32 0.0, %v5822_v27  ;;  %4179 = vrcp.f32 %v1086_v39  ;;  %v1874_v62 = vsel %vm377_vm0, %v1702_v21, %v1836_v55  ;;  %v1871_v60 = vsel %vm377_vm0, %v1701_v44, %v1834_v25  ;;  %v7404_v25 = vld [vmem:[#allocation2_spill] sm:$0xff] }
 0x263   : > { %v4174_v14 = vpop.eup %4173  ;;  %v1660_v23 = vadd.f32 1.0, %v1628_v41  ;;  %v1402_v32 = vmul.f32 %v5808_v30, %v1370_v57  ;;  %v1311_v36 = vadd.f32 -0.28449672, %v1279_v17  ;;  %v1149_v8 = vmul.f32 1.0614054, %v5873_v35  ;;  %4001 = vmatprep.mubr.msk.bf16.mxu1 %vm1944_vm13, %v1871_v60 }
 0x264   : > { %v1625_v38 = vmul.f32 %v1593_v5, %v5735_v19  ;;  %4002 = vmatmul.mubr.msk.bf16.gmra.mrb[8].mxu1 %vm1944_vm13, %v1874_v62  ;;  %v1703_v54 = vpack.c.bf16 %v5609_v53, %v5541_v51  ;;  %v1706_v47 = vpack.c.bf16 %v5729_v1, %v5671_v15  ;;  %v1705_v18 = vpack.c.bf16 %v5753_v26, %v5691_v3 }
 0x265   : > { %v5890_v30 = vmul.f32 %v1660_v23, %v5756_v16  ;;  %v1562_v9 = vmul.f32 %v4174_v14, %v1402_v32  ;;  %v1343_v48 = vmul.f32 %v5836_v2, %v1311_v36  ;;  %v1181_v42 = vadd.f32 -1.4531521, %v1149_v8  ;;  %v1846_v36 = vpop.permute.xlu0 %1845 }
 0x266   : > { %v5893_v13 = vpop.eup %4175  ;;  %v5896_v19 = vmul.f32 %v1659_v22, %v5688_v43  ;;  %v1472_v51 = vmul.f32 %v1440_v0, %v5822_v27  ;;  %v1877_v53 = vsel %vm377_vm0, %v1703_v54, %v1838_v58  ;;  %v1708_v15 = vpack.c.bf16 %v5852_v45, %v5788_v37  ;;  %v1840_v22 = vpop.permute.xlu1 %1839 }
 0x267   : > { %v1594_v3 = vsub.f32 1.0, %v1562_v9  ;;  %v1213_v1 = vmul.f32 %v5873_v35, %v1181_v42  ;;  %v1529_v26 = vmul.f32 1.442695, %v1469_v4  ;;  %v1152_v16 = vmul.f32 1.0614054, %v5893_v13  ;;  %4005 = vmatprep.mubr.msk.bf16.mxu1 %vm1944_vm13, %v1877_v53 }
 0x268   : > { %v4178_v61 = vpop.eup %4177  ;;  %v1657_v46 = vadd.f32 1.0, %v1625_v38  ;;  %v1438_v43 = vsub.f32 0.0, %v5855_v11  ;;  %v1707_v27 = vpack.c.bf16 %v5860_v56, %v5846_v33  ;;  %v1710_v28 = vpack.c.bf16 %v5890_v30, %v5896_v19 }
 0x269   : > { %v1626_v24 = vmul.f32 %v1594_v3, %v5833_v49  ;;  %v1375_v29 = vadd.f32 0.2548296, %v1343_v48  ;;  %v1245_v55 = vadd.f32 1.4214138, %v1213_v1  ;;  %v1184_v21 = vadd.f32 -1.4531521, %v1152_v16 }
 0x26a   : > { %v889_v5 = vmul.f32 0.5, %v7404_v25  ;;  %v890_v39 = vmul.f32 0.5, %v5703_v31  ;;  %v1535_v44 = vmul.f32 1.442695, %v1472_v51  ;;  %v1883_v41 = vsel %vm377_vm0, %v1705_v18, %v1842_v10  ;;  %v1844_v38 = vpop.permute.xlu1 %1843 }
 0x26b   : > { %v1658_v57 = vadd.f32 1.0, %v1626_v24  ;;  %v1277_v17 = vmul.f32 %v5873_v35, %v1245_v55  ;;  %v1216_v33 = vmul.f32 %v5893_v13, %v1184_v21  ;;  %v1880_v56 = vsel %vm377_vm0, %v1704_v63, %v1840_v22 }
 0x26c   : > { %v4180_v4 = vpop.eup %4179  ;;  %v1689_v0 = vmul.f32 %v1657_v46, %v889_v5  ;;  %4181 = vpow2.f32 %v1529_v26  ;;  %v1470_v49 = vmul.f32 %v1438_v43, %v5855_v11  ;;  %4006 = vmatmul.mubr.msk.bf16.gmra.mrb[12].mxu1 %vm1944_vm13, %v1880_v56  ;;  %v1407_v31 = vmul.f32 %v5836_v2, %v1375_v29  ;;  %v1850_v46 = vpop.permute.xlu0 %1849 }
 0x26d   : > { %v1690_v62 = vmul.f32 %v1658_v57, %v890_v39  ;;  %v1309_v60 = vadd.f32 -0.28449672, %v1277_v17  ;;  %v1248_v14 = vadd.f32 1.4214138, %v1216_v33  ;;  %4009 = vmatprep.mubr.msk.bf16.mxu1 %vm1944_vm13, %v1883_v41  ;;  %4183 = vpow2.f32 %v1535_v44 }
 0x26e   : > { %v1150_v23 = vmul.f32 1.0614054, %v4180_v4  ;;  %v1567_v11 = vmul.f32 %v4178_v61, %v1407_v31  ;;  %v1531_v9 = vmul.f32 1.442695, %v1470_v49  ;;  %v1889_v2 = vsel %vm377_vm0, %v1707_v27, %v1846_v36  ;;  %v1848_v27 = vpop.permute.xlu1 %1847 }
 0x26f   : > { %v1341_v32 = vmul.f32 %v5873_v35, %v1309_v60  ;;  %v1280_v63 = vmul.f32 %v5893_v13, %v1248_v14  ;;  %v1709_v8 = vpack.c.bf16 %v1690_v62, %v1689_v0  ;;  %v1886_v51 = vsel %vm377_vm0, %v1706_v47, %v1844_v38 }
 0x270   : > { %v1182_v58 = vadd.f32 -1.4531521, %v1150_v23  ;;  %vm959_vm15 = vcmp.ge.f32.partialorder %v5748_v40, 0.0  ;;  %v1599_v1 = vsub.f32 1.0, %v1567_v11  ;;  %4185 = vpow2.f32 %v1531_v9  ;;  %v1854_v36 = vpop.permute.xlu0 %1853 }
 0x271   : > { %v1373_v54 = vadd.f32 0.2548296, %v1341_v32  ;;  %v1312_v18 = vadd.f32 -0.28449672, %v1280_v63  ;;  %v991_v47 = vsel %vm959_vm15, 1.0, %v7382_v12  ;;  %vm960_vm1 = vcmp.ge.f32.partialorder %v5814_v6, 0.0 }
 0x272   : > { %v1214_v48 = vmul.f32 %v4180_v4, %v1182_v58  ;;  %v1631_v24 = vmul.f32 %v1599_v1, %v991_v47  ;;  %v1895_v55 = vsel %vm377_vm0, %v1709_v8, %v1850_v46  ;;  %vm957_vm2 = vcmp.ge.f32.partialorder %v5796_v50, 0.0  ;;  %v1852_v56 = vpop.permute.xlu1 %1851 }
 0x273   : > { %v1344_v42 = vmul.f32 %v5893_v13, %v1312_v18  ;;  %v1405_v53 = vmul.f32 %v5873_v35, %v1373_v54  ;;  %v992_v5 = vsel %vm960_vm1, 1.0, %v7382_v12  ;;  %v895_v17 = vmul.f32 0.5, %v5726_v20 }
 0x274   : > { %v1246_v3 = vadd.f32 1.4214138, %v1214_v48  ;;  %4010 = vmatmul.mubr.msk.bf16.gmra.mrb[16].mxu1 %vm1944_vm13, %v1886_v51  ;;  %v1663_v44 = vadd.f32 1.0, %v1631_v24  ;;  %v989_v37 = vsel %vm957_vm2, 1.0, %v7382_v12  ;;  %v896_v45 = vmul.f32 0.5, %v5802_v52 }
 0x275   : > { %v1376_v26 = vadd.f32 0.2548296, %v1344_v42  ;;  %4013 = vmatprep.mubr.msk.bf16.mxu1 %vm1944_vm13, %v1889_v2  ;;  %vm958_vm3 = vcmp.ge.f32.partialorder %v5842_v7, 0.0  ;;  %v1898_v20 = vsel %vm377_vm0, %v1710_v28, %v1852_v56  ;;  %v893_v52 = vmul.f32 0.5, %v5784_v59  ;;  %v5961_v59 = vld [vmem:[%s7367_s5] ss:$0 sm:$0xff] }
 0x276   : > { %v4182_v16 = vpop.eup %4181  ;;  %v1278_v10 = vmul.f32 %v4180_v4, %v1246_v3  ;;  %v1695_v0 = vmul.f32 %v1663_v44, %v895_v17  ;;  %v990_v31 = vsel %vm958_vm3, 1.0, %v7382_v12  ;;  %v894_v7 = vmul.f32 0.5, %v5827_v34  ;;  %v1856_v8 = vpop.permute.xlu1 %1855 }
 0x277   : > { %v1408_v61 = vmul.f32 %v5893_v13, %v1376_v26  ;;  %v4184_v43 = vpop.eup %4183  ;;  %v1565_v22 = vmul.f32 %v4182_v16, %v1405_v53  ;;  %v1892_v13 = vsel %vm377_vm0, %v1708_v15, %v1848_v27  ;;  %vm3098_vm8 = vcmask 257024  }
 0x278   : > { %v1310_v35 = vadd.f32 -0.28449672, %v1278_v10 }
 0x279   : > { %v1568_v40 = vmul.f32 %v4184_v43, %v1408_v61  ;;  %v1597_v25 = vsub.f32 1.0, %v1565_v22 }
 0x27a   : > { %v1342_v29 = vmul.f32 %v4180_v4, %v1310_v35  ;;  %v4186_v57 = vpop.eup %4185 }
 0x27b   : > { %v1600_v21 = vsub.f32 1.0, %v1568_v40  ;;  %v1629_v50 = vmul.f32 %v1597_v25, %v989_v37 }
 0x27c   : > { %v1374_v39 = vadd.f32 0.2548296, %v1342_v29  ;;  %4014 = vmatmul.mubr.msk.bf16.gmra.mrb[20].mxu1 %vm1944_vm13, %v1892_v13 }
 0x27d   : > { %v1632_v6 = vmul.f32 %v1600_v21, %v992_v5  ;;  %4017 = vmatprep.mubr.msk.bf16.mxu1 %vm1944_vm13, %v1895_v55  ;;  %v1661_v60 = vadd.f32 1.0, %v1629_v50 }
 0x27e   : > { %v1406_v41 = vmul.f32 %v4180_v4, %v1374_v39 }
 0x27f   : > { %v1664_v15 = vadd.f32 1.0, %v1632_v6  ;;  %v1693_v32 = vmul.f32 %v1661_v60, %v893_v52 }
 0x280   : > { %v1566_v33 = vmul.f32 %v4186_v57, %v1406_v41 }
 0x281   : > { %v1696_v49 = vmul.f32 %v1664_v15, %v896_v45 }
 0x282   : > { %v1598_v62 = vsub.f32 1.0, %v1566_v33 }
 0x283   : > { %v1712_v4 = vpack.c.bf16 %v1696_v49, %v1695_v0 }
 0x284   : > { %v1630_v14 = vmul.f32 %v1598_v62, %v990_v31  ;;  %4018 = vmatmul.mubr.msk.bf16.gmra.mrb[24].mxu1 %vm1944_vm13, %v1898_v20 }
 0x285   : > { %v1904_v30 = vsel %vm377_vm0, %v1712_v4, %v1856_v8 }
 0x286   : > { %v1662_v23 = vadd.f32 1.0, %v1630_v14 }
 0x288   : > { %v1694_v63 = vmul.f32 %v1662_v23, %v894_v7 }
 0x28a   : > { %v1711_v58 = vpack.c.bf16 %v1694_v63, %v1693_v32 }
 0x28c   : > { %v1901_v38 = vsel %vm377_vm0, %v1711_v58, %v1854_v36 }
 0x28d   : > { %4021 = vmatprep.mubr.msk.bf16.mxu1 %vm1944_vm13, %v1901_v38 }
 0x28e   : > { %4022 = vmatmul.mubr.msk.bf16.gmra.mrb[28].mxu1 %vm1944_vm13, %v1904_v30 }
 0x31f   : > { %v3995_v34 = vpop.f32.mrb[0].mxu1 }
 0x320   : > { %v2020_v19 = vadd.f32 %v3995_v34, %v5961_v59  ;;  %v2011_v28 = vpop.f32.mrb[1].mxu1 }
 0x321   : > { %v2012_v11 = vadd.f32 %v5961_v59, %v2011_v28  ;;  %v3996_v54 = vpop.f32.mrb[2].mxu1 }
 0x322   : > { %v2172_v18 = vmul.f32 0.70710677, %v2020_v19  ;;  %v2023_v9 = vadd.f32 %v3996_v54, %v5961_v59  ;;  %v2014_v48 = vpop.f32.mrb[3].mxu1  ;;  %v5976_v5 = vmul.f32 0.5, %v2020_v19 }
 0x323   : > { %v2170_v2 = vmul.f32 0.70710677, %v2012_v11  ;;  %v2015_v53 = vadd.f32 %v5961_v59, %v2014_v48  ;;  %v5981_v6 = vmul.f32 0.5, %v2012_v11 }
 0x324   : > { %v2268_v42 = vand.u32 2147483647, %v2172_v18  ;;  %v5966_v51 = vmul.f32 0.70710677, %v2023_v9  ;;  %vm2204_vm4 = vcmp.ge.f32.partialorder %v2172_v18, 0.0  ;;  %v5992_v15 = vmul.f32 0.5, %v2023_v9 }
 0x325   : > { %v2266_v3 = vand.u32 2147483647, %v2170_v2  ;;  %v5970_v61 = vmul.f32 0.70710677, %v2015_v53  ;;  %vm2202_vm5 = vcmp.ge.f32.partialorder %v2170_v2, 0.0  ;;  %v5990_v45 = vsel %vm2204_vm4, 1.0, %v7382_v12 }
 0x326   : > { %v2300_v1 = vmul.f32 0.3275911, %v2268_v42  ;;  %v2269_v16 = vand.u32 2147483647, %v5966_v51  ;;  %v2684_v22 = vsub.f32 0.0, %v2268_v42  ;;  %v5998_v0 = vsel %vm2202_vm5, 1.0, %v7382_v12 }
 0x327   : > { %v2298_v26 = vmul.f32 0.3275911, %v2266_v3  ;;  %v2267_v47 = vand.u32 2147483647, %v5970_v61  ;;  %v2682_v24 = vsub.f32 0.0, %v2266_v3  ;;  %v6000_v49 = vmul.f32 0.5, %v2015_v53 }
 0x328   : > { %v2332_v10 = vadd.f32 1.0, %v2300_v1  ;;  %v2301_v43 = vmul.f32 0.3275911, %v2269_v16  ;;  %v2685_v40 = vsub.f32 0.0, %v2269_v16  ;;  %v2716_v21 = vmul.f32 %v2684_v22, %v2268_v42 }
 0x329   : > { %v2330_v46 = vadd.f32 1.0, %v2298_v26  ;;  %v2299_v27 = vmul.f32 0.3275911, %v2267_v47  ;;  %v2714_v41 = vmul.f32 %v2682_v24, %v2266_v3  ;;  %vm2205_vm6 = vcmp.ge.f32.partialorder %v5966_v51, 0.0 }
 0x32a   : > { %4187 = vrcp.f32 %v2332_v10  ;;  %v2333_v35 = vadd.f32 1.0, %v2301_v43  ;;  %v2717_v50 = vmul.f32 %v2685_v40, %v2269_v16  ;;  %v2750_v56 = vmul.f32 1.442695, %v2716_v21 }
 0x32b   : > { %4189 = vrcp.f32 %v2330_v46  ;;  %v2331_v29 = vadd.f32 1.0, %v2299_v27  ;;  %v2683_v20 = vsub.f32 0.0, %v2267_v47  ;;  %v2746_v7 = vmul.f32 1.442695, %v2714_v41 }
 0x32c   : > { %4191 = vrcp.f32 %v2333_v35  ;;  %vm2203_vm7 = vcmp.ge.f32.partialorder %v5970_v61, 0.0  ;;  %v2752_v63 = vmul.f32 1.442695, %v2717_v50 }
 0x32d   : > { %4193 = vrcp.f32 %v2331_v29  ;;  %v2715_v28 = vmul.f32 %v2683_v20, %v2267_v47 }
 0x32e   : > { %v3999_v55 = vpop.f32.mrb[4].mxu1  ;;  %4195 = vpow2.f32 %v2750_v56 }
 0x32f   : > { %v5974_v13 = vadd.f32 %v3999_v55, %v5961_v59  ;;  %v2027_v25 = vpop.f32.mrb[5].mxu1  ;;  %v2748_v22 = vmul.f32 1.442695, %v2715_v28 }
 0x330   : > { %v5979_v39 = vadd.f32 %v5961_v59, %v2027_v25  ;;  %v4000_v44 = vpop.f32.mrb[6].mxu1 }
 0x331   : > { %v5984_v57 = vmul.f32 0.70710677, %v5974_v13  ;;  %v5987_v17 = vadd.f32 %v4000_v44, %v5961_v59  ;;  %v2030_v37 = vpop.f32.mrb[7].mxu1 }
 0x332   : > { %v5995_v33 = vmul.f32 0.70710677, %v5979_v39  ;;  %v6025_v2 = vadd.f32 %v5961_v59, %v2030_v37  ;;  %v6044_v37 = vsel %vm2205_vm6, 1.0, %v7382_v12 }
 0x333   : > { %v2272_v62 = vand.u32 2147483647, %v5984_v57  ;;  %v6008_v60 = vmul.f32 0.70710677, %v5987_v17  ;;  %vm2208_vm9 = vcmp.ge.f32.partialorder %v5984_v57, 0.0 }
 0x334   : > { %v6003_v31 = vpop.eup %4187  ;;  %v2270_v4 = vand.u32 2147483647, %v5995_v33  ;;  %v6038_v55 = vmul.f32 0.70710677, %v6025_v2  ;;  %vm2206_vm10 = vcmp.ge.f32.partialorder %v5995_v33, 0.0 }
 0x335   : > { %v6010_v14 = vpop.eup %4189  ;;  %v2396_v52 = vmul.f32 1.0614054, %v6003_v31  ;;  %v2304_v23 = vmul.f32 0.3275911, %v2272_v62  ;;  %v2688_v38 = vsub.f32 0.0, %v2272_v62  ;;  %vm2209_vm11 = vcmp.ge.f32.partialorder %v6008_v60, 0.0 }
 0x336   : > { %v2394_v32 = vmul.f32 1.0614054, %v6010_v14  ;;  %v2302_v36 = vmul.f32 0.3275911, %v2270_v4  ;;  %v6017_v34 = vpop.eup %4191  ;;  %v2273_v54 = vand.u32 2147483647, %v6008_v60 }
 0x337   : > { %v2428_v8 = vadd.f32 -1.4531521, %v2396_v52  ;;  %v2336_v58 = vadd.f32 1.0, %v2304_v23  ;;  %v6015_v30 = vpop.f32.mrb[8].mxu1  ;;  %v2397_v48 = vmul.f32 1.0614054, %v6017_v34  ;;  %v6029_v53 = vpop.eup %4193  ;;  %v2720_v35 = vmul.f32 %v2688_v38, %v2272_v62 }
 0x338   : > { %v2426_v19 = vadd.f32 -1.4531521, %v2394_v32  ;;  %v2334_v11 = vadd.f32 1.0, %v2302_v36  ;;  %v6020_v18 = vpop.f32.mrb[9].mxu1  ;;  %v2686_v1 = vsub.f32 0.0, %v2270_v4  ;;  %v2689_v44 = vsub.f32 0.0, %v2273_v54 }
 0x339   : > { %v2460_v9 = vmul.f32 %v6003_v31, %v2428_v8  ;;  %4197 = vrcp.f32 %v2336_v58  ;;  %v6027_v42 = vpop.f32.mrb[10].mxu1  ;;  %v2305_v26 = vmul.f32 0.3275911, %v2273_v54  ;;  %v2429_v46 = vadd.f32 -1.4531521, %v2397_v48 }
 0x33a   : > { %v2458_v3 = vmul.f32 %v6010_v14, %v2426_v19  ;;  %4199 = vrcp.f32 %v2334_v11  ;;  %v6032_v16 = vpop.f32.mrb[11].mxu1  ;;  %v2395_v43 = vmul.f32 1.0614054, %v6029_v53  ;;  %v2718_v25 = vmul.f32 %v2686_v1, %v2270_v4 }
 0x33b   : > { %v2492_v10 = vadd.f32 1.4214138, %v2460_v9  ;;  %4201 = vpow2.f32 %v2746_v7  ;;  %v2337_v27 = vadd.f32 1.0, %v2305_v26  ;;  %v2461_v40 = vmul.f32 %v6017_v34, %v2429_v46  ;;  %v4196_v7 = vpop.eup %4195 }
 0x33c   : > { %v2490_v47 = vadd.f32 1.4214138, %v2458_v3  ;;  %v2427_v29 = vadd.f32 -1.4531521, %v2395_v43  ;;  %v6052_v52 = vsel %vm2203_vm7, 1.0, %v7382_v12  ;;  %v2721_v38 = vmul.f32 %v2689_v44, %v2273_v54 }
 0x33d   : > { %v2524_v24 = vmul.f32 %v6003_v31, %v2492_v10  ;;  %4203 = vrcp.f32 %v2337_v27  ;;  %v2493_v50 = vadd.f32 1.4214138, %v2461_v40  ;;  %v2758_v4 = vmul.f32 1.442695, %v2720_v35 }
 0x33e   : > { %v2522_v21 = vmul.f32 %v6010_v14, %v2490_v47  ;;  %v2459_v56 = vmul.f32 %v6029_v53, %v2427_v29  ;;  %4205 = vpow2.f32 %v2752_v63  ;;  %v6057_v36 = vand.u32 2147483647, %v6038_v55 }
 0x33f   : > { %v2556_v41 = vadd.f32 -0.28449672, %v2524_v24  ;;  %v6047_v62 = vpop.f32.mrb[12].mxu1  ;;  %v2525_v51 = vmul.f32 %v6017_v34, %v2493_v50  ;;  %4207 = vpow2.f32 %v2748_v22  ;;  %v2754_v63 = vmul.f32 1.442695, %v2718_v25 }
 0x340   : > { %v2554_v20 = vadd.f32 -0.28449672, %v2522_v21  ;;  %v2491_v32 = vadd.f32 1.4214138, %v2459_v56  ;;  %v6059_v8 = vpop.f32.mrb[13].mxu1  ;;  %4209 = vpow2.f32 %v2758_v4  ;;  %v6073_v10 = vadd.f32 %v6015_v30, %v5961_v59 }
 0x341   : > { %v2588_v23 = vmul.f32 %v6003_v31, %v2556_v41  ;;  %v6062_v61 = vpop.f32.mrb[14].mxu1  ;;  %v2557_v11 = vadd.f32 -0.28449672, %v2525_v51  ;;  %v2303_v48 = vmul.f32 0.3275911, %v6057_v36  ;;  %vm2207_vm12 = vcmp.ge.f32.partialorder %v6038_v55, 0.0 }
 0x342   : > { %v2586_v58 = vmul.f32 %v6010_v14, %v2554_v20  ;;  %v2523_v9 = vmul.f32 %v6029_v53, %v2491_v32  ;;  %v6078_v35 = vpop.f32.mrb[15].mxu1  ;;  %v2760_v40 = vmul.f32 1.442695, %v2721_v38  ;;  %v6088_v20 = vmul.f32 0.70710677, %v6073_v10 }
 0x343   : > { %v6064_v19 = vpop.eup %4197  ;;  %v2620_v28 = vadd.f32 0.2548296, %v2588_v23  ;;  %v2589_v43 = vmul.f32 %v6017_v34, %v2557_v11  ;;  %v2335_v29 = vadd.f32 1.0, %v2303_v48 }
 0x344   : > { %v6068_v3 = vpop.eup %4199  ;;  %v2618_v1 = vadd.f32 0.2548296, %v2586_v58  ;;  %v2400_v26 = vmul.f32 1.0614054, %v6064_v19  ;;  %v2555_v47 = vadd.f32 -0.28449672, %v2523_v9 }
 0x345   : > { %v4202_v54 = vpop.eup %4201  ;;  %v2652_v46 = vmul.f32 %v6003_v31, %v2620_v28  ;;  %v2398_v22 = vmul.f32 1.0614054, %v6068_v3  ;;  %v2621_v25 = vadd.f32 0.2548296, %v2589_v43  ;;  %4211 = vrcp.f32 %v2335_v29 }
 0x346   : > { %v2650_v27 = vmul.f32 %v6010_v14, %v2618_v1  ;;  %v2432_v24 = vadd.f32 -1.4531521, %v2400_v26  ;;  %v2587_v30 = vmul.f32 %v6029_v53, %v2555_v47  ;;  %4213 = vpow2.f32 %v2754_v63 }
 0x347   : > { %v2812_v21 = vmul.f32 %v4196_v7, %v2652_v46  ;;  %v2430_v44 = vadd.f32 -1.4531521, %v2398_v22  ;;  %v6082_v41 = vpop.f32.mrb[16].mxu1  ;;  %v6084_v31 = vpop.eup %4203  ;;  %v2653_v7 = vmul.f32 %v6017_v34, %v2621_v25  ;;  %v2687_v22 = vsub.f32 0.0, %v6057_v36 }
 0x348   : > { %v2810_v50 = vmul.f32 %v4202_v54, %v2650_v27  ;;  %v2464_v56 = vmul.f32 %v6064_v19, %v2432_v24  ;;  %v6090_v14 = vpop.f32.mrb[17].mxu1  ;;  %v2619_v23 = vadd.f32 0.2548296, %v2587_v30  ;;  %v4206_v58 = vpop.eup %4205  ;;  %v2401_v11 = vmul.f32 1.0614054, %v6084_v31 }
 0x349   : > { %v2844_v4 = vsub.f32 1.0, %v2812_v21  ;;  %v2462_v51 = vmul.f32 %v6068_v3, %v2430_v44  ;;  %v6094_v32 = vpop.f32.mrb[18].mxu1  ;;  %v2813_v1 = vmul.f32 %v4206_v58, %v2653_v7  ;;  %v4208_v34 = vpop.eup %4207  ;;  %v6107_v30 = vand.u32 2147483647, %v6088_v20 }
 0x34a   : > { %v2842_v38 = vsub.f32 1.0, %v2810_v50  ;;  %v2496_v28 = vadd.f32 1.4214138, %v2464_v56  ;;  %v6097_v9 = vpop.f32.mrb[19].mxu1  ;;  %v2651_v26 = vmul.f32 %v6029_v53, %v2619_v23  ;;  %v2433_v47 = vadd.f32 -1.4531521, %v2401_v11  ;;  %v4210_v21 = vpop.eup %4209 }
 0x34b   : > { %v2876_v48 = vmul.f32 %v2844_v4, %v5990_v45  ;;  %v2494_v54 = vadd.f32 1.4214138, %v2462_v51  ;;  %v2845_v27 = vsub.f32 1.0, %v2813_v1  ;;  %4215 = vpow2.f32 %v2760_v40 }
 0x34c   : > { %v2874_v46 = vmul.f32 %v2842_v38, %v5998_v0  ;;  %v2528_v43 = vmul.f32 %v6064_v19, %v2496_v28  ;;  %v2811_v24 = vmul.f32 %v4208_v34, %v2651_v26  ;;  %v2465_v53 = vmul.f32 %v6084_v31, %v2433_v47 }
 0x34d   : > { %v2908_v63 = vadd.f32 1.0, %v2876_v48  ;;  %v2526_v29 = vmul.f32 %v6068_v3, %v2494_v54  ;;  %v2877_v44 = vmul.f32 %v2845_v27, %v6044_v37  ;;  %v2719_v54 = vmul.f32 %v2687_v22, %v6057_v36 }
 0x34e   : > { %v2906_v45 = vadd.f32 1.0, %v2874_v46  ;;  %v2560_v25 = vadd.f32 -0.28449672, %v2528_v43  ;;  %v2843_v50 = vsub.f32 1.0, %v2811_v24  ;;  %v2497_v51 = vadd.f32 1.4214138, %v2465_v53 }
 0x34f   : > { %v6110_v0 = vmul.f32 %v2908_v63, %v5976_v5  ;;  %v2558_v56 = vadd.f32 -0.28449672, %v2526_v29  ;;  %v6113_v4 = vpop.f32.mrb[20].mxu1  ;;  %v2308_v5 = vmul.f32 0.3275911, %v6107_v30  ;;  %v2909_v38 = vadd.f32 1.0, %v2877_v44 }
 0x350   : > { %v6122_v7 = vmul.f32 %v2906_v45, %v5981_v6  ;;  %v2592_v23 = vmul.f32 %v6064_v19, %v2560_v25  ;;  %v6126_v58 = vpop.f32.mrb[21].mxu1  ;;  %v2875_v28 = vmul.f32 %v2843_v50, %v6052_v52  ;;  %v6133_v6 = vpop.eup %4211  ;;  %v2529_v40 = vmul.f32 %v6084_v31, %v2497_v51 }
 0x351   : > { %7405 = vst [vmem:[#allocation3_spill] sm:$0xff] %v6110_v0  ;;  %v3770_v37 = vpack.c.bf16 %v6110_v0, %v6110_v0  ;;  %v6131_v11 = vpop.f32.mrb[22].mxu1  ;;  %v2590_v26 = vmul.f32 %v6068_v3, %v2558_v56  ;;  %v6144_v46 = vmul.f32 %v2909_v38, %v5992_v15  ;;  %v2399_v43 = vmul.f32 1.0614054, %v6133_v6  ;;  %v4214_v47 = vpop.eup %4213 }
 0x352   : > { %7406 = vst [vmem:[#allocation4_spill] sm:$0xff] %v6122_v7  ;;  %v3768_v48 = vpack.c.bf16 %v6122_v7, %v6122_v7  ;;  %v2624_v1 = vadd.f32 0.2548296, %v2592_v23  ;;  %v6139_v34 = vpop.f32.mrb[23].mxu1  ;;  %v2907_v52 = vadd.f32 1.0, %v2875_v28  ;;  %v2340_v63 = vadd.f32 1.0, %v2308_v5 }
 0x353   : > { %3101 = vst.msk [vmem:[%s6119_s10 + $0x8] sm:$0xf] %vm3098_vm8, %v3770_v37  ;;  %7407 = vst [vmem:[#allocation5_spill] sm:$0xff] %v6144_v46  ;;  %v2622_v22 = vadd.f32 0.2548296, %v2590_v26  ;;  %v3771_v27 = vpack.c.bf16 %v6144_v46, %v6144_v46  ;;  %v2144_v51 = vmul.f32 0.5, %v5974_v13 }
 0x354   : > { %3099 = vst.msk [vmem:[%s6119_s10] sm:$0xf] %vm3098_vm8, %v3768_v48  ;;  %v2656_v36 = vmul.f32 %v6064_v19, %v2624_v1  ;;  %v6155_v15 = vmul.f32 %v2907_v52, %v6000_v49  ;;  %v2561_v24 = vadd.f32 -0.28449672, %v2529_v40  ;;  %v2431_v25 = vadd.f32 -1.4531521, %v2399_v43 }
 0x355   : > { %v2654_v45 = vmul.f32 %v6068_v3, %v2622_v22  ;;  %4217 = vrcp.f32 %v2340_v63  ;;  %3102 = vst.msk [vmem:[%s6119_s10 + $0xc] sm:$0xf] %vm3098_vm8, %v3771_v27  ;;  %v2756_v44 = vmul.f32 1.442695, %v2719_v54  ;;  %v6166_v49 = vadd.f32 %v5961_v59, %v6020_v18  ;;  %v4216_v54 = vpop.eup %4215 }
 0x356   : > { %7408 = vst [vmem:[#allocation6_spill] sm:$0xff] %v6155_v15  ;;  %v2816_v29 = vmul.f32 %v4210_v21, %v2656_v36  ;;  %v3769_v19 = vpack.c.bf16 %v6155_v15, %v6155_v15  ;;  %v2593_v53 = vmul.f32 %v6084_v31, %v2561_v24  ;;  %v2463_v3 = vmul.f32 %v6133_v6, %v2431_v25 }
 0x357   : > { %v6168_v50 = vpop.f32.mrb[24].mxu1  ;;  %v2814_v21 = vmul.f32 %v4214_v47, %v2654_v45  ;;  %v2240_v5 = vsel %vm2208_vm9, 1.0, %v7382_v12  ;;  %v2238_v18 = vsel %vm2206_vm10, 1.0, %v7382_v12  ;;  %4219 = vpow2.f32 %v2756_v44 }
 0x358   : > { %v2848_v56 = vsub.f32 1.0, %v2816_v29  ;;  %v6171_v23 = vpop.f32.mrb[25].mxu1  ;;  %3100 = vst.msk [vmem:[%s6119_s10 + $0x4] sm:$0xf] %vm3098_vm8, %v3769_v19  ;;  %v2625_v37 = vadd.f32 0.2548296, %v2593_v53  ;;  %v6195_v47 = vadd.f32 %v6027_v42, %v5961_v59 }
 0x359   : > { %v6182_v38 = vpop.f32.mrb[26].mxu1  ;;  %v2846_v48 = vsub.f32 1.0, %v2814_v21  ;;  %v2495_v1 = vadd.f32 1.4214138, %v2463_v3  ;;  %v2692_v57 = vsub.f32 0.0, %v6107_v30  ;;  %v2241_v29 = vsel %vm2209_vm11, 1.0, %v7382_v12 }
 0x35a   : > { %v2880_v28 = vmul.f32 %v2848_v56, %v2240_v5  ;;  %v6185_v26 = vpop.f32.mrb[27].mxu1  ;;  %v2657_v13 = vmul.f32 %v6084_v31, %v2625_v37  ;;  %v6190_v52 = vmul.f32 0.70710677, %v6166_v49  ;;  %v2142_v31 = vmul.f32 0.5, %v5979_v39 }
 0x35b   : > { %v2878_v40 = vmul.f32 %v2846_v48, %v2238_v18  ;;  %v2527_v43 = vmul.f32 %v6133_v6, %v2495_v1  ;;  %v2724_v25 = vmul.f32 %v2692_v57, %v6107_v30  ;;  %v6213_v56 = vmul.f32 0.70710677, %v6195_v47 }
 0x35c   : > { %v2912_v33 = vadd.f32 1.0, %v2880_v28  ;;  %v2817_v36 = vmul.f32 %v4216_v54, %v2657_v13  ;;  %v2274_v22 = vand.u32 2147483647, %v6190_v52  ;;  %v2145_v18 = vmul.f32 0.5, %v5987_v17 }
 0x35d   : > { %v2910_v27 = vadd.f32 1.0, %v2878_v40  ;;  %v2559_v24 = vadd.f32 -0.28449672, %v2527_v43  ;;  %v2766_v1 = vmul.f32 1.442695, %v2724_v25  ;;  %v6231_v13 = vadd.f32 %v5961_v59, %v6032_v16 }
 0x35e   : > { %v6198_v63 = vmul.f32 %v2912_v33, %v2144_v51  ;;  %v2849_v45 = vsub.f32 1.0, %v2817_v36  ;;  %v2306_v19 = vmul.f32 0.3275911, %v2274_v22  ;;  %v6227_v54 = vand.u32 2147483647, %v6213_v56 }
 0x35f   : > { %v6205_v42 = vpop.eup %4217  ;;  %v6209_v44 = vmul.f32 %v2910_v27, %v2142_v31  ;;  %v2591_v39 = vmul.f32 %v6133_v6, %v2559_v24  ;;  %v6240_v43 = vadd.f32 %v6047_v62, %v5961_v59  ;;  %v2690_v36 = vsub.f32 0.0, %v2274_v22 }
 0x360   : > { %v3774_v53 = vpack.c.bf16 %v6198_v63, %v6198_v63  ;;  %v2881_v21 = vmul.f32 %v2849_v45, %v2241_v29  ;;  %v2404_v60 = vmul.f32 1.0614054, %v6205_v42  ;;  %v2338_v3 = vadd.f32 1.0, %v2306_v19 }
 0x361   : > { %7409 = vst [vmem:[#allocation11_spill] sm:$0xff] %v6209_v44  ;;  %v3772_v30 = vpack.c.bf16 %v6209_v44, %v6209_v44  ;;  %v2623_v51 = vadd.f32 0.2548296, %v2591_v39  ;;  %v6220_v5 = vpop.f32.mrb[28].mxu1  ;;  %v4220_v33 = vpop.eup %4219  ;;  %v2309_v31 = vmul.f32 0.3275911, %v6227_v54 }
 0x362   : > { %3105 = vst.msk [vmem:[%s6119_s10 + $0x18] sm:$0xf] %vm3098_vm8, %v3774_v53  ;;  %v2913_v37 = vadd.f32 1.0, %v2881_v21  ;;  %v2436_v28 = vadd.f32 -1.4531521, %v2404_v60  ;;  %4221 = vrcp.f32 %v2338_v3  ;;  %v6233_v57 = vpop.f32.mrb[29].mxu1  ;;  %v2722_v21 = vmul.f32 %v2690_v36, %v2274_v22 }
 0x363   : > { %3103 = vst.msk [vmem:[%s6119_s10 + $0x10] sm:$0xf] %vm3098_vm8, %v3772_v30  ;;  %v2655_v48 = vmul.f32 %v6133_v6, %v2623_v51  ;;  %4223 = vpow2.f32 %v2766_v1  ;;  %v2341_v29 = vadd.f32 1.0, %v2309_v31  ;;  %v6247_v45 = vmul.f32 0.70710677, %v6231_v13  ;;  %v6257_v19 = vpop.f32.mrb[30].mxu1 }
 0x364   : > { %v6235_v17 = vmul.f32 %v2913_v37, %v2145_v18  ;;  %v2468_v40 = vmul.f32 %v6205_v42, %v2436_v28  ;;  %v2239_v62 = vsel %vm2207_vm12, 1.0, %v7382_v12  ;;  %vm2212_vm13 = vcmp.ge.f32.partialorder %v6088_v20, 0.0  ;;  %7410 = vst [vmem:[#allocation13_spill] sm:$0xff] %v6257_v19 }
 0x365   : > { %v2815_v6 = vmul.f32 %v4220_v33, %v2655_v48  ;;  %v6255_v25 = vmul.f32 0.70710677, %v6240_v43  ;;  %v3132_v53 = vsel %vm377_vm0, %v6155_v15, 0.0  ;;  %4225 = vrcp.f32 %v2341_v29 }
 0x366   : > { %v3775_v16 = vpack.c.bf16 %v6235_v17, %v6235_v17  ;;  %v2500_v27 = vadd.f32 1.4214138, %v2468_v40  ;;  %v2143_v60 = vmul.f32 0.5, %v6025_v2  ;;  %v2275_v30 = vand.u32 2147483647, %v6247_v45 }
 0x367   : > { %v2847_v24 = vsub.f32 1.0, %v2815_v6  ;;  %v6265_v51 = vadd.f32 %v5961_v59, %v6059_v8  ;;  %v3131_v18 = vsel %vm377_vm0, %v6122_v7, 0.0  ;;  %v6270_v28 = vmul.f32 0.5, %v6073_v10 }
 0x368   : > { %3106 = vst.msk [vmem:[%s6119_s10 + $0x1c] sm:$0xf] %vm3098_vm8, %v3775_v16  ;;  %v2532_v55 = vmul.f32 %v6205_v42, %v2500_v27  ;;  %v2280_v48 = vand.u32 2147483647, %v6255_v25  ;;  %v3133_v1 = vadd.f32 %v3132_v53, %v3131_v18  ;;  %v2244_v2 = vsel %vm2212_vm13, 1.0, %v7382_v12 }
 0x369   : > { %v2879_v39 = vmul.f32 %v2847_v24, %v2239_v62  ;;  %v2307_v8 = vmul.f32 0.3275911, %v2275_v30  ;;  %v2762_v36 = vmul.f32 1.442695, %v2722_v21  ;;  %v3134_v10 = vsel %vm377_vm0, %v6110_v0, 0.0 }
 0x36a   : > { %v2564_v3 = vadd.f32 -0.28449672, %v2532_v55  ;;  %v2312_v31 = vmul.f32 0.3275911, %v2280_v48  ;;  %v6285_v24 = vmul.f32 0.70710677, %v6265_v51  ;;  %v3135_v18 = vadd.f32 %v3134_v10, %v3133_v1 }
 0x36b   : > { %v2911_v37 = vadd.f32 1.0, %v2879_v39  ;;  %v2339_v27 = vadd.f32 1.0, %v2307_v8  ;;  %v2693_v62 = vsub.f32 0.0, %v6227_v54  ;;  %v3136_v53 = vsel %vm377_vm0, %v6144_v46, 0.0 }
 0x36c   : > { %v6273_v22 = vpop.eup %4221  ;;  %v2596_v33 = vmul.f32 %v6205_v42, %v2564_v3  ;;  %v2344_v55 = vadd.f32 1.0, %v2312_v31  ;;  %v6294_v21 = vmul.f32 0.5, %v6166_v49  ;;  %vm2210_vm14 = vcmp.ge.f32.partialorder %v6190_v52, 0.0 }
 0x36d   : > { %v6279_v40 = vmul.f32 %v2911_v37, %v2143_v60  ;;  %v2402_v6 = vmul.f32 1.0614054, %v6273_v22  ;;  %4227 = vrcp.f32 %v2339_v27  ;;  %v6296_v60 = vpop.f32.mrb[31].mxu1  ;;  %v4224_v3 = vpop.eup %4223  ;;  %v2278_v49 = vand.u32 2147483647, %v6285_v24 }
 0x36e   : > { %v2628_v16 = vadd.f32 0.2548296, %v2596_v33  ;;  %7411 = vst [vmem:[#allocation7_spill] sm:$0xff] %v6296_v60  ;;  %v2691_v33 = vsub.f32 0.0, %v2275_v30  ;;  %4229 = vrcp.f32 %v2344_v55  ;;  %v2725_v1 = vmul.f32 %v2693_v62, %v6227_v54 }
 0x36f   : > { %v3773_v20 = vpack.c.bf16 %v6279_v40, %v6279_v40  ;;  %v2434_v29 = vadd.f32 -1.4531521, %v2402_v6  ;;  %v6303_v6 = vmul.f32 0.5, %v6195_v47  ;;  %4231 = vpow2.f32 %v2762_v36 }
 0x370   : > { %v2660_v39 = vmul.f32 %v6205_v42, %v2628_v16  ;;  %v6306_v42 = vpop.eup %4225  ;;  %v6311_v10 = vadd.f32 %v6062_v61, %v5961_v59  ;;  %v6316_v47 = vadd.f32 %v5961_v59, %v6078_v35  ;;  %v2242_v61 = vsel %vm2210_vm14, 1.0, %v7382_v12 }
 0x371   : > { %3104 = vst.msk [vmem:[%s6119_s10 + $0x14] sm:$0xf] %vm3098_vm8, %v3773_v20  ;;  %v2466_v37 = vmul.f32 %v6273_v22, %v2434_v29  ;;  %v2405_v27 = vmul.f32 1.0614054, %v6306_v42  ;;  %v2310_v20 = vmul.f32 0.3275911, %v2278_v49  ;;  %v3137_v29 = vadd.f32 %v3136_v53, %v3135_v18 }
 0x372   : > { %v2820_v8 = vmul.f32 %v4224_v3, %v2660_v39  ;;  %v2723_v39 = vmul.f32 %v2691_v33, %v2275_v30  ;;  %v2696_v3 = vsub.f32 0.0, %v2280_v48  ;;  %v6320_v62 = vmul.f32 0.70710677, %v6311_v10 }
 0x373   : > { %v2498_v31 = vadd.f32 1.4214138, %v2466_v37  ;;  %v2437_v37 = vadd.f32 -1.4531521, %v2405_v27  ;;  %v2342_v54 = vadd.f32 1.0, %v2310_v20  ;;  %vm2213_vm15 = vcmp.ge.f32.partialorder %v6213_v56, 0.0 }
 0x374   : > { %v2852_v16 = vsub.f32 1.0, %v2820_v8  ;;  %v2768_v35 = vmul.f32 1.442695, %v2725_v1  ;;  %v6328_v30 = vmul.f32 0.70710677, %v6316_v47  ;;  %v2728_v33 = vmul.f32 %v2696_v3, %v2280_v48 }
 0x375   : > { %v2530_v55 = vmul.f32 %v6273_v22, %v2498_v31  ;;  %v2469_v53 = vmul.f32 %v6306_v42, %v2437_v37  ;;  %4233 = vrcp.f32 %v2342_v54  ;;  %v6334_v52 = vand.u32 2147483647, %v6320_v62 }
 0x376   : > { %v2884_v36 = vmul.f32 %v2852_v16, %v2244_v2  ;;  %v3138_v2 = vsel %vm377_vm0, %v6209_v44, 0.0  ;;  %v2764_v27 = vmul.f32 1.442695, %v2723_v39  ;;  %v2694_v20 = vsub.f32 0.0, %v2278_v49 }
 0x377   : > { %v2562_v8 = vadd.f32 -0.28449672, %v2530_v55  ;;  %v6336_v31 = vpop.eup %4227  ;;  %v2501_v16 = vadd.f32 1.4214138, %v2469_v53  ;;  %4235 = vpow2.f32 %v2768_v35  ;;  %v2313_v48 = vmul.f32 0.3275911, %v6334_v52 }
 0x378   : > { %v2916_v46 = vadd.f32 1.0, %v2884_v36  ;;  %v6341_v55 = vpop.eup %4229  ;;  %v2403_v37 = vmul.f32 1.0614054, %v6336_v31  ;;  %v6353_v44 = vadd.f32 %v3138_v2, %v3137_v29  ;;  %v2245_v0 = vsel %vm2213_vm15, 1.0, %v7382_v12 }
 0x379   : > { %v2594_v18 = vmul.f32 %v6273_v22, %v2562_v8  ;;  %v2533_v54 = vmul.f32 %v6306_v42, %v2501_v16  ;;  %v4232_v39 = vpop.eup %4231  ;;  %v2345_v35 = vadd.f32 1.0, %v2313_v48  ;;  %v2726_v19 = vmul.f32 %v2694_v20, %v2278_v49 }
 0x37a   : > { %v6339_v1 = vmul.f32 %v2916_v46, %v6270_v28  ;;  %v2408_v46 = vmul.f32 1.0614054, %v6341_v55  ;;  %v6350_v28 = vand.u32 2147483647, %v6328_v30  ;;  %v2435_v53 = vadd.f32 -1.4531521, %v2403_v37 }
 0x37b   : > { %v2626_v36 = vadd.f32 0.2548296, %v2594_v18  ;;  %v2774_v18 = vmul.f32 1.442695, %v2728_v33  ;;  %v2565_v16 = vadd.f32 -0.28449672, %v2533_v54  ;;  %4237 = vrcp.f32 %v2345_v35 }
 0x37c   : > { %v3778_v3 = vpack.c.bf16 %v6339_v1, %v6339_v1  ;;  %v2440_v15 = vadd.f32 -1.4531521, %v2408_v46  ;;  %v2467_v60 = vmul.f32 %v6336_v31, %v2435_v53  ;;  %4239 = vpow2.f32 %v2764_v27 }
 0x37d   : > { %v2658_v8 = vmul.f32 %v6273_v22, %v2626_v36  ;;  %v2597_v22 = vmul.f32 %v6306_v42, %v2565_v16  ;;  %v2311_v29 = vmul.f32 0.3275911, %v6350_v28  ;;  %vm2211_vm1 = vcmp.ge.f32.partialorder %v6247_v45, 0.0 }
 0x37e   : > { %3109 = vst.msk [vmem:[%s6119_s10 + $0x28] sm:$0xf] %vm3098_vm8, %v3778_v3  ;;  %v2472_v33 = vmul.f32 %v6341_v55, %v2440_v15  ;;  %v2499_v36 = vadd.f32 1.4214138, %v2467_v60  ;;  %4241 = vpow2.f32 %v2774_v18  ;;  %v6369_v49 = vadd.f32 %v6082_v41, %v5961_v59 }
 0x37f   : > { %v2818_v7 = vmul.f32 %v4232_v39, %v2658_v8  ;;  %v6365_v56 = vpop.eup %4233  ;;  %v2629_v37 = vadd.f32 0.2548296, %v2597_v22  ;;  %v2343_v3 = vadd.f32 1.0, %v2311_v29  ;;  %v2770_v54 = vmul.f32 1.442695, %v2726_v19 }
 0x380   : > { %v2504_v48 = vadd.f32 1.4214138, %v2472_v33  ;;  %v2531_v27 = vmul.f32 %v6336_v31, %v2499_v36  ;;  %v2406_v15 = vmul.f32 1.0614054, %v6365_v56  ;;  %v6375_v60 = vmul.f32 0.5, %v6231_v13 }
 0x381   : > { %v2850_v2 = vsub.f32 1.0, %v2818_v7  ;;  %v2661_v7 = vmul.f32 %v6306_v42, %v2629_v37  ;;  %4243 = vrcp.f32 %v2343_v3  ;;  %v4236_v39 = vpop.eup %4235  ;;  %v2697_v41 = vsub.f32 0.0, %v6334_v52 }
 0x382   : > { %v2536_v46 = vmul.f32 %v6341_v55, %v2504_v48  ;;  %v2563_v53 = vadd.f32 -0.28449672, %v2531_v27  ;;  %v2438_v18 = vadd.f32 -1.4531521, %v2406_v15  ;;  %v2243_v35 = vsel %vm2211_vm1, 1.0, %v7382_v12 }
 0x383   : > { %v2882_v20 = vmul.f32 %v2850_v2, %v2242_v61  ;;  %v2821_v61 = vmul.f32 %v4236_v39, %v2661_v7  ;;  %v6383_v42 = vmul.f32 0.70710677, %v6369_v49  ;;  %4245 = vpow2.f32 %v2770_v54 }
 0x384   : > { %v2568_v19 = vadd.f32 -0.28449672, %v2536_v46  ;;  %v2595_v16 = vmul.f32 %v6336_v31, %v2563_v53  ;;  %v2470_v22 = vmul.f32 %v6365_v56, %v2438_v18  ;;  %v2695_v2 = vsub.f32 0.0, %v6350_v28 }
 0x385   : > { %v2914_v8 = vadd.f32 1.0, %v2882_v20  ;;  %v2853_v33 = vsub.f32 1.0, %v2821_v61  ;;  %v6393_v45 = vand.u32 2147483647, %v6383_v42  ;;  %v6395_v36 = vpop.eup %4237  ;;  %v2729_v3 = vmul.f32 %v2697_v41, %v6334_v52 }
 0x386   : > { %v2600_v29 = vmul.f32 %v6341_v55, %v2568_v19  ;;  %v2627_v37 = vadd.f32 0.2548296, %v2595_v16  ;;  %v2502_v48 = vadd.f32 1.4214138, %v2470_v22  ;;  %v4240_v20 = vpop.eup %4239  ;;  %v2409_v54 = vmul.f32 1.0614054, %v6395_v36 }
 0x387   : > { %v6386_v13 = vmul.f32 %v2914_v8, %v6294_v21  ;;  %v2885_v27 = vmul.f32 %v2853_v33, %v2245_v0  ;;  %v6403_v7 = vadd.f32 %v5961_v59, %v6090_v14  ;;  %vm2216_vm2 = vcmp.ge.f32.partialorder %v6255_v25, 0.0 }
 0x388   : > { %v2632_v15 = vadd.f32 0.2548296, %v2600_v29  ;;  %v4242_v46 = vpop.eup %4241  ;;  %v2659_v39 = vmul.f32 %v6336_v31, %v2627_v37  ;;  %v2534_v8 = vmul.f32 %v6365_v56, %v2502_v48  ;;  %v2316_v52 = vmul.f32 0.3275911, %v6393_v45 }
 0x389   : > { %v3776_v21 = vpack.c.bf16 %v6386_v13, %v6386_v13  ;;  %v2917_v53 = vadd.f32 1.0, %v2885_v27  ;;  %v2441_v18 = vadd.f32 -1.4531521, %v2409_v54  ;;  %v2727_v41 = vmul.f32 %v2695_v2, %v6350_v28 }
 0x38a   : > { %v2664_v0 = vmul.f32 %v6341_v55, %v2632_v15  ;;  %v2819_v61 = vmul.f32 %v4240_v20, %v2659_v39  ;;  %v2566_v59 = vadd.f32 -0.28449672, %v2534_v8  ;;  %v2776_v14 = vmul.f32 1.442695, %v2729_v3 }
 0x38b   : > { %3107 = vst.msk [vmem:[%s6119_s10 + $0x20] sm:$0xf] %vm3098_vm8, %v3776_v21  ;;  %v2348_v19 = vadd.f32 1.0, %v2316_v52  ;;  %v6413_v16 = vpop.eup %4243  ;;  %v6416_v31 = vmul.f32 %v2917_v53, %v6303_v6  ;;  %v2473_v33 = vmul.f32 %v6395_v36, %v2441_v18  ;;  %v6420_v29 = vmul.f32 0.70710677, %v6403_v7 }
 0x38c   : > { %v2824_v22 = vmul.f32 %v4242_v46, %v2664_v0  ;;  %v2851_v55 = vsub.f32 1.0, %v2819_v61  ;;  %v2598_v21 = vmul.f32 %v6365_v56, %v2566_v59  ;;  %v2407_v28 = vmul.f32 1.0614054, %v6413_v16 }
 0x38d   : > { %4247 = vrcp.f32 %v2348_v19  ;;  %v3779_v2 = vpack.c.bf16 %v6416_v31, %v6416_v31  ;;  %v2248_v6 = vsel %vm2216_vm2, 1.0, %v7382_v12  ;;  %v2505_v48 = vadd.f32 1.4214138, %v2473_v33  ;;  %v4246_v3 = vpop.eup %4245 }
 0x38e   : > { %v2856_v37 = vsub.f32 1.0, %v2824_v22  ;;  %v2883_v20 = vmul.f32 %v2851_v55, %v2243_v35  ;;  %v2630_v27 = vadd.f32 0.2548296, %v2598_v21  ;;  %4249 = vpow2.f32 %v2776_v14 }
 0x38f   : > { %v2439_v15 = vadd.f32 -1.4531521, %v2407_v28  ;;  %3110 = vst.msk [vmem:[%s6119_s10 + $0x2c] sm:$0xf] %vm3098_vm8, %v3779_v2  ;;  %v2537_v46 = vmul.f32 %v6395_v36, %v2505_v48  ;;  %v2772_v39 = vmul.f32 1.442695, %v2727_v41 }
 0x390   : > { %v2888_v54 = vmul.f32 %v2856_v37, %v2248_v6  ;;  %v6433_v8 = vand.u32 2147483647, %v6420_v29  ;;  %v2915_v52 = vadd.f32 1.0, %v2883_v20  ;;  %v2152_v25 = vmul.f32 0.5, %v6240_v43 }
 0x391   : > { %v2662_v53 = vmul.f32 %v6365_v56, %v2630_v27  ;;  %v2471_v0 = vmul.f32 %v6413_v16, %v2439_v15  ;;  %vm2214_vm3 = vcmp.ge.f32.partialorder %v6285_v24, 0.0  ;;  %v2569_v18 = vadd.f32 -0.28449672, %v2537_v46 }
 0x392   : > { %v2920_v35 = vadd.f32 1.0, %v2888_v54  ;;  %v2314_v61 = vmul.f32 0.3275911, %v6433_v8  ;;  %v6441_v59 = vmul.f32 %v2915_v52, %v6375_v60  ;;  %v2700_v19 = vsub.f32 0.0, %v6393_v45  ;;  %v6453_v60 = vld [vmem:[%s7367_s5] ss:$0 sm:$0xff] }
 0x393   : > { %v2822_v41 = vmul.f32 %v4246_v3, %v2662_v53  ;;  %v2503_v14 = vadd.f32 1.4214138, %v2471_v0  ;;  %v2601_v43 = vmul.f32 %v6395_v36, %v2569_v18  ;;  %4251 = vpow2.f32 %v2772_v39 }
 0x394   : > { %v6444_v22 = vmul.f32 %v2920_v35, %v2152_v25  ;;  %v2346_v56 = vadd.f32 1.0, %v2314_v61  ;;  %v3777_v33 = vpack.c.bf16 %v6441_v59, %v6441_v59  ;;  %v6457_v28 = vadd.f32 %v6453_v60, %v6094_v32 }
 0x395   : > { %v2854_v55 = vsub.f32 1.0, %v2822_v41  ;;  %v2535_v21 = vmul.f32 %v6413_v16, %v2503_v14  ;;  %v3140_v2 = vsel %vm377_vm0, %v6279_v40, 0.0  ;;  %v2246_v37 = vsel %vm2214_vm3, 1.0, %v7382_v12 }
 0x396   : > { %v3782_v6 = vpack.c.bf16 %v6444_v22, %v6444_v22  ;;  %v2633_v48 = vadd.f32 0.2548296, %v2601_v43  ;;  %3108 = vst.msk [vmem:[%s6119_s10 + $0x24] sm:$0xf] %vm3098_vm8, %v3777_v33  ;;  %v2732_v32 = vmul.f32 %v2700_v19, %v6393_v45  ;;  %4253 = vrcp.f32 %v2346_v56 }
 0x397   : > { %v6466_v3 = vpop.eup %4247  ;;  %v2886_v20 = vmul.f32 %v2854_v55, %v2246_v37  ;;  %v2567_v27 = vadd.f32 -0.28449672, %v2535_v21  ;;  %v3142_v15 = vsel %vm377_vm0, %v6198_v63, 0.0  ;;  %v2150_v54 = vmul.f32 0.5, %v6265_v51 }
 0x398   : > { %3113 = vst.msk [vmem:[%s6119_s10 + $0x38] sm:$0xf] %vm3098_vm8, %v3782_v6  ;;  %v2665_v24 = vmul.f32 %v6395_v36, %v2633_v48  ;;  %v2412_v46 = vmul.f32 1.0614054, %v6466_v3  ;;  %v4250_v39 = vpop.eup %4249  ;;  %vm2217_vm4 = vcmp.ge.f32.partialorder %v6320_v62, 0.0  ;;  %v3144_v53 = vsel %vm377_vm0, %v6235_v17, 0.0 }
 0x399   : > { %v2918_v52 = vadd.f32 1.0, %v2886_v20  ;;  %v2599_v25 = vmul.f32 %v6413_v16, %v2567_v27  ;;  %v6481_v45 = vmul.f32 0.70710677, %v6457_v28  ;;  %v3141_v0 = vadd.f32 %v3140_v2, %v6353_v44 }
 0x39a   : > { %v2825_v35 = vmul.f32 %v4250_v39, %v2665_v24  ;;  %v2444_v51 = vadd.f32 -1.4531521, %v2412_v46  ;;  %v2782_v61 = vmul.f32 1.442695, %v2732_v32  ;;  %v6490_v62 = vadd.f32 %v6453_v60, %v6097_v9 }
 0x39b   : > { %v6486_v18 = vmul.f32 %v2918_v52, %v2150_v54  ;;  %v2631_v36 = vadd.f32 0.2548296, %v2599_v25  ;;  %v2249_v41 = vsel %vm2217_vm4, 1.0, %v7382_v12  ;;  %v6495_v43 = vand.u32 2147483647, %v6481_v45 }
 0x39c   : > { %v2857_v14 = vsub.f32 1.0, %v2825_v35  ;;  %v2476_v19 = vmul.f32 %v6466_v3, %v2444_v51  ;;  %vm2215_vm5 = vcmp.ge.f32.partialorder %v6328_v30, 0.0  ;;  %v2698_v33 = vsub.f32 0.0, %v6433_v8 }
 0x39d   : > { %v3780_v44 = vpack.c.bf16 %v6486_v18, %v6486_v18  ;;  %v2663_v56 = vmul.f32 %v6413_v16, %v2631_v36  ;;  %v4252_v55 = vpop.eup %4251  ;;  %v3143_v9 = vadd.f32 %v3142_v15, %v3141_v0  ;;  %v2317_v6 = vmul.f32 0.3275911, %v6495_v43 }
 0x39e   : > { %v2889_v21 = vmul.f32 %v2857_v14, %v2249_v41  ;;  %v2508_v2 = vadd.f32 1.4214138, %v2476_v19  ;;  %v2153_v37 = vmul.f32 0.5, %v6311_v10  ;;  %4255 = vpow2.f32 %v2782_v61 }
 0x39f   : > { %3111 = vst.msk [vmem:[%s6119_s10 + $0x30] sm:$0xf] %vm3098_vm8, %v3780_v44  ;;  %v2823_v48 = vmul.f32 %v4252_v55, %v2663_v56  ;;  %v6507_v20 = vmul.f32 0.70710677, %v6490_v62  ;;  %v2247_v16 = vsel %vm2215_vm5, 1.0, %v7382_v12  ;;  %v2349_v32 = vadd.f32 1.0, %v2317_v6 }
 0x3a0   : > { %v2921_v30 = vadd.f32 1.0, %v2889_v21  ;;  %v2540_v27 = vmul.f32 %v6466_v3, %v2508_v2  ;;  %v6511_v15 = vpop.eup %4253  ;;  %v2730_v24 = vmul.f32 %v2698_v33, %v6433_v8  ;;  %v6519_v10 = vadd.f32 %v6453_v60, %v6113_v4 }
 0x3a1   : > { %v2855_v54 = vsub.f32 1.0, %v2823_v48  ;;  %v6515_v46 = vand.u32 2147483647, %v6507_v20  ;;  %v2410_v25 = vmul.f32 1.0614054, %v6511_v15  ;;  %4257 = vrcp.f32 %v2349_v32 }
 0x3a2   : > { %v6521_v39 = vmul.f32 %v2921_v30, %v2153_v37  ;;  %v2572_v52 = vadd.f32 -0.28449672, %v2540_v27  ;;  %v3145_v0 = vadd.f32 %v3144_v53, %v3143_v9  ;;  %v2151_v36 = vmul.f32 0.5, %v6316_v47 }
 0x3a3   : > { %v2887_v35 = vmul.f32 %v2855_v54, %v2247_v16  ;;  %v2315_v51 = vmul.f32 0.3275911, %v6515_v46  ;;  %v2442_v4 = vadd.f32 -1.4531521, %v2410_v25  ;;  %v3146_v41 = vsel %vm377_vm0, %v6386_v13, 0.0 }
 0x3a4   : > { %v3783_v8 = vpack.c.bf16 %v6521_v39, %v6521_v39  ;;  %v2604_v61 = vmul.f32 %v6466_v3, %v2572_v52  ;;  %v2778_v19 = vmul.f32 1.442695, %v2730_v24  ;;  %vm2220_vm6 = vcmp.ge.f32.partialorder %v6383_v42, 0.0 }
 0x3a5   : > { %v2919_v14 = vadd.f32 1.0, %v2887_v35  ;;  %v2347_v44 = vadd.f32 1.0, %v2315_v51  ;;  %v2474_v56 = vmul.f32 %v6511_v15, %v2442_v4  ;;  %v6536_v33 = vmul.f32 0.70710677, %v6519_v10 }
 0x3a6   : > { %3114 = vst.msk [vmem:[%s6119_s10 + $0x3c] sm:$0xf] %vm3098_vm8, %v3783_v8  ;;  %v2636_v53 = vadd.f32 0.2548296, %v2604_v61  ;;  %v2701_v55 = vsub.f32 0.0, %v6495_v43  ;;  %v6543_v9 = vadd.f32 %v6453_v60, %v6126_v58  ;;  %v3147_v21 = vadd.f32 %v3146_v41, %v3145_v0 }
 0x3a7   : > { %v6538_v47 = vmul.f32 %v2919_v14, %v2151_v36  ;;  %4259 = vrcp.f32 %v2347_v44  ;;  %v2506_v6 = vadd.f32 1.4214138, %v2474_v56  ;;  %v6547_v37 = vand.u32 2147483647, %v6536_v33 }
 0x3a8   : > { %v2668_v2 = vmul.f32 %v6466_v3, %v2636_v53  ;;  %v4256_v48 = vpop.eup %4255  ;;  %v3150_v30 = vsel %vm377_vm0, %v6339_v1, 0.0  ;;  %v3148_v16 = vsel %vm377_vm0, %v6441_v59, 0.0  ;;  %4261 = vpow2.f32 %v2778_v19 }
 0x3a9   : > { %v3781_v27 = vpack.c.bf16 %v6538_v47, %v6538_v47  ;;  %v2156_v58 = vmul.f32 0.5, %v6369_v49  ;;  %v2538_v3 = vmul.f32 %v6511_v15, %v2506_v6  ;;  %v2320_v54 = vmul.f32 0.3275911, %v6547_v37 }
 0x3aa   : > { %v2828_v32 = vmul.f32 %v4256_v48, %v2668_v2  ;;  %v2252_v24 = vsel %vm2220_vm6, 1.0, %v7382_v12  ;;  %vm2218_vm7 = vcmp.ge.f32.partialorder %v6420_v29, 0.0  ;;  %v2733_v52 = vmul.f32 %v2701_v55, %v6495_v43 }
 0x3ab   : > { %3112 = vst.msk [vmem:[%s6119_s10 + $0x34] sm:$0xf] %vm3098_vm8, %v3781_v27  ;;  %v6566_v25 = vmul.f32 0.70710677, %v6543_v9  ;;  %v6568_v0 = vpop.eup %4257  ;;  %v3149_v49 = vadd.f32 %v3148_v16, %v3147_v21  ;;  %v2570_v51 = vadd.f32 -0.28449672, %v2538_v3  ;;  %v6577_v4 = vadd.f32 %v6453_v60, %v6131_v11 }
 0x3ac   : > { %v2860_v35 = vsub.f32 1.0, %v2828_v32  ;;  %v2352_v8 = vadd.f32 1.0, %v2320_v54  ;;  %v2413_v36 = vmul.f32 1.0614054, %v6568_v0  ;;  %v2699_v61 = vsub.f32 0.0, %v6515_v46 }
 0x3ad   : > { %v6573_v42 = vand.u32 2147483647, %v6566_v25  ;;  %v2154_v41 = vmul.f32 0.5, %v6403_v7  ;;  %v2602_v14 = vmul.f32 %v6511_v15, %v2570_v51  ;;  %v3152_v19 = vsel %vm377_vm0, %v6416_v31, 0.0 }
 0x3ae   : > { %v2892_v43 = vmul.f32 %v2860_v35, %v2252_v24  ;;  %4263 = vrcp.f32 %v2352_v8  ;;  %v2250_v44 = vsel %vm2218_vm7, 1.0, %v7382_v12  ;;  %v2445_v53 = vadd.f32 -1.4531521, %v2413_v36 }
 0x3af   : > { %v2784_v56 = vmul.f32 1.442695, %v2733_v52  ;;  %v6588_v55 = vsel %vm377_vm0, %v6444_v22, 0.0  ;;  %v2634_v21 = vadd.f32 0.2548296, %v2602_v14  ;;  %v3151_v6 = vadd.f32 %v3150_v30, %v3149_v49 }
 0x3b0   : > { %v2924_v11 = vadd.f32 1.0, %v2892_v43  ;;  %v2318_v7 = vmul.f32 0.3275911, %v6573_v42  ;;  %v2477_v48 = vmul.f32 %v6568_v0, %v2445_v53  ;;  %v2731_v16 = vmul.f32 %v2699_v61, %v6515_v46 }
 0x3b1   : > { %v6591_v2 = vpop.eup %4259  ;;  %v6596_v29 = vmul.f32 0.70710677, %v6577_v4  ;;  %v2666_v32 = vmul.f32 %v6511_v15, %v2634_v21  ;;  %vm2221_vm9 = vcmp.ge.f32.partialorder %v6481_v45, 0.0  ;;  %4265 = vpow2.f32 %v2784_v56 }
 0x3b2   : > { %v6598_v27 = vmul.f32 %v2924_v11, %v2156_v58  ;;  %v2411_v3 = vmul.f32 1.0614054, %v6591_v2  ;;  %v2350_v54 = vadd.f32 1.0, %v2318_v7  ;;  %v4262_v24 = vpop.eup %4261  ;;  %v2509_v52 = vadd.f32 1.4214138, %v2477_v48 }
 0x3b3   : > { %v2704_v30 = vsub.f32 0.0, %v6547_v37  ;;  %v2826_v49 = vmul.f32 %v4262_v24, %v2666_v32  ;;  %v6608_v58 = vadd.f32 %v6453_v60, %v6139_v34  ;;  %v2780_v51 = vmul.f32 1.442695, %v2731_v16 }
 0x3b4   : > { %v3786_v46 = vpack.c.bf16 %v6598_v27, %v6598_v27  ;;  %v2443_v35 = vadd.f32 -1.4531521, %v2411_v3  ;;  %v2541_v15 = vmul.f32 %v6568_v0, %v2509_v52  ;;  %4267 = vrcp.f32 %v2350_v54 }
 0x3b5   : > { %v6612_v8 = vand.u32 2147483647, %v6596_v29  ;;  %v3153_v36 = vadd.f32 %v3152_v19, %v3151_v6  ;;  %v2858_v61 = vsub.f32 1.0, %v2826_v49  ;;  %v6617_v43 = vmul.f32 0.5, %v6457_v28 }
 0x3b6   : > { %3117 = vst.msk [vmem:[%s6119_s10 + $0x48] sm:$0xf] %vm3098_vm8, %v3786_v46  ;;  %v2475_v14 = vmul.f32 %v6591_v2, %v2443_v35  ;;  %v2253_v34 = vsel %vm2221_vm9, 1.0, %v7382_v12  ;;  %v2573_v53 = vadd.f32 -0.28449672, %v2541_v15  ;;  %v2736_v56 = vmul.f32 %v2704_v30, %v6547_v37 }
 0x3b7   : > { %v2321_v11 = vmul.f32 0.3275911, %v6612_v8  ;;  %v2890_v19 = vmul.f32 %v2858_v61, %v2250_v44  ;;  %v2702_v6 = vsub.f32 0.0, %v6573_v42  ;;  %v6629_v28 = vmul.f32 0.70710677, %v6608_v58 }
 0x3b8   : > { %v6625_v21 = vpop.eup %4263  ;;  %v2507_v7 = vadd.f32 1.4214138, %v2475_v14  ;;  %v2605_v48 = vmul.f32 %v6568_v0, %v2573_v53  ;;  %4269 = vpow2.f32 %v2780_v51  ;;  %v3154_v37 = vsel %vm377_vm0, %v6486_v18, 0.0 }
 0x3b9   : > { %v2416_v45 = vmul.f32 1.0614054, %v6625_v21  ;;  %v2353_v16 = vadd.f32 1.0, %v2321_v11  ;;  %v2922_v32 = vadd.f32 1.0, %v2890_v19  ;;  %v6637_v44 = vand.u32 2147483647, %v6629_v28 }
 0x3ba   : > { %v2539_v3 = vmul.f32 %v6591_v2, %v2507_v7  ;;  %v2637_v54 = vadd.f32 0.2548296, %v2605_v48  ;;  %v2790_v52 = vmul.f32 1.442695, %v2736_v56  ;;  %v2734_v49 = vmul.f32 %v2702_v6, %v6573_v42 }
 0x3bb   : > { %v2448_v24 = vadd.f32 -1.4531521, %v2416_v45  ;;  %4271 = vrcp.f32 %v2353_v16  ;;  %v6639_v30 = vmul.f32 %v2922_v32, %v2154_v41  ;;  %v2319_v35 = vmul.f32 0.3275911, %v6637_v44  ;;  %v4266_v15 = vpop.eup %4265 }
 0x3bc   : > { %v2571_v46 = vadd.f32 -0.28449672, %v2539_v3  ;;  %v2669_v51 = vmul.f32 %v6568_v0, %v2637_v54  ;;  %v6645_v61 = vmul.f32 0.5, %v6490_v62  ;;  %v6650_v53 = vadd.f32 %v6453_v60, %v6168_v50 }
 0x3bd   : > { %v2480_v14 = vmul.f32 %v6625_v21, %v2448_v24  ;;  %v3784_v41 = vpack.c.bf16 %v6639_v30, %v6639_v30  ;;  %vm2219_vm10 = vcmp.ge.f32.partialorder %v6507_v20, 0.0  ;;  %v2351_v56 = vadd.f32 1.0, %v2319_v35 }
 0x3be   : > { %v2603_v42 = vmul.f32 %v6591_v2, %v2571_v46  ;;  %v6656_v11 = vpop.eup %4267  ;;  %v2829_v0 = vmul.f32 %v4266_v15, %v2669_v51  ;;  %4273 = vpow2.f32 %v2790_v52  ;;  %v6660_v62 = vadd.f32 %v6453_v60, %v6171_v23 }
 0x3bf   : > { %v2512_v19 = vadd.f32 1.4214138, %v2480_v14  ;;  %3115 = vst.msk [vmem:[%s6119_s10 + $0x40] sm:$0xf] %vm3098_vm8, %v3784_v41  ;;  %v2414_v7 = vmul.f32 1.0614054, %v6656_v11  ;;  %4275 = vrcp.f32 %v2351_v56  ;;  %v3155_v3 = vadd.f32 %v3154_v37, %v3153_v36 }
 0x3c0   : > { %v2635_v50 = vadd.f32 0.2548296, %v2603_v42  ;;  %v2786_v6 = vmul.f32 1.442695, %v2734_v49  ;;  %v2861_v48 = vsub.f32 1.0, %v2829_v0  ;;  %v2705_v16 = vsub.f32 0.0, %v6612_v8 }
 0x3c1   : > { %v2544_v45 = vmul.f32 %v6625_v21, %v2512_v19  ;;  %v6668_v32 = vmul.f32 0.70710677, %v6650_v53  ;;  %v2251_v23 = vsel %vm2219_vm10, 1.0, %v7382_v12  ;;  %v2446_v24 = vadd.f32 -1.4531521, %v2414_v7 }
 0x3c2   : > { %v2667_v54 = vmul.f32 %v6591_v2, %v2635_v50  ;;  %v4270_v52 = vpop.eup %4269  ;;  %v2893_v46 = vmul.f32 %v2861_v48, %v2253_v34  ;;  %vm2224_vm11 = vcmp.ge.f32.partialorder %v6536_v33, 0.0  ;;  %v6676_v35 = vmul.f32 0.70710677, %v6660_v62 }
 0x3c3   : > { %v2576_v49 = vadd.f32 -0.28449672, %v2544_v45  ;;  %v3156_v15 = vsel %vm377_vm0, %v6538_v47, 0.0  ;;  %v2478_v36 = vmul.f32 %v6656_v11, %v2446_v24  ;;  %v6682_v20 = vand.u32 2147483647, %v6668_v32 }
 0x3c4   : > { %v2827_v51 = vmul.f32 %v4270_v52, %v2667_v54  ;;  %v2925_v2 = vadd.f32 1.0, %v2893_v46  ;;  %4277 = vpow2.f32 %v2786_v6  ;;  %v2737_v14 = vmul.f32 %v2705_v16, %v6612_v8 }
 0x3c5   : > { %v6684_v37 = vpop.eup %4271  ;;  %v2608_v34 = vmul.f32 %v6625_v21, %v2576_v49  ;;  %v2510_v42 = vadd.f32 1.4214138, %v2478_v36  ;;  %v2703_v0 = vsub.f32 0.0, %v6637_v44  ;;  %v2324_v7 = vmul.f32 0.3275911, %v6682_v20 }
 0x3c6   : > { %v2859_v41 = vsub.f32 1.0, %v2827_v51  ;;  %v2417_v56 = vmul.f32 1.0614054, %v6684_v37  ;;  %v6691_v19 = vmul.f32 %v2925_v2, %v6617_v43  ;;  %v6695_v48 = vand.u32 2147483647, %v6676_v35 }
 0x3c7   : > { %v2640_v50 = vadd.f32 0.2548296, %v2608_v34  ;;  %v2256_v8 = vsel %vm2224_vm11, 1.0, %v7382_v12  ;;  %v2542_v6 = vmul.f32 %v6656_v11, %v2510_v42  ;;  %v2792_v52 = vmul.f32 1.442695, %v2737_v14 }
 0x3c8   : > { %v2891_v45 = vmul.f32 %v2859_v41, %v2251_v23  ;;  %v2449_v16 = vadd.f32 -1.4531521, %v2417_v56  ;;  %v4274_v54 = vpop.eup %4273  ;;  %v3787_v43 = vpack.c.bf16 %v6691_v19, %v6691_v19  ;;  %v2356_v46 = vadd.f32 1.0, %v2324_v7 }
 0x3c9   : > { %v2672_v24 = vmul.f32 %v6625_v21, %v2640_v50  ;;  %v6704_v49 = vpop.eup %4275  ;;  %v2574_v36 = vadd.f32 -0.28449672, %v2542_v6  ;;  %v2735_v33 = vmul.f32 %v2703_v0, %v6637_v44  ;;  %v2322_v41 = vmul.f32 0.3275911, %v6695_v48 }
 0x3ca   : > { %v2923_v51 = vadd.f32 1.0, %v2891_v45  ;;  %v2481_v23 = vmul.f32 %v6684_v37, %v2449_v16  ;;  %3118 = vst.msk [vmem:[%s6119_s10 + $0x4c] sm:$0xf] %vm3098_vm8, %v3787_v43  ;;  %v2415_v34 = vmul.f32 1.0614054, %v6704_v49  ;;  %4279 = vrcp.f32 %v2356_v46 }
 0x3cb   : > { %v2832_v2 = vmul.f32 %v4274_v54, %v2672_v24  ;;  %v3157_v42 = vadd.f32 %v3156_v15, %v3155_v3  ;;  %v2606_v14 = vmul.f32 %v6656_v11, %v2574_v36  ;;  %4281 = vpow2.f32 %v2792_v52 }
 0x3cc   : > { %v6713_v21 = vmul.f32 %v2923_v51, %v6645_v61  ;;  %v2513_v56 = vadd.f32 1.4214138, %v2481_v23  ;;  %v2447_v7 = vadd.f32 -1.4531521, %v2415_v34  ;;  %v2354_v44 = vadd.f32 1.0, %v2322_v41 }
 0x3cd   : > { %v2864_v50 = vsub.f32 1.0, %v2832_v2  ;;  %v2638_v45 = vadd.f32 0.2548296, %v2606_v14  ;;  %v2788_v16 = vmul.f32 1.442695, %v2735_v33  ;;  %v2708_v15 = vsub.f32 0.0, %v6682_v20 }
 0x3ce   : > { %v3785_v0 = vpack.c.bf16 %v6713_v21, %v6713_v21  ;;  %v2545_v6 = vmul.f32 %v6684_v37, %v2513_v56  ;;  %v4278_v54 = vpop.eup %4277  ;;  %v2479_v61 = vmul.f32 %v6704_v49, %v2447_v7  ;;  %4283 = vrcp.f32 %v2354_v44 }
 0x3cf   : > { %v2896_v3 = vmul.f32 %v2864_v50, %v2256_v8  ;;  %v3160_v43 = vsel %vm377_vm0, %v6521_v39, 0.0  ;;  %v2670_v24 = vmul.f32 %v6656_v11, %v2638_v45  ;;  %v6728_v46 = vadd.f32 %v6453_v60, %v6182_v38 }
 0x3d0   : > { %3116 = vst.msk [vmem:[%s6119_s10 + $0x44] sm:$0xf] %vm3098_vm8, %v3785_v0  ;;  %v2577_v52 = vadd.f32 -0.28449672, %v2545_v6  ;;  %v2160_v51 = vmul.f32 0.5, %v6519_v10  ;;  %vm2222_vm12 = vcmp.ge.f32.partialorder %v6566_v25, 0.0  ;;  %v3159_v23 = vadd.f32 %v6588_v55, %v3157_v42 }
 0x3d1   : > { %v2928_v8 = vadd.f32 1.0, %v2896_v3  ;;  %v2511_v36 = vadd.f32 1.4214138, %v2479_v61  ;;  %v2830_v33 = vmul.f32 %v4278_v54, %v2670_v24  ;;  %4285 = vpow2.f32 %v2788_v16 }
 0x3d2   : > { %v2609_v2 = vmul.f32 %v6684_v37, %v2577_v52  ;;  %v2740_v41 = vmul.f32 %v2708_v15, %v6682_v20  ;;  %v6739_v38 = vmul.f32 0.70710677, %v6728_v46  ;;  %v2254_v10 = vsel %vm2222_vm12, 1.0, %v7382_v12 }
 0x3d3   : > { %v6734_v34 = vmul.f32 %v2928_v8, %v2160_v51  ;;  %v2543_v11 = vmul.f32 %v6704_v49, %v2511_v36  ;;  %v2862_v25 = vsub.f32 1.0, %v2830_v33  ;;  %vm2225_vm13 = vcmp.ge.f32.partialorder %v6596_v29, 0.0 }
 0x3d4   : > { %v2641_v55 = vadd.f32 0.2548296, %v2609_v2  ;;  %v6743_v42 = vpop.eup %4279  ;;  %v2706_v50 = vsub.f32 0.0, %v6695_v48  ;;  %v6750_v20 = vadd.f32 %v6453_v60, %v6185_v26  ;;  %v2158_v7 = vmul.f32 0.5, %v6543_v9 }
 0x3d5   : > { %v3790_v14 = vpack.c.bf16 %v6734_v34, %v6734_v34  ;;  %v2575_v56 = vadd.f32 -0.28449672, %v2543_v11  ;;  %v2894_v44 = vmul.f32 %v2862_v25, %v2254_v10  ;;  %v2420_v45 = vmul.f32 1.0614054, %v6743_v42  ;;  %v4282_v6 = vpop.eup %4281 }
 0x3d6   : > { %v2673_v0 = vmul.f32 %v6684_v37, %v2641_v55  ;;  %v3161_v16 = vadd.f32 %v3160_v43, %v3159_v23  ;;  %v2798_v3 = vmul.f32 1.442695, %v2740_v41  ;;  %v2293_v61 = vand.u32 2147483647, %v6739_v38 }
 0x3d7   : > { %3121 = vst.msk [vmem:[%s6119_s10 + $0x58] sm:$0xf] %vm3098_vm8, %v3790_v14  ;;  %v2607_v54 = vmul.f32 %v6704_v49, %v2575_v56  ;;  %v2926_v15 = vadd.f32 1.0, %v2894_v44  ;;  %v2257_v26 = vsel %vm2225_vm13, 1.0, %v7382_v12  ;;  %v2452_v24 = vadd.f32 -1.4531521, %v2420_v45 }
 0x3d8   : > { %v2833_v9 = vmul.f32 %v4282_v6, %v2673_v0  ;;  %v6762_v52 = vpop.eup %4283  ;;  %v2738_v51 = vmul.f32 %v2706_v50, %v6695_v48  ;;  %v2325_v43 = vmul.f32 0.3275911, %v2293_v61  ;;  %v6766_v8 = vmul.f32 0.70710677, %v6750_v20 }
 0x3d9   : > { %v2639_v37 = vadd.f32 0.2548296, %v2607_v54  ;;  %v6768_v36 = vmul.f32 %v2926_v15, %v2158_v7  ;;  %v2484_v33 = vmul.f32 %v6743_v42, %v2452_v24  ;;  %v2418_v29 = vmul.f32 1.0614054, %v6762_v52 }
 0x3da   : > { %v2865_v23 = vsub.f32 1.0, %v2833_v9  ;;  %vm2223_vm14 = vcmp.ge.f32.partialorder %v6629_v28, 0.0  ;;  %4287 = vpow2.f32 %v2798_v3  ;;  %v2357_v11 = vadd.f32 1.0, %v2325_v43 }
 0x3db   : > { %v2671_v2 = vmul.f32 %v6704_v49, %v2639_v37  ;;  %v4286_v41 = vpop.eup %4285  ;;  %v3788_v48 = vpack.c.bf16 %v6768_v36, %v6768_v36  ;;  %v2516_v25 = vadd.f32 1.4214138, %v2484_v33  ;;  %v6778_v55 = vadd.f32 %v6453_v60, %v6220_v5 }
 0x3dc   : > { %v2897_v10 = vmul.f32 %v2865_v23, %v2257_v26  ;;  %v2161_v14 = vmul.f32 0.5, %v6577_v4  ;;  %v2450_v50 = vadd.f32 -1.4531521, %v2418_v29  ;;  %4289 = vrcp.f32 %v2357_v11 }
 0x3dd   : > { %v2831_v56 = vmul.f32 %v4286_v41, %v2671_v2  ;;  %3119 = vst.msk [vmem:[%s6119_s10 + $0x50] sm:$0xf] %vm3098_vm8, %v3788_v48  ;;  %v2548_v7 = vmul.f32 %v6743_v42, %v2516_v25  ;;  %v2794_v44 = vmul.f32 1.442695, %v2738_v51  ;;  %v6785_v0 = vand.u32 2147483647, %v6766_v8 }
 0x3de   : > { %v2929_v49 = vadd.f32 1.0, %v2897_v10  ;;  %v2255_v45 = vsel %vm2223_vm14, 1.0, %v7382_v12  ;;  %v2482_v6 = vmul.f32 %v6762_v52, %v2450_v50  ;;  %v2709_v4 = vsub.f32 0.0, %v2293_v61 }
 0x3df   : > { %v2863_v5 = vsub.f32 1.0, %v2831_v56  ;;  %v2580_v3 = vadd.f32 -0.28449672, %v2548_v7  ;;  %v2323_v15 = vmul.f32 0.3275911, %v6785_v0  ;;  %v3162_v9 = vsel %vm377_vm0, %v6639_v30, 0.0 }
 0x3e0   : > { %v6791_v54 = vmul.f32 %v2929_v49, %v2161_v14  ;;  %v6795_v26 = vmul.f32 0.70710677, %v6778_v55  ;;  %v2514_v37 = vadd.f32 1.4214138, %v2482_v6  ;;  %v6801_v28 = vadd.f32 %v6453_v60, %v6233_v57 }
 0x3e1   : > { %v2895_v24 = vmul.f32 %v2863_v5, %v2255_v45  ;;  %v2612_v43 = vmul.f32 %v6743_v42, %v2580_v3  ;;  %4291 = vpow2.f32 %v2794_v44  ;;  %v2355_v23 = vadd.f32 1.0, %v2323_v15 }
 0x3e2   : > { %v3791_v51 = vpack.c.bf16 %v6791_v54, %v6791_v54  ;;  %v2159_v33 = vmul.f32 0.5, %v6608_v58  ;;  %v2546_v2 = vmul.f32 %v6762_v52, %v2514_v37  ;;  %v2741_v41 = vmul.f32 %v2709_v4, %v2293_v61 }
 0x3e3   : > { %v2927_v29 = vadd.f32 1.0, %v2895_v24  ;;  %v2644_v11 = vadd.f32 0.2548296, %v2612_v43  ;;  %4293 = vrcp.f32 %v2355_v23  ;;  %v6811_v57 = vand.u32 2147483647, %v6795_v26 }
 0x3e4   : > { %3122 = vst.msk [vmem:[%s6119_s10 + $0x5c] sm:$0xf] %vm3098_vm8, %v3791_v51  ;;  %v4288_v48 = vpop.eup %4287  ;;  %v3163_v10 = vadd.f32 %v3162_v9, %v3161_v16  ;;  %v2578_v14 = vadd.f32 -0.28449672, %v2546_v2  ;;  %v6816_v56 = vmul.f32 0.70710677, %v6801_v28 }
 0x3e5   : > { %v6813_v25 = vmul.f32 %v2927_v29, %v2159_v33  ;;  %v3164_v58 = vsel %vm377_vm0, %v6713_v21, 0.0  ;;  %v2676_v50 = vmul.f32 %v6743_v42, %v2644_v11  ;;  %v2328_v61 = vmul.f32 0.3275911, %v6811_v57  ;;  %v7412_v51 = vld [vmem:[#allocation13_spill] sm:$0xff] }
 0x3e6   : > { %v6822_v49 = vpop.eup %4289  ;;  %v3166_v7 = vsel %vm377_vm0, %v6598_v27, 0.0  ;;  %vm2228_vm15 = vcmp.ge.f32.partialorder %v6668_v32, 0.0  ;;  %v2610_v44 = vmul.f32 %v6762_v52, %v2578_v14  ;;  %v2800_v6 = vmul.f32 1.442695, %v2741_v41 }
 0x3e7   : > { %v3789_v16 = vpack.c.bf16 %v6813_v25, %v6813_v25  ;;  %v2836_v45 = vmul.f32 %v4288_v48, %v2676_v50  ;;  %v2421_v5 = vmul.f32 1.0614054, %v6822_v49  ;;  %v2360_v4 = vadd.f32 1.0, %v2328_v61 }
 0x3e8   : > { %v3165_v42 = vadd.f32 %v3164_v58, %v3163_v10  ;;  %v2642_v3 = vadd.f32 0.2548296, %v2610_v44  ;;  %v2707_v15 = vsub.f32 0.0, %v6785_v0  ;;  %v6835_v9 = vand.u32 2147483647, %v6816_v56 }
 0x3e9   : > { %3120 = vst.msk [vmem:[%s6119_s10 + $0x54] sm:$0xf] %vm3098_vm8, %v3789_v16  ;;  %v2868_v24 = vsub.f32 1.0, %v2836_v45  ;;  %v2453_v37 = vadd.f32 -1.4531521, %v2421_v5  ;;  %4295 = vrcp.f32 %v2360_v4  ;;  %v6839_v43 = vadd.f32 %v6453_v60, %v7412_v51 }
 0x3ea   : > { %v2164_v23 = vmul.f32 0.5, %v6650_v53  ;;  %v2260_v33 = vsel %vm2228_vm15, 1.0, %v7382_v12  ;;  %v2674_v29 = vmul.f32 %v6762_v52, %v2642_v3  ;;  %v2326_v2 = vmul.f32 0.3275911, %v6835_v9 }
 0x3eb   : > { %v4292_v11 = vpop.eup %4291  ;;  %v2900_v41 = vmul.f32 %v2868_v24, %v2260_v33  ;;  %v2162_v48 = vmul.f32 0.5, %v6660_v62  ;;  %vm2226_vm1 = vcmp.ge.f32.partialorder %v6676_v35, 0.0  ;;  %v2485_v10 = vmul.f32 %v6822_v49, %v2453_v37 }
 0x3ec   : > { %v3167_v14 = vadd.f32 %v3166_v7, %v3165_v42  ;;  %v2834_v58 = vmul.f32 %v4292_v11, %v2674_v29  ;;  %4297 = vpow2.f32 %v2800_v6  ;;  %v2358_v53 = vadd.f32 1.0, %v2326_v2  ;;  %v7413_v6 = vld [vmem:[#allocation7_spill] sm:$0xff] }
 0x3ed   : > { %v6850_v50 = vpop.eup %4293  ;;  %v2932_v32 = vadd.f32 1.0, %v2900_v41  ;;  %v2517_v61 = vadd.f32 1.4214138, %v2485_v10  ;;  %v2739_v52 = vmul.f32 %v2707_v15, %v6785_v0  ;;  %v6854_v16 = vmul.f32 0.70710677, %v6839_v43 }
 0x3ee   : > { %v2258_v44 = vsel %vm2226_vm1, 1.0, %v7382_v12  ;;  %v2866_v62 = vsub.f32 1.0, %v2834_v58  ;;  %v2419_v35 = vmul.f32 1.0614054, %v6850_v50  ;;  %4299 = vrcp.f32 %v2358_v53 }
 0x3ef   : > { %v6858_v45 = vmul.f32 %v2932_v32, %v2164_v23  ;;  %v2549_v7 = vmul.f32 %v6822_v49, %v2517_v61  ;;  %v2712_v5 = vsub.f32 0.0, %v6811_v57  ;;  %v6864_v4 = vadd.f32 %v6453_v60, %v7413_v6 }
 0x3f0   : > { %v3168_v0 = vsel %vm377_vm0, %v6691_v19, 0.0  ;;  %v2898_v42 = vmul.f32 %v2866_v62, %v2258_v44  ;;  %v2451_v3 = vadd.f32 -1.4531521, %v2419_v35  ;;  %v6869_v15 = vand.u32 2147483647, %v6854_v16 }
 0x3f1   : > { %v3169_v24 = vadd.f32 %v3168_v0, %v3167_v14  ;;  %v3794_v37 = vpack.c.bf16 %v6858_v45, %v6858_v45  ;;  %v2581_v51 = vadd.f32 -0.28449672, %v2549_v7  ;;  %v2796_v23 = vmul.f32 1.442695, %v2739_v52 }
 0x3f2   : > { %v3170_v33 = vsel %vm377_vm0, %v6768_v36, 0.0  ;;  %v2930_v29 = vadd.f32 1.0, %v2898_v42  ;;  %v2483_v60 = vmul.f32 %v6850_v50, %v2451_v3  ;;  %v2329_v2 = vmul.f32 0.3275911, %v6869_v15 }
 0x3f3   : > { %v6877_v11 = vpop.eup %4295  ;;  %3125 = vst.msk [vmem:[%s6119_s10 + $0x68] sm:$0xf] %vm3098_vm8, %v3794_v37  ;;  %v2613_v41 = vmul.f32 %v6822_v49, %v2581_v51  ;;  %v2744_v10 = vmul.f32 %v2712_v5, %v6811_v57  ;;  %v2710_v14 = vsub.f32 0.0, %v6835_v9  ;;  %v6885_v58 = vmul.f32 0.70710677, %v6864_v4 }
 0x3f4   : > { %v6887_v53 = vmul.f32 %v2930_v29, %v2162_v48  ;;  %v2515_v32 = vadd.f32 1.4214138, %v2483_v60  ;;  %v2424_v61 = vmul.f32 1.0614054, %v6877_v11  ;;  %v2361_v52 = vadd.f32 1.0, %v2329_v2 }
 0x3f5   : > { %vm2229_vm2 = vcmp.ge.f32.partialorder %v6739_v38, 0.0  ;;  %v2645_v44 = vadd.f32 0.2548296, %v2613_v41  ;;  %4301 = vpow2.f32 %v2796_v23  ;;  %v6892_v62 = vand.u32 2147483647, %v6885_v58 }
 0x3f6   : > { %v4298_v57 = vpop.eup %4297  ;;  %v3171_v35 = vadd.f32 %v3170_v33, %v3169_v24  ;;  %v3792_v7 = vpack.c.bf16 %v6887_v53, %v6887_v53  ;;  %v2547_v48 = vmul.f32 %v6850_v50, %v2515_v32  ;;  %v2456_v5 = vadd.f32 -1.4531521, %v2424_v61 }
 0x3f7   : > { %v3172_v6 = vsel %vm377_vm0, %v6813_v25, 0.0  ;;  %v2677_v0 = vmul.f32 %v6822_v49, %v2645_v44  ;;  %v2806_v42 = vmul.f32 1.442695, %v2744_v10  ;;  %4303 = vrcp.f32 %v2361_v52 }
 0x3f8   : > { %v6900_v3 = vpop.eup %4299  ;;  %3123 = vst.msk [vmem:[%s6119_s10 + $0x60] sm:$0xf] %vm3098_vm8, %v3792_v7  ;;  %v2579_v37 = vadd.f32 -0.28449672, %v2547_v48  ;;  %v2488_v24 = vmul.f32 %v6877_v11, %v2456_v5  ;;  %v2742_v51 = vmul.f32 %v2710_v14, %v6835_v9  ;;  %v2327_v23 = vmul.f32 0.3275911, %v6892_v62 }
 0x3f9   : > { %v2837_v33 = vmul.f32 %v4298_v57, %v2677_v0  ;;  %v2422_v29 = vmul.f32 1.0614054, %v6900_v3  ;;  %v2261_v49 = vsel %vm2229_vm2, 1.0, %v7382_v12  ;;  %v3173_v10 = vadd.f32 %v3172_v6, %v3171_v35 }
 0x3fa   : > { %v2611_v60 = vmul.f32 %v6850_v50, %v2579_v37  ;;  %v2520_v2 = vadd.f32 1.4214138, %v2488_v24  ;;  %v2359_v41 = vadd.f32 1.0, %v2327_v23  ;;  %4305 = vpow2.f32 %v2806_v42 }
 0x3fb   : > { %v2869_v32 = vsub.f32 1.0, %v2837_v33  ;;  %v2454_v61 = vadd.f32 -1.4531521, %v2422_v29  ;;  %v2802_v14 = vmul.f32 1.442695, %v2742_v51  ;;  %vm2227_vm3 = vcmp.ge.f32.partialorder %v6766_v8, 0.0 }
 0x3fc   : > { %v2643_v52 = vadd.f32 0.2548296, %v2611_v60  ;;  %v2552_v9 = vmul.f32 %v6877_v11, %v2520_v2  ;;  %4307 = vrcp.f32 %v2359_v41  ;;  %v2713_v38 = vsub.f32 0.0, %v6869_v15 }
 0x3fd   : > { %v2901_v44 = vmul.f32 %v2869_v32, %v2261_v49  ;;  %v2486_v57 = vmul.f32 %v6900_v3, %v2454_v61  ;;  %v3174_v7 = vsel %vm377_vm0, %v6734_v34, 0.0  ;;  %v2165_v0 = vmul.f32 0.5, %v6728_v46 }
 0x3fe   : > { %v2675_v35 = vmul.f32 %v6850_v50, %v2643_v52  ;;  %v2584_v48 = vadd.f32 -0.28449672, %v2552_v9  ;;  %v3175_v6 = vadd.f32 %v3174_v7, %v3173_v10  ;;  %v2259_v24 = vsel %vm2227_vm3, 1.0, %v7382_v12 }
 0x3ff   : > { %v4302_v5 = vpop.eup %4301  ;;  %v2933_v42 = vadd.f32 1.0, %v2901_v44  ;;  %v2518_v37 = vadd.f32 1.4214138, %v2486_v57  ;;  %4309 = vpow2.f32 %v2802_v14  ;;  %v2745_v50 = vmul.f32 %v2713_v38, %v6869_v15 }
 0x400   : > { %v2835_v51 = vmul.f32 %v4302_v5, %v2675_v35  ;;  %v2616_v8 = vmul.f32 %v6877_v11, %v2584_v48  ;;  %v2711_v49 = vsub.f32 0.0, %v6892_v62  ;;  %v3176_v46 = vsel %vm377_vm0, %v6791_v54, 0.0 }
 0x401   : > { %v6922_v23 = vpop.eup %4303  ;;  %v6924_v33 = vmul.f32 %v2933_v42, %v2165_v0  ;;  %v2550_v29 = vmul.f32 %v6900_v3, %v2518_v37  ;;  %v3177_v10 = vadd.f32 %v3176_v46, %v3175_v6  ;;  %vm2232_vm4 = vcmp.ge.f32.partialorder %v6795_v26, 0.0 }
 0x402   : > { %v2867_v60 = vsub.f32 1.0, %v2835_v51  ;;  %v2648_v2 = vadd.f32 0.2548296, %v2616_v8  ;;  %v2425_v41 = vmul.f32 1.0614054, %v6922_v23  ;;  %v3178_v52 = vsel %vm377_vm0, %v6887_v53, 0.0 }
 0x403   : > { %v3795_v32 = vpack.c.bf16 %v6924_v33, %v6924_v33  ;;  %v2582_v61 = vadd.f32 -0.28449672, %v2550_v29  ;;  %v2808_v38 = vmul.f32 1.442695, %v2745_v50  ;;  %v2743_v7 = vmul.f32 %v2711_v49, %v6892_v62 }
 0x404   : > { %v2899_v15 = vmul.f32 %v2867_v60, %v2259_v24  ;;  %v2680_v9 = vmul.f32 %v6877_v11, %v2648_v2  ;;  %v2457_v14 = vadd.f32 -1.4531521, %v2425_v41  ;;  %v4306_v44 = vpop.eup %4305  ;;  %v2163_v48 = vmul.f32 0.5, %v6750_v20 }
 0x405   : > { %3126 = vst.msk [vmem:[%s6119_s10 + $0x6c] sm:$0xf] %vm3098_vm8, %v3795_v32  ;;  %v2614_v57 = vmul.f32 %v6900_v3, %v2582_v61  ;;  %v3179_v42 = vadd.f32 %v3178_v52, %v3177_v10  ;;  %v2264_v11 = vsel %vm2232_vm4, 1.0, %v7382_v12  ;;  %vm2230_vm5 = vcmp.ge.f32.partialorder %v6816_v56, 0.0 }
 0x406   : > { %v4308_v35 = vpop.eup %4307  ;;  %v2931_v5 = vadd.f32 1.0, %v2899_v15  ;;  %v2840_v6 = vmul.f32 %v4306_v44, %v2680_v9  ;;  %v2489_v0 = vmul.f32 %v6922_v23, %v2457_v14  ;;  %4311 = vpow2.f32 %v2808_v38 }
 0x407   : > { %v2646_v37 = vadd.f32 0.2548296, %v2614_v57  ;;  %v2423_v24 = vmul.f32 1.0614054, %v4308_v35  ;;  %v2804_v50 = vmul.f32 1.442695, %v2743_v7 }
 0x408   : > { %v6947_v51 = vmul.f32 %v2931_v5, %v2163_v48  ;;  %v2872_v8 = vsub.f32 1.0, %v2840_v6  ;;  %v2521_v62 = vadd.f32 1.4214138, %v2489_v0  ;;  %v3182_v61 = vsel %vm377_vm0, %v6858_v45, 0.0 }
 0x409   : > { %v2678_v20 = vmul.f32 %v6900_v3, %v2646_v37  ;;  %v2455_v29 = vadd.f32 -1.4531521, %v2423_v24  ;;  %v4310_v49 = vpop.eup %4309  ;;  %v2168_v3 = vmul.f32 0.5, %v6778_v55  ;;  %v2262_v14 = vsel %vm2230_vm5, 1.0, %v7382_v12 }
 0x40a   : > { %v3793_v46 = vpack.c.bf16 %v6947_v51, %v6947_v51  ;;  %v3180_v26 = vsel %vm377_vm0, %v6947_v51, 0.0  ;;  %v2904_v60 = vmul.f32 %v2872_v8, %v2264_v11  ;;  %v2553_v2 = vmul.f32 %v6922_v23, %v2521_v62 }
 0x40b   : > { %v3181_v41 = vadd.f32 %v3180_v26, %v3179_v42  ;;  %v2838_v10 = vmul.f32 %v4310_v49, %v2678_v20  ;;  %v2487_v32 = vmul.f32 %v4308_v35, %v2455_v29  ;;  %v3184_v38 = vsel %vm377_vm0, %v6924_v33, 0.0 }
 0x40c   : > { %3124 = vst.msk [vmem:[%s6119_s10 + $0x64] sm:$0xf] %vm3098_vm8, %v3793_v46  ;;  %v2936_v52 = vadd.f32 1.0, %v2904_v60  ;;  %v2585_v15 = vadd.f32 -0.28449672, %v2553_v2  ;;  %4313 = vpow2.f32 %v2804_v50  ;;  %v2166_v11 = vmul.f32 0.5, %v6801_v28 }
 0x40d   : > { %v3183_v9 = vadd.f32 %v3182_v61, %v3181_v41  ;;  %v2870_v44 = vsub.f32 1.0, %v2838_v10  ;;  %v2519_v57 = vadd.f32 1.4214138, %v2487_v32  ;;  %vm2233_vm6 = vcmp.ge.f32.partialorder %v6854_v16, 0.0 }
 0x40e   : > { %v2968_v7 = vmul.f32 %v2936_v52, %v2168_v3  ;;  %v2617_v48 = vmul.f32 %v6922_v23, %v2585_v15  ;;  %v2265_v28 = vsel %vm2233_vm6, 1.0, %v7382_v12  ;;  %vm2231_vm7 = vcmp.ge.f32.partialorder %v6885_v58, 0.0 }
 0x40f   : > { %v2902_v5 = vmul.f32 %v2870_v44, %v2262_v14  ;;  %v3185_v6 = vadd.f32 %v3184_v38, %v3183_v9  ;;  %v2551_v55 = vmul.f32 %v4308_v35, %v2519_v57  ;;  %v2169_v16 = vmul.f32 0.5, %v6839_v43 }
 0x410   : > { %v3798_v0 = vpack.c.bf16 %v2968_v7, %v2968_v7  ;;  %v2649_v42 = vadd.f32 0.2548296, %v2617_v48  ;;  %v4312_v8 = vpop.eup %4311  ;;  %v2263_v52 = vsel %vm2231_vm7, 1.0, %v7382_v12  ;;  %v2167_v14 = vmul.f32 0.5, %v6864_v4 }
 0x411   : > { %v2934_v56 = vadd.f32 1.0, %v2902_v5  ;;  %v2583_v37 = vadd.f32 -0.28449672, %v2551_v55  ;;  %v3190_v48 = vsel %vm377_vm0, %v2968_v7, 0.0 }
 0x412   : > { %3129 = vst.msk [vmem:[%s6119_s10 + $0x78] sm:$0xf] %vm3098_vm8, %v3798_v0  ;;  %v2681_v24 = vmul.f32 %v6922_v23, %v2649_v42 }
 0x413   : > { %v2966_v62 = vmul.f32 %v2934_v56, %v2166_v11  ;;  %v2615_v20 = vmul.f32 %v4308_v35, %v2583_v37 }
 0x414   : > { %v2841_v29 = vmul.f32 %v4312_v8, %v2681_v24 }
 0x415   : > { %v3796_v50 = vpack.c.bf16 %v2966_v62, %v2966_v62  ;;  %v3186_v49 = vsel %vm377_vm0, %v2966_v62, 0.0  ;;  %v2647_v46 = vadd.f32 0.2548296, %v2615_v20 }
 0x416   : > { %v3187_v26 = vadd.f32 %v3186_v49, %v3185_v6  ;;  %v2873_v60 = vsub.f32 1.0, %v2841_v29  ;;  %v4314_v41 = vpop.eup %4313  ;;  %v7414_v49 = vld [vmem:[#allocation4_spill] sm:$0xff] }
 0x417   : > { %3127 = vst.msk [vmem:[%s6119_s10 + $0x70] sm:$0xf] %vm3098_vm8, %v3796_v50  ;;  %v2679_v2 = vmul.f32 %v4308_v35, %v2647_v46  ;;  %v7415_v46 = vld [vmem:[#allocation6_spill] sm:$0xff] }
 0x418   : > { %v2905_v23 = vmul.f32 %v2873_v60, %v2265_v28  ;;  %v7417_v60 = vld [vmem:[#allocation5_spill] sm:$0xff] }
 0x419   : > { %v2839_v10 = vmul.f32 %v4314_v41, %v2679_v2  ;;  %v7418_v41 = vld [vmem:[#allocation11_spill] sm:$0xff] }
 0x41a   : > { %v2937_v32 = vadd.f32 1.0, %v2905_v23 }
 0x41b   : > { %v2871_v61 = vsub.f32 1.0, %v2839_v10 }
 0x41c   : > { %v2969_v3 = vmul.f32 %v2937_v32, %v2169_v16 }
 0x41d   : > { %v2903_v15 = vmul.f32 %v2871_v61, %v2263_v52 }
 0x41e   : > { %v3799_v9 = vpack.c.bf16 %v2969_v3, %v2969_v3  ;;  %v3192_v5 = vsel %vm377_vm0, %v2969_v3, 0.0 }
 0x41f   : > { %v2935_v44 = vadd.f32 1.0, %v2903_v15 }
 0x420   : > { %3130 = vst.msk [vmem:[%s6119_s10 + $0x7c] sm:$0xf] %vm3098_vm8, %v3799_v9 }
 0x421   : > { %v2967_v35 = vmul.f32 %v2935_v44, %v2167_v14 }
 0x423   : > { %v3797_v57 = vpack.c.bf16 %v2967_v35, %v2967_v35  ;;  %v3188_v58 = vsel %vm377_vm0, %v2967_v35, 0.0 }
 0x424   : > { %v3189_v38 = vadd.f32 %v3188_v58, %v3187_v26 }
 0x425   : > { %3128 = vst.msk [vmem:[%s6119_s10 + $0x74] sm:$0xf] %vm3098_vm8, %v3797_v57 }
 0x426   : > { %v3191_v43 = vadd.f32 %v3190_v48, %v3189_v38 }
 0x428   : > { %v3193_v12 = vadd.f32 %v3192_v5, %v3191_v43 }
 0x42a   : > { %v3194_v6 = vrot.slane %v3193_v12, 4 }
 0x42c   : > { %v3195_v55 = vadd.f32 %v3194_v6, %v3193_v12 }
 0x42e   : > { %v3196_v0 = vrot.slane %v3195_v55, 2 }
 0x430   : > { %v3197_v4 = vadd.f32 %v3196_v0, %v3195_v55 }
 0x432   : > { %v3198_v42 = vrot.slane %v3197_v4, 1 }
 0x434   : > { %v3199_v11 = vadd.f32 %v3198_v42, %v3197_v4 }
 0x436   : > { %v6987_v56 = vmul.f32 0.00390625, %v3199_v11 }
 0x438   : > { %v6991_v37 = vsub.f32 %v6947_v51, %v6987_v56  ;;  %v6995_v24 = vsub.f32 %v6924_v33, %v6987_v56  ;;  %v6998_v8 = vsub.f32 %v2966_v62, %v6987_v56  ;;  %v7001_v20 = vsub.f32 %v2967_v35, %v6987_v56  ;;  %v7416_v62 = vld [vmem:[#allocation3_spill] sm:$0xff] }
 0x439   : > { %v7004_v29 = vsub.f32 %v2968_v7, %v6987_v56  ;;  %v7007_v50 = vsub.f32 %v2969_v3, %v6987_v56  ;;  %v7011_v51 = vsub.f32 %v7414_v49, %v6987_v56  ;;  %v7015_v33 = vsub.f32 %v7415_v46, %v6987_v56 }
 0x43a   : > { %v7019_v26 = vsub.f32 %v7416_v62, %v6987_v56  ;;  %v7023_v28 = vsub.f32 %v7417_v60, %v6987_v56  ;;  %v7031_v23 = vsub.f32 %v7418_v41, %v6987_v56  ;;  %v7037_v16 = vsub.f32 %v6279_v40, %v6987_v56 }
 0x43b   : > { %v3233_v7 = vmul.f32 %v7011_v51, %v7011_v51  ;;  %v3234_v2 = vmul.f32 %v7015_v33, %v7015_v33  ;;  %v7045_v15 = vsub.f32 %v6198_v63, %v6987_v56  ;;  %v7052_v40 = vsub.f32 %v6235_v17, %v6987_v56 }
 0x43c   : > { %v3235_v10 = vmul.f32 %v7019_v26, %v7019_v26  ;;  %v3236_v32 = vmul.f32 %v7023_v28, %v7023_v28  ;;  %v3237_v9 = vmul.f32 %v7031_v23, %v7031_v23  ;;  %v3238_v35 = vmul.f32 %v7037_v16, %v7037_v16 }
 0x43d   : > { %v3265_v61 = vsel %vm377_vm0, %v3233_v7, 0.0  ;;  %v3266_v3 = vsel %vm377_vm0, %v3234_v2, 0.0  ;;  %v7059_v63 = vsub.f32 %v6386_v13, %v6987_v56  ;;  %v3239_v38 = vmul.f32 %v7045_v15, %v7045_v15 }
 0x43e   : > { %v3267_v52 = vadd.f32 %v3266_v3, %v3265_v61  ;;  %v3268_v14 = vsel %vm377_vm0, %v3235_v10, 0.0  ;;  %v3270_v57 = vsel %vm377_vm0, %v3236_v32, 0.0  ;;  %v3272_v48 = vsel %vm377_vm0, %v3237_v9, 0.0 }
 0x43f   : > { %v7066_v17 = vsub.f32 %v6441_v59, %v6987_v56  ;;  %v3240_v5 = vmul.f32 %v7052_v40, %v7052_v40  ;;  %v3274_v12 = vsel %vm377_vm0, %v3238_v35, 0.0  ;;  %v7073_v13 = vsub.f32 %v6339_v1, %v6987_v56 }
 0x440   : > { %v3269_v44 = vadd.f32 %v3268_v14, %v3267_v52  ;;  %v3241_v55 = vmul.f32 %v7059_v63, %v7059_v63  ;;  %v3276_v0 = vsel %vm377_vm0, %v3239_v38, 0.0  ;;  %v7080_v59 = vsub.f32 %v6416_v31, %v6987_v56 }
 0x441   : > { %v3242_v42 = vmul.f32 %v7066_v17, %v7066_v17  ;;  %v3278_v11 = vsel %vm377_vm0, %v3240_v5, 0.0  ;;  %v7087_v1 = vsub.f32 %v6486_v18, %v6987_v56  ;;  %v3243_v46 = vmul.f32 %v7073_v13, %v7073_v13 }
 0x442   : > { %v3271_v58 = vadd.f32 %v3270_v57, %v3269_v44  ;;  %v3280_v62 = vsel %vm377_vm0, %v3241_v55, 0.0  ;;  %v7094_v31 = vsub.f32 %v6538_v47, %v6987_v56  ;;  %v3244_v7 = vmul.f32 %v7080_v59, %v7080_v59 }
 0x443   : > { %v3282_v2 = vsel %vm377_vm0, %v3242_v42, 0.0  ;;  %v7101_v18 = vsub.f32 %v6444_v22, %v6987_v56  ;;  %v3245_v10 = vmul.f32 %v7087_v1, %v7087_v1  ;;  %v3284_v32 = vsel %vm377_vm0, %v3243_v46, 0.0 }
 0x444   : > { %v3273_v43 = vadd.f32 %v3272_v48, %v3271_v58  ;;  %v7108_v47 = vsub.f32 %v6521_v39, %v6987_v56  ;;  %v3246_v3 = vmul.f32 %v7094_v31, %v7094_v31  ;;  %v3286_v52 = vsel %vm377_vm0, %v3244_v7, 0.0 }
 0x445   : > { %v7115_v22 = vsub.f32 %v6639_v30, %v6987_v56  ;;  %v3247_v14 = vmul.f32 %v7101_v18, %v7101_v18  ;;  %v3288_v44 = vsel %vm377_vm0, %v3245_v10, 0.0  ;;  %v7122_v39 = vsub.f32 %v6713_v21, %v6987_v56 }
 0x446   : > { %v3275_v6 = vadd.f32 %v3274_v12, %v3273_v43  ;;  %v3248_v57 = vmul.f32 %v7108_v47, %v7108_v47  ;;  %v3290_v58 = vsel %vm377_vm0, %v3246_v3, 0.0  ;;  %v7129_v30 = vsub.f32 %v6598_v27, %v6987_v56 }
 0x447   : > { %v3249_v48 = vmul.f32 %v7115_v22, %v7115_v22  ;;  %v3292_v43 = vsel %vm377_vm0, %v3247_v14, 0.0  ;;  %v7136_v21 = vsub.f32 %v6691_v19, %v6987_v56  ;;  %v3250_v12 = vmul.f32 %v7122_v39, %v7122_v39 }
 0x448   : > { %v3277_v4 = vadd.f32 %v3276_v0, %v3275_v6  ;;  %v3294_v6 = vsel %vm377_vm0, %v3248_v57, 0.0  ;;  %v7143_v27 = vsub.f32 %v6768_v36, %v6987_v56  ;;  %v3251_v0 = vmul.f32 %v7129_v30, %v7129_v30 }
 0x449   : > { %v7150_v19 = vsub.f32 %v6813_v25, %v6987_v56  ;;  %v7157_v36 = vsub.f32 %v6734_v34, %v6987_v56  ;;  %v7164_v25 = vsub.f32 %v6791_v54, %v6987_v56  ;;  %v7171_v34 = vsub.f32 %v6887_v53, %v6987_v56 }
 0x44a   : > { %v3279_v49 = vadd.f32 %v3278_v11, %v3277_v4  ;;  %v3296_v4 = vsel %vm377_vm0, %v3249_v48, 0.0  ;;  %v3252_v11 = vmul.f32 %v7136_v21, %v7136_v21  ;;  %v7181_v14 = vsub.f32 %v6858_v45, %v6987_v56 }
 0x44b   : > { %v3256_v54 = vmul.f32 %v7164_v25, %v7164_v25  ;;  %v3257_v53 = vmul.f32 %v7171_v34, %v7171_v34  ;;  %v3258_v57 = vmul.f32 %v6991_v37, %v6991_v37  ;;  %v3260_v45 = vmul.f32 %v6995_v24, %v6995_v24 }
 0x44c   : > { %v3281_v60 = vadd.f32 %v3280_v62, %v3279_v49  ;;  %v3298_v49 = vsel %vm377_vm0, %v3250_v12, 0.0  ;;  %v3253_v62 = vmul.f32 %v7143_v27, %v7143_v27  ;;  %v3259_v48 = vmul.f32 %v7181_v14, %v7181_v14 }
 0x44d   : > { %v3314_v56 = vsel %vm377_vm0, %v3258_v57, 0.0 }
 0x44e   : > { %v3283_v41 = vadd.f32 %v3282_v2, %v3281_v60  ;;  %v3300_v60 = vsel %vm377_vm0, %v3251_v0, 0.0  ;;  %v3254_v2 = vmul.f32 %v7150_v19, %v7150_v19 }
 0x450   : > { %v3285_v61 = vadd.f32 %v3284_v32, %v3283_v41  ;;  %v3302_v41 = vsel %vm377_vm0, %v3252_v11, 0.0  ;;  %v3255_v32 = vmul.f32 %v7157_v36, %v7157_v36 }
 0x452   : > { %v3287_v9 = vadd.f32 %v3286_v52, %v3285_v61  ;;  %v3304_v61 = vsel %vm377_vm0, %v3253_v62, 0.0  ;;  %v3306_v52 = vsel %vm377_vm0, %v3254_v2, 0.0 }
 0x454   : > { %v3289_v35 = vadd.f32 %v3288_v44, %v3287_v9  ;;  %v3308_v44 = vsel %vm377_vm0, %v3255_v32, 0.0 }
 0x456   : > { %v3291_v38 = vadd.f32 %v3290_v58, %v3289_v35  ;;  %v3310_v58 = vsel %vm377_vm0, %v3256_v54, 0.0 }
 0x458   : > { %v3293_v5 = vadd.f32 %v3292_v43, %v3291_v38  ;;  %v3312_v43 = vsel %vm377_vm0, %v3257_v53, 0.0 }
 0x45a   : > { %v3295_v55 = vadd.f32 %v3294_v6, %v3293_v5  ;;  %v3261_v6 = vmul.f32 %v6998_v8, %v6998_v8 }
 0x45c   : > { %v3297_v42 = vadd.f32 %v3296_v4, %v3295_v55  ;;  %v3316_v55 = vsel %vm377_vm0, %v3259_v48, 0.0  ;;  %v3262_v4 = vmul.f32 %v7001_v20, %v7001_v20 }
 0x45e   : > { %v3299_v46 = vadd.f32 %v3298_v49, %v3297_v42  ;;  %v3318_v42 = vsel %vm377_vm0, %v3260_v45, 0.0  ;;  %v3263_v49 = vmul.f32 %v7004_v29, %v7004_v29 }
 0x460   : > { %v3301_v7 = vadd.f32 %v3300_v60, %v3299_v46  ;;  %v3320_v46 = vsel %vm377_vm0, %v3261_v6, 0.0  ;;  %v3264_v60 = vmul.f32 %v7007_v50, %v7007_v50 }
 0x462   : > { %v3303_v10 = vadd.f32 %v3302_v41, %v3301_v7  ;;  %v3322_v7 = vsel %vm377_vm0, %v3262_v4, 0.0  ;;  %v3324_v41 = vsel %vm377_vm0, %v3263_v49, 0.0  ;;  %v3326_v32 = vsel %vm377_vm0, %v3264_v60, 0.0 }
 0x464   : > { %v3305_v3 = vadd.f32 %v3304_v61, %v3303_v10 }
 0x466   : > { %v3307_v9 = vadd.f32 %v3306_v52, %v3305_v3 }
 0x468   : > { %v3309_v35 = vadd.f32 %v3308_v44, %v3307_v9 }
 0x46a   : > { %v3311_v38 = vadd.f32 %v3310_v58, %v3309_v35 }
 0x46c   : > { %v3313_v5 = vadd.f32 %v3312_v43, %v3311_v38 }
 0x46e   : > { %v3315_v12 = vadd.f32 %v3314_v56, %v3313_v5 }
 0x470   : > { %v3317_v0 = vadd.f32 %v3316_v55, %v3315_v12 }
 0x472   : > { %v3319_v11 = vadd.f32 %v3318_v42, %v3317_v0 }
 0x474   : > { %v3321_v62 = vadd.f32 %v3320_v46, %v3319_v11 }
 0x476   : > { %v3323_v2 = vadd.f32 %v3322_v7, %v3321_v62 }
 0x478   : > { %v3325_v10 = vadd.f32 %v3324_v41, %v3323_v2 }
 0x47a   : > { %v3327_v61 = vadd.f32 %v3326_v32, %v3325_v10 }
 0x47c   : > { %v3328_v3 = vrot.slane %v3327_v61, 4 }
 0x47e   : > { %v3329_v54 = vadd.f32 %v3328_v3, %v3327_v61 }
 0x480   : > { %v3330_v52 = vrot.slane %v3329_v54, 2 }
 0x482   : > { %v3331_v9 = vadd.f32 %v3330_v52, %v3329_v54 }
 0x484   : > { %v3332_v53 = vrot.slane %v3331_v9, 1 }
 0x486   : > { %v3333_v44 = vadd.f32 %v3332_v53, %v3331_v9 }
 0x488   : > { %v3334_v35 = vmul.f32 0.00390625, %v3333_v44 }
 0x48a   : > { %v3335_v57 = vadd.f32 1e-05, %v3334_v35 }
 0x48c   : > { %4315 = vrsqrt.f32 %v3335_v57 }
 0x496   : > { %v4316_v58 = vpop.eup %4315 }
 0x497   : > { %v3337_v38 = vmul.f32 %v4316_v58, %v7011_v51  ;;  %v3338_v48 = vmul.f32 %v4316_v58, %v7015_v33  ;;  %v3339_v43 = vmul.f32 %v4316_v58, %v7019_v26  ;;  %v3340_v5 = vmul.f32 %v4316_v58, %v7023_v28 }
 0x498   : > { %v3341_v45 = vmul.f32 %v4316_v58, %v7031_v23  ;;  %v3342_v56 = vmul.f32 %v4316_v58, %v7037_v16  ;;  %v3343_v12 = vmul.f32 %v4316_v58, %v7045_v15  ;;  %v3344_v6 = vmul.f32 %v4316_v58, %v7052_v40 }
 0x499   : > { %v3345_v55 = vmul.f32 %v4316_v58, %v7059_v63  ;;  %v3346_v0 = vmul.f32 %v4316_v58, %v7066_v17  ;;  %v3347_v51 = vmul.f32 %v4316_v58, %v7073_v13  ;;  %v3348_v33 = vmul.f32 %v4316_v58, %v7080_v59 }
 0x49a   : > { %v3349_v26 = vmul.f32 %v4316_v58, %v7087_v1  ;;  %v3350_v28 = vmul.f32 %v4316_v58, %v7094_v31  ;;  %v3351_v23 = vmul.f32 %v4316_v58, %v7101_v18  ;;  %v3352_v16 = vmul.f32 %v4316_v58, %v7108_v47 }
 0x49b   : > { %v3353_v15 = vmul.f32 %v4316_v58, %v7115_v22  ;;  %v3354_v40 = vmul.f32 %v4316_v58, %v7122_v39  ;;  %v3355_v63 = vmul.f32 %v4316_v58, %v7129_v30  ;;  %v3356_v17 = vmul.f32 %v4316_v58, %v7136_v21 }
 0x49c   : > { %v7230_v13 = vmul.f32 %v4316_v58, %v7143_v27  ;;  %v7233_v59 = vmul.f32 %v4316_v58, %v7150_v19  ;;  %v7236_v1 = vmul.f32 %v4316_v58, %v7157_v36  ;;  %v7239_v31 = vmul.f32 %v4316_v58, %v7164_v25 }
 0x49d   : > { %v7242_v18 = vmul.f32 %v4316_v58, %v7171_v34  ;;  %v7245_v47 = vmul.f32 %v4316_v58, %v6991_v37  ;;  %v7248_v22 = vmul.f32 %v4316_v58, %v7181_v14  ;;  %v7251_v39 = vmul.f32 %v4316_v58, %v6995_v24 }
 0x49e   : > { %v7260_v30 = vmul.f32 %v4316_v58, %v6998_v8  ;;  %v7263_v21 = vmul.f32 %v4316_v58, %v7001_v20  ;;  %v7266_v37 = vmul.f32 %v4316_v58, %v7004_v29  ;;  %v7269_v24 = vmul.f32 %v4316_v58, %v7007_v50 }
 0x49f   : > { %v3800_v27 = vpack.c.bf16 %v3337_v38, %v3337_v38  ;;  %v3801_v19 = vpack.c.bf16 %v3338_v48, %v3338_v48  ;;  %v3802_v36 = vpack.c.bf16 %v3339_v43, %v3339_v43  ;;  %v3803_v25 = vpack.c.bf16 %v3340_v5, %v3340_v5 }
 0x4a0   : > { %v3804_v34 = vpack.c.bf16 %v3341_v45, %v3341_v45  ;;  %v3805_v8 = vpack.c.bf16 %v3342_v56, %v3342_v56  ;;  %v3806_v14 = vpack.c.bf16 %v3343_v12, %v3343_v12  ;;  %v3807_v20 = vpack.c.bf16 %v3344_v6, %v3344_v6 }
 0x4a1   : > { %v3808_v4 = vpack.c.bf16 %v3345_v55, %v3345_v55  ;;  %v3809_v29 = vpack.c.bf16 %v3346_v0, %v3346_v0  ;;  %v3810_v42 = vpack.c.bf16 %v3347_v51, %v3347_v51  ;;  %v3811_v11 = vpack.c.bf16 %v3348_v33, %v3348_v33  ;;  %3497 = vst.msk [vmem:[%s7257_s15] sm:$0xf] %vm3098_vm8, %v3800_v27 }
 0x4a2   : > { %3498 = vst.msk [vmem:[%s7257_s15 + $0x4] sm:$0xf] %vm3098_vm8, %v3801_v19  ;;  %3499 = vst.msk [vmem:[%s7257_s15 + $0x8] sm:$0xf] %vm3098_vm8, %v3802_v36  ;;  %v3812_v50 = vpack.c.bf16 %v3349_v26, %v3349_v26  ;;  %v3813_v49 = vpack.c.bf16 %v3350_v28, %v3350_v28  ;;  %v3814_v46 = vpack.c.bf16 %v3351_v23, %v3351_v23 }
 0x4a3   : > { %3500 = vst.msk [vmem:[%s7257_s15 + $0xc] sm:$0xf] %vm3098_vm8, %v3803_v25  ;;  %v3815_v62 = vpack.c.bf16 %v3352_v16, %v3352_v16  ;;  %3501 = vst.msk [vmem:[%s7257_s15 + $0x10] sm:$0xf] %vm3098_vm8, %v3804_v34  ;;  %v3816_v60 = vpack.c.bf16 %v3353_v15, %v3353_v15  ;;  %v3817_v7 = vpack.c.bf16 %v3354_v40, %v3354_v40 }
 0x4a4   : > { %3502 = vst.msk [vmem:[%s7257_s15 + $0x14] sm:$0xf] %vm3098_vm8, %v3805_v8  ;;  %3503 = vst.msk [vmem:[%s7257_s15 + $0x18] sm:$0xf] %vm3098_vm8, %v3806_v14  ;;  %v3818_v2 = vpack.c.bf16 %v3355_v63, %v3355_v63  ;;  %v3819_v41 = vpack.c.bf16 %v3356_v17, %v3356_v17  ;;  %v3820_v10 = vpack.c.bf16 %v7230_v13, %v7230_v13 }
 0x4a5   : > { %3504 = vst.msk [vmem:[%s7257_s15 + $0x1c] sm:$0xf] %vm3098_vm8, %v3807_v20  ;;  %3505 = vst.msk [vmem:[%s7257_s15 + $0x20] sm:$0xf] %vm3098_vm8, %v3808_v4  ;;  %v3821_v32 = vpack.c.bf16 %v7233_v59, %v7233_v59  ;;  %v3822_v61 = vpack.c.bf16 %v7236_v1, %v7236_v1  ;;  %v3823_v3 = vpack.c.bf16 %v7239_v31, %v7239_v31 }
 0x4a6   : > { %3506 = vst.msk [vmem:[%s7257_s15 + $0x24] sm:$0xf] %vm3098_vm8, %v3809_v29  ;;  %3507 = vst.msk [vmem:[%s7257_s15 + $0x28] sm:$0xf] %vm3098_vm8, %v3810_v42  ;;  %v3824_v54 = vpack.c.bf16 %v7242_v18, %v7242_v18  ;;  %v3825_v52 = vpack.c.bf16 %v7245_v47, %v7245_v47  ;;  %v3826_v9 = vpack.c.bf16 %v7248_v22, %v7248_v22 }
 0x4a7   : > { %3508 = vst.msk [vmem:[%s7257_s15 + $0x2c] sm:$0xf] %vm3098_vm8, %v3811_v11  ;;  %3509 = vst.msk [vmem:[%s7257_s15 + $0x30] sm:$0xf] %vm3098_vm8, %v3812_v50  ;;  %v3827_v53 = vpack.c.bf16 %v7251_v39, %v7251_v39  ;;  %v3828_v44 = vpack.c.bf16 %v7260_v30, %v7260_v30  ;;  %v3829_v35 = vpack.c.bf16 %v7263_v21, %v7263_v21 }
 0x4a8   : > { %3510 = vst.msk [vmem:[%s7257_s15 + $0x34] sm:$0xf] %vm3098_vm8, %v3813_v49  ;;  %3511 = vst.msk [vmem:[%s7257_s15 + $0x38] sm:$0xf] %vm3098_vm8, %v3814_v46  ;;  %v3830_v57 = vpack.c.bf16 %v7266_v37, %v7266_v37  ;;  %v3831_v58 = vpack.c.bf16 %v7269_v24, %v7269_v24 }
 0x4a9   : > { %3512 = vst.msk [vmem:[%s7257_s15 + $0x3c] sm:$0xf] %vm3098_vm8, %v3815_v62  ;;  %3513 = vst.msk [vmem:[%s7257_s15 + $0x40] sm:$0xf] %vm3098_vm8, %v3816_v60 }
 0x4aa   : > { %3514 = vst.msk [vmem:[%s7257_s15 + $0x44] sm:$0xf] %vm3098_vm8, %v3817_v7  ;;  %3515 = vst.msk [vmem:[%s7257_s15 + $0x48] sm:$0xf] %vm3098_vm8, %v3818_v2 }
 0x4ab   : > { %3516 = vst.msk [vmem:[%s7257_s15 + $0x4c] sm:$0xf] %vm3098_vm8, %v3819_v41  ;;  %3517 = vst.msk [vmem:[%s7257_s15 + $0x50] sm:$0xf] %vm3098_vm8, %v3820_v10 }
 0x4ac   : > { %3518 = vst.msk [vmem:[%s7257_s15 + $0x54] sm:$0xf] %vm3098_vm8, %v3821_v32  ;;  %3519 = vst.msk [vmem:[%s7257_s15 + $0x58] sm:$0xf] %vm3098_vm8, %v3822_v61 }
 0x4ad   : > { %3520 = vst.msk [vmem:[%s7257_s15 + $0x5c] sm:$0xf] %vm3098_vm8, %v3823_v3  ;;  %3521 = vst.msk [vmem:[%s7257_s15 + $0x60] sm:$0xf] %vm3098_vm8, %v3824_v54 }
 0x4ae   : > { %3522 = vst.msk [vmem:[%s7257_s15 + $0x64] sm:$0xf] %vm3098_vm8, %v3825_v52  ;;  %3523 = vst.msk [vmem:[%s7257_s15 + $0x68] sm:$0xf] %vm3098_vm8, %v3826_v9 }
 0x4af   : > { %3524 = vst.msk [vmem:[%s7257_s15 + $0x6c] sm:$0xf] %vm3098_vm8, %v3827_v53  ;;  %3525 = vst.msk [vmem:[%s7257_s15 + $0x70] sm:$0xf] %vm3098_vm8, %v3828_v44 }
 0x4b0   : > { %3526 = vst.msk [vmem:[%s7257_s15 + $0x74] sm:$0xf] %vm3098_vm8, %v3829_v35  ;;  %3527 = vst.msk [vmem:[%s7257_s15 + $0x78] sm:$0xf] %vm3098_vm8, %v3830_v57 }
 0x4b1   : > { %3528 = vst.msk [vmem:[%s7257_s15 + $0x7c] sm:$0xf] %vm3098_vm8, %v3831_v58 }
 0x4b2 PF: > { %s18_s24 = sadd.s32 1, %s4325_s24  }
 0x4b3   : > { %p15_p4 = scmp.ge.s32.totalorder %s18_s24, 4  }
 0x4b5   :  { %17 = sbr.rel (!%p15_p4) target bundleno = 1 (0x1), region = 89 }

// kernel: fno2d_forward.17
= control target key start
LH: loop header
LB: loop body
LE: loop exit
PB: predicated region body
PF: predicated region fallthrough
CT: control target
= control target key end

     0   :  { %s4425_s15 = smov 0   ;;  %s7219_s0 = inlined_call_operand.vmem [shape: bf16[2,256,32], index: 0, kind: input, shape index: {}]   ;;  %s7220_s1 = inlined_call_operand.vmem [shape: bf16[2,256,32], index: 1, kind: input, shape index: {}]   ;;  %s7221_s2 = inlined_call_operand.vmem [shape: bf16[32,32], index: 2, kind: input, shape index: {}]   ;;  %s7222_s3 = inlined_call_operand.vmem [shape: f32[1,32], index: 3, kind: input, shape index: {}]   ;;  %s7223_s4 = inlined_call_operand.vmem [shape: bf16[64,32], index: 4, kind: input, shape index: {}]   ;;  %s7224_s5 = inlined_call_operand.vmem [shape: f32[1,32], index: 5, kind: input, shape index: {}]   ;;  %s7225_s6 = inlined_call_operand.vmem [shape: bf16[32,128], index: 6, kind: input, shape index: {}]   ;;  %s7226_s7 = inlined_call_operand.vmem [shape: f32[1,128], index: 7, kind: input, shape index: {}]   ;;  %s7227_s8 = inlined_call_operand.vmem [shape: bf16[128,1], index: 8, kind: input, shape index: {}]   ;;  %s7228_s9 = inlined_call_operand.<no memory space> [shape: f32[1,1], index: 9, kind: input, shape index: {}]   ;;  %s7229_s10 = inlined_call_operand.vmem [shape: f32[2,256,1], index: 10, kind: output, shape index: {}]  }
   0x1   :  { %v15_v0 = vstv %s7228_s9 }
   0x2   :  { %16 = vst [vmem:[#allocation2] sm:$0x1] %v15_v0 }
   0x3 LB: > { %s3636_s16 = sadd.s32 4294967295, %s4363_s15   ;;  %p3640_p0 = scmp.ge.s32.totalorder %s4363_s15, 1  ;;  %s4363_s15 = sphi %s4425_s15, %s22_s15  }
   0x4   : > { %p324_p1 = scmp.lt.s32.totalorder %s4363_s15, 3 }
   0x6   : > { %p325_p2 = pnand %p3640_p0, %p324_p1 }
   0x8   : > { %328 = sbr.rel (%p325_p2) target bundleno = 1488 (0x5d0), region = 60 }
   0xf   : > { %v4065_v1 = vld [vmem:[%s7221_s2] sm:$0xff]   ;;  %p367_p3 = scmp.lt.s32.totalorder %s3636_s16, 1  ;;  %v4066_v2 = vld [vmem:[%s7221_s2 + $0x8] sm:$0xff]   ;;  %vm447_vm0 = vcmask 261120   ;;  %s4365_s27 = smov 32  }
  0x10   : > { %3895 = vmatprep.subr.bf16.mxu0 %v4065_v1 }
  0x11   : > { %s7284_s16 = smov (!%p367_p3, %s3636_s16), 1  ;;  %3896 = vmatpush3.bf16.msra.mxu0 %v4065_v1 }
  0x12   : > { %3897 = vmatprep.subr.bf16.mxu0 %v4066_v2  ;;  %s3733_s20 = sshll.u32 %s7284_s16, 7  ;;  %s3735_s28 = sshll.u32 %s7284_s16, 8 }
  0x13   : > { %s4445_s23 = scalar_lea.vmem %s7219_s0, %s3733_s20  ;;  %s4456_s26 = scalar_lea.vmem %s7220_s1, %s3733_s20 }
  0x14   : > { %v4448_v3 = vld [vmem:[%s4445_s23] sm:$0xff]   ;;  %v4451_v4 = vld [vmem:[%s4445_s23 + $0x8] sm:$0xff]   ;;  %v4462_v8 = vld [vmem:[%s4445_s23 + $0x10] sm:$0xff]   ;;  %s7118_s11 = scalar_lea.vmem %s7229_s10, %s3735_s28 }
  0x15   : > { %3898 = vmatpush3.bf16.msra.mxu0 %v4066_v2  ;;  %v3738_v5 = vunpack.c.l.bf16 %v4448_v3  ;;  %v3739_v6 = vunpack.c.h.bf16 %v4448_v3  ;;  %v3742_v7 = vunpack.c.l.bf16 %v4451_v4  ;;  %v3743_v9 = vunpack.c.h.bf16 %v4451_v4  ;;  %v4466_v10 = vld [vmem:[%s4445_s23 + $0x18] sm:$0xff]   ;;  %v4470_v12 = vld [vmem:[%s4445_s23 + $0x20] sm:$0xff]   ;;  %v4482_v16 = vld [vmem:[%s4445_s23 + $0x28] sm:$0xff]  }
  0x16   : > { %v3746_v11 = vunpack.c.l.bf16 %v4462_v8  ;;  %v3747_v18 = vunpack.c.h.bf16 %v4462_v8  ;;  %v3750_v20 = vunpack.c.l.bf16 %v4466_v10  ;;  %v3751_v21 = vunpack.c.h.bf16 %v4466_v10  ;;  %v4519_v38 = vld [vmem:[%s4445_s23 + $0x30] sm:$0xff]   ;;  %v4522_v41 = vld [vmem:[%s4445_s23 + $0x38] sm:$0xff]   ;;  %v4531_v49 = vld [vmem:[%s4445_s23 + $0x40] sm:$0xff]  }
  0x17   : > { %v448_v13 = vsel %vm447_vm0, %v3738_v5, 0.0  ;;  %v449_v14 = vsel %vm447_vm0, %v3739_v6, 0.0  ;;  %v451_v15 = vsel %vm447_vm0, %v3742_v7, 0.0  ;;  %v453_v19 = vsel %vm447_vm0, %v3743_v9, 0.0  ;;  %v4542_v56 = vld [vmem:[%s4445_s23 + $0x48] sm:$0xff]   ;;  %v4553_v63 = vld [vmem:[%s4445_s23 + $0x50] sm:$0xff]  }
  0x18   : > { %v450_v17 = vadd.f32 %v449_v14, %v448_v13  ;;  %v3754_v22 = vunpack.c.l.bf16 %v4470_v12  ;;  %v3755_v24 = vunpack.c.h.bf16 %v4470_v12  ;;  %v3758_v25 = vunpack.c.l.bf16 %v4482_v16 }
  0x19   : > { %v3759_v26 = vunpack.c.h.bf16 %v4482_v16  ;;  %v455_v27 = vsel %vm447_vm0, %v3746_v11, 0.0  ;;  %v457_v29 = vsel %vm447_vm0, %v3747_v18, 0.0  ;;  %v459_v31 = vsel %vm447_vm0, %v3750_v20, 0.0 }
  0x1a   : > { %v452_v23 = vadd.f32 %v451_v15, %v450_v17  ;;  %v461_v32 = vsel %vm447_vm0, %v3751_v21, 0.0  ;;  %v463_v33 = vsel %vm447_vm0, %v3754_v22, 0.0  ;;  %v465_v34 = vsel %vm447_vm0, %v3755_v24, 0.0  ;;  %v4564_v17 = vld [vmem:[%s4445_s23 + $0x58] sm:$0xff]  }
  0x1b   : > { %v467_v35 = vsel %vm447_vm0, %v3758_v25, 0.0  ;;  %v469_v36 = vsel %vm447_vm0, %v3759_v26, 0.0  ;;  %v3762_v43 = vunpack.c.l.bf16 %v4519_v38  ;;  %v3763_v45 = vunpack.c.h.bf16 %v4519_v38 }
  0x1c   : > { %v454_v28 = vadd.f32 %v453_v19, %v452_v23  ;;  %v3766_v47 = vunpack.c.l.bf16 %v4522_v41  ;;  %v3767_v51 = vunpack.c.h.bf16 %v4522_v41  ;;  %v3770_v54 = vunpack.c.l.bf16 %v4531_v49 }
  0x1d   : > { %v471_v48 = vsel %vm447_vm0, %v3762_v43, 0.0  ;;  %v473_v52 = vsel %vm447_vm0, %v3763_v45, 0.0  ;;  %v3771_v58 = vunpack.c.h.bf16 %v4531_v49  ;;  %v3774_v61 = vunpack.c.l.bf16 %v4542_v56 }
  0x1e   : > { %v456_v30 = vadd.f32 %v455_v27, %v454_v28  ;;  %v475_v55 = vsel %vm447_vm0, %v3766_v47, 0.0  ;;  %v477_v59 = vsel %vm447_vm0, %v3767_v51, 0.0  ;;  %v479_v62 = vsel %vm447_vm0, %v3770_v54, 0.0 }
  0x1f   : > { %v3775_v1 = vunpack.c.h.bf16 %v4542_v56  ;;  %v481_v2 = vsel %vm447_vm0, %v3771_v58, 0.0  ;;  %v3778_v14 = vunpack.c.l.bf16 %v4553_v63  ;;  %v483_v15 = vsel %vm447_vm0, %v3774_v61, 0.0 }
  0x20   : > { %v458_v37 = vadd.f32 %v457_v29, %v456_v30  ;;  %v3779_v23 = vunpack.c.h.bf16 %v4553_v63  ;;  %v3782_v29 = vunpack.c.l.bf16 %v4564_v17 }
  0x21   : > { %v485_v27 = vsel %vm447_vm0, %v3775_v1, 0.0  ;;  %v487_v30 = vsel %vm447_vm0, %v3778_v14, 0.0 }
  0x22   : > { %v460_v39 = vadd.f32 %v459_v31, %v458_v37  ;;  %v4575_v31 = vld [vmem:[%s4445_s23 + $0x60] sm:$0xff]   ;;  %v491_v37 = vsel %vm447_vm0, %v3782_v29, 0.0 }
  0x24   : > { %v462_v40 = vadd.f32 %v461_v32, %v460_v39  ;;  %v4586_v39 = vld [vmem:[%s4445_s23 + $0x68] sm:$0xff]  }
  0x26   : > { %v464_v42 = vadd.f32 %v463_v33, %v462_v40  ;;  %v3783_v33 = vunpack.c.h.bf16 %v4564_v17 }
  0x28   : > { %v466_v44 = vadd.f32 %v465_v34, %v464_v42  ;;  %v489_v34 = vsel %vm447_vm0, %v3779_v23, 0.0  ;;  %v3787_v42 = vunpack.c.h.bf16 %v4575_v31 }
  0x2a   : > { %v468_v46 = vadd.f32 %v467_v35, %v466_v44  ;;  %v493_v44 = vsel %vm447_vm0, %v3783_v33, 0.0 }
  0x2c   : > { %v470_v50 = vadd.f32 %v469_v36, %v468_v46  ;;  %v3786_v36 = vunpack.c.l.bf16 %v4575_v31 }
  0x2e   : > { %v472_v53 = vadd.f32 %v471_v48, %v470_v50  ;;  %v3790_v48 = vunpack.c.l.bf16 %v4586_v39  ;;  %v495_v50 = vsel %vm447_vm0, %v3786_v36, 0.0 }
  0x30   : > { %v474_v57 = vadd.f32 %v473_v52, %v472_v53  ;;  %v4597_v52 = vld [vmem:[%s4445_s23 + $0x70] sm:$0xff]  }
  0x32   : > { %v476_v60 = vadd.f32 %v475_v55, %v474_v57  ;;  %v3791_v55 = vunpack.c.h.bf16 %v4586_v39  ;;  %v497_v57 = vsel %vm447_vm0, %v3787_v42, 0.0 }
  0x34   : > { %v478_v0 = vadd.f32 %v477_v59, %v476_v60  ;;  %v3794_v60 = vunpack.c.l.bf16 %v4597_v52 }
  0x36   : > { %v480_v13 = vadd.f32 %v479_v62, %v478_v0  ;;  %v499_v62 = vsel %vm447_vm0, %v3790_v48, 0.0  ;;  %v4608_v0 = vld [vmem:[%s4445_s23 + $0x78] sm:$0xff]  }
  0x38   : > { %v482_v19 = vadd.f32 %v481_v2, %v480_v13  ;;  %v3795_v13 = vunpack.c.h.bf16 %v4597_v52  ;;  %v4081_v52 = vld [vmem:[%s4456_s26 + $0x78] sm:$0xff]  }
  0x3a   : > { %v484_v28 = vadd.f32 %v483_v15, %v482_v19  ;;  %v501_v15 = vsel %vm447_vm0, %v3791_v55, 0.0 }
  0x3c   : > { %v486_v32 = vadd.f32 %v485_v27, %v484_v28  ;;  %v3798_v27 = vunpack.c.l.bf16 %v4608_v0  ;;  %v503_v28 = vsel %vm447_vm0, %v3794_v60, 0.0 }
  0x3e   : > { %v488_v35 = vadd.f32 %v487_v30, %v486_v32  ;;  %v3799_v32 = vunpack.c.h.bf16 %v4608_v0 }
  0x40   : > { %v490_v40 = vadd.f32 %v489_v34, %v488_v35  ;;  %v505_v34 = vsel %vm447_vm0, %v3795_v13, 0.0 }
  0x42   : > { %v492_v46 = vadd.f32 %v491_v37, %v490_v40  ;;  %v507_v37 = vsel %vm447_vm0, %v3798_v27, 0.0 }
  0x44   : > { %v494_v53 = vadd.f32 %v493_v44, %v492_v46  ;;  %v509_v44 = vsel %vm447_vm0, %v3799_v32, 0.0 }
  0x46   : > { %v496_v59 = vadd.f32 %v495_v50, %v494_v53 }
  0x48   : > { %v498_v2 = vadd.f32 %v497_v57, %v496_v59 }
  0x4a   : > { %v500_v19 = vadd.f32 %v499_v62, %v498_v2 }
  0x4c   : > { %v502_v30 = vadd.f32 %v501_v15, %v500_v19 }
  0x4e   : > { %v504_v35 = vadd.f32 %v503_v28, %v502_v30 }
  0x50   : > { %v506_v40 = vadd.f32 %v505_v34, %v504_v35 }
  0x52   : > { %v508_v46 = vadd.f32 %v507_v37, %v506_v40 }
  0x54   : > { %v510_v50 = vadd.f32 %v509_v44, %v508_v46 }
  0x56   : > { %v511_v53 = vrot.slane %v510_v50, 4 }
  0x58   : > { %v512_v57 = vadd.f32 %v511_v53, %v510_v50 }
  0x5a   : > { %v513_v59 = vrot.slane %v512_v57, 2 }
  0x5c   : > { %v514_v62 = vadd.f32 %v513_v59, %v512_v57 }
  0x5e   : > { %v515_v2 = vrot.slane %v514_v62, 1 }
  0x60   : > { %v516_v15 = vadd.f32 %v515_v2, %v514_v62 }
  0x62   : > { %v4628_v19 = vmul.f32 0.00390625, %v516_v15 }
  0x64   : > { %v4633_v28 = vsub.f32 %v3738_v5, %v4628_v19  ;;  %v4638_v30 = vsub.f32 %v3739_v6, %v4628_v19  ;;  %v4643_v34 = vsub.f32 %v3742_v7, %v4628_v19  ;;  %v4648_v35 = vsub.f32 %v3743_v9, %v4628_v19 }
  0x65   : > { %v4653_v5 = vsub.f32 %v3746_v11, %v4628_v19  ;;  %v4664_v4 = vsub.f32 %v3747_v18, %v4628_v19  ;;  %v4671_v11 = vsub.f32 %v3750_v20, %v4628_v19  ;;  %v4681_v18 = vsub.f32 %v3751_v21, %v4628_v19 }
  0x66   : > { %v551_v3 = vmul.f32 %v4633_v28, %v4633_v28  ;;  %v552_v6 = vmul.f32 %v4638_v30, %v4638_v30  ;;  %v553_v7 = vmul.f32 %v4643_v34, %v4643_v34  ;;  %v554_v9 = vmul.f32 %v4648_v35, %v4648_v35 }
  0x67   : > { %v555_v37 = vmul.f32 %v4653_v5, %v4653_v5  ;;  %v556_v50 = vmul.f32 %v4664_v4, %v4664_v4  ;;  %v4689_v57 = vsub.f32 %v3754_v22, %v4628_v19  ;;  %v557_v59 = vmul.f32 %v4671_v11, %v4671_v11 }
  0x68   : > { %v583_v40 = vsel %vm447_vm0, %v551_v3, 0.0  ;;  %v584_v44 = vsel %vm447_vm0, %v552_v6, 0.0  ;;  %v586_v46 = vsel %vm447_vm0, %v553_v7, 0.0  ;;  %v588_v20 = vsel %vm447_vm0, %v554_v9, 0.0 }
  0x69   : > { %v585_v8 = vadd.f32 %v584_v44, %v583_v40  ;;  %v590_v62 = vsel %vm447_vm0, %v555_v37, 0.0  ;;  %v4697_v10 = vsub.f32 %v3755_v24, %v4628_v19  ;;  %v558_v21 = vmul.f32 %v4681_v18, %v4681_v18 }
  0x6a   : > { %v592_v15 = vsel %vm447_vm0, %v556_v50, 0.0  ;;  %v4705_v22 = vsub.f32 %v3758_v25, %v4628_v19  ;;  %v559_v6 = vmul.f32 %v4689_v57, %v4689_v57  ;;  %v594_v7 = vsel %vm447_vm0, %v557_v59, 0.0 }
  0x6b   : > { %v587_v53 = vadd.f32 %v586_v46, %v585_v8  ;;  %v4713_v12 = vsub.f32 %v3759_v26, %v4628_v19  ;;  %v560_v24 = vmul.f32 %v4697_v10, %v4697_v10  ;;  %v596_v37 = vsel %vm447_vm0, %v558_v21, 0.0 }
  0x6c   : > { %v4721_v25 = vsub.f32 %v3762_v43, %v4628_v19  ;;  %v561_v44 = vmul.f32 %v4705_v22, %v4705_v22  ;;  %v598_v46 = vsel %vm447_vm0, %v559_v6, 0.0  ;;  %v4729_v16 = vsub.f32 %v3763_v45, %v4628_v19 }
  0x6d   : > { %v589_v2 = vadd.f32 %v588_v20, %v587_v53  ;;  %v562_v26 = vmul.f32 %v4713_v12, %v4713_v12  ;;  %v600_v50 = vsel %vm447_vm0, %v560_v24, 0.0  ;;  %v4737_v43 = vsub.f32 %v3766_v47, %v4628_v19  ;;  %v4069_v24 = vld [vmem:[%s4456_s26 + $0x10] sm:$0xff]  }
  0x6e   : > { %v563_v53 = vmul.f32 %v4721_v25, %v4721_v25  ;;  %v602_v38 = vsel %vm447_vm0, %v561_v44, 0.0  ;;  %v4745_v59 = vsub.f32 %v3767_v51, %v4628_v19  ;;  %v4753_v21 = vsub.f32 %v3770_v54, %v4628_v19  ;;  %v4068_v44 = vld [vmem:[%s4456_s26 + $0x8] sm:$0xff]   ;;  %1899 = vrot.lane.b32.xlu1 %v4069_v24, %s4365_s27 }
  0x6f   : > { %v591_v3 = vadd.f32 %v590_v62, %v589_v2  ;;  %v564_v62 = vmul.f32 %v4729_v16, %v4729_v16  ;;  %v604_v2 = vsel %vm447_vm0, %v562_v26, 0.0  ;;  %v4761_v51 = vsub.f32 %v3771_v58, %v4628_v19 }
  0x70   : > { %v566_v6 = vmul.f32 %v4745_v59, %v4745_v59  ;;  %v4831_v24 = vsub.f32 %v3786_v36, %v4628_v19 }
  0x71   : > { %v593_v9 = vadd.f32 %v592_v15, %v591_v3  ;;  %v565_v15 = vmul.f32 %v4737_v43, %v4737_v43  ;;  %v606_v3 = vsel %vm447_vm0, %v563_v53, 0.0 }
  0x72   : > { %v612_v26 = vsel %vm447_vm0, %v566_v6, 0.0  ;;  %v4074_v6 = vld [vmem:[%s4456_s26 + $0x30] sm:$0xff]  }
  0x73   : > { %v595_v40 = vadd.f32 %v594_v7, %v593_v9  ;;  %v608_v7 = vsel %vm447_vm0, %v564_v62, 0.0  ;;  %v4067_v9 = vld [vmem:[%s4456_s26] sm:$0xff]   ;;  %v610_v49 = vsel %vm447_vm0, %v565_v15, 0.0  ;;  %v4803_v62 = vsub.f32 %v3779_v23, %v4628_v19  ;;  %v4073_v23 = vld [vmem:[%s4456_s26 + $0x38] sm:$0xff]  }
  0x74   : > { %1895 = vrot.lane.b32.xlu0 %v4067_v9, %s4365_s27  ;;  %v4811_v15 = vsub.f32 %v3782_v29, %v4628_v19 }
  0x75   : > { %v597_v8 = vadd.f32 %v596_v37, %v595_v40  ;;  %v4771_v37 = vsub.f32 %v3774_v61, %v4628_v19  ;;  %v567_v40 = vmul.f32 %v4753_v21, %v4753_v21  ;;  %v4783_v61 = vsub.f32 %v3775_v1, %v4628_v19  ;;  %v4071_v1 = vld [vmem:[%s4456_s26 + $0x28] sm:$0xff]  }
  0x76   : > { %v572_v29 = vmul.f32 %v4803_v62, %v4803_v62 }
  0x77   : > { %v599_v20 = vadd.f32 %v598_v46, %v597_v8  ;;  %v4070_v46 = vld [vmem:[%s4456_s26 + $0x18] sm:$0xff]   ;;  %v568_v8 = vmul.f32 %v4761_v51, %v4761_v51  ;;  %v569_v53 = vmul.f32 %v4771_v37, %v4771_v37 }
  0x78   : > { %1897 = vrot.lane.b32.xlu0 %v4068_v44, %s4365_s27  ;;  %1901 = vrot.lane.b32.xlu1 %v4070_v46, %s4365_s27  ;;  %v4843_v44 = vsub.f32 %v3787_v42, %v4628_v19  ;;  %v624_v46 = vsel %vm447_vm0, %v572_v29, 0.0  ;;  %v4077_v42 = vld [vmem:[%s4456_s26 + $0x58] sm:$0xff]  }
  0x79   : > { %v601_v45 = vadd.f32 %v600_v50, %v599_v20  ;;  %v4791_v20 = vsub.f32 %v3778_v14, %v4628_v19  ;;  %v570_v14 = vmul.f32 %v4783_v61, %v4783_v61 }
  0x7b   : > { %v603_v47 = vadd.f32 %v602_v38, %v601_v45  ;;  %v614_v38 = vsel %vm447_vm0, %v567_v40, 0.0  ;;  %v4072_v45 = vld [vmem:[%s4456_s26 + $0x20] sm:$0xff]   ;;  %v573_v40 = vmul.f32 %v4811_v15, %v4811_v15 }
  0x7c   : > { %1905 = vrot.lane.b32.xlu1 %v4071_v1, %s4365_s27  ;;  %1903 = vrot.lane.b32.xlu0 %v4072_v45, %s4365_s27 }
  0x7d   : > { %v605_v41 = vadd.f32 %v604_v2, %v603_v47  ;;  %v616_v2 = vsel %vm447_vm0, %v568_v8, 0.0 }
  0x7f   : > { %v607_v54 = vadd.f32 %v606_v3, %v605_v41  ;;  %v571_v3 = vmul.f32 %v4791_v20, %v4791_v20  ;;  %v618_v41 = vsel %vm447_vm0, %v569_v53, 0.0  ;;  %v626_v53 = vsel %vm447_vm0, %v573_v40, 0.0 }
  0x80   : > { %1909 = vrot.lane.b32.xlu1 %v4073_v23, %s4365_s27  ;;  %1907 = vrot.lane.b32.xlu0 %v4074_v6, %s4365_s27  ;;  %v4891_v6 = vsub.f32 %v3798_v27, %v4628_v19  ;;  %v4903_v40 = vsub.f32 %v3799_v32, %v4628_v19 }
  0x81   : > { %v609_v58 = vadd.f32 %v608_v7, %v607_v54  ;;  %v4823_v7 = vsub.f32 %v3783_v33, %v4628_v19  ;;  %v620_v54 = vsel %vm447_vm0, %v570_v14, 0.0  ;;  %v4075_v33 = vld [vmem:[%s4456_s26 + $0x48] sm:$0xff]   ;;  %v4871_v14 = vsub.f32 %v3794_v60, %v4628_v19 }
  0x82   : > { %v582_v0 = vmul.f32 %v4903_v40, %v4903_v40 }
  0x83   : > { %v611_v50 = vadd.f32 %v610_v49, %v609_v58  ;;  %v622_v49 = vsel %vm447_vm0, %v571_v3, 0.0  ;;  %v4076_v58 = vld [vmem:[%s4456_s26 + $0x40] sm:$0xff]   ;;  %v574_v36 = vmul.f32 %v4823_v7, %v4823_v7  ;;  %v579_v29 = vmul.f32 %v4871_v14, %v4871_v14 }
  0x84   : > { %1913 = vrot.lane.b32.xlu1 %v4075_v33, %s4365_s27  ;;  %1911 = vrot.lane.b32.xlu0 %v4076_v58, %s4365_s27  ;;  %v4080_v3 = vld [vmem:[%s4456_s26 + $0x60] sm:$0xff]   ;;  %v581_v33 = vmul.f32 %v4891_v6, %v4891_v6 }
  0x85   : > { %v613_v56 = vadd.f32 %v612_v26, %v611_v50  ;;  %v4851_v26 = vsub.f32 %v3790_v48, %v4628_v19  ;;  %v575_v50 = vmul.f32 %v4831_v24, %v4831_v24  ;;  %v576_v48 = vmul.f32 %v4843_v44, %v4843_v44 }
  0x86   : > { %v628_v1 = vsel %vm447_vm0, %v574_v36, 0.0  ;;  %v638_v58 = vsel %vm447_vm0, %v579_v29, 0.0 }
  0x87   : > { %v615_v47 = vadd.f32 %v614_v38, %v613_v56  ;;  %v4078_v38 = vld [vmem:[%s4456_s26 + $0x50] sm:$0xff]   ;;  %v4863_v56 = vsub.f32 %v3791_v55, %v4628_v19  ;;  %v4079_v55 = vld [vmem:[%s4456_s26 + $0x68] sm:$0xff]  }
  0x88   : > { %1917 = vrot.lane.b32.xlu1 %v4077_v42, %s4365_s27  ;;  %1915 = vrot.lane.b32.xlu0 %v4078_v38, %s4365_s27 }
  0x89   : > { %v617_v63 = vadd.f32 %v616_v2, %v615_v47  ;;  %v577_v2 = vmul.f32 %v4851_v26, %v4851_v26  ;;  %v630_v47 = vsel %vm447_vm0, %v575_v50, 0.0  ;;  %v578_v60 = vmul.f32 %v4863_v56, %v4863_v56 }
  0x8a   : > { %v644_v50 = vsel %vm447_vm0, %v582_v0, 0.0 }
  0x8b   : > { %v619_v9 = vadd.f32 %v618_v41, %v617_v63  ;;  %v4883_v41 = vsub.f32 %v3795_v13, %v4628_v19  ;;  %v632_v63 = vsel %vm447_vm0, %v576_v48, 0.0  ;;  %v4082_v13 = vld [vmem:[%s4456_s26 + $0x70] sm:$0xff]  }
  0x8c   : > { %1921 = vrot.lane.b32.xlu1 %v4079_v55, %s4365_s27  ;;  %1919 = vrot.lane.b32.xlu0 %v4080_v3, %s4365_s27 }
  0x8d   : > { %v621_v17 = vadd.f32 %v620_v54, %v619_v9  ;;  %v634_v54 = vsel %vm447_vm0, %v577_v2, 0.0  ;;  %v580_v27 = vmul.f32 %v4883_v41, %v4883_v41 }
  0x8f   : > { %v623_v8 = vadd.f32 %v622_v49, %v621_v17  ;;  %v636_v49 = vsel %vm447_vm0, %v578_v60, 0.0  ;;  %v640_v32 = vsel %vm447_vm0, %v580_v27, 0.0 }
  0x90   : > { %1925 = vrot.lane.b32.xlu1 %v4081_v52, %s4365_s27  ;;  %1923 = vrot.lane.b32.xlu0 %v4082_v13, %s4365_s27 }
  0x91   : > { %v625_v31 = vadd.f32 %v624_v46, %v623_v8  ;;  %v642_v46 = vsel %vm447_vm0, %v581_v33, 0.0 }
  0x93   : > { %v627_v45 = vadd.f32 %v626_v53, %v625_v31 }
  0x95   : > { %v629_v39 = vadd.f32 %v628_v1, %v627_v45 }
  0x97   : > { %v631_v23 = vadd.f32 %v630_v47, %v629_v39 }
  0x99   : > { %v633_v9 = vadd.f32 %v632_v63, %v631_v23 }
  0x9b   : > { %v635_v17 = vadd.f32 %v634_v54, %v633_v9 }
  0x9d   : > { %v637_v36 = vadd.f32 %v636_v49, %v635_v17 }
  0x9f   : > { %v639_v19 = vadd.f32 %v638_v58, %v637_v36 }
  0xa1   : > { %v641_v8 = vadd.f32 %v640_v32, %v639_v19 }
  0xa3   : > { %v643_v53 = vadd.f32 %v642_v46, %v641_v8 }
  0xa5   : > { %v645_v31 = vadd.f32 %v644_v50, %v643_v53 }
  0xa7   : > { %v646_v42 = vrot.slane %v645_v31, 4 }
  0xa9   : > { %v647_v38 = vadd.f32 %v646_v42, %v645_v31 }
  0xab   : > { %v648_v48 = vrot.slane %v647_v38, 2 }
  0xad   : > { %v649_v1 = vadd.f32 %v648_v48, %v647_v38 }
  0xaf   : > { %v650_v45 = vrot.slane %v649_v1, 1 }
  0xb1   : > { %v651_v2 = vadd.f32 %v650_v45, %v649_v1 }
  0xb3   : > { %v652_v47 = vmul.f32 0.00390625, %v651_v2 }
  0xb5   : > { %v653_v39 = vadd.f32 1e-05, %v652_v47 }
  0xb7   : > { %4097 = vrsqrt.f32 %v653_v39 }
  0xc1   : > { %v4098_v55 = vpop.eup %4097 }
  0xc2   : > { %v655_v3 = vmul.f32 %v4098_v55, %v4633_v28  ;;  %v656_v60 = vmul.f32 %v4098_v55, %v4638_v30  ;;  %v657_v63 = vmul.f32 %v4098_v55, %v4643_v34  ;;  %v658_v23 = vmul.f32 %v4098_v55, %v4648_v35 }
  0xc3   : > { %v659_v29 = vmul.f32 %v4098_v55, %v4653_v5  ;;  %v660_v54 = vmul.f32 %v4098_v55, %v4664_v4  ;;  %v661_v27 = vmul.f32 %v4098_v55, %v4671_v11  ;;  %v662_v28 = vmul.f32 %v4098_v55, %v4681_v18 }
  0xc4   : > { %v687_v9 = vpack.c.bf16 %v656_v60, %v655_v3  ;;  %v688_v52 = vpack.c.bf16 %v658_v23, %v657_v63  ;;  %v663_v30 = vmul.f32 %v4098_v55, %v4689_v57  ;;  %v664_v34 = vmul.f32 %v4098_v55, %v4697_v10 }
  0xc5   : > { %v689_v13 = vpack.c.bf16 %v660_v54, %v659_v29  ;;  %v690_v35 = vpack.c.bf16 %v662_v28, %v661_v27  ;;  %v665_v4 = vmul.f32 %v4098_v55, %v4705_v22  ;;  %v666_v49 = vmul.f32 %v4098_v55, %v4713_v12 }
  0xc6   : > { %3899 = vmatprep.mubr.msk.bf16.mxu0 %vm447_vm0, %v687_v9  ;;  %v691_v5 = vpack.c.bf16 %v664_v34, %v663_v30  ;;  %v667_v11 = vmul.f32 %v4098_v55, %v4721_v25  ;;  %v668_v18 = vmul.f32 %v4098_v55, %v4729_v16  ;;  %v669_v57 = vmul.f32 %v4098_v55, %v4737_v43 }
  0xc7   : > { %3900 = vmatmul.mubr.msk.bf16.vlgmr.msra.gmra.mrb[0].mxu0 %vm447_vm0, %v688_v52  ;;  %v692_v17 = vpack.c.bf16 %v666_v49, %v665_v4  ;;  %v670_v10 = vmul.f32 %v4098_v55, %v4745_v59  ;;  %v671_v22 = vmul.f32 %v4098_v55, %v4753_v21  ;;  %v672_v12 = vmul.f32 %v4098_v55, %v4761_v51 }
  0xc8   : > { %3903 = vmatprep.mubr.msk.bf16.mxu0 %vm447_vm0, %v689_v13  ;;  %v693_v33 = vpack.c.bf16 %v668_v18, %v667_v11  ;;  %v673_v25 = vmul.f32 %v4098_v55, %v4771_v37  ;;  %v674_v16 = vmul.f32 %v4098_v55, %v4783_v61  ;;  %v675_v43 = vmul.f32 %v4098_v55, %v4791_v20  ;;  %v4084_v13 = vld [vmem:[%s7223_s4 + $0x8] sm:$0xff]  }
  0xc9   : > { %v694_v58 = vpack.c.bf16 %v670_v10, %v669_v57  ;;  %v695_v36 = vpack.c.bf16 %v672_v12, %v671_v22  ;;  %v676_v59 = vmul.f32 %v4098_v55, %v4803_v62  ;;  %v677_v21 = vmul.f32 %v4098_v55, %v4811_v15 }
  0xca   : > { %v696_v0 = vpack.c.bf16 %v674_v16, %v673_v25  ;;  %v678_v51 = vmul.f32 %v4098_v55, %v4823_v7  ;;  %v679_v37 = vmul.f32 %v4098_v55, %v4831_v24  ;;  %v680_v61 = vmul.f32 %v4098_v55, %v4843_v44 }
  0xcb   : > { %v697_v32 = vpack.c.bf16 %v676_v59, %v675_v43  ;;  %v681_v20 = vmul.f32 %v4098_v55, %v4851_v26  ;;  %v682_v62 = vmul.f32 %v4098_v55, %v4863_v56  ;;  %v683_v15 = vmul.f32 %v4098_v55, %v4871_v14  ;;  %v4969_v26 = vld [vmem:[%s7222_s3] ss:$0 sm:$0xff] }
  0xcc   : > { %v698_v19 = vpack.c.bf16 %v678_v51, %v677_v21  ;;  %v699_v46 = vpack.c.bf16 %v680_v61, %v679_v37  ;;  %v684_v7 = vmul.f32 %v4098_v55, %v4883_v41  ;;  %v685_v24 = vmul.f32 %v4098_v55, %v4891_v6  ;;  %v4083_v56 = vld [vmem:[%s7223_s4] sm:$0xff]   ;;  %v4085_v51 = vld [vmem:[%s7223_s4 + $0x10] sm:$0xff]  }
  0xcd   : > { %v700_v8 = vpack.c.bf16 %v682_v62, %v681_v20  ;;  %v686_v44 = vmul.f32 %v4098_v55, %v4903_v40  ;;  %3931 = vmatprep.subr.bf16.mxu1 %v4083_v56  ;;  %v7230_v37 = vmov -1.0  }
  0xce   : > { %v701_v50 = vpack.c.bf16 %v684_v7, %v683_v15  ;;  %3932 = vmatpush3.bf16.msra.mxu1 %v4083_v56 }
  0xcf   : > { %3904 = vmatmul.mubr.msk.bf16.gmra.mrb[4].mxu0 %vm447_vm0, %v690_v35  ;;  %v702_v53 = vpack.c.bf16 %v686_v44, %v685_v24  ;;  %3933 = vmatprep.subr.bf16.mxu1 %v4084_v13 }
  0xd0   : > { %3907 = vmatprep.mubr.msk.bf16.mxu0 %vm447_vm0, %v691_v5 }
  0xd2   : > { %3934 = vmatpush3.bf16.msra.mxu1 %v4084_v13 }
  0xd3   : > { %3935 = vmatprep.subr.bf16.mxu1 %v4085_v51 }
  0xd6   : > { %3936 = vmatpush3.bf16.msra.mxu1 %v4085_v51 }
  0xd7   : > { %3908 = vmatmul.mubr.msk.bf16.gmra.mrb[8].mxu0 %vm447_vm0, %v692_v17 }
  0xd8   : > { %3911 = vmatprep.mubr.msk.bf16.mxu0 %vm447_vm0, %v693_v33 }
  0xdf   : > { %3912 = vmatmul.mubr.msk.bf16.gmra.mrb[12].mxu0 %vm447_vm0, %v694_v58 }
  0xe0   : > { %3915 = vmatprep.mubr.msk.bf16.mxu0 %vm447_vm0, %v695_v36 }
  0xe7   : > { %3916 = vmatmul.mubr.msk.bf16.gmra.mrb[16].mxu0 %vm447_vm0, %v696_v0 }
  0xe8   : > { %3919 = vmatprep.mubr.msk.bf16.mxu0 %vm447_vm0, %v697_v32 }
  0xef   : > { %3920 = vmatmul.mubr.msk.bf16.gmra.mrb[20].mxu0 %vm447_vm0, %v698_v19 }
  0xf0   : > { %3923 = vmatprep.mubr.msk.bf16.mxu0 %vm447_vm0, %v699_v46 }
  0xf7   : > { %3924 = vmatmul.mubr.msk.bf16.gmra.mrb[24].mxu0 %vm447_vm0, %v700_v8 }
  0xf8   : > { %3927 = vmatprep.mubr.msk.bf16.mxu0 %vm447_vm0, %v701_v50 }
  0xff   : > { %3928 = vmatmul.mubr.msk.bf16.gmra.mrb[28].mxu0 %vm447_vm0, %v702_v53 }
 0x19a   : > { %v3901_v14 = vpop.f32.mrb[0].mxu0 }
 0x19b   : > { %v817_v41 = vadd.f32 %v3901_v14, %v4969_v26  ;;  %v808_v6 = vpop.f32.mrb[1].mxu0 }
 0x19c   : > { %v809_v40 = vadd.f32 %v4969_v26, %v808_v6  ;;  %v3902_v31 = vpop.f32.mrb[2].mxu0 }
 0x19d   : > { %v969_v42 = vmul.f32 0.70710677, %v817_v41  ;;  %v820_v38 = vadd.f32 %v3902_v31, %v4969_v26  ;;  %v811_v48 = vpop.f32.mrb[3].mxu0  ;;  %v5002_v17 = vmul.f32 0.5, %v817_v41 }
 0x19e   : > { %v4977_v1 = vmul.f32 0.70710677, %v809_v40  ;;  %v812_v47 = vadd.f32 %v4969_v26, %v811_v48  ;;  %v5022_v59 = vmul.f32 0.5, %v809_v40 }
 0x19f   : > { %v1065_v45 = vand.u32 2147483647, %v969_v42  ;;  %v4979_v2 = vmul.f32 0.70710677, %v820_v38  ;;  %vm1001_vm1 = vcmp.ge.f32.partialorder %v969_v42, 0.0  ;;  %v5024_v0 = vmul.f32 0.5, %v820_v38 }
 0x1a0   : > { %v1063_v39 = vand.u32 2147483647, %v4977_v1  ;;  %v4984_v23 = vmul.f32 0.70710677, %v812_v47  ;;  %v5036_v61 = vsel %vm1001_vm1, 1.0, %v7230_v37  ;;  %vm999_vm2 = vcmp.ge.f32.partialorder %v4977_v1, 0.0 }
 0x1a1   : > { %v1097_v55 = vmul.f32 0.3275911, %v1065_v45  ;;  %v1066_v60 = vand.u32 2147483647, %v4979_v2  ;;  %v1481_v35 = vsub.f32 0.0, %v1065_v45  ;;  %v5039_v19 = vmul.f32 0.5, %v812_v47 }
 0x1a2   : > { %v1095_v3 = vmul.f32 0.3275911, %v1063_v39  ;;  %v3905_v29 = vpop.f32.mrb[4].mxu0  ;;  %v4990_v27 = vand.u32 2147483647, %v4984_v23  ;;  %v1479_v22 = vsub.f32 0.0, %v1063_v39 }
 0x1a3   : > { %v1129_v63 = vadd.f32 1.0, %v1097_v55  ;;  %v1098_v9 = vmul.f32 0.3275911, %v1066_v60  ;;  %v824_v52 = vpop.f32.mrb[5].mxu0  ;;  %v4994_v4 = vadd.f32 %v3905_v29, %v4969_v26  ;;  %v1513_v10 = vmul.f32 %v1481_v35, %v1065_v45 }
 0x1a4   : > { %v1127_v54 = vadd.f32 1.0, %v1095_v3  ;;  %v3906_v28 = vpop.f32.mrb[6].mxu0  ;;  %v1096_v5 = vmul.f32 0.3275911, %v4990_v27  ;;  %v4997_v49 = vadd.f32 %v4969_v26, %v824_v52  ;;  %v1482_v36 = vsub.f32 0.0, %v1066_v60 }
 0x1a5   : > { %4099 = vrcp.f32 %v1129_v63  ;;  %v1130_v30 = vadd.f32 1.0, %v1098_v9  ;;  %v827_v34 = vpop.f32.mrb[7].mxu0  ;;  %v5000_v18 = vadd.f32 %v3906_v28, %v4969_v26  ;;  %v5005_v33 = vmul.f32 0.70710677, %v4994_v4 }
 0x1a6   : > { %4101 = vrcp.f32 %v1127_v54  ;;  %v1128_v11 = vadd.f32 1.0, %v1096_v5  ;;  %v5010_v12 = vmul.f32 0.70710677, %v4997_v49  ;;  %v1547_v62 = vmul.f32 1.442695, %v1513_v10 }
 0x1a7   : > { %4103 = vrcp.f32 %v1130_v30  ;;  %v5015_v25 = vand.u32 2147483647, %v5005_v33  ;;  %v5018_v16 = vmul.f32 0.70710677, %v5000_v18  ;;  %v1511_v15 = vmul.f32 %v1479_v22, %v1063_v39 }
 0x1a8   : > { %4105 = vrcp.f32 %v1128_v11  ;;  %v5027_v32 = vand.u32 2147483647, %v5010_v12  ;;  %v1514_v44 = vmul.f32 %v1482_v36, %v1066_v60  ;;  %v1480_v53 = vsub.f32 0.0, %v4990_v27 }
 0x1a9   : > { %v1101_v46 = vmul.f32 0.3275911, %v5015_v25  ;;  %v5046_v8 = vand.u32 2147483647, %v5018_v16  ;;  %v5055_v40 = vadd.f32 %v4969_v26, %v827_v34  ;;  %v5060_v42 = vsel %vm999_vm2, 1.0, %v7230_v37 }
 0x1aa   : > { %v5007_v57 = vpop.f32.mrb[8].mxu0  ;;  %v1099_v7 = vmul.f32 0.3275911, %v5027_v32  ;;  %vm1002_vm3 = vcmp.ge.f32.partialorder %v4979_v2, 0.0  ;;  %v1543_v47 = vmul.f32 1.442695, %v1511_v15  ;;  %v1512_v9 = vmul.f32 %v1480_v53, %v4990_v27 }
 0x1ab   : > { %v5012_v58 = vpop.f32.mrb[9].mxu0  ;;  %v1133_v56 = vadd.f32 1.0, %v1101_v46  ;;  %v1102_v6 = vmul.f32 0.3275911, %v5046_v8  ;;  %v1549_v1 = vmul.f32 1.442695, %v1514_v44 }
 0x1ac   : > { %v5020_v43 = vpop.f32.mrb[10].mxu0  ;;  %v1131_v41 = vadd.f32 1.0, %v1099_v7  ;;  %vm1000_vm4 = vcmp.ge.f32.partialorder %v4984_v23, 0.0  ;;  %v5079_v52 = vmul.f32 0.70710677, %v5055_v40  ;;  %v5087_v35 = vsel %vm1002_vm3, 1.0, %v7230_v37 }
 0x1ad   : > { %v5029_v21 = vpop.f32.mrb[11].mxu0  ;;  %4107 = vrcp.f32 %v1133_v56  ;;  %v1134_v39 = vadd.f32 1.0, %v1102_v6  ;;  %v5090_v5 = vsel %vm1000_vm4, 1.0, %v7230_v37  ;;  %v1545_v36 = vmul.f32 1.442695, %v1512_v9 }
 0x1ae   : > { %4109 = vrcp.f32 %v1131_v41  ;;  %v5096_v51 = vmul.f32 0.5, %v4994_v4  ;;  %v5099_v46 = vand.u32 2147483647, %v5079_v52  ;;  %v5103_v7 = vmul.f32 0.5, %v4997_v49 }
 0x1af   : > { %v5042_v20 = vpop.eup %4099  ;;  %4111 = vpow2.f32 %v1547_v62  ;;  %v5108_v53 = vmul.f32 0.5, %v5000_v18  ;;  %v5113_v4 = vadd.f32 %v5007_v57, %v4969_v26  ;;  %vm1005_vm5 = vcmp.ge.f32.partialorder %v5005_v33, 0.0 }
 0x1b0   : > { %v5048_v50 = vpop.eup %4101  ;;  %v1193_v24 = vmul.f32 1.0614054, %v5042_v20  ;;  %4113 = vrcp.f32 %v1134_v39  ;;  %v1100_v56 = vmul.f32 0.3275911, %v5099_v46  ;;  %v1483_v57 = vsub.f32 0.0, %v5027_v32 }
 0x1b1   : > { %v1191_v14 = vmul.f32 1.0614054, %v5048_v50  ;;  %v5065_v48 = vpop.eup %4103  ;;  %4115 = vpow2.f32 %v1543_v47  ;;  %vm1003_vm6 = vcmp.ge.f32.partialorder %v5010_v12, 0.0  ;;  %vm1006_vm7 = vcmp.ge.f32.partialorder %v5018_v16, 0.0 }
 0x1b2   : > { %v1225_v31 = vadd.f32 -1.4531521, %v1193_v24  ;;  %v5063_v38 = vpop.f32.mrb[12].mxu0  ;;  %v1194_v60 = vmul.f32 1.0614054, %v5065_v48  ;;  %v5074_v29 = vpop.eup %4105  ;;  %4117 = vpow2.f32 %v1549_v1  ;;  %v1132_v39 = vadd.f32 1.0, %v1100_v56 }
 0x1b3   : > { %v1223_v45 = vadd.f32 -1.4531521, %v1191_v14  ;;  %v5067_v55 = vpop.f32.mrb[13].mxu0  ;;  %v1192_v34 = vmul.f32 1.0614054, %v5074_v29  ;;  %vm1004_vm8 = vcmp.ge.f32.partialorder %v5079_v52, 0.0 }
 0x1b4   : > { %v1257_v3 = vmul.f32 %v5042_v20, %v1225_v31  ;;  %v5072_v63 = vpop.f32.mrb[14].mxu0  ;;  %v1226_v30 = vadd.f32 -1.4531521, %v1194_v60  ;;  %v1485_v31 = vsub.f32 0.0, %v5015_v25  ;;  %4119 = vrcp.f32 %v1132_v39 }
 0x1b5   : > { %v1255_v54 = vmul.f32 %v5048_v50, %v1223_v45  ;;  %v5081_v13 = vpop.f32.mrb[15].mxu0  ;;  %v1224_v10 = vadd.f32 -1.4531521, %v1192_v34  ;;  %4121 = vpow2.f32 %v1545_v36  ;;  %v5215_v52 = vmul.f32 0.5, %v5055_v40 }
 0x1b6   : > { %v1289_v28 = vadd.f32 1.4214138, %v1257_v3  ;;  %v1258_v11 = vmul.f32 %v5065_v48, %v1226_v30 }
 0x1b7   : > { %v1287_v23 = vadd.f32 1.4214138, %v1255_v54  ;;  %v1256_v15 = vmul.f32 %v5074_v29, %v1224_v10  ;;  %v5115_v14 = vpop.eup %4107  ;;  %v1517_v10 = vmul.f32 %v1485_v31, %v5015_v25  ;;  %v1515_v31 = vmul.f32 %v1483_v57, %v5027_v32 }
 0x1b8   : > { %v1321_v27 = vmul.f32 %v5042_v20, %v1289_v28  ;;  %v1290_v62 = vadd.f32 1.4214138, %v1258_v11  ;;  %v5122_v47 = vpop.eup %4109  ;;  %v1197_v18 = vmul.f32 1.0614054, %v5115_v14 }
 0x1b9   : > { %v1319_v22 = vmul.f32 %v5048_v50, %v1287_v23  ;;  %v1288_v49 = vadd.f32 1.4214138, %v1256_v15  ;;  %v1195_v9 = vmul.f32 1.0614054, %v5122_v47  ;;  %v4112_v28 = vpop.eup %4111  ;;  %v5133_v23 = vmul.f32 0.70710677, %v5113_v4 }
 0x1ba   : > { %v1353_v2 = vadd.f32 -0.28449672, %v1321_v27  ;;  %v5105_v24 = vpop.f32.mrb[16].mxu0  ;;  %v1322_v6 = vmul.f32 %v5065_v48, %v1290_v62  ;;  %v1229_v34 = vadd.f32 -1.4531521, %v1197_v18  ;;  %v5135_v27 = vpop.eup %4113  ;;  %v5147_v18 = vsel %vm1005_vm5, 1.0, %v7230_v37 }
 0x1bb   : > { %v1351_v44 = vadd.f32 -0.28449672, %v1319_v22  ;;  %v5120_v45 = vpop.f32.mrb[17].mxu0  ;;  %v1320_v54 = vmul.f32 %v5074_v29, %v1288_v49  ;;  %v1227_v22 = vadd.f32 -1.4531521, %v1195_v9  ;;  %v4116_v15 = vpop.eup %4115  ;;  %vm1009_vm9 = vcmp.ge.f32.partialorder %v5133_v23, 0.0 }
 0x1bc   : > { %v1385_v41 = vmul.f32 %v5042_v20, %v1353_v2  ;;  %v5127_v3 = vpop.f32.mrb[18].mxu0  ;;  %v1354_v1 = vadd.f32 -0.28449672, %v1322_v6  ;;  %v1486_v2 = vsub.f32 0.0, %v5046_v8  ;;  %v1261_v56 = vmul.f32 %v5115_v14, %v1229_v34  ;;  %v4118_v6 = vpop.eup %4117 }
 0x1bd   : > { %v1383_v60 = vmul.f32 %v5048_v50, %v1351_v44  ;;  %v1352_v11 = vadd.f32 -0.28449672, %v1320_v54  ;;  %v5139_v62 = vpop.f32.mrb[19].mxu0  ;;  %v1259_v25 = vmul.f32 %v5122_v47, %v1227_v22  ;;  %v5155_v9 = vand.u32 2147483647, %v5133_v23 }
 0x1be   : > { %v1417_v30 = vadd.f32 0.2548296, %v1385_v41  ;;  %7235 = vst [vmem:[#allocation3_spill] sm:$0xff] %v5139_v62  ;;  %v1386_v44 = vmul.f32 %v5065_v48, %v1354_v1  ;;  %v1198_v41 = vmul.f32 1.0614054, %v5135_v27  ;;  %v1518_v33 = vmul.f32 %v1486_v2, %v5046_v8 }
 0x1bf   : > { %v1415_v49 = vadd.f32 0.2548296, %v1383_v60  ;;  %v1293_v36 = vadd.f32 1.4214138, %v1261_v56  ;;  %v1384_v60 = vmul.f32 %v5074_v29, %v1352_v11  ;;  %v1555_v34 = vmul.f32 1.442695, %v1517_v10 }
 0x1c0   : > { %v1449_v1 = vmul.f32 %v5042_v20, %v1417_v30  ;;  %v1230_v54 = vadd.f32 -1.4531521, %v1198_v41  ;;  %v1291_v62 = vadd.f32 1.4214138, %v1259_v25  ;;  %v1418_v22 = vadd.f32 0.2548296, %v1386_v44 }
 0x1c1   : > { %v1325_v32 = vmul.f32 %v5115_v14, %v1293_v36  ;;  %v1105_v20 = vmul.f32 0.3275911, %v5155_v9  ;;  %v4086_v56 = vld [vmem:[%s7223_s4 + $0x18] sm:$0xff]   ;;  %v1447_v11 = vmul.f32 %v5048_v50, %v1415_v49  ;;  %v1416_v36 = vadd.f32 0.2548296, %v1384_v60 }
 0x1c2   : > { %v5151_v39 = vpop.f32.mrb[20].mxu0  ;;  %v1262_v57 = vmul.f32 %v5135_v27, %v1230_v54  ;;  %v1323_v8 = vmul.f32 %v5122_v47, %v1291_v62  ;;  %v1609_v2 = vmul.f32 %v4112_v28, %v1449_v1  ;;  %3937 = vmatprep.subr.bf16.mxu1 %v4086_v56  ;;  %4123 = vpow2.f32 %v1555_v34 }
 0x1c3   : > { %7236 = vst [vmem:[#allocation4_spill] sm:$0xff] %v5151_v39  ;;  %v5159_v37 = vpop.f32.mrb[21].mxu0  ;;  %v1357_v44 = vadd.f32 -0.28449672, %v1325_v32  ;;  %v1137_v25 = vadd.f32 1.0, %v1105_v20  ;;  %3938 = vmatpush3.bf16.msra.mxu1 %v4086_v56  ;;  %v1450_v50 = vmul.f32 %v5065_v48, %v1418_v22  ;;  %v1607_v39 = vmul.f32 %v4116_v15, %v1447_v11 }
 0x1c4   : > { %7237 = vst [vmem:[#allocation5_spill] sm:$0xff] %v5159_v37  ;;  %v5164_v30 = vpop.f32.mrb[22].mxu0  ;;  %v1294_v41 = vadd.f32 1.4214138, %v1262_v57  ;;  %v1355_v54 = vadd.f32 -0.28449672, %v1323_v8  ;;  %v5175_v37 = vpop.eup %4119  ;;  %v5183_v60 = vadd.f32 %v4969_v26, %v5012_v58 }
 0x1c5   : > { %7238 = vst [vmem:[#allocation6_spill] sm:$0xff] %v5164_v30  ;;  %v5173_v10 = vpop.f32.mrb[23].mxu0  ;;  %v1551_v30 = vmul.f32 1.442695, %v1515_v31  ;;  %v1557_v49 = vmul.f32 1.442695, %v1518_v33  ;;  %4125 = vrcp.f32 %v1137_v25  ;;  %v1389_v28 = vmul.f32 %v5115_v14, %v1357_v44  ;;  %v4122_v31 = vpop.eup %4121 }
 0x1c6   : > { %v1326_v62 = vmul.f32 %v5135_v27, %v1294_v41  ;;  %v1484_v1 = vsub.f32 0.0, %v5099_v46  ;;  %v1641_v32 = vsub.f32 1.0, %v1609_v2  ;;  %v1387_v57 = vmul.f32 %v5122_v47, %v1355_v54 }
 0x1c7   : > { %v1196_v22 = vmul.f32 1.0614054, %v5175_v37  ;;  %v1448_v33 = vmul.f32 %v5074_v29, %v1416_v36  ;;  %v7239_v15 = vmov -1.0   ;;  %4127 = vpow2.f32 %v1551_v30 }
 0x1c8   : > { %v1358_v48 = vadd.f32 -0.28449672, %v1326_v62  ;;  %v5193_v20 = vsel %vm1003_vm6, 1.0, %v7239_v15  ;;  %v5198_v58 = vsel %vm1006_vm7, 1.0, %v7239_v15  ;;  %v1610_v11 = vmul.f32 %v4118_v6, %v1450_v50 }
 0x1c9   : > { %v1228_v2 = vadd.f32 -1.4531521, %v1196_v22  ;;  %v1639_v44 = vsub.f32 1.0, %v1607_v39  ;;  %v1421_v12 = vadd.f32 0.2548296, %v1389_v28  ;;  %4129 = vpow2.f32 %v1557_v49 }
 0x1ca   : > { %v5185_v34 = vpop.f32.mrb[24].mxu0  ;;  %v1390_v8 = vmul.f32 %v5135_v27, %v1358_v48  ;;  %v1516_v30 = vmul.f32 %v1484_v1, %v5099_v46  ;;  %v1673_v16 = vmul.f32 %v1641_v32, %v5036_v61  ;;  %v1419_v25 = vadd.f32 0.2548296, %v1387_v57 }
 0x1cb   : > { %v5200_v56 = vpop.f32.mrb[25].mxu0  ;;  %v1260_v36 = vmul.f32 %v5175_v37, %v1228_v2  ;;  %v5212_v6 = vmul.f32 0.70710677, %v5183_v60  ;;  %v1608_v54 = vmul.f32 %v4122_v31, %v1448_v33  ;;  %v5218_v39 = vsel %vm1004_vm8, 1.0, %v7239_v15 }
 0x1cc   : > { %v5204_v29 = vpop.f32.mrb[26].mxu0  ;;  %v5221_v50 = vmul.f32 0.5, %v5113_v4  ;;  %v1642_v46 = vsub.f32 1.0, %v1610_v11  ;;  %v1422_v62 = vadd.f32 0.2548296, %v1390_v8  ;;  %v5225_v61 = vadd.f32 %v5020_v43, %v4969_v26  ;;  %v4124_v28 = vpop.eup %4123 }
 0x1cd   : > { %v5207_v41 = vpop.f32.mrb[27].mxu0  ;;  %v1292_v49 = vadd.f32 1.4214138, %v1260_v36  ;;  %v1453_v1 = vmul.f32 %v5115_v14, %v1421_v12  ;;  %v1553_v31 = vmul.f32 1.442695, %v1516_v30  ;;  %v1705_v57 = vadd.f32 1.0, %v1673_v16 }
 0x1ce   : > { %v5230_v40 = vand.u32 2147483647, %v5212_v6  ;;  %v1671_v48 = vmul.f32 %v1639_v44, %v5060_v42  ;;  %v1451_v22 = vmul.f32 %v5122_v47, %v1419_v25  ;;  %v1640_v14 = vsub.f32 1.0, %v1608_v54 }
 0x1cf   : > { %v5234_v4 = vpop.eup %4125  ;;  %v1324_v43 = vmul.f32 %v5175_v37, %v1292_v49  ;;  %v1489_v8 = vsub.f32 0.0, %v5155_v9  ;;  %v1674_v12 = vmul.f32 %v1642_v46, %v5087_v35  ;;  %v1454_v30 = vmul.f32 %v5135_v27, %v1422_v62 }
 0x1d0   : > { %v1201_v11 = vmul.f32 1.0614054, %v5234_v4  ;;  %v1103_v2 = vmul.f32 0.3275911, %v5230_v40  ;;  %v5247_v42 = vmul.f32 0.70710677, %v5225_v61  ;;  %v1613_v44 = vmul.f32 %v4124_v28, %v1453_v1 }
 0x1d1   : > { %v1356_v16 = vadd.f32 -0.28449672, %v1324_v43  ;;  %v4128_v47 = vpop.eup %4127  ;;  %v5252_v25 = vsel %vm1009_vm9, 1.0, %v7239_v15  ;;  %4131 = vpow2.f32 %v1553_v31  ;;  %v1672_v46 = vmul.f32 %v1640_v14, %v5090_v5 }
 0x1d2   : > { %v5232_v32 = vpop.f32.mrb[28].mxu0  ;;  %v1233_v36 = vadd.f32 -1.4531521, %v1201_v11  ;;  %v1135_v54 = vadd.f32 1.0, %v1103_v2  ;;  %v1521_v28 = vmul.f32 %v1489_v8, %v5155_v9  ;;  %v5261_v23 = vmul.f32 %v1705_v57, %v5002_v17 }
 0x1d3   : > { %7240 = vst [vmem:[#allocation7_spill] sm:$0xff] %v5232_v32  ;;  %v5239_v33 = vpop.f32.mrb[29].mxu0  ;;  %v1611_v32 = vmul.f32 %v4128_v47, %v1451_v22  ;;  %v1388_v35 = vmul.f32 %v5175_v37, %v1356_v16  ;;  %v4130_v27 = vpop.eup %4129  ;;  %v1706_v1 = vadd.f32 1.0, %v1674_v12  ;;  %v1074_v11 = vand.u32 2147483647, %v5247_v42 }
 0x1d4   : > { %7241 = vst [vmem:[#allocation8_spill] sm:$0xff] %v5239_v33  ;;  %v5254_v49 = vpop.f32.mrb[30].mxu0  ;;  %v1703_v33 = vadd.f32 1.0, %v1671_v48  ;;  %v1265_v62 = vmul.f32 %v5234_v4, %v1233_v36  ;;  %4133 = vrcp.f32 %v1135_v54  ;;  %v1614_v43 = vmul.f32 %v4130_v27, %v1454_v30 }
 0x1d5   : > { %7242 = vst [vmem:[#allocation9_spill] sm:$0xff] %v5254_v49  ;;  %v1645_v48 = vsub.f32 1.0, %v1613_v44  ;;  %v5266_v31 = vadd.f32 %v4969_v26, %v5029_v21  ;;  %v5270_v5 = vadd.f32 %v5063_v38, %v4969_v26  ;;  %v5272_v14 = vpop.f32.mrb[31].mxu0  ;;  %v1643_v17 = vsub.f32 1.0, %v1611_v32 }
 0x1d6   : > { %v1297_v22 = vadd.f32 1.4214138, %v1265_v62  ;;  %7243 = vst [vmem:[#allocation10_spill] sm:$0xff] %v5272_v14  ;;  %v5275_v9 = vmul.f32 %v1703_v33, %v5022_v59  ;;  %v1420_v57 = vadd.f32 0.2548296, %v1388_v35  ;;  %v1704_v2 = vadd.f32 1.0, %v1672_v46 }
 0x1d7   : > { %v1106_v8 = vmul.f32 0.3275911, %v1074_v11  ;;  %v1563_v30 = vmul.f32 1.442695, %v1521_v28  ;;  %v5279_v16 = vmul.f32 0.70710677, %v5266_v31  ;;  %v5286_v59 = vmul.f32 %v1706_v1, %v5024_v0 }
 0x1d8   : > { %v1329_v12 = vmul.f32 %v5234_v4, %v1297_v22  ;;  %v1646_v21 = vsub.f32 1.0, %v1614_v43  ;;  %v1487_v47 = vsub.f32 0.0, %v5230_v40  ;;  %v5283_v44 = vmul.f32 0.70710677, %v5270_v5 }
 0x1d9   : > { %v1138_v38 = vadd.f32 1.0, %v1106_v8  ;;  %v1677_v32 = vmul.f32 %v1645_v48, %v5147_v18  ;;  %v5290_v33 = vmul.f32 0.5, %v5183_v60  ;;  %v1072_v36 = vand.u32 2147483647, %v5279_v16 }
 0x1da   : > { %v1675_v54 = vmul.f32 %v1643_v17, %v5193_v20  ;;  %v1452_v35 = vmul.f32 %v5175_v37, %v1420_v57  ;;  %vm1007_vm10 = vcmp.ge.f32.partialorder %v5212_v6, 0.0  ;;  %v5297_v27 = vmul.f32 %v1704_v2, %v5039_v19 }
 0x1db   : > { %4135 = vrcp.f32 %v1138_v38  ;;  %v1361_v46 = vadd.f32 -0.28449672, %v1329_v12  ;;  %v1104_v0 = vmul.f32 0.3275911, %v1072_v36  ;;  %v5301_v18 = vadd.f32 %v4969_v26, %v5067_v55  ;;  %v4132_v60 = vpop.eup %4131 }
 0x1dc   : > { %v1678_v62 = vmul.f32 %v1646_v21, %v5198_v58  ;;  %4137 = vpow2.f32 %v1563_v30  ;;  %v1519_v20 = vmul.f32 %v1487_v47, %v5230_v40  ;;  %v5306_v37 = vand.u32 2147483647, %v5283_v44 }
 0x1dd   : > { %v1709_v28 = vadd.f32 1.0, %v1677_v32  ;;  %v5311_v19 = vsel %vm1007_vm10, 1.0, %v7239_v15  ;;  %v1490_v1 = vsub.f32 0.0, %v1074_v11  ;;  %v1136_v43 = vadd.f32 1.0, %v1104_v0 }
 0x1de   : > { %v5308_v6 = vpop.eup %4133  ;;  %v1707_v48 = vadd.f32 1.0, %v1675_v54  ;;  %v1612_v55 = vmul.f32 %v4132_v60, %v1452_v35  ;;  %v1109_v58 = vmul.f32 0.3275911, %v5306_v37  ;;  %v1393_v17 = vmul.f32 %v5234_v4, %v1361_v46 }
 0x1df   : > { %v1199_v22 = vmul.f32 1.0614054, %v5308_v6  ;;  %vm1010_vm11 = vcmp.ge.f32.partialorder %v5247_v42, 0.0  ;;  %4139 = vrcp.f32 %v1136_v43  ;;  %v5318_v40 = vmul.f32 0.70710677, %v5301_v18 }
 0x1e0   : > { %v1710_v57 = vadd.f32 1.0, %v1678_v62  ;;  %v1559_v2 = vmul.f32 1.442695, %v1519_v20  ;;  %v1141_v12 = vadd.f32 1.0, %v1109_v58  ;;  %v5321_v30 = vmul.f32 %v1709_v28, %v5096_v51 }
 0x1e1   : > { %v1231_v8 = vadd.f32 -1.4531521, %v1199_v22  ;;  %v5324_v21 = vmul.f32 0.5, %v5225_v61  ;;  %v1522_v47 = vmul.f32 %v1490_v1, %v1074_v11  ;;  %v5327_v38 = vand.u32 2147483647, %v5318_v40 }
 0x1e2   : > { %7244 = vst [vmem:[#allocation11_spill] sm:$0xff] %v5321_v30  ;;  %v5330_v32 = vmul.f32 %v1707_v48, %v5103_v7  ;;  %v1644_v54 = vsub.f32 1.0, %v1612_v55  ;;  %4141 = vrcp.f32 %v1141_v12  ;;  %v1425_v46 = vadd.f32 0.2548296, %v1393_v17 }
 0x1e3   : > { %v1263_v35 = vmul.f32 %v5308_v6, %v1231_v8  ;;  %v5336_v51 = vsel %vm1010_vm11, 1.0, %v7239_v15  ;;  %v1107_v61 = vmul.f32 0.3275911, %v5327_v38  ;;  %v5341_v11 = vadd.f32 %v5072_v63, %v4969_v26 }
 0x1e4   : > { %7245 = vst [vmem:[#allocation12_spill] sm:$0xff] %v5330_v32  ;;  %v5346_v7 = vmul.f32 %v1710_v57, %v5108_v53  ;;  %4143 = vpow2.f32 %v1559_v2  ;;  %v1488_v62 = vsub.f32 0.0, %v1072_v36  ;;  %v1565_v28 = vmul.f32 1.442695, %v1522_v47 }
 0x1e5   : > { %v5343_v0 = vpop.eup %4135  ;;  %v1295_v60 = vadd.f32 1.4214138, %v1263_v35  ;;  %vm1008_vm12 = vcmp.ge.f32.partialorder %v5279_v16, 0.0  ;;  %v1139_v42 = vadd.f32 1.0, %v1107_v61  ;;  %v1676_v43 = vmul.f32 %v1644_v54, %v5218_v39 }
 0x1e6   : > { %7246 = vst [vmem:[#allocation13_spill] sm:$0xff] %v5346_v7  ;;  %v1202_v20 = vmul.f32 1.0614054, %v5343_v0  ;;  %v4138_v1 = vpop.eup %4137  ;;  %v1493_v48 = vsub.f32 0.0, %v5306_v37  ;;  %v5354_v55 = vmul.f32 0.70710677, %v5341_v11  ;;  %v1457_v53 = vmul.f32 %v5234_v4, %v1425_v46 }
 0x1e7   : > { %v1327_v63 = vmul.f32 %v5308_v6, %v1295_v60  ;;  %4145 = vrcp.f32 %v1139_v42  ;;  %v5359_v58 = vadd.f32 %v4969_v26, %v5081_v13  ;;  %v5362_v17 = vmul.f32 0.5, %v5266_v31 }
 0x1e8   : > { %v1234_v22 = vadd.f32 -1.4531521, %v1202_v20  ;;  %v1520_v57 = vmul.f32 %v1488_v62, %v1072_v36  ;;  %v5365_v39 = vmul.f32 0.5, %v5270_v5  ;;  %v5368_v8 = vand.u32 2147483647, %v5354_v55 }
 0x1e9   : > { %v5370_v2 = vpop.eup %4139  ;;  %v1359_v12 = vadd.f32 -0.28449672, %v1327_v63  ;;  %v5376_v13 = vsel %vm1008_vm12, 1.0, %v7239_v15  ;;  %vm1013_vm13 = vcmp.ge.f32.partialorder %v5283_v44, 0.0  ;;  %v1708_v31 = vadd.f32 1.0, %v1676_v43 }
 0x1ea   : > { %v1266_v4 = vmul.f32 %v5343_v0, %v1234_v22  ;;  %4147 = vpow2.f32 %v1565_v28  ;;  %v1200_v5 = vmul.f32 1.0614054, %v5370_v2  ;;  %v1110_v36 = vmul.f32 0.3275911, %v5368_v8 }
 0x1eb   : > { %v1617_v47 = vmul.f32 %v4138_v1, %v1457_v53  ;;  %v1525_v35 = vmul.f32 %v1493_v48, %v5306_v37  ;;  %v5383_v46 = vmul.f32 0.70710677, %v5359_v58  ;;  %v1561_v60 = vmul.f32 1.442695, %v1520_v57 }
 0x1ec   : > { %v1298_v54 = vadd.f32 1.4214138, %v1266_v4  ;;  %v5385_v61 = vpop.eup %4141  ;;  %v1232_v16 = vadd.f32 -1.4531521, %v1200_v5  ;;  %v5388_v62 = vsel %vm1013_vm13, 1.0, %v7239_v15  ;;  %v1142_v44 = vadd.f32 1.0, %v1110_v36 }
 0x1ed   : > { %v1391_v20 = vmul.f32 %v5308_v6, %v1359_v12  ;;  %v1205_v28 = vmul.f32 1.0614054, %v5385_v61  ;;  %v1076_v42 = vand.u32 2147483647, %v5383_v46  ;;  %v881_v37 = vadd.f32 %v5105_v24, %v4969_v26 }
 0x1ee   : > { %v4144_v1 = vpop.eup %4143  ;;  %v1330_v43 = vmul.f32 %v5343_v0, %v1298_v54  ;;  %v1264_v63 = vmul.f32 %v5370_v2, %v1232_v16  ;;  %v5398_v48 = vmul.f32 0.5, %v5301_v18  ;;  %4149 = vrcp.f32 %v1142_v44 }
 0x1ef   : > { %v5401_v53 = vmul.f32 %v1708_v31, %v5215_v52  ;;  %v1649_v22 = vsub.f32 1.0, %v1617_v47  ;;  %v1237_v57 = vadd.f32 -1.4531521, %v1205_v28  ;;  %v1571_v12 = vmul.f32 1.442695, %v1525_v35 }
 0x1f0   : > { %v1296_v4 = vadd.f32 1.4214138, %v1264_v63  ;;  %vm1011_vm14 = vcmp.ge.f32.partialorder %v5318_v40, 0.0  ;;  %v1491_v24 = vsub.f32 0.0, %v5327_v38  ;;  %v1108_v5 = vmul.f32 0.3275911, %v1076_v42 }
 0x1f1   : > { %7247 = vst [vmem:[#allocation14_spill] sm:$0xff] %v5401_v53  ;;  %v5405_v36 = vpop.eup %4145  ;;  %v1423_v54 = vadd.f32 0.2548296, %v1391_v20  ;;  %4151 = vpow2.f32 %v1561_v60  ;;  %v1269_v18 = vmul.f32 %v5385_v61, %v1237_v57  ;;  %v5408_v16 = vmul.f32 0.70710677, %v881_v37 }
 0x1f2   : > { %v1362_v44 = vadd.f32 -0.28449672, %v1330_v43  ;;  %v1328_v52 = vmul.f32 %v5370_v2, %v1296_v4  ;;  %v1203_v31 = vmul.f32 1.0614054, %v5405_v36  ;;  %v1140_v47 = vadd.f32 1.0, %v1108_v5 }
 0x1f3   : > { %v1681_v35 = vmul.f32 %v1649_v22, %v5252_v25  ;;  %v1301_v40 = vadd.f32 1.4214138, %v1269_v18  ;;  %4153 = vpow2.f32 %v1571_v12  ;;  %v5414_v28 = vsel %vm1011_vm14, 1.0, %v7239_v15 }
 0x1f4   : > { %v4148_v63 = vpop.eup %4147  ;;  %v1235_v20 = vadd.f32 -1.4531521, %v1203_v31  ;;  %v1523_v60 = vmul.f32 %v1491_v24, %v5327_v38  ;;  %v1494_v57 = vsub.f32 0.0, %v5368_v8  ;;  %4155 = vrcp.f32 %v1140_v47 }
 0x1f5   : > { %v1455_v43 = vmul.f32 %v5308_v6, %v1423_v54  ;;  %v1360_v4 = vadd.f32 -0.28449672, %v1328_v52  ;;  %v1333_v14 = vmul.f32 %v5385_v61, %v1301_v40  ;;  %v5421_v5 = vmul.f32 0.5, %v5341_v11 }
 0x1f6   : > { %v1394_v25 = vmul.f32 %v5343_v0, %v1362_v44  ;;  %v1267_v22 = vmul.f32 %v5405_v36, %v1235_v20  ;;  %v5426_v12 = vand.u32 2147483647, %v5408_v16  ;;  %v5430_v38 = vadd.f32 %v4969_v26, %v5120_v45 }
 0x1f7   : > { %v1713_v24 = vadd.f32 1.0, %v1681_v35  ;;  %v1365_v18 = vadd.f32 -0.28449672, %v1333_v14  ;;  %v5433_v6 = vmul.f32 0.5, %v5359_v58  ;;  %v1492_v54 = vsub.f32 0.0, %v1076_v42 }
 0x1f8   : > { %v5435_v52 = vpop.eup %4149  ;;  %v1299_v11 = vadd.f32 1.4214138, %v1267_v22  ;;  %v1567_v31 = vmul.f32 1.442695, %v1523_v60  ;;  %v1526_v44 = vmul.f32 %v1494_v57, %v5368_v8  ;;  %v1113_v47 = vmul.f32 0.3275911, %v5426_v12 }
 0x1f9   : > { %v1615_v40 = vmul.f32 %v4144_v1, %v1455_v43  ;;  %v1392_v20 = vmul.f32 %v5370_v2, %v1360_v4  ;;  %v1397_v45 = vmul.f32 %v5385_v61, %v1365_v18  ;;  %v1206_v35 = vmul.f32 1.0614054, %v5435_v52 }
 0x1fa   : > { %v1426_v14 = vadd.f32 0.2548296, %v1394_v25  ;;  %v1331_v58 = vmul.f32 %v5405_v36, %v1299_v11  ;;  %v1145_v7 = vadd.f32 1.0, %v1113_v47  ;;  %v5444_v30 = vmul.f32 0.70710677, %v5430_v38 }
 0x1fb   : > { %v4152_v22 = vpop.eup %4151  ;;  %vm1014_vm15 = vcmp.ge.f32.partialorder %v5354_v55, 0.0  ;;  %v1238_v8 = vadd.f32 -1.4531521, %v1206_v35  ;;  %v1524_v60 = vmul.f32 %v1492_v54, %v1076_v42  ;;  %v5447_v57 = vmul.f32 0.5, %v881_v37 }
 0x1fc   : > { %v5450_v1 = vmul.f32 %v1713_v24, %v5221_v50  ;;  %v1363_v43 = vadd.f32 -0.28449672, %v1331_v58  ;;  %v1573_v4 = vmul.f32 1.442695, %v1526_v44  ;;  %4157 = vrcp.f32 %v1145_v7 }
 0x1fd   : > { %v4154_v25 = vpop.eup %4153  ;;  %v1647_v18 = vsub.f32 1.0, %v1615_v40  ;;  %v1424_v11 = vadd.f32 0.2548296, %v1392_v20  ;;  %v1429_v47 = vadd.f32 0.2548296, %v1397_v45  ;;  %v1270_v49 = vmul.f32 %v5435_v52, %v1238_v8 }
 0x1fe   : > { %v5453_v53 = vpop.eup %4155  ;;  %v1458_v32 = vmul.f32 %v5343_v0, %v1426_v14  ;;  %v1395_v42 = vmul.f32 %v5405_v36, %v1363_v43  ;;  %v5458_v37 = vand.u32 2147483647, %v5444_v30  ;;  %v5462_v50 = vadd.f32 %v5127_v3, %v4969_v26 }
 0x1ff   : > { %4159 = vpow2.f32 %v1567_v31  ;;  %v1302_v7 = vadd.f32 1.4214138, %v1270_v49  ;;  %v1204_v24 = vmul.f32 1.0614054, %v5453_v53  ;;  %v1569_v54 = vmul.f32 1.442695, %v1524_v60 }
 0x200   : > { %4161 = vpow2.f32 %v1573_v4  ;;  %vm1012_vm1 = vcmp.ge.f32.partialorder %v5383_v46, 0.0  ;;  %vm1017_vm2 = vcmp.ge.f32.partialorder %v5408_v16, 0.0  ;;  %v1111_v0 = vmul.f32 0.3275911, %v5458_v37 }
 0x201   : > { %v1456_v44 = vmul.f32 %v5370_v2, %v1424_v11  ;;  %v1461_v40 = vmul.f32 %v5385_v61, %v1429_v47  ;;  %v1334_v20 = vmul.f32 %v5435_v52, %v1302_v7  ;;  %v1236_v3 = vadd.f32 -1.4531521, %v1204_v24  ;;  %v7248_v11 = vld [vmem:[#allocation3_spill] sm:$0xff] }
 0x202   : > { %v1618_v45 = vmul.f32 %v4148_v63, %v1458_v32  ;;  %v1427_v31 = vadd.f32 0.2548296, %v1395_v42  ;;  %v1143_v49 = vadd.f32 1.0, %v1111_v0  ;;  %v5472_v35 = vmul.f32 0.70710677, %v5462_v50 }
 0x203   : > { %v1679_v14 = vmul.f32 %v1647_v18, %v5311_v19  ;;  %v1366_v58 = vadd.f32 -0.28449672, %v1334_v20  ;;  %v1268_v8 = vmul.f32 %v5453_v53, %v1236_v3  ;;  %4163 = vpow2.f32 %v1569_v54 }
 0x204   : > { %v5479_v2 = vsel %vm1014_vm15, 1.0, %v7239_v15  ;;  %v5484_v32 = vsel %vm1012_vm1, 1.0, %v7239_v15  ;;  %v1497_v61 = vsub.f32 0.0, %v5426_v12  ;;  %4165 = vrcp.f32 %v1143_v49 }
 0x205   : > { %v1616_v63 = vmul.f32 %v4152_v22, %v1456_v44  ;;  %v1621_v60 = vmul.f32 %v4154_v25, %v1461_v40  ;;  %v1300_v19 = vadd.f32 1.4214138, %v1268_v8  ;;  %v5490_v43 = vsel %vm1017_vm2, 1.0, %v7239_v15  ;;  %v7249_v8 = vld [vmem:[#allocation4_spill] sm:$0xff] }
 0x206   : > { %v5492_v4 = vpop.eup %4157  ;;  %v1650_v55 = vsub.f32 1.0, %v1618_v45  ;;  %v1459_v18 = vmul.f32 %v5405_v36, %v1427_v31  ;;  %v5496_v46 = vand.u32 2147483647, %v5472_v35  ;;  %v5500_v47 = vadd.f32 %v4969_v26, %v7248_v11 }
 0x207   : > { %v1711_v22 = vadd.f32 1.0, %v1679_v14  ;;  %v1398_v25 = vmul.f32 %v5435_v52, %v1366_v58  ;;  %v1332_v42 = vmul.f32 %v5453_v53, %v1300_v19  ;;  %v1209_v16 = vmul.f32 1.0614054, %v5492_v4  ;;  %v5522_v58 = vld [vmem:[%s7222_s3] ss:$0 sm:$0xff] }
 0x208   : > { %v1529_v7 = vmul.f32 %v1497_v61, %v5426_v12  ;;  %v5507_v24 = vmul.f32 0.5, %v5430_v38  ;;  %vm1015_vm3 = vcmp.ge.f32.partialorder %v5444_v30, 0.0  ;;  %v1114_v36 = vmul.f32 0.3275911, %v5496_v46 }
 0x209   : > { %v4160_v54 = vpop.eup %4159  ;;  %v1648_v0 = vsub.f32 1.0, %v1616_v63  ;;  %v1653_v26 = vsub.f32 1.0, %v1621_v60  ;;  %v1364_v44 = vadd.f32 -0.28449672, %v1332_v42  ;;  %v1241_v40 = vadd.f32 -1.4531521, %v1209_v16 }
 0x20a   : > { %v4162_v20 = vpop.eup %4161  ;;  %v1682_v3 = vmul.f32 %v1650_v55, %v5336_v51  ;;  %v1619_v45 = vmul.f32 %v4160_v54, %v1459_v18  ;;  %v1146_v31 = vadd.f32 1.0, %v1114_v36  ;;  %v5513_v49 = vmul.f32 0.70710677, %v5500_v47 }
 0x20b   : > { %v5516_v12 = vmul.f32 %v1711_v22, %v5290_v33  ;;  %v1430_v38 = vadd.f32 0.2548296, %v1398_v25  ;;  %v1273_v14 = vmul.f32 %v5492_v4, %v1241_v40  ;;  %v5526_v61 = vadd.f32 %v5522_v58, %v7249_v8  ;;  %v4088_v8 = vld [vmem:[%s7225_s6 + $0x8] sm:$0xff]  }
 0x20c   : > { %v1396_v51 = vmul.f32 %v5453_v53, %v1364_v44  ;;  %v1579_v63 = vmul.f32 1.442695, %v1529_v7  ;;  %v5532_v33 = vsel %vm1015_vm3, 1.0, %v7239_v15  ;;  %4167 = vrcp.f32 %v1146_v31 }
 0x20d   : > { %v4164_v60 = vpop.eup %4163  ;;  %v1680_v19 = vmul.f32 %v1648_v0, %v5376_v13  ;;  %v1685_v55 = vmul.f32 %v1653_v26, %v5388_v62  ;;  %v1305_v18 = vadd.f32 1.4214138, %v1273_v14  ;;  %v1495_v11 = vsub.f32 0.0, %v5458_v37 }
 0x20e   : > { %v5537_v22 = vpop.eup %4165  ;;  %v1714_v25 = vadd.f32 1.0, %v1682_v3  ;;  %v1651_v42 = vsub.f32 1.0, %v1619_v45  ;;  %v5540_v16 = vand.u32 2147483647, %v5513_v49  ;;  %v5543_v30 = vmul.f32 0.70710677, %v5526_v61 }
 0x20f   : > { %v1462_v7 = vmul.f32 %v5435_v52, %v1430_v38  ;;  %v1337_v36 = vmul.f32 %v5492_v4, %v1305_v18  ;;  %v1207_v13 = vmul.f32 1.0614054, %v5537_v22  ;;  %v5549_v62 = vmul.f32 0.5, %v5462_v50  ;;  %v4087_v52 = vld [vmem:[%s7225_s6] sm:$0xff]  }
 0x210   : > { %v1428_v54 = vadd.f32 0.2548296, %v1396_v51  ;;  %4169 = vpow2.f32 %v1579_v63  ;;  %v1112_v0 = vmul.f32 0.3275911, %v5540_v16  ;;  %v5553_v26 = vand.u32 2147483647, %v5543_v30  ;;  %3971 = vmatprep.subr.bf16.mxu0 %v4087_v52 }
 0x211   : > { %v1712_v44 = vadd.f32 1.0, %v1680_v19  ;;  %v1717_v40 = vadd.f32 1.0, %v1685_v55  ;;  %v1239_v3 = vadd.f32 -1.4531521, %v1207_v13  ;;  %v1527_v45 = vmul.f32 %v1495_v11, %v5458_v37  ;;  %3972 = vmatpush3.bf16.msra.mxu0 %v4087_v52 }
 0x212   : > { %v1683_v31 = vmul.f32 %v1651_v42, %v5414_v28  ;;  %v1369_v50 = vadd.f32 -0.28449672, %v1337_v36  ;;  %v1144_v38 = vadd.f32 1.0, %v1112_v0  ;;  %v1117_v14 = vmul.f32 0.3275911, %v5553_v26  ;;  %v7250_v42 = vld [vmem:[#allocation5_spill] sm:$0xff]  ;;  %3973 = vmatprep.subr.bf16.mxu0 %v4088_v8 }
 0x213   : > { %v1622_v51 = vmul.f32 %v4162_v20, %v1462_v7  ;;  %v1271_v63 = vmul.f32 %v5537_v22, %v1239_v3  ;;  %vm1018_vm4 = vcmp.ge.f32.partialorder %v5472_v35, 0.0  ;;  %v1498_v37 = vsub.f32 0.0, %v5496_v46 }
 0x214   : > { %v5568_v19 = vmul.f32 %v1714_v25, %v5324_v21  ;;  %v1460_v28 = vmul.f32 %v5453_v53, %v1428_v54  ;;  %4171 = vrcp.f32 %v1144_v38  ;;  %v1149_v55 = vadd.f32 1.0, %v1117_v14 }
 0x215   : > { %v5572_v18 = vmul.f32 %v1712_v44, %v5362_v17  ;;  %v1303_v11 = vadd.f32 1.4214138, %v1271_v63  ;;  %v1575_v20 = vmul.f32 1.442695, %v1527_v45  ;;  %v5576_v7 = vadd.f32 %v5522_v58, %v7250_v42  ;;  %3974 = vmatpush3.bf16.msra.mxu0 %v4088_v8 }
 0x216   : > { %v5578_v36 = vpop.eup %4167  ;;  %v5581_v21 = vmul.f32 %v1717_v40, %v5365_v39  ;;  %v1715_v25 = vadd.f32 1.0, %v1683_v31  ;;  %v1401_v53 = vmul.f32 %v5492_v4, %v1369_v50  ;;  %v5587_v17 = vsel %vm1018_vm4, 1.0, %v7239_v15  ;;  %v7251_v40 = vld [vmem:[#allocation6_spill] sm:$0xff] }
 0x217   : > { %v1654_v13 = vsub.f32 1.0, %v1622_v51  ;;  %v1335_v54 = vmul.f32 %v5537_v22, %v1303_v11  ;;  %v1210_v0 = vmul.f32 1.0614054, %v5578_v36  ;;  %v1530_v44 = vmul.f32 %v1498_v37, %v5496_v46 }
 0x218   : > { %v1620_v3 = vmul.f32 %v4164_v60, %v1460_v28  ;;  %4173 = vrcp.f32 %v1149_v55  ;;  %v5593_v39 = vmul.f32 0.70710677, %v5576_v7  ;;  %v5597_v45 = vadd.f32 %v5522_v58, %v7251_v40 }
 0x219   : > { %4175 = vpow2.f32 %v1575_v20  ;;  %v1242_v35 = vadd.f32 -1.4531521, %v1210_v0  ;;  %v5600_v52 = vmul.f32 0.5, %v5500_v47  ;;  %vm1016_vm5 = vcmp.ge.f32.partialorder %v5513_v49, 0.0 }
 0x21a   : > { %v4170_v31 = vpop.eup %4169  ;;  %v5604_v46 = vmul.f32 %v1715_v25, %v5398_v48  ;;  %v1433_v60 = vadd.f32 0.2548296, %v1401_v53  ;;  %v1367_v50 = vadd.f32 -0.28449672, %v1335_v54  ;;  %v5607_v38 = vand.u32 2147483647, %v5593_v39 }
 0x21b   : > { %v1686_v14 = vmul.f32 %v1654_v13, %v5479_v2  ;;  %v1274_v8 = vmul.f32 %v5578_v36, %v1242_v35  ;;  %v1581_v51 = vmul.f32 1.442695, %v1530_v44  ;;  %v1496_v63 = vsub.f32 0.0, %v5540_v16 }
 0x21c   : > { %v1652_v47 = vsub.f32 1.0, %v1620_v3  ;;  %v1115_v37 = vmul.f32 0.3275911, %v5607_v38  ;;  %v5614_v49 = vmul.f32 0.70710677, %v5597_v45  ;;  %v5618_v48 = vadd.f32 %v5522_v58, %v5173_v10 }
 0x21d   : > { %v1306_v28 = vadd.f32 1.4214138, %v1274_v8  ;;  %v5621_v55 = vsel %vm1016_vm5, 1.0, %v7239_v15  ;;  %vm1021_vm6 = vcmp.ge.f32.partialorder %v5543_v30, 0.0  ;;  %v1501_v2 = vsub.f32 0.0, %v5553_v26 }
 0x21e   : > { %v5625_v11 = vpop.eup %4171  ;;  %v1465_v20 = vmul.f32 %v5492_v4, %v1433_v60  ;;  %v1399_v42 = vmul.f32 %v5537_v22, %v1367_v50  ;;  %v1147_v25 = vadd.f32 1.0, %v1115_v37  ;;  %v5630_v53 = vand.u32 2147483647, %v5614_v49 }
 0x21f   : > { %v1718_v10 = vadd.f32 1.0, %v1686_v14  ;;  %v1338_v13 = vmul.f32 %v5578_v36, %v1306_v28  ;;  %v1208_v54 = vmul.f32 1.0614054, %v5625_v11  ;;  %v1528_v0 = vmul.f32 %v1496_v63, %v5540_v16 }
 0x220   : > { %v1684_v44 = vmul.f32 %v1652_v47, %v5484_v32  ;;  %4177 = vrcp.f32 %v1147_v25  ;;  %v1118_v3 = vmul.f32 0.3275911, %v5630_v53  ;;  %v5638_v4 = vmul.f32 0.70710677, %v5618_v48 }
 0x221   : > { %v1370_v40 = vadd.f32 -0.28449672, %v1338_v13  ;;  %4179 = vpow2.f32 %v1581_v51  ;;  %v1240_v35 = vadd.f32 -1.4531521, %v1208_v54  ;;  %v1533_v60 = vmul.f32 %v1501_v2, %v5553_v26 }
 0x222   : > { %v5641_v50 = vpop.eup %4173  ;;  %v1625_v14 = vmul.f32 %v4170_v31, %v1465_v20  ;;  %v1431_v8 = vadd.f32 0.2548296, %v1399_v42  ;;  %v5644_v37 = vmul.f32 0.5, %v5526_v61  ;;  %v1150_v16 = vadd.f32 1.0, %v1118_v3 }
 0x223   : > { %v4176_v32 = vpop.eup %4175  ;;  %v1272_v63 = vmul.f32 %v5625_v11, %v1240_v35  ;;  %v1577_v47 = vmul.f32 1.442695, %v1528_v0  ;;  %v5650_v28 = vsel %vm1021_vm6, 1.0, %v7239_v15  ;;  %v1213_v51 = vmul.f32 1.0614054, %v5641_v50 }
 0x224   : > { %v5654_v26 = vmul.f32 %v1718_v10, %v5421_v5  ;;  %v1716_v31 = vadd.f32 1.0, %v1684_v44  ;;  %4181 = vrcp.f32 %v1150_v16  ;;  %v5657_v61 = vand.u32 2147483647, %v5638_v4 }
 0x225   : > { %v1402_v2 = vmul.f32 %v5578_v36, %v1370_v40  ;;  %v1304_v20 = vadd.f32 1.4214138, %v1272_v63  ;;  %v1245_v42 = vadd.f32 -1.4531521, %v1213_v51  ;;  %v1587_v25 = vmul.f32 1.442695, %v1533_v60 }
 0x226   : > { %v1657_v13 = vsub.f32 1.0, %v1625_v14  ;;  %v1463_v30 = vmul.f32 %v5537_v22, %v1431_v8  ;;  %v1116_v54 = vmul.f32 0.3275911, %v5657_v61  ;;  %v5664_v0 = vadd.f32 %v5522_v58, %v5185_v34 }
 0x227   : > { %v1336_v5 = vmul.f32 %v5625_v11, %v1304_v20  ;;  %4183 = vpow2.f32 %v1577_v47  ;;  %v1277_v10 = vmul.f32 %v5641_v50, %v1245_v42  ;;  %v5669_v44 = vmul.f32 0.5, %v5576_v7 }
 0x228   : > { %v5672_v3 = vmul.f32 %v1716_v31, %v5433_v6  ;;  %vm1019_vm7 = vcmp.ge.f32.partialorder %v5593_v39, 0.0  ;;  %v1499_v22 = vsub.f32 0.0, %v5607_v38  ;;  %v1148_v40 = vadd.f32 1.0, %v1116_v54 }
 0x229   : > { %v1434_v35 = vadd.f32 0.2548296, %v1402_v2  ;;  %v1368_v60 = vadd.f32 -0.28449672, %v1336_v5  ;;  %v1309_v34 = vadd.f32 1.4214138, %v1277_v10  ;;  %4185 = vpow2.f32 %v1587_v25 }
 0x22a   : > { %v5676_v14 = vpop.eup %4177  ;;  %v1689_v8 = vmul.f32 %v1657_v13, %v5490_v43  ;;  %v1623_v16 = vmul.f32 %v4176_v32, %v1463_v30  ;;  %4187 = vrcp.f32 %v1148_v40  ;;  %v5680_v7 = vmul.f32 0.70710677, %v5664_v0 }
 0x22b   : > { %v4180_v6 = vpop.eup %4179  ;;  %v1400_v63 = vmul.f32 %v5625_v11, %v1368_v60  ;;  %v1341_v47 = vmul.f32 %v5641_v50, %v1309_v34  ;;  %v1211_v51 = vmul.f32 1.0614054, %v5676_v14  ;;  %v5687_v31 = vadd.f32 %v5522_v58, %v5200_v56 }
 0x22c   : > { %v5692_v43 = vsel %vm1019_vm7, 1.0, %v7239_v15  ;;  %v5695_v32 = vmul.f32 0.5, %v5597_v45  ;;  %v1502_v2 = vsub.f32 0.0, %v5630_v53  ;;  %v5699_v20 = vand.u32 2147483647, %v5680_v7 }
 0x22d   : > { %7252 = vst [vmem:[#allocation3_spill] sm:$0xff] %v5687_v31  ;;  %v1466_v42 = vmul.f32 %v5578_v36, %v1434_v35  ;;  %v1373_v25 = vadd.f32 -0.28449672, %v1341_v47  ;;  %v1243_v13 = vadd.f32 -1.4531521, %v1211_v51  ;;  %v1531_v56 = vmul.f32 %v1499_v22, %v5607_v38 }
 0x22e   : > { %v5703_v30 = vpop.eup %4181  ;;  %v1655_v54 = vsub.f32 1.0, %v1623_v16  ;;  %vm1022_vm8 = vcmp.ge.f32.partialorder %v5614_v49, 0.0  ;;  %v5707_v39 = vmul.f32 0.5, %v5618_v48  ;;  %v1121_v45 = vmul.f32 0.3275911, %v5699_v20 }
 0x22f   : > { %v1721_v5 = vadd.f32 1.0, %v1689_v8  ;;  %v1432_v10 = vadd.f32 0.2548296, %v1400_v63  ;;  %v1275_v40 = vmul.f32 %v5676_v14, %v1243_v13  ;;  %v5712_v36 = vmul.f32 0.70710677, %v5687_v31 }
 0x230   : > { %v1405_v35 = vmul.f32 %v5641_v50, %v1373_v25  ;;  %v1214_v38 = vmul.f32 1.0614054, %v5703_v30  ;;  %v1534_v22 = vmul.f32 %v1502_v2, %v5630_v53  ;;  %v1153_v60 = vadd.f32 1.0, %v1121_v45 }
 0x231   : > { %v4184_v49 = vpop.eup %4183  ;;  %v1626_v34 = vmul.f32 %v4180_v6, %v1466_v42  ;;  %v1307_v48 = vadd.f32 1.4214138, %v1275_v40  ;;  %v1583_v16 = vmul.f32 1.442695, %v1531_v56  ;;  %v5718_v47 = vsel %vm1022_vm8, 1.0, %v7239_v15 }
 0x232   : > { %v1687_v8 = vmul.f32 %v1655_v54, %v5532_v33  ;;  %v1246_v63 = vadd.f32 -1.4531521, %v1214_v38  ;;  %v1500_v51 = vsub.f32 0.0, %v5657_v61  ;;  %4189 = vrcp.f32 %v1153_v60 }
 0x233   : > { %v4186_v13 = vpop.eup %4185  ;;  %v1464_v25 = vmul.f32 %v5625_v11, %v1432_v10  ;;  %v1339_v31 = vmul.f32 %v5676_v14, %v1307_v48  ;;  %vm1020_vm9 = vcmp.ge.f32.partialorder %v5638_v4, 0.0  ;;  %v1087_v53 = vand.u32 2147483647, %v5712_v36 }
 0x234   : > { %v5726_v6 = vpop.eup %4187  ;;  %v1437_v2 = vadd.f32 0.2548296, %v1405_v35  ;;  %v1278_v42 = vmul.f32 %v5703_v30, %v1246_v63  ;;  %v1589_v56 = vmul.f32 1.442695, %v1534_v22  ;;  %v5731_v33 = vadd.f32 %v5522_v58, %v5204_v29 }
 0x235   : > { %v5734_v54 = vmul.f32 %v1721_v5, %v5447_v57  ;;  %v1658_v11 = vsub.f32 1.0, %v1626_v34  ;;  %4191 = vpow2.f32 %v1583_v16  ;;  %v1212_v45 = vmul.f32 1.0614054, %v5726_v6 }
 0x236   : > { %v1719_v10 = vadd.f32 1.0, %v1687_v8  ;;  %v1310_v40 = vadd.f32 1.4214138, %v1278_v42  ;;  %v1532_v38 = vmul.f32 %v1500_v51, %v5657_v61  ;;  %v1119_v60 = vmul.f32 0.3275911, %v1087_v53 }
 0x237   : > { %v1624_v35 = vmul.f32 %v4184_v49, %v1464_v25  ;;  %v1371_v48 = vadd.f32 -0.28449672, %v1339_v31  ;;  %v5741_v22 = vsel %vm1020_vm9, 1.0, %v7239_v15  ;;  %v1244_v29 = vadd.f32 -1.4531521, %v1212_v45 }
 0x238   : > { %v1469_v57 = vmul.f32 %v5641_v50, %v1437_v2  ;;  %4193 = vpow2.f32 %v1589_v56  ;;  %v1151_v5 = vadd.f32 1.0, %v1119_v60  ;;  %v5745_v34 = vmul.f32 0.70710677, %v5731_v33 }
 0x239   : > { %v1690_v16 = vmul.f32 %v1658_v11, %v5587_v17  ;;  %v1342_v61 = vmul.f32 %v5703_v30, %v1310_v40  ;;  %v1276_v49 = vmul.f32 %v5726_v6, %v1244_v29  ;;  %v5751_v31 = vmul.f32 0.5, %v5664_v0 }
 0x23a   : > { %v5754_v4 = vmul.f32 %v1719_v10, %v5507_v24  ;;  %v1585_v8 = vmul.f32 1.442695, %v1532_v38  ;;  %v1505_v50 = vsub.f32 0.0, %v5699_v20  ;;  %4195 = vrcp.f32 %v1151_v5 }
 0x23b   : > { %v1656_v63 = vsub.f32 1.0, %v1624_v35  ;;  %v1403_v51 = vmul.f32 %v5676_v14, %v1371_v48  ;;  %v1308_v25 = vadd.f32 1.4214138, %v1276_v49  ;;  %vm1025_vm10 = vcmp.ge.f32.partialorder %v5680_v7, 0.0 }
 0x23c   : > { %v5759_v17 = vpop.eup %4189  ;;  %v1629_v2 = vmul.f32 %v4186_v13, %v1469_v57  ;;  %v1503_v42 = vsub.f32 0.0, %v1087_v53  ;;  %v5762_v0 = vand.u32 2147483647, %v5745_v34  ;;  %v5766_v24 = vadd.f32 %v5522_v58, %v5207_v41 }
 0x23d   : > { %v1722_v56 = vadd.f32 1.0, %v1690_v16  ;;  %v1374_v11 = vadd.f32 -0.28449672, %v1342_v61  ;;  %v1340_v45 = vmul.f32 %v5726_v6, %v1308_v25  ;;  %v1217_v10 = vmul.f32 1.0614054, %v5759_v17 }
 0x23e   : > { %v1537_v40 = vmul.f32 %v1505_v50, %v5699_v20  ;;  %vm1023_vm11 = vcmp.ge.f32.partialorder %v5712_v36, 0.0  ;;  %v1122_v13 = vmul.f32 0.3275911, %v5762_v0  ;;  %v1768_v38 = vpack.c.bf16 %v5286_v59, %v5261_v23 }
 0x23f   : > { %v4192_v60 = vpop.eup %4191  ;;  %v1688_v35 = vmul.f32 %v1656_v63, %v5621_v55  ;;  %v1435_v41 = vadd.f32 0.2548296, %v1403_v51  ;;  %v1372_v48 = vadd.f32 -0.28449672, %v1340_v45  ;;  %v1249_v29 = vadd.f32 -1.4531521, %v1217_v10 }
 0x240   : > { %v1661_v57 = vsub.f32 1.0, %v1629_v2  ;;  %v1535_v5 = vmul.f32 %v1503_v42, %v1087_v53  ;;  %v1154_v16 = vadd.f32 1.0, %v1122_v13  ;;  %v5777_v61 = vmul.f32 0.70710677, %v5766_v24  ;;  %v7253_v53 = vld [vmem:[#allocation7_spill] sm:$0xff] }
 0x241   : > { %v1406_v20 = vmul.f32 %v5703_v30, %v1374_v11  ;;  %4197 = vpow2.f32 %v1585_v8  ;;  %v5783_v49 = vsel %vm1025_vm10, 1.0, %v7239_v15  ;;  %v1281_v50 = vmul.f32 %v5759_v17, %v1249_v29 }
 0x242   : > { %v4194_v55 = vpop.eup %4193  ;;  %v1404_v63 = vmul.f32 %v5726_v6, %v1372_v48  ;;  %v1595_v51 = vmul.f32 1.442695, %v1537_v40  ;;  %4199 = vrcp.f32 %v1154_v16  ;;  %v5789_v25 = vadd.f32 %v5522_v58, %v7253_v53  ;;  %v1896_v40 = vpop.permute.xlu0 %1895 }
 0x243   : > { %v5792_v2 = vmul.f32 %v1722_v56, %v5549_v62  ;;  %v1467_v8 = vmul.f32 %v5676_v14, %v1435_v41  ;;  %v1313_v42 = vadd.f32 1.4214138, %v1281_v50  ;;  %v5798_v7 = vsel %vm1023_vm11, 1.0, %v7239_v15 }
 0x244   : > { %v5800_v11 = vpop.eup %4195  ;;  %v1720_v45 = vadd.f32 1.0, %v1688_v35  ;;  %v1693_v10 = vmul.f32 %v1661_v57, %v5650_v28  ;;  %v1591_v13 = vmul.f32 1.442695, %v1535_v5  ;;  %v5804_v48 = vand.u32 2147483647, %v5777_v61 }
 0x245   : > { %v1438_v62 = vadd.f32 0.2548296, %v1406_v20  ;;  %v1345_v56 = vmul.f32 %v5759_v17, %v1313_v42  ;;  %v1215_v14 = vmul.f32 1.0614054, %v5800_v11  ;;  %vm1026_vm12 = vcmp.ge.f32.partialorder %v5745_v34, 0.0 }
 0x246   : > { %v1436_v36 = vadd.f32 0.2548296, %v1404_v63  ;;  %4201 = vpow2.f32 %v1595_v51  ;;  %v1120_v41 = vmul.f32 0.3275911, %v5804_v48  ;;  %v5811_v35 = vmul.f32 0.70710677, %v5789_v25 }
 0x247   : > { %v1627_v28 = vmul.f32 %v4192_v60, %v1467_v8  ;;  %v1377_v29 = vadd.f32 -0.28449672, %v1345_v56  ;;  %v1247_v57 = vadd.f32 -1.4531521, %v1215_v14  ;;  %v1767_v5 = vpack.c.bf16 %v5297_v27, %v5275_v9  ;;  %v1898_v27 = vpop.permute.xlu0 %1897 }
 0x248   : > { %v5816_v16 = vmul.f32 %v1720_v45, %v5600_v52  ;;  %v5819_v20 = vmul.f32 0.5, %v5731_v33  ;;  %v1506_v50 = vsub.f32 0.0, %v5762_v0  ;;  %v1152_v63 = vadd.f32 1.0, %v1120_v41 }
 0x249   : > { %v1725_v51 = vadd.f32 1.0, %v1693_v10  ;;  %v1470_v53 = vmul.f32 %v5703_v30, %v1438_v62  ;;  %v1409_v42 = vmul.f32 %v5759_v17, %v1377_v29  ;;  %v1279_v60 = vmul.f32 %v5800_v11, %v1247_v57  ;;  %v7254_v29 = vld [vmem:[#allocation12_spill] sm:$0xff]  ;;  %v7255_v57 = vld [vmem:[#allocation14_spill] sm:$0xff] }
 0x24a   : > { %v1468_v8 = vmul.f32 %v5726_v6, %v1436_v36  ;;  %v5829_v9 = vsel %vm1026_vm12, 1.0, %v7239_v15  ;;  %4203 = vrcp.f32 %v1152_v63  ;;  %v1093_v52 = vand.u32 2147483647, %v5811_v35 }
 0x24b   : > { %v4198_v33 = vpop.eup %4197  ;;  %v1659_v45 = vsub.f32 1.0, %v1627_v28  ;;  %v1311_v10 = vadd.f32 1.4214138, %v1279_v60  ;;  %4205 = vpow2.f32 %v1591_v13  ;;  %v1929_v30 = vsel %vm447_vm0, %v1767_v5, %v1896_v40 }
 0x24c   : > { %v5833_v62 = vpop.eup %4199  ;;  %v1441_v56 = vadd.f32 0.2548296, %v1409_v42  ;;  %v1538_v6 = vmul.f32 %v1506_v50, %v5762_v0  ;;  %v1125_v14 = vmul.f32 0.3275911, %v1093_v52  ;;  %vm2014_vm13 = vcmask 523264   ;;  %v7256_v0 = vld [vmem:[#allocation8_spill] sm:$0xff] }
 0x24d   : > { %v1630_v34 = vmul.f32 %v4194_v55, %v1470_v53  ;;  %v1343_v36 = vmul.f32 %v5800_v11, %v1311_v10  ;;  %v1218_v41 = vmul.f32 1.0614054, %v5833_v62  ;;  %v1932_v28 = vsel %vm447_vm0, %v1768_v38, %v1898_v27  ;;  %3939 = vmatprep.mubr.msk.bf16.mxu1 %vm2014_vm13, %v1929_v30  ;;  %v1900_v38 = vpop.permute.xlu1 %1899 }
 0x24e   : > { %v1628_v40 = vmul.f32 %v4198_v33, %v1468_v8  ;;  %v1157_v13 = vadd.f32 1.0, %v1125_v14  ;;  %v1769_v5 = vpack.c.bf16 %v7255_v57, %v7254_v29  ;;  %v5847_v50 = vadd.f32 %v5522_v58, %v7256_v0  ;;  %3940 = vmatmul.mubr.msk.bf16.vlgmr.msra.gmra.mrb[0].mxu1 %vm2014_vm13, %v1932_v28  ;;  %v7257_v14 = vld [vmem:[#allocation9_spill] sm:$0xff] }
 0x24f   : > { %v5851_v55 = vmul.f32 %v1725_v51, %v5644_v37  ;;  %v1375_v63 = vadd.f32 -0.28449672, %v1343_v36  ;;  %v1250_v23 = vadd.f32 -1.4531521, %v1218_v41  ;;  %v1504_v59 = vsub.f32 0.0, %v5804_v48 }
 0x250   : > { %v4202_v53 = vpop.eup %4201  ;;  %v1473_v42 = vmul.f32 %v5759_v17, %v1441_v56  ;;  %v1597_v60 = vmul.f32 1.442695, %v1538_v6  ;;  %4207 = vrcp.f32 %v1157_v13  ;;  %v1935_v8 = vsel %vm447_vm0, %v1769_v5, %v1900_v38  ;;  %v7258_v56 = vld [vmem:[#allocation11_spill] sm:$0xff]  ;;  %v7259_v6 = vld [vmem:[#allocation13_spill] sm:$0xff] }
 0x251   : > { %v1691_v27 = vmul.f32 %v1659_v45, %v5692_v43  ;;  %v1662_v33 = vsub.f32 1.0, %v1630_v34  ;;  %v1282_v10 = vmul.f32 %v5833_v62, %v1250_v23  ;;  %v5859_v37 = vmul.f32 0.70710677, %v5847_v50  ;;  %3943 = vmatprep.mubr.msk.bf16.mxu1 %vm2014_vm13, %v1935_v8 }
 0x252   : > { %v1660_v51 = vsub.f32 1.0, %v1628_v40  ;;  %v1407_v30 = vmul.f32 %v5800_v11, %v1375_v63  ;;  %v5865_v17 = vadd.f32 %v5522_v58, %v7257_v14  ;;  %v1770_v36 = vpack.c.bf16 %v7259_v6, %v7258_v56  ;;  %v1902_v6 = vpop.permute.xlu1 %1901 }
 0x253   : > { %v1314_v41 = vadd.f32 1.4214138, %v1282_v10  ;;  %vm1024_vm14 = vcmp.ge.f32.partialorder %v5777_v61, 0.0  ;;  %v1536_v43 = vmul.f32 %v1504_v59, %v5804_v48  ;;  %v1509_v45 = vsub.f32 0.0, %v1093_v52 }
 0x254   : > { %v5871_v34 = vpop.eup %4203  ;;  %v1633_v28 = vmul.f32 %v4202_v53, %v1473_v42  ;;  %4209 = vpow2.f32 %v1597_v60  ;;  %v5874_v40 = vand.u32 2147483647, %v5859_v37  ;;  %v5877_v13 = vmul.f32 0.70710677, %v5865_v17 }
 0x255   : > { %v4206_v29 = vpop.eup %4205  ;;  %v1723_v57 = vadd.f32 1.0, %v1691_v27  ;;  %v1694_v5 = vmul.f32 %v1662_v33, %v5718_v47  ;;  %v1346_v0 = vmul.f32 %v5833_v62, %v1314_v41  ;;  %v1216_v63 = vmul.f32 1.0614054, %v5871_v34  ;;  %v7260_v33 = vld [vmem:[#allocation10_spill] sm:$0xff] }
 0x256   : > { %v1692_v48 = vmul.f32 %v1660_v51, %v5741_v22  ;;  %v1439_v23 = vadd.f32 0.2548296, %v1407_v30  ;;  %v1123_v59 = vmul.f32 0.3275911, %v5874_v40  ;;  %v5885_v38 = vand.u32 2147483647, %v5877_v13 }
 0x257   : > { %v1378_v53 = vadd.f32 -0.28449672, %v1346_v0  ;;  %v1248_v42 = vadd.f32 -1.4531521, %v1216_v63  ;;  %v1593_v60 = vmul.f32 1.442695, %v1536_v43  ;;  %v1541_v8 = vmul.f32 %v1509_v45, %v1093_v52 }
 0x258   : > { %v1665_v10 = vsub.f32 1.0, %v1633_v28  ;;  %v1155_v27 = vadd.f32 1.0, %v1123_v59  ;;  %v1126_v47 = vmul.f32 0.3275911, %v5885_v38  ;;  %v5890_v14 = vadd.f32 %v5522_v58, %v7260_v33 }
 0x259   : > { %v1726_v56 = vadd.f32 1.0, %v1694_v5  ;;  %v1410_v22 = vmul.f32 %v5833_v62, %v1378_v53  ;;  %v5896_v51 = vsel %vm1024_vm14, 1.0, %v7239_v15  ;;  %v1280_v30 = vmul.f32 %v5871_v34, %v1248_v42 }
 0x25a   : > { %v5899_v52 = vpop.eup %4207  ;;  %v1724_v41 = vadd.f32 1.0, %v1692_v48  ;;  %v1471_v43 = vmul.f32 %v5800_v11, %v1439_v23  ;;  %4211 = vrcp.f32 %v1155_v27  ;;  %v1158_v45 = vadd.f32 1.0, %v1126_v47 }
 0x25b   : > { %v1442_v58 = vadd.f32 0.2548296, %v1410_v22  ;;  %v1312_v28 = vadd.f32 1.4214138, %v1280_v30  ;;  %4213 = vpow2.f32 %v1593_v60  ;;  %v1221_v5 = vmul.f32 1.0614054, %v5899_v52  ;;  %v1904_v30 = vpop.permute.xlu0 %1903 }
 0x25c   : > { %v1697_v0 = vmul.f32 %v1665_v10, %v5783_v49  ;;  %v1603_v61 = vmul.f32 1.442695, %v1541_v8  ;;  %v5905_v63 = vmul.f32 0.70710677, %v5890_v14  ;;  %v1938_v59 = vsel %vm447_vm0, %v1770_v36, %v1902_v6 }
 0x25d   : > { %v5909_v53 = vmul.f32 %v1723_v57, %v5669_v44  ;;  %v1474_v11 = vmul.f32 %v5833_v62, %v1442_v58  ;;  %v1344_v48 = vmul.f32 %v5871_v34, %v1312_v28  ;;  %v1253_v23 = vadd.f32 -1.4531521, %v1221_v5  ;;  %3944 = vmatmul.mubr.msk.bf16.gmra.mrb[4].mxu1 %vm2014_vm13, %v1938_v59 }
 0x25e   : > { %v4210_v42 = vpop.eup %4209  ;;  %v5915_v60 = vmul.f32 %v1726_v56, %v5695_v32  ;;  %v1631_v49 = vmul.f32 %v4206_v29, %v1471_v43  ;;  %4215 = vrcp.f32 %v1158_v45  ;;  %v5918_v8 = vand.u32 2147483647, %v5905_v63  ;;  %v1906_v56 = vpop.permute.xlu1 %1905 }
 0x25f   : > { %v1634_v36 = vmul.f32 %v4210_v42, %v1474_v11  ;;  %v1376_v10 = vadd.f32 -0.28449672, %v1344_v48  ;;  %v1285_v44 = vmul.f32 %v5899_v52, %v1253_v23  ;;  %v1507_v62 = vsub.f32 0.0, %v5874_v40  ;;  %v1908_v59 = vpop.permute.xlu0 %1907 }
 0x260   : > { %v5923_v57 = vmul.f32 %v1724_v41, %v5707_v39  ;;  %v1729_v27 = vadd.f32 1.0, %v1697_v0  ;;  %4217 = vpow2.f32 %v1603_v61  ;;  %v1124_v47 = vmul.f32 0.3275911, %v5918_v8 }
 0x261   : > { %v1666_v32 = vsub.f32 1.0, %v1634_v36  ;;  %v1408_v29 = vmul.f32 %v5871_v34, %v1376_v10  ;;  %v1317_v33 = vadd.f32 1.4214138, %v1285_v44  ;;  %v1772_v22 = vpack.c.bf16 %v5568_v19, %v5450_v1 }
 0x262   : > { %v1663_v6 = vsub.f32 1.0, %v1631_v49  ;;  %v1156_v43 = vadd.f32 1.0, %v1124_v47  ;;  %v1771_v45 = vpack.c.bf16 %v5572_v18, %v5516_v12  ;;  %v1774_v39 = vpack.c.bf16 %v5654_v26, %v5581_v21 }
 0x263   : > { %v1698_v41 = vmul.f32 %v1666_v32, %v5829_v9  ;;  %v1440_v58 = vadd.f32 0.2548296, %v1408_v29  ;;  %v1349_v28 = vmul.f32 %v5899_v52, %v1317_v33  ;;  %v1539_v5 = vmul.f32 %v1507_v62, %v5874_v40  ;;  %v1912_v44 = vpop.permute.xlu0 %1911 }
 0x264   : > { %v5936_v0 = vpop.eup %4211  ;;  %v1510_v1 = vsub.f32 0.0, %v5885_v38  ;;  %4219 = vrcp.f32 %v1156_v43  ;;  %v1944_v19 = vsel %vm447_vm0, %v1772_v22, %v1906_v56  ;;  %v1941_v61 = vsel %vm447_vm0, %v1771_v45, %v1904_v30  ;;  %v7261_v30 = vld [vmem:[#allocation3_spill] sm:$0xff] }
 0x265   : > { %v4214_v12 = vpop.eup %4213  ;;  %v1730_v18 = vadd.f32 1.0, %v1698_v41  ;;  %v1472_v21 = vmul.f32 %v5871_v34, %v1440_v58  ;;  %v1381_v26 = vadd.f32 -0.28449672, %v1349_v28  ;;  %v1219_v9 = vmul.f32 1.0614054, %v5936_v0  ;;  %3947 = vmatprep.mubr.msk.bf16.mxu1 %vm2014_vm13, %v1941_v61 }
 0x266   : > { %v1695_v40 = vmul.f32 %v1663_v6, %v5798_v7  ;;  %3948 = vmatmul.mubr.msk.bf16.gmra.mrb[8].mxu1 %vm2014_vm13, %v1944_v19  ;;  %v1773_v11 = vpack.c.bf16 %v5672_v3, %v5604_v46  ;;  %v1776_v48 = vpack.c.bf16 %v5792_v2, %v5734_v54  ;;  %v1775_v23 = vpack.c.bf16 %v5816_v16, %v5754_v4 }
 0x267   : > { %v5953_v34 = vmul.f32 %v1730_v18, %v5819_v20  ;;  %v1632_v42 = vmul.f32 %v4214_v12, %v1472_v21  ;;  %v1413_v49 = vmul.f32 %v5899_v52, %v1381_v26  ;;  %v1251_v36 = vadd.f32 -1.4531521, %v1219_v9  ;;  %v1916_v26 = vpop.permute.xlu0 %1915 }
 0x268   : > { %v5956_v10 = vpop.eup %4215  ;;  %v5959_v7 = vmul.f32 %v1729_v27, %v5751_v31  ;;  %v1542_v46 = vmul.f32 %v1510_v1, %v5885_v38  ;;  %v1947_v3 = vsel %vm447_vm0, %v1773_v11, %v1908_v59  ;;  %v1778_v54 = vpack.c.bf16 %v5915_v60, %v5851_v55  ;;  %v1910_v27 = vpop.permute.xlu1 %1909 }
 0x269   : > { %v1664_v4 = vsub.f32 1.0, %v1632_v42  ;;  %v1283_v2 = vmul.f32 %v5936_v0, %v1251_v36  ;;  %v1599_v16 = vmul.f32 1.442695, %v1539_v5  ;;  %v1222_v20 = vmul.f32 1.0614054, %v5956_v10  ;;  %3951 = vmatprep.mubr.msk.bf16.mxu1 %vm2014_vm13, %v1947_v3 }
 0x26a   : > { %v4218_v62 = vpop.eup %4217  ;;  %v1727_v47 = vadd.f32 1.0, %v1695_v40  ;;  %v1508_v31 = vsub.f32 0.0, %v5918_v8  ;;  %v1777_v38 = vpack.c.bf16 %v5923_v57, %v5909_v53  ;;  %v1780_v32 = vpack.c.bf16 %v5953_v34, %v5959_v7 }
 0x26b   : > { %v1696_v29 = vmul.f32 %v1664_v4, %v5896_v51  ;;  %v1445_v33 = vadd.f32 0.2548296, %v1413_v49  ;;  %v1315_v56 = vadd.f32 1.4214138, %v1283_v2  ;;  %v1254_v22 = vadd.f32 -1.4531521, %v1222_v20 }
 0x26c   : > { %v959_v6 = vmul.f32 0.5, %v7261_v30  ;;  %v960_v43 = vmul.f32 0.5, %v5766_v24  ;;  %v1605_v45 = vmul.f32 1.442695, %v1542_v46  ;;  %v1953_v41 = vsel %vm447_vm0, %v1775_v23, %v1912_v44  ;;  %v1914_v40 = vpop.permute.xlu1 %1913 }
 0x26d   : > { %v1728_v58 = vadd.f32 1.0, %v1696_v29  ;;  %v1347_v28 = vmul.f32 %v5936_v0, %v1315_v56  ;;  %v1286_v53 = vmul.f32 %v5956_v10, %v1254_v22  ;;  %v1950_v57 = vsel %vm447_vm0, %v1774_v39, %v1910_v27 }
 0x26e   : > { %v4220_v5 = vpop.eup %4219  ;;  %v1759_v1 = vmul.f32 %v1727_v47, %v959_v6  ;;  %4221 = vpow2.f32 %v1599_v16  ;;  %v1540_v51 = vmul.f32 %v1508_v31, %v5918_v8  ;;  %3952 = vmatmul.mubr.msk.bf16.gmra.mrb[12].mxu1 %vm2014_vm13, %v1950_v57  ;;  %v1477_v24 = vmul.f32 %v5899_v52, %v1445_v33  ;;  %v1920_v47 = vpop.permute.xlu0 %1919 }
 0x26f   : > { %v1760_v19 = vmul.f32 %v1728_v58, %v960_v43  ;;  %v1379_v61 = vadd.f32 -0.28449672, %v1347_v28  ;;  %v1318_v12 = vadd.f32 1.4214138, %v1286_v53  ;;  %3955 = vmatprep.mubr.msk.bf16.mxu1 %vm2014_vm13, %v1953_v41  ;;  %4223 = vpow2.f32 %v1605_v45 }
 0x270   : > { %v1220_v18 = vmul.f32 1.0614054, %v4220_v5  ;;  %v1637_v8 = vmul.f32 %v4218_v62, %v1477_v24  ;;  %v1601_v42 = vmul.f32 1.442695, %v1540_v51  ;;  %v1959_v52 = vsel %vm447_vm0, %v1777_v38, %v1916_v26  ;;  %v1918_v38 = vpop.permute.xlu1 %1917 }
 0x271   : > { %v1411_v21 = vmul.f32 %v5936_v0, %v1379_v61  ;;  %v1350_v39 = vmul.f32 %v5956_v10, %v1318_v12  ;;  %v1779_v9 = vpack.c.bf16 %v1760_v19, %v1759_v1  ;;  %v1956_v46 = vsel %vm447_vm0, %v1776_v48, %v1914_v40 }
 0x272   : > { %v1252_v59 = vadd.f32 -1.4531521, %v1220_v18  ;;  %vm1029_vm15 = vcmp.ge.f32.partialorder %v5811_v35, 0.0  ;;  %v1669_v2 = vsub.f32 1.0, %v1637_v8  ;;  %4225 = vpow2.f32 %v1601_v42  ;;  %v1924_v26 = vpop.permute.xlu0 %1923 }
 0x273   : > { %v1443_v11 = vadd.f32 0.2548296, %v1411_v21  ;;  %v1382_v23 = vadd.f32 -0.28449672, %v1350_v39  ;;  %v1061_v48 = vsel %vm1029_vm15, 1.0, %v7239_v15  ;;  %vm1030_vm1 = vcmp.ge.f32.partialorder %v5877_v13, 0.0 }
 0x274   : > { %v1284_v49 = vmul.f32 %v4220_v5, %v1252_v59  ;;  %v1701_v29 = vmul.f32 %v1669_v2, %v1061_v48  ;;  %v1965_v56 = vsel %vm447_vm0, %v1779_v9, %v1920_v47  ;;  %vm1027_vm2 = vcmp.ge.f32.partialorder %v5859_v37, 0.0  ;;  %v1922_v57 = vpop.permute.xlu1 %1921 }
 0x275   : > { %v1414_v36 = vmul.f32 %v5956_v10, %v1382_v23  ;;  %v1475_v3 = vmul.f32 %v5936_v0, %v1443_v11  ;;  %v1062_v6 = vsel %vm1030_vm1, 1.0, %v7239_v15  ;;  %v965_v28 = vmul.f32 0.5, %v5789_v25 }
 0x276   : > { %v1316_v4 = vadd.f32 1.4214138, %v1284_v49  ;;  %3956 = vmatmul.mubr.msk.bf16.gmra.mrb[16].mxu1 %vm2014_vm13, %v1956_v46  ;;  %v1733_v45 = vadd.f32 1.0, %v1701_v29  ;;  %v1059_v55 = vsel %vm1027_vm2, 1.0, %v7239_v15  ;;  %v966_v60 = vmul.f32 0.5, %v5865_v17 }
 0x277   : > { %v1446_v16 = vadd.f32 0.2548296, %v1414_v36  ;;  %3959 = vmatprep.mubr.msk.bf16.mxu1 %vm2014_vm13, %v1959_v52  ;;  %vm1028_vm3 = vcmp.ge.f32.partialorder %v5905_v63, 0.0  ;;  %v1968_v25 = vsel %vm447_vm0, %v1780_v32, %v1922_v57  ;;  %v963_v17 = vmul.f32 0.5, %v5847_v50  ;;  %v4089_v50 = vld [vmem:[%s7227_s8] sm:$0xff]  }
 0x278   : > { %v4222_v20 = vpop.eup %4221  ;;  %v1348_v44 = vmul.f32 %v4220_v5, %v1316_v4  ;;  %v1765_v1 = vmul.f32 %v1733_v45, %v965_v28  ;;  %v1060_v24 = vsel %vm1028_vm3, 1.0, %v7239_v15  ;;  %v964_v63 = vmul.f32 0.5, %v5890_v14  ;;  %v1926_v9 = vpop.permute.xlu1 %1925  ;;  %v4090_v14 = vld [vmem:[%s7227_s8 + $0x8] sm:$0xff]   ;;  %4007 = vmatprep.subr.bf16.mxu1 %v4089_v50  ;;  %v6030_v32 = vld [vmem:[%s7224_s5] ss:$0 sm:$0xff] }
 0x279   : > { %v1478_v62 = vmul.f32 %v5956_v10, %v1446_v16  ;;  %v4224_v31 = vpop.eup %4223  ;;  %v1635_v27 = vmul.f32 %v4222_v20, %v1475_v3  ;;  %v1962_v10 = vsel %vm447_vm0, %v1778_v54, %v1918_v38  ;;  %4008 = vmatpush3.bf16.msra.mxu1 %v4089_v50 }
 0x27a   : > { %v1380_v0 = vadd.f32 -0.28449672, %v1348_v44  ;;  %4009 = vmatprep.subr.bf16.mxu1 %v4090_v14 }
 0x27b   : > { %v1638_v35 = vmul.f32 %v4224_v31, %v1478_v62  ;;  %v1667_v30 = vsub.f32 1.0, %v1635_v27 }
 0x27c   : > { %v1412_v33 = vmul.f32 %v4220_v5, %v1380_v0  ;;  %v4226_v58 = vpop.eup %4225 }
 0x27d   : > { %v1670_v22 = vsub.f32 1.0, %v1638_v35  ;;  %v1699_v37 = vmul.f32 %v1667_v30, %v1059_v55  ;;  %4010 = vmatpush3.bf16.msra.mxu1 %v4090_v14 }
 0x27e   : > { %v1444_v43 = vadd.f32 0.2548296, %v1412_v33  ;;  %3960 = vmatmul.mubr.msk.bf16.gmra.mrb[20].mxu1 %vm2014_vm13, %v1962_v10 }
 0x27f   : > { %v1702_v13 = vmul.f32 %v1670_v22, %v1062_v6  ;;  %3963 = vmatprep.mubr.msk.bf16.mxu1 %vm2014_vm13, %v1965_v56  ;;  %v1731_v61 = vadd.f32 1.0, %v1699_v37 }
 0x280   : > { %v1476_v41 = vmul.f32 %v4220_v5, %v1444_v43 }
 0x281   : > { %v1734_v54 = vadd.f32 1.0, %v1702_v13  ;;  %v1763_v21 = vmul.f32 %v1731_v61, %v963_v17 }
 0x282   : > { %v1636_v53 = vmul.f32 %v4226_v58, %v1476_v41 }
 0x283   : > { %v1766_v51 = vmul.f32 %v1734_v54, %v966_v60 }
 0x284   : > { %v1668_v19 = vsub.f32 1.0, %v1636_v53 }
 0x285   : > { %v1782_v5 = vpack.c.bf16 %v1766_v51, %v1765_v1 }
 0x286   : > { %v1700_v12 = vmul.f32 %v1668_v19, %v1060_v24  ;;  %3964 = vmatmul.mubr.msk.bf16.gmra.mrb[24].mxu1 %vm2014_vm13, %v1968_v25 }
 0x287   : > { %v1974_v34 = vsel %vm447_vm0, %v1782_v5, %v1926_v9 }
 0x288   : > { %v1732_v18 = vadd.f32 1.0, %v1700_v12 }
 0x28a   : > { %v1764_v39 = vmul.f32 %v1732_v18, %v964_v63 }
 0x28c   : > { %v1781_v59 = vpack.c.bf16 %v1764_v39, %v1763_v21 }
 0x28e   : > { %v1971_v40 = vsel %vm447_vm0, %v1781_v59, %v1924_v26 }
 0x28f   : > { %3967 = vmatprep.mubr.msk.bf16.mxu1 %vm2014_vm13, %v1971_v40 }
 0x290   : > { %3968 = vmatmul.mubr.msk.bf16.gmra.mrb[28].mxu1 %vm2014_vm13, %v1974_v34 }
 0x321   : > { %v3941_v7 = vpop.f32.mrb[0].mxu1 }
 0x322   : > { %v2081_v8 = vpop.f32.mrb[1].mxu1  ;;  %v2090_v23 = vadd.f32 %v3941_v7, %v6030_v32 }
 0x323   : > { %v3942_v11 = vpop.f32.mrb[2].mxu1  ;;  %v2082_v52 = vadd.f32 %v6030_v32, %v2081_v8 }
 0x324   : > { %v2093_v42 = vadd.f32 %v3942_v11, %v6030_v32  ;;  %v2084_v49 = vpop.f32.mrb[3].mxu1 }
 0x325   : > { %v2085_v36 = vadd.f32 %v6030_v32, %v2084_v49 }
 0x326   : > { %v2209_v46 = vpack.c.bf16 %v2093_v42, %v2090_v23 }
 0x327   : > { %v2208_v3 = vpack.c.bf16 %v2085_v36, %v2082_v52 }
 0x329   : > { %3975 = vmatprep.mubr.msk.bf16.mxu0 %vm447_vm0, %v2208_v3 }
 0x32a   : > { %3976 = vmatmul.mubr.msk.bf16.vlgmr.msra.gmra.mrb[32].mxu0 %vm447_vm0, %v2209_v46 }
 0x330   : > { %v3945_v4 = vpop.f32.mrb[4].mxu1 }
 0x331   : > { %v2097_v2 = vpop.f32.mrb[5].mxu1  ;;  %v2106_v20 = vadd.f32 %v3945_v4, %v6030_v32 }
 0x332   : > { %v3946_v16 = vpop.f32.mrb[6].mxu1  ;;  %v2098_v47 = vadd.f32 %v6030_v32, %v2097_v2 }
 0x333   : > { %v2109_v44 = vadd.f32 %v3946_v16, %v6030_v32  ;;  %v2100_v62 = vpop.f32.mrb[7].mxu1 }
 0x334   : > { %v2101_v31 = vadd.f32 %v6030_v32, %v2100_v62 }
 0x335   : > { %v2211_v48 = vpack.c.bf16 %v2109_v44, %v2106_v20 }
 0x336   : > { %v2210_v27 = vpack.c.bf16 %v2101_v31, %v2098_v47 }
 0x338   : > { %3979 = vmatprep.mubr.msk.bf16.mxu0 %vm447_vm0, %v2210_v27  ;;  %v4092_v27 = vld [vmem:[%s7227_s8 + $0x18] sm:$0xff]  }
 0x339   : > { %v3949_v0 = vpop.f32.mrb[8].mxu1  ;;  %3980 = vmatmul.mubr.msk.bf16.gmra.mrb[36].mxu0 %vm447_vm0, %v2211_v48  ;;  %v4091_v48 = vld [vmem:[%s7227_s8 + $0x10] sm:$0xff]  }
 0x33a   : > { %v2113_v38 = vpop.f32.mrb[9].mxu1  ;;  %v2122_v35 = vadd.f32 %v3949_v0, %v6030_v32  ;;  %4011 = vmatprep.subr.bf16.mxu1 %v4091_v48  ;;  %v4094_v0 = vld [vmem:[%s7227_s8 + $0x28] sm:$0xff]  }
 0x33b   : > { %v3950_v29 = vpop.f32.mrb[10].mxu1  ;;  %v2114_v22 = vadd.f32 %v6030_v32, %v2113_v38  ;;  %4012 = vmatpush3.bf16.msra.mxu1 %v4091_v48  ;;  %v6095_v38 = vld [vmem:[%s7226_s7] ss:$0 sm:$0xff] }
 0x33c   : > { %v2125_v33 = vadd.f32 %v3950_v29, %v6030_v32  ;;  %v2116_v56 = vpop.f32.mrb[11].mxu1  ;;  %4013 = vmatprep.subr.bf16.mxu1 %v4092_v27 }
 0x33d   : > { %v2117_v10 = vadd.f32 %v6030_v32, %v2116_v56 }
 0x33e   : > { %v2213_v30 = vpack.c.bf16 %v2125_v33, %v2122_v35  ;;  %v4095_v35 = vld [vmem:[%s7227_s8 + $0x30] sm:$0xff]  }
 0x33f   : > { %v2212_v6 = vpack.c.bf16 %v2117_v10, %v2114_v22  ;;  %4014 = vmatpush3.bf16.msra.mxu1 %v4092_v27 }
 0x341   : > { %v3953_v43 = vpop.f32.mrb[12].mxu1  ;;  %3983 = vmatprep.mubr.msk.bf16.mxu0 %vm447_vm0, %v2212_v6 }
 0x342   : > { %v2129_v45 = vpop.f32.mrb[13].mxu1  ;;  %3984 = vmatmul.mubr.msk.bf16.gmra.mrb[40].mxu0 %vm447_vm0, %v2213_v30  ;;  %v2138_v41 = vadd.f32 %v3953_v43, %v6030_v32 }
 0x343   : > { %v3954_v13 = vpop.f32.mrb[14].mxu1  ;;  %v2130_v55 = vadd.f32 %v6030_v32, %v2129_v45 }
 0x344   : > { %v2141_v58 = vadd.f32 %v3954_v13, %v6030_v32  ;;  %v2132_v28 = vpop.f32.mrb[15].mxu1 }
 0x345   : > { %v2133_v60 = vadd.f32 %v6030_v32, %v2132_v28 }
 0x346   : > { %v2215_v54 = vpack.c.bf16 %v2141_v58, %v2138_v41 }
 0x347   : > { %v2214_v37 = vpack.c.bf16 %v2133_v60, %v2130_v55 }
 0x349   : > { %v3957_v53 = vpop.f32.mrb[16].mxu1  ;;  %3987 = vmatprep.mubr.msk.bf16.mxu0 %vm447_vm0, %v2214_v37 }
 0x34a   : > { %v2145_v57 = vpop.f32.mrb[17].mxu1  ;;  %3988 = vmatmul.mubr.msk.bf16.gmra.mrb[44].mxu0 %vm447_vm0, %v2215_v54  ;;  %v2154_v51 = vadd.f32 %v3957_v53, %v6030_v32 }
 0x34b   : > { %v3958_v1 = vpop.f32.mrb[18].mxu1  ;;  %v2146_v25 = vadd.f32 %v6030_v32, %v2145_v57 }
 0x34c   : > { %v2157_v19 = vadd.f32 %v3958_v1, %v6030_v32  ;;  %v2148_v24 = vpop.f32.mrb[19].mxu1 }
 0x34d   : > { %v2149_v5 = vadd.f32 %v6030_v32, %v2148_v24 }
 0x34e   : > { %v2217_v61 = vpack.c.bf16 %v2157_v19, %v2154_v51 }
 0x34f   : > { %v2216_v12 = vpack.c.bf16 %v2149_v5, %v2146_v25 }
 0x351   : > { %v3961_v17 = vpop.f32.mrb[20].mxu1  ;;  %3991 = vmatprep.mubr.msk.bf16.mxu0 %vm447_vm0, %v2216_v12 }
 0x352   : > { %v2161_v63 = vpop.f32.mrb[21].mxu1  ;;  %3992 = vmatmul.mubr.msk.bf16.gmra.mrb[48].mxu0 %vm447_vm0, %v2217_v61  ;;  %v2170_v21 = vadd.f32 %v3961_v17, %v6030_v32 }
 0x353   : > { %v3962_v18 = vpop.f32.mrb[22].mxu1  ;;  %v2162_v9 = vadd.f32 %v6030_v32, %v2161_v63 }
 0x354   : > { %v2173_v39 = vadd.f32 %v3962_v18, %v6030_v32  ;;  %v2164_v26 = vpop.f32.mrb[23].mxu1 }
 0x355   : > { %v2165_v59 = vadd.f32 %v6030_v32, %v2164_v26 }
 0x356   : > { %v2219_v40 = vpack.c.bf16 %v2173_v39, %v2170_v21 }
 0x357   : > { %v2218_v34 = vpack.c.bf16 %v2165_v59, %v2162_v9 }
 0x359   : > { %v3965_v50 = vpop.f32.mrb[24].mxu1  ;;  %3995 = vmatprep.mubr.msk.bf16.mxu0 %vm447_vm0, %v2218_v34 }
 0x35a   : > { %v2177_v14 = vpop.f32.mrb[25].mxu1  ;;  %3996 = vmatmul.mubr.msk.bf16.gmra.mrb[52].mxu0 %vm447_vm0, %v2219_v40  ;;  %v2186_v8 = vadd.f32 %v3965_v50, %v6030_v32 }
 0x35b   : > { %v3966_v7 = vpop.f32.mrb[26].mxu1  ;;  %v2178_v42 = vadd.f32 %v6030_v32, %v2177_v14 }
 0x35c   : > { %v2189_v11 = vadd.f32 %v3966_v7, %v6030_v32  ;;  %v2180_v23 = vpop.f32.mrb[27].mxu1 }
 0x35d   : > { %v2181_v49 = vadd.f32 %v6030_v32, %v2180_v23 }
 0x35e   : > { %v2221_v52 = vpack.c.bf16 %v2189_v11, %v2186_v8 }
 0x35f   : > { %v2220_v36 = vpack.c.bf16 %v2181_v49, %v2178_v42  ;;  %v4096_v49 = vld [vmem:[%s7227_s8 + $0x38] sm:$0xff]  }
 0x361   : > { %3999 = vmatprep.mubr.msk.bf16.mxu0 %vm447_vm0, %v2220_v36 }
 0x362   : > { %4000 = vmatmul.mubr.msk.bf16.gmra.mrb[56].mxu0 %vm447_vm0, %v2221_v52 }
 0x363   : > { %v3969_v46 = vpop.f32.mrb[28].mxu1 }
 0x364   : > { %v2193_v3 = vpop.f32.mrb[29].mxu1  ;;  %v2202_v2 = vadd.f32 %v3969_v46, %v6030_v32 }
 0x365   : > { %v3970_v4 = vpop.f32.mrb[30].mxu1  ;;  %v2194_v44 = vadd.f32 %v6030_v32, %v2193_v3 }
 0x366   : > { %v2205_v16 = vadd.f32 %v3970_v4, %v6030_v32  ;;  %v2196_v20 = vpop.f32.mrb[31].mxu1 }
 0x367   : > { %v2197_v62 = vadd.f32 %v6030_v32, %v2196_v20  ;;  %v4093_v32 = vld [vmem:[%s7227_s8 + $0x20] sm:$0xff]  }
 0x368   : > { %v2223_v47 = vpack.c.bf16 %v2205_v16, %v2202_v2  ;;  %4015 = vmatprep.subr.bf16.mxu1 %v4093_v32 }
 0x369   : > { %v2222_v31 = vpack.c.bf16 %v2197_v62, %v2194_v44  ;;  %4016 = vmatpush3.bf16.msra.mxu1 %v4093_v32 }
 0x36a   : > { %4017 = vmatprep.subr.bf16.mxu1 %v4094_v0 }
 0x36b   : > { %4003 = vmatprep.mubr.msk.bf16.mxu0 %vm447_vm0, %v2222_v31 }
 0x36c   : > { %4004 = vmatmul.mubr.msk.bf16.gmra.mrb[60].mxu0 %vm447_vm0, %v2223_v47 }
 0x36d   : > { %4018 = vmatpush3.bf16.msra.mxu1 %v4094_v0 }
 0x36e   : > { %4019 = vmatprep.subr.bf16.mxu1 %v4095_v35 }
 0x371   : > { %4020 = vmatpush3.bf16.msra.mxu1 %v4095_v35 }
 0x372   : > { %4021 = vmatprep.subr.bf16.mxu1 %v4096_v49 }
 0x375   : > { %4022 = vmatpush3.bf16.msra.mxu1 %v4096_v49 }
 0x3fd   : > { %v3977_v29 = vpop.f32.mrb[32].mxu0 }
 0x3fe   : > { %v2338_v33 = vadd.f32 %v3977_v29, %v6095_v38  ;;  %v2329_v56 = vpop.f32.mrb[33].mxu0 }
 0x3ff   : > { %v2330_v22 = vadd.f32 %v6095_v38, %v2329_v56  ;;  %v3978_v10 = vpop.f32.mrb[34].mxu0 }
 0x400   : > { %v2490_v30 = vmul.f32 0.70710677, %v2338_v33  ;;  %v2341_v6 = vadd.f32 %v3978_v10, %v6095_v38  ;;  %v2332_v43 = vpop.f32.mrb[35].mxu0  ;;  %v6134_v9 = vmul.f32 0.5, %v2338_v33 }
 0x401   : > { %v6103_v45 = vmul.f32 0.70710677, %v2330_v22  ;;  %v6108_v58 = vadd.f32 %v6095_v38, %v2332_v43  ;;  %v6142_v50 = vmul.f32 0.5, %v2330_v22 }
 0x402   : > { %v2586_v13 = vand.u32 2147483647, %v2490_v30  ;;  %v6105_v41 = vmul.f32 0.70710677, %v2341_v6  ;;  %vm2522_vm0 = vcmp.ge.f32.partialorder %v2490_v30, 0.0  ;;  %v6144_v14 = vmul.f32 0.5, %v2341_v6 }
 0x403   : > { %v6111_v28 = vand.u32 2147483647, %v6103_v45  ;;  %v6116_v53 = vmul.f32 0.70710677, %v6108_v58  ;;  %v6140_v34 = vsel %vm2522_vm0, 1.0, %v7239_v15  ;;  %vm2520_vm4 = vcmp.ge.f32.partialorder %v6103_v45, 0.0 }
 0x404   : > { %v2618_v55 = vmul.f32 0.3275911, %v2586_v13  ;;  %v2587_v54 = vand.u32 2147483647, %v6105_v41  ;;  %v3002_v25 = vsub.f32 0.0, %v2586_v13  ;;  %vm2523_vm5 = vcmp.ge.f32.partialorder %v6105_v41, 0.0 }
 0x405   : > { %v2616_v60 = vmul.f32 0.3275911, %v6111_v28  ;;  %v6119_v51 = vand.u32 2147483647, %v6116_v53  ;;  %v3000_v46 = vsub.f32 0.0, %v6111_v28  ;;  %vm2521_vm6 = vcmp.ge.f32.partialorder %v6116_v53, 0.0 }
 0x406   : > { %v2650_v37 = vadd.f32 1.0, %v2618_v55  ;;  %v2619_v1 = vmul.f32 0.3275911, %v2587_v54  ;;  %v3034_v59 = vmul.f32 %v3002_v25, %v2586_v13  ;;  %v3003_v11 = vsub.f32 0.0, %v2587_v54 }
 0x407   : > { %v2648_v57 = vadd.f32 1.0, %v2616_v60  ;;  %v2617_v24 = vmul.f32 0.3275911, %v6119_v51  ;;  %v3001_v44 = vsub.f32 0.0, %v6119_v51  ;;  %v3032_v6 = vmul.f32 %v3000_v46, %v6111_v28 }
 0x408   : > { %4227 = vrcp.f32 %v2650_v37  ;;  %v2651_v19 = vadd.f32 1.0, %v2619_v1  ;;  %v3068_v4 = vmul.f32 1.442695, %v3034_v59  ;;  %v3035_v27 = vmul.f32 %v3003_v11, %v2587_v54 }
 0x409   : > { %4229 = vrcp.f32 %v2648_v57  ;;  %v2649_v5 = vadd.f32 1.0, %v2617_v24  ;;  %v3033_v1 = vmul.f32 %v3001_v44, %v6119_v51  ;;  %v6216_v45 = vsel %vm2523_vm5, 1.0, %v7239_v15 }
 0x40a   : > { %4231 = vrcp.f32 %v2651_v19  ;;  %v3070_v57 = vmul.f32 1.442695, %v3035_v27 }
 0x40b   : > { %4233 = vrcp.f32 %v2649_v5 }
 0x40c   : > { %v3981_v61 = vpop.f32.mrb[36].mxu0 }
 0x40d   : > { %v6123_v12 = vadd.f32 %v3981_v61, %v6095_v38  ;;  %v2345_v17 = vpop.f32.mrb[37].mxu0  ;;  %v6203_v61 = vsel %vm2520_vm4, 1.0, %v7239_v15 }
 0x40e   : > { %v6126_v63 = vadd.f32 %v6095_v38, %v2345_v17  ;;  %v3982_v18 = vpop.f32.mrb[38].mxu0  ;;  %v3064_v17 = vmul.f32 1.442695, %v3032_v6 }
 0x40f   : > { %v6129_v21 = vmul.f32 0.70710677, %v6123_v12  ;;  %v6132_v39 = vadd.f32 %v3982_v18, %v6095_v38  ;;  %v2348_v26 = vpop.f32.mrb[39].mxu0  ;;  %v6206_v18 = vmul.f32 0.5, %v6108_v58  ;;  %v6229_v41 = vmul.f32 0.5, %v6123_v12 }
 0x410   : > { %v6137_v40 = vmul.f32 0.70710677, %v6126_v63  ;;  %v6182_v56 = vadd.f32 %v6095_v38, %v2348_v26 }
 0x411   : > { %v6147_v7 = vand.u32 2147483647, %v6129_v21  ;;  %v6155_v42 = vmul.f32 0.70710677, %v6132_v39  ;;  %vm2526_vm7 = vcmp.ge.f32.partialorder %v6129_v21, 0.0 }
 0x412   : > { %v6149_v8 = vpop.eup %4227  ;;  %v6152_v23 = vand.u32 2147483647, %v6137_v40  ;;  %v6198_v5 = vmul.f32 0.70710677, %v6182_v56  ;;  %vm2524_vm8 = vcmp.ge.f32.partialorder %v6137_v40, 0.0 }
 0x413   : > { %v6160_v52 = vpop.eup %4229  ;;  %v2714_v36 = vmul.f32 1.0614054, %v6149_v8  ;;  %v2622_v3 = vmul.f32 0.3275911, %v6147_v7  ;;  %v6175_v0 = vand.u32 2147483647, %v6155_v42 }
 0x414   : > { %v2712_v2 = vmul.f32 1.0614054, %v6160_v52  ;;  %v2620_v16 = vmul.f32 0.3275911, %v6152_v23  ;;  %v6172_v31 = vpop.eup %4231  ;;  %v6221_v53 = vand.u32 2147483647, %v6198_v5 }
 0x415   : > { %v2746_v20 = vadd.f32 -1.4531521, %v2714_v36  ;;  %v2654_v62 = vadd.f32 1.0, %v2622_v3  ;;  %v6170_v47 = vpop.f32.mrb[40].mxu0  ;;  %v2715_v33 = vmul.f32 1.0614054, %v6172_v31  ;;  %v6186_v10 = vpop.eup %4233 }
 0x416   : > { %v2744_v48 = vadd.f32 -1.4531521, %v2712_v2  ;;  %v2652_v32 = vadd.f32 1.0, %v2620_v16  ;;  %v6177_v29 = vpop.f32.mrb[41].mxu0  ;;  %v2623_v43 = vmul.f32 0.3275911, %v6175_v0 }
 0x417   : > { %v2778_v35 = vmul.f32 %v6149_v8, %v2746_v20  ;;  %4235 = vrcp.f32 %v2654_v62  ;;  %v6184_v22 = vpop.f32.mrb[42].mxu0  ;;  %v2747_v60 = vadd.f32 -1.4531521, %v2715_v33  ;;  %v2713_v54 = vmul.f32 1.0614054, %v6186_v10 }
 0x418   : > { %v2776_v30 = vmul.f32 %v6160_v52, %v2744_v48  ;;  %4237 = vrcp.f32 %v2652_v32  ;;  %v6191_v13 = vpop.f32.mrb[43].mxu0  ;;  %v2655_v19 = vadd.f32 1.0, %v2623_v43  ;;  %v3066_v36 = vmul.f32 1.442695, %v3033_v1 }
 0x419   : > { %v2810_v55 = vadd.f32 1.4214138, %v2778_v35  ;;  %4239 = vpow2.f32 %v3068_v4  ;;  %v2779_v25 = vmul.f32 %v6172_v31, %v2747_v60  ;;  %v2745_v28 = vadd.f32 -1.4531521, %v2713_v54 }
 0x41a   : > { %v2808_v37 = vadd.f32 1.4214138, %v2776_v30  ;;  %4241 = vrcp.f32 %v2655_v19  ;;  %v6226_v2 = vsel %vm2521_vm6, 1.0, %v7239_v15  ;;  %v3006_v16 = vsub.f32 0.0, %v6147_v7 }
 0x41b   : > { %v2842_v24 = vmul.f32 %v6149_v8, %v2810_v55  ;;  %v2811_v26 = vadd.f32 1.4214138, %v2779_v25  ;;  %v2777_v59 = vmul.f32 %v6186_v10, %v2745_v28  ;;  %4243 = vpow2.f32 %v3070_v57 }
 0x41c   : > { %v2840_v49 = vmul.f32 %v6160_v52, %v2808_v37  ;;  %4245 = vpow2.f32 %v3064_v17  ;;  %v2621_v32 = vmul.f32 0.3275911, %v6221_v53  ;;  %v3004_v12 = vsub.f32 0.0, %v6152_v23 }
 0x41d   : > { %v2874_v51 = vadd.f32 -0.28449672, %v2842_v24  ;;  %v6210_v11 = vpop.f32.mrb[44].mxu0  ;;  %v2843_v46 = vmul.f32 %v6172_v31, %v2811_v26  ;;  %v2809_v3 = vadd.f32 1.4214138, %v2777_v59  ;;  %4247 = vpow2.f32 %v3066_v36 }
 0x41e   : > { %v6223_v4 = vpop.f32.mrb[45].mxu0  ;;  %v2872_v33 = vadd.f32 -0.28449672, %v2840_v49  ;;  %v6247_v54 = vadd.f32 %v6170_v47, %v6095_v38  ;;  %v6252_v19 = vmul.f32 0.5, %v6126_v63  ;;  %v2653_v24 = vadd.f32 1.0, %v2621_v32 }
 0x41f   : > { %v2906_v58 = vmul.f32 %v6149_v8, %v2874_v51  ;;  %v6232_v20 = vpop.f32.mrb[46].mxu0  ;;  %v2875_v48 = vadd.f32 -0.28449672, %v2843_v46  ;;  %v2841_v27 = vmul.f32 %v6186_v10, %v2809_v3  ;;  %v3036_v49 = vmul.f32 %v3004_v12, %v6152_v23 }
 0x420   : > { %v6249_v37 = vpop.f32.mrb[47].mxu0  ;;  %v2904_v47 = vmul.f32 %v6160_v52, %v2872_v33  ;;  %4249 = vrcp.f32 %v2653_v24  ;;  %vm2527_vm9 = vcmp.ge.f32.partialorder %v6155_v42, 0.0  ;;  %vm2525_vm10 = vcmp.ge.f32.partialorder %v6198_v5, 0.0 }
 0x421   : > { %v6234_v44 = vpop.eup %4235  ;;  %v2938_v62 = vadd.f32 0.2548296, %v2906_v58  ;;  %v2907_v55 = vmul.f32 %v6172_v31, %v2875_v48  ;;  %v2873_v57 = vadd.f32 -0.28449672, %v2841_v27  ;;  %v3072_v24 = vmul.f32 1.442695, %v3036_v49 }
 0x422   : > { %v6238_v35 = vpop.eup %4237  ;;  %v2718_v30 = vmul.f32 1.0614054, %v6234_v44  ;;  %v6382_v5 = vadd.f32 %v6095_v38, %v6191_v13 }
 0x423   : > { %v4240_v6 = vpop.eup %4239  ;;  %v2970_v43 = vmul.f32 %v6149_v8, %v2938_v62  ;;  %v2716_v60 = vmul.f32 1.0614054, %v6238_v35  ;;  %v2939_v28 = vadd.f32 0.2548296, %v2907_v55  ;;  %v3038_v8 = vmul.f32 %v3006_v16, %v6147_v7 }
 0x424   : > { %v2750_v1 = vadd.f32 -1.4531521, %v2718_v30  ;;  %v6257_v26 = vpop.eup %4241  ;;  %v6267_v7 = vmul.f32 0.70710677, %v6247_v54  ;;  %v2905_v62 = vmul.f32 %v6186_v10, %v2873_v57  ;;  %v6279_v55 = vmul.f32 0.5, %v6132_v39 }
 0x425   : > { %v3130_v25 = vmul.f32 %v4240_v6, %v2970_v43  ;;  %v2748_v17 = vadd.f32 -1.4531521, %v2716_v60  ;;  %v6255_v51 = vpop.f32.mrb[48].mxu0  ;;  %v2971_v58 = vmul.f32 %v6172_v31, %v2939_v28  ;;  %v4244_v16 = vpop.eup %4243  ;;  %v2719_v23 = vmul.f32 1.0614054, %v6257_v26 }
 0x426   : > { %v2782_v59 = vmul.f32 %v6234_v44, %v2750_v1  ;;  %v6262_v36 = vpop.f32.mrb[49].mxu0  ;;  %v3076_v33 = vmul.f32 1.442695, %v3038_v8  ;;  %v4246_v12 = vpop.eup %4245  ;;  %v2936_v6 = vadd.f32 0.2548296, %v2904_v47  ;;  %vm2530_vm11 = vcmp.ge.f32.partialorder %v6267_v7, 0.0 }
 0x427   : > { %v3162_v63 = vsub.f32 1.0, %v3130_v25  ;;  %v2780_v46 = vmul.f32 %v6238_v35, %v2748_v17  ;;  %v6269_v3 = vpop.f32.mrb[50].mxu0  ;;  %v3131_v31 = vmul.f32 %v4244_v16, %v2971_v58  ;;  %v2751_v60 = vadd.f32 -1.4531521, %v2719_v23  ;;  %v4248_v28 = vpop.eup %4247 }
 0x428   : > { %v2814_v48 = vadd.f32 1.4214138, %v2782_v59  ;;  %v6274_v27 = vpop.f32.mrb[51].mxu0  ;;  %v3007_v25 = vsub.f32 0.0, %v6175_v0  ;;  %v2937_v17 = vadd.f32 0.2548296, %v2905_v62  ;;  %4251 = vpow2.f32 %v3076_v33 }
 0x429   : > { %v3194_v32 = vmul.f32 %v3162_v63, %v6140_v34  ;;  %v2812_v30 = vadd.f32 1.4214138, %v2780_v46  ;;  %v3163_v57 = vsub.f32 1.0, %v3131_v31  ;;  %v2783_v8 = vmul.f32 %v6257_v26, %v2751_v60 }
 0x42a   : > { %v2846_v43 = vmul.f32 %v6234_v44, %v2814_v48  ;;  %v6285_v59 = vand.u32 2147483647, %v6267_v7  ;;  %v2968_v46 = vmul.f32 %v6160_v52, %v2936_v6  ;;  %4253 = vpow2.f32 %v3072_v24  ;;  %v6303_v33 = vpop.eup %4249 }
 0x42b   : > { %v2844_v1 = vmul.f32 %v6238_v35, %v2812_v30  ;;  %v3226_v47 = vadd.f32 1.0, %v3194_v32  ;;  %v3195_v63 = vmul.f32 %v3163_v57, %v6216_v45  ;;  %v2815_v16 = vadd.f32 1.4214138, %v2783_v8 }
 0x42c   : > { %v2878_v34 = vadd.f32 -0.28449672, %v2846_v43  ;;  %v2626_v62 = vmul.f32 0.3275911, %v6285_v59  ;;  %v6298_v32 = vsel %vm2526_vm7, 1.0, %v7239_v15  ;;  %v3039_v45 = vmul.f32 %v3007_v25, %v6175_v0 }
 0x42d   : > { %v2876_v39 = vadd.f32 -0.28449672, %v2844_v1  ;;  %v6288_v58 = vpop.f32.mrb[52].mxu0  ;;  %v3227_v23 = vadd.f32 1.0, %v3195_v63  ;;  %v2969_v52 = vmul.f32 %v6186_v10, %v2937_v17  ;;  %v2847_v30 = vmul.f32 %v6257_v26, %v2815_v16 }
 0x42e   : > { %v2910_v49 = vmul.f32 %v6234_v44, %v2878_v34  ;;  %v6293_v48 = vpop.f32.mrb[53].mxu0  ;;  %v2658_v6 = vadd.f32 1.0, %v2626_v62  ;;  %v6309_v43 = vadd.f32 %v6095_v38, %v6177_v29  ;;  %v6314_v21 = vmul.f32 %v3226_v47, %v6134_v9 }
 0x42f   : > { %v6301_v31 = vpop.f32.mrb[54].mxu0  ;;  %v6317_v0 = vmul.f32 %v3227_v23, %v6144_v14  ;;  %v2908_v57 = vmul.f32 %v6238_v35, %v2876_v39  ;;  %v2717_v1 = vmul.f32 1.0614054, %v6303_v33  ;;  %v3128_v10 = vmul.f32 %v4246_v12, %v2968_v46 }
 0x430   : > { %v6311_v60 = vpop.f32.mrb[55].mxu0  ;;  %7262 = vst [vmem:[#allocation4_spill] sm:$0xff] %v6314_v21  ;;  %v2942_v24 = vadd.f32 0.2548296, %v2910_v49  ;;  %4255 = vrcp.f32 %v2658_v6  ;;  %v2879_v25 = vadd.f32 -0.28449672, %v2847_v30  ;;  %v3129_v34 = vmul.f32 %v4248_v28, %v2969_v52 }
 0x431   : > { %7263 = vst [vmem:[#allocation5_spill] sm:$0xff] %v6317_v0  ;;  %v2749_v17 = vadd.f32 -1.4531521, %v2717_v1  ;;  %v3005_v9 = vsub.f32 0.0, %v6221_v53  ;;  %v3078_v8 = vmul.f32 1.442695, %v3039_v45  ;;  %v6337_v39 = vadd.f32 %v6184_v22, %v6095_v38 }
 0x432   : > { %v6326_v14 = vmul.f32 0.5, %v6182_v56  ;;  %v6329_v47 = vmul.f32 0.70710677, %v6309_v43  ;;  %v6332_v12 = vsel %vm2524_vm8, 1.0, %v7239_v15  ;;  %v2940_v40 = vadd.f32 0.2548296, %v2908_v57  ;;  %v4252_v16 = vpop.eup %4251 }
 0x433   : > { %v2781_v63 = vmul.f32 %v6303_v33, %v2749_v17  ;;  %v3160_v28 = vsub.f32 1.0, %v3128_v10  ;;  %v2974_v49 = vmul.f32 %v6234_v44, %v2942_v24  ;;  %v2911_v62 = vmul.f32 %v6257_v26, %v2879_v25 }
 0x434   : > { %v3037_v45 = vmul.f32 %v3005_v9, %v6221_v53  ;;  %v6349_v22 = vand.u32 2147483647, %v6329_v47  ;;  %v3161_v52 = vsub.f32 1.0, %v3129_v34  ;;  %4257 = vpow2.f32 %v3078_v8  ;;  %v4254_v6 = vpop.eup %4253 }
 0x435   : > { %v6339_v46 = vpop.f32.mrb[56].mxu0  ;;  %v2813_v23 = vadd.f32 1.4214138, %v2781_v63  ;;  %v3010_v30 = vsub.f32 0.0, %v6285_v59  ;;  %v6353_v44 = vmul.f32 0.70710677, %v6337_v39  ;;  %v2972_v57 = vmul.f32 %v6238_v35, %v2940_v40 }
 0x436   : > { %v6344_v56 = vpop.f32.mrb[57].mxu0  ;;  %v6359_v1 = vsel %vm2527_vm9, 1.0, %v7239_v15  ;;  %v2624_v10 = vmul.f32 0.3275911, %v6349_v22  ;;  %v3192_v25 = vmul.f32 %v3160_v28, %v6203_v61  ;;  %v3134_v17 = vmul.f32 %v4252_v16, %v2974_v49 }
 0x437   : > { %v6355_v42 = vpop.f32.mrb[58].mxu0  ;;  %v2845_v53 = vmul.f32 %v6303_v33, %v2813_v23  ;;  %v6369_v9 = vsel %vm2525_vm10, 1.0, %v7239_v15  ;;  %v6372_v34 = vand.u32 2147483647, %v6353_v44  ;;  %v2943_v35 = vadd.f32 0.2548296, %v2911_v62 }
 0x438   : > { %v6363_v24 = vpop.f32.mrb[59].mxu0  ;;  %v3074_v8 = vmul.f32 1.442695, %v3037_v45  ;;  %v2656_v40 = vadd.f32 1.0, %v2624_v10  ;;  %v3193_v23 = vmul.f32 %v3161_v52, %v6226_v2  ;;  %v3042_v61 = vmul.f32 %v3010_v30, %v6285_v59 }
 0x439   : > { %v2627_v28 = vmul.f32 0.3275911, %v6372_v34  ;;  %v3132_v49 = vmul.f32 %v4254_v6, %v2972_v57  ;;  %v2877_v16 = vadd.f32 -0.28449672, %v2845_v53  ;;  %v3224_v45 = vadd.f32 1.0, %v3192_v25 }
 0x43a   : > { %v6375_v63 = vpop.eup %4255  ;;  %4259 = vrcp.f32 %v2656_v40  ;;  %v3166_v29 = vsub.f32 1.0, %v3134_v17  ;;  %v6386_v10 = vmul.f32 0.5, %v6247_v54  ;;  %v2975_v2 = vmul.f32 %v6257_v26, %v2943_v35 }
 0x43b   : > { %v2722_v62 = vmul.f32 1.0614054, %v6375_v63  ;;  %v2659_v21 = vadd.f32 1.0, %v2627_v28  ;;  %v6392_v59 = vsel %vm2530_vm11, 1.0, %v7239_v15  ;;  %v6396_v52 = vadd.f32 %v6210_v11, %v6095_v38 }
 0x43c   : > { %v3225_v6 = vadd.f32 1.0, %v3193_v23  ;;  %4261 = vpow2.f32 %v3074_v8  ;;  %v3084_v57 = vmul.f32 1.442695, %v3042_v61  ;;  %v6401_v54 = vmul.f32 0.70710677, %v6382_v5 }
 0x43d   : > { %v2754_v13 = vadd.f32 -1.4531521, %v2722_v62  ;;  %v3164_v26 = vsub.f32 1.0, %v3132_v49  ;;  %v2909_v7 = vmul.f32 %v6303_v33, %v2877_v16  ;;  %4263 = vrcp.f32 %v2659_v21 }
 0x43e   : > { %v4258_v11 = vpop.eup %4257  ;;  %v6410_v35 = vmul.f32 %v3224_v45, %v6142_v50  ;;  %v3198_v8 = vmul.f32 %v3166_v29, %v6298_v32  ;;  %v6414_v40 = vmul.f32 0.5, %v6309_v43  ;;  %v6417_v23 = vand.u32 2147483647, %v6401_v54 }
 0x43f   : > { %v6398_v30 = vpop.f32.mrb[60].mxu0  ;;  %v2786_v25 = vmul.f32 %v6375_v63, %v2754_v13  ;;  %v3135_v28 = vmul.f32 %v4258_v11, %v2975_v2  ;;  %vm2528_vm12 = vcmp.ge.f32.partialorder %v6329_v47, 0.0  ;;  %v3008_v21 = vsub.f32 0.0, %v6349_v22 }
 0x440   : > { %7264 = vst [vmem:[#allocation6_spill] sm:$0xff] %v6398_v30  ;;  %v6403_v53 = vpop.f32.mrb[61].mxu0  ;;  %v6424_v49 = vmul.f32 0.70710677, %v6396_v52  ;;  %v6427_v50 = vmul.f32 %v3225_v6, %v6206_v18  ;;  %v2625_v43 = vmul.f32 0.3275911, %v6417_v23  ;;  %v6432_v29 = vadd.f32 %v6095_v38, %v6223_v4 }
 0x441   : > { %7265 = vst [vmem:[#allocation7_spill] sm:$0xff] %v6403_v53  ;;  %v6407_v17 = vpop.f32.mrb[62].mxu0  ;;  %v2818_v32 = vadd.f32 1.4214138, %v2786_v25  ;;  %v3196_v16 = vmul.f32 %v3164_v26, %v6332_v12  ;;  %v2941_v62 = vadd.f32 0.2548296, %v2909_v7  ;;  %4265 = vpow2.f32 %v3084_v57 }
 0x442   : > { %7266 = vst [vmem:[#allocation12_spill] sm:$0xff] %v6407_v17  ;;  %v6419_v61 = vpop.f32.mrb[63].mxu0  ;;  %7268 = vst [vmem:[#allocation8_spill] sm:$0xff] %v6427_v50  ;;  %v6436_v47 = vand.u32 2147483647, %v6424_v49  ;;  %v3230_v45 = vadd.f32 1.0, %v3198_v8  ;;  %v3040_v4 = vmul.f32 %v3008_v21, %v6349_v22 }
 0x443   : > { %7267 = vst [vmem:[#allocation14_spill] sm:$0xff] %v6419_v61  ;;  %v6439_v2 = vsel %vm2528_vm12, 1.0, %v7239_v15  ;;  %vm2531_vm13 = vcmp.ge.f32.partialorder %v6353_v44, 0.0  ;;  %v2657_v18 = vadd.f32 1.0, %v2625_v43  ;;  %v3167_v6 = vsub.f32 1.0, %v3135_v28 }
 0x444   : > { %v6442_v13 = vpop.eup %4259  ;;  %v3011_v25 = vsub.f32 0.0, %v6372_v34  ;;  %v2630_v12 = vmul.f32 0.3275911, %v6436_v47  ;;  %v2850_v57 = vmul.f32 %v6375_v63, %v2818_v32  ;;  %v6450_v7 = vmul.f32 0.70710677, %v6432_v29 }
 0x445   : > { %v2720_v26 = vmul.f32 1.0614054, %v6442_v13  ;;  %4267 = vrcp.f32 %v2657_v18  ;;  %v3228_v11 = vadd.f32 1.0, %v3196_v16  ;;  %v2973_v8 = vmul.f32 %v6303_v33, %v2941_v62 }
 0x446   : > { %v6454_v43 = vmul.f32 0.5, %v6337_v39  ;;  %v2662_v28 = vadd.f32 1.0, %v2630_v12  ;;  %v4262_v22 = vpop.eup %4261  ;;  %v6457_v21 = vmul.f32 %v3230_v45, %v6229_v41  ;;  %v6462_v32 = vsel %vm2531_vm13, 1.0, %v7239_v15 }
 0x447   : > { %v2752_v61 = vadd.f32 -1.4531521, %v2720_v26  ;;  %v6465_v18 = vand.u32 2147483647, %v6450_v7  ;;  %v6467_v16 = vpop.eup %4263  ;;  %v3199_v33 = vmul.f32 %v3167_v6, %v6359_v1  ;;  %v3080_v39 = vmul.f32 1.442695, %v3040_v4 }
 0x448   : > { %7269 = vst [vmem:[#allocation9_spill] sm:$0xff] %v6457_v21  ;;  %v3043_v62 = vmul.f32 %v3011_v25, %v6372_v34  ;;  %4269 = vrcp.f32 %v2662_v28  ;;  %v2882_v12 = vadd.f32 -0.28449672, %v2850_v57  ;;  %v2723_v45 = vmul.f32 1.0614054, %v6467_v16 }
 0x449   : > { %v2784_v41 = vmul.f32 %v6442_v13, %v2752_v61  ;;  %v2628_v44 = vmul.f32 0.3275911, %v6465_v18  ;;  %v6475_v26 = vmul.f32 %v3228_v11, %v6252_v19  ;;  %v3133_v21 = vmul.f32 %v4262_v22, %v2973_v8 }
 0x44a   : > { %v6478_v17 = vmul.f32 0.5, %v6382_v5  ;;  %v6482_v1 = vadd.f32 %v6232_v20, %v6095_v38  ;;  %v2755_v6 = vadd.f32 -1.4531521, %v2723_v45  ;;  %v3009_v4 = vsub.f32 0.0, %v6417_v23 }
 0x44b   : > { %7270 = vst [vmem:[#allocation11_spill] sm:$0xff] %v6475_v26  ;;  %v2816_v34 = vadd.f32 1.4214138, %v2784_v41  ;;  %v2660_v61 = vadd.f32 1.0, %v2628_v44  ;;  %v4266_v25 = vpop.eup %4265  ;;  %v3231_v57 = vadd.f32 1.0, %v3199_v33  ;;  %4271 = vpow2.f32 %v3080_v39 }
 0x44c   : > { %v3086_v28 = vmul.f32 1.442695, %v3043_v62  ;;  %v6486_v19 = vmul.f32 0.70710677, %v6482_v1  ;;  %v2914_v11 = vmul.f32 %v6375_v63, %v2882_v12  ;;  %v2787_v8 = vmul.f32 %v6467_v16, %v2755_v6 }
 0x44d   : > { %v2848_v5 = vmul.f32 %v6442_v13, %v2816_v34  ;;  %4273 = vrcp.f32 %v2660_v61  ;;  %vm2529_vm14 = vcmp.ge.f32.partialorder %v6401_v54, 0.0  ;;  %v6493_v20 = vmul.f32 0.5, %v6396_v52 }
 0x44e   : > { %v6496_v22 = vand.u32 2147483647, %v6486_v19  ;;  %v6500_v33 = vadd.f32 %v6095_v38, %v6249_v37  ;;  %v3165_v62 = vsub.f32 1.0, %v3133_v21  ;;  %v2819_v12 = vadd.f32 1.4214138, %v2787_v8 }
 0x44f   : > { %v6502_v39 = vpop.eup %4267  ;;  %v3041_v41 = vmul.f32 %v3009_v4, %v6417_v23  ;;  %vm2534_vm15 = vcmp.ge.f32.partialorder %v6424_v49, 0.0  ;;  %v6507_v54 = vmul.f32 %v3231_v57, %v6279_v55  ;;  %v2880_v52 = vadd.f32 -0.28449672, %v2848_v5 }
 0x450   : > { %v2721_v45 = vmul.f32 1.0614054, %v6502_v39  ;;  %v2631_v44 = vmul.f32 0.3275911, %v6496_v22  ;;  %v2946_v34 = vadd.f32 0.2548296, %v2914_v11  ;;  %4275 = vpow2.f32 %v3086_v28 }
 0x451   : > { %7271 = vst [vmem:[#allocation13_spill] sm:$0xff] %v6507_v54  ;;  %v6512_v37 = vsel %vm2529_vm14, 1.0, %v7239_v15  ;;  %v3014_v21 = vsub.f32 0.0, %v6436_v47  ;;  %v2851_v23 = vmul.f32 %v6467_v16, %v2819_v12  ;;  %v6519_v55 = vmul.f32 0.70710677, %v6500_v33 }
 0x452   : > { %v6515_v6 = vpop.eup %4269  ;;  %v2753_v4 = vadd.f32 -1.4531521, %v2721_v45  ;;  %v2663_v61 = vadd.f32 1.0, %v2631_v44  ;;  %v3197_v57 = vmul.f32 %v3165_v62, %v6369_v9  ;;  %v3082_v5 = vmul.f32 1.442695, %v3041_v41 }
 0x453   : > { %v6525_v28 = vsel %vm2534_vm15, 1.0, %v7239_v15  ;;  %v2726_v11 = vmul.f32 1.0614054, %v6515_v6  ;;  %v2912_v8 = vmul.f32 %v6442_v13, %v2880_v52  ;;  %v6531_v12 = vmul.f32 0.5, %v6432_v29 }
 0x454   : > { %v2785_v54 = vmul.f32 %v6502_v39, %v2753_v4  ;;  %4277 = vrcp.f32 %v2663_v61  ;;  %v2978_v45 = vmul.f32 %v6375_v63, %v2946_v34  ;;  %v3046_v9 = vmul.f32 %v3014_v21, %v6436_v47 }
 0x455   : > { %v2758_v44 = vadd.f32 -1.4531521, %v2726_v11  ;;  %v3012_v62 = vsub.f32 0.0, %v6465_v18  ;;  %v4272_v49 = vpop.eup %4271  ;;  %v2883_v41 = vadd.f32 -0.28449672, %v2851_v23  ;;  %v6541_v52 = vadd.f32 %v6255_v51, %v6095_v38 }
 0x456   : > { %v2817_v26 = vadd.f32 1.4214138, %v2785_v54  ;;  %v6537_v53 = vand.u32 2147483647, %v6519_v55  ;;  %v3229_v4 = vadd.f32 1.0, %v3197_v57  ;;  %4279 = vpow2.f32 %v3082_v5 }
 0x457   : > { %v6543_v29 = vpop.eup %4273  ;;  %v2790_v63 = vmul.f32 %v6515_v6, %v2758_v44  ;;  %vm2532_vm1 = vcmp.ge.f32.partialorder %v6450_v7, 0.0  ;;  %v2944_v47 = vadd.f32 0.2548296, %v2912_v8  ;;  %v3138_v23 = vmul.f32 %v4266_v25, %v2978_v45 }
 0x458   : > { %v2849_v34 = vmul.f32 %v6502_v39, %v2817_v26  ;;  %v2724_v54 = vmul.f32 1.0614054, %v6543_v29  ;;  %v2629_v21 = vmul.f32 0.3275911, %v6537_v53  ;;  %v3092_v11 = vmul.f32 1.442695, %v3046_v9 }
 0x459   : > { %v2822_v61 = vadd.f32 1.4214138, %v2790_v63  ;;  %v3044_v51 = vmul.f32 %v3012_v62, %v6465_v18  ;;  %v2915_v30 = vmul.f32 %v6467_v16, %v2883_v41  ;;  %v6553_v44 = vmul.f32 0.70710677, %v6541_v52 }
 0x45a   : > { %v2756_v57 = vadd.f32 -1.4531521, %v2724_v54  ;;  %v2661_v5 = vadd.f32 1.0, %v2629_v21  ;;  %v4276_v0 = vpop.eup %4275  ;;  %v6556_v8 = vmul.f32 %v3229_v4, %v6326_v14  ;;  %v2881_v26 = vadd.f32 -0.28449672, %v2849_v34 }
 0x45b   : > { %v2854_v50 = vmul.f32 %v6515_v6, %v2822_v61  ;;  %v6562_v25 = vsel %vm2532_vm1, 1.0, %v7239_v15  ;;  %v2976_v18 = vmul.f32 %v6442_v13, %v2944_v47  ;;  %v6567_v9 = vmul.f32 0.5, %v6482_v1 }
 0x45c   : > { %v2788_v45 = vmul.f32 %v6543_v29, %v2756_v57  ;;  %4281 = vrcp.f32 %v2661_v5  ;;  %v3170_v62 = vsub.f32 1.0, %v3138_v23  ;;  %v3088_v14 = vmul.f32 1.442695, %v3044_v51 }
 0x45d   : > { %v2886_v41 = vadd.f32 -0.28449672, %v2854_v50  ;;  %v3015_v4 = vsub.f32 0.0, %v6496_v22  ;;  %v2947_v34 = vadd.f32 0.2548296, %v2915_v30  ;;  %4283 = vpow2.f32 %v3092_v11 }
 0x45e   : > { %v6570_v63 = vpop.eup %4277  ;;  %v2820_v7 = vadd.f32 1.4214138, %v2788_v45  ;;  %v6573_v54 = vand.u32 2147483647, %v6553_v44  ;;  %v2913_v13 = vmul.f32 %v6502_v39, %v2881_v26  ;;  %v6578_v1 = vmul.f32 0.5, %v6500_v33 }
 0x45f   : > { %v2727_v47 = vmul.f32 1.0614054, %v6570_v63  ;;  %v6582_v50 = vadd.f32 %v6095_v38, %v6262_v36  ;;  %v3136_v21 = vmul.f32 %v4272_v49, %v2976_v18  ;;  %v2918_v23 = vmul.f32 %v6515_v6, %v2886_v41 }
 0x460   : > { %v2852_v30 = vmul.f32 %v6543_v29, %v2820_v7  ;;  %v2634_v61 = vmul.f32 0.3275911, %v6573_v54  ;;  %v4280_v11 = vpop.eup %4279  ;;  %v3202_v51 = vmul.f32 %v3170_v62, %v6392_v59  ;;  %4285 = vpow2.f32 %v3088_v14 }
 0x461   : > { %vm2535_vm2 = vcmp.ge.f32.partialorder %v6486_v19, 0.0  ;;  %v2759_v57 = vadd.f32 -1.4531521, %v2727_v47  ;;  %v2979_v33 = vmul.f32 %v6467_v16, %v2947_v34  ;;  %v3047_v36 = vmul.f32 %v3015_v4, %v6496_v22 }
 0x462   : > { %v2884_v5 = vadd.f32 -0.28449672, %v2852_v30  ;;  %v2666_v26 = vadd.f32 1.0, %v2634_v61  ;;  %v2945_v49 = vadd.f32 0.2548296, %v2913_v13  ;;  %v3013_v45 = vsub.f32 0.0, %v6537_v53 }
 0x463   : > { %v2791_v18 = vmul.f32 %v6570_v63, %v2759_v57  ;;  %v6594_v41 = vmul.f32 0.70710677, %v6582_v50  ;;  %v3168_v7 = vsub.f32 1.0, %v3136_v21  ;;  %v2950_v59 = vadd.f32 0.2548296, %v2918_v23 }
 0x464   : > { %v6597_v62 = vsel %vm2535_vm2, 1.0, %v7239_v15  ;;  %4287 = vrcp.f32 %v2666_v26  ;;  %v3234_v19 = vadd.f32 1.0, %v3202_v51  ;;  %v2916_v16 = vmul.f32 %v6543_v29, %v2884_v5 }
 0x465   : > { %v2823_v14 = vadd.f32 1.4214138, %v2791_v18  ;;  %v6601_v22 = vand.u32 2147483647, %v6594_v41  ;;  %v3139_v34 = vmul.f32 %v4276_v0, %v2979_v33  ;;  %v3094_v13 = vmul.f32 1.442695, %v3047_v36 }
 0x466   : > { %v6603_v4 = vpop.eup %4281  ;;  %vm2533_vm3 = vcmp.ge.f32.partialorder %v6519_v55, 0.0  ;;  %v6607_v47 = vmul.f32 0.5, %v6541_v52  ;;  %v2977_v21 = vmul.f32 %v6502_v39, %v2945_v49  ;;  %v3045_v30 = vmul.f32 %v3013_v45, %v6537_v53 }
 0x467   : > { %v2725_v23 = vmul.f32 1.0614054, %v6603_v4  ;;  %v2632_v61 = vmul.f32 0.3275911, %v6601_v22  ;;  %v4284_v51 = vpop.eup %4283  ;;  %v3200_v57 = vmul.f32 %v3168_v7, %v6439_v2  ;;  %v2982_v5 = vmul.f32 %v6515_v6, %v2950_v59 }
 0x468   : > { %v2855_v0 = vmul.f32 %v6570_v63, %v2823_v14  ;;  %v6618_v33 = vadd.f32 %v6269_v3, %v6095_v38  ;;  %v6621_v52 = vmul.f32 %v3234_v19, %v6386_v10  ;;  %v2948_v39 = vadd.f32 0.2548296, %v2916_v16 }
 0x469   : > { %v2757_v36 = vadd.f32 -1.4531521, %v2725_v23  ;;  %v2664_v26 = vadd.f32 1.0, %v2632_v61  ;;  %v3171_v53 = vsub.f32 1.0, %v3139_v34  ;;  %v6626_v49 = vsel %vm2533_vm3, 1.0, %v7239_v15 }
 0x46a   : > { %vm2538_vm0 = vcmp.ge.f32.partialorder %v6553_v44, 0.0  ;;  %v3018_v2 = vsub.f32 0.0, %v6573_v54  ;;  %v4286_v6 = vpop.eup %4285  ;;  %v3137_v18 = vmul.f32 %v4280_v11, %v2977_v21  ;;  %v3090_v45 = vmul.f32 1.442695, %v3045_v30 }
 0x46b   : > { %v2789_v3 = vmul.f32 %v6603_v4, %v2757_v36  ;;  %4289 = vrcp.f32 %v2664_v26  ;;  %v3232_v10 = vadd.f32 1.0, %v3200_v57  ;;  %v3142_v7 = vmul.f32 %v4284_v51, %v2982_v5 }
 0x46c   : > { %v2887_v59 = vadd.f32 -0.28449672, %v2855_v0  ;;  %v6632_v19 = vmul.f32 0.70710677, %v6618_v33  ;;  %v2980_v55 = vmul.f32 %v6543_v29, %v2948_v39  ;;  %4291 = vpow2.f32 %v3094_v13 }
 0x46d   : > { %v2821_v16 = vadd.f32 1.4214138, %v2789_v3  ;;  %v6637_v14 = vadd.f32 %v6095_v38, %v6274_v27  ;;  %v3203_v11 = vmul.f32 %v3171_v53, %v6462_v32  ;;  %v6645_v21 = vsel %vm2538_vm0, 1.0, %v7239_v15 }
 0x46e   : > { %v6639_v34 = vpop.eup %4287  ;;  %v3050_v23 = vmul.f32 %v3018_v2, %v6573_v54  ;;  %v6649_v30 = vand.u32 2147483647, %v6632_v19  ;;  %v3169_v29 = vsub.f32 1.0, %v3137_v18  ;;  %4293 = vpow2.f32 %v3090_v45 }
 0x46f   : > { %v2853_v13 = vmul.f32 %v6603_v4, %v2821_v16  ;;  %v2730_v27 = vmul.f32 1.0614054, %v6639_v34  ;;  %v6654_v61 = vmul.f32 %v3232_v10, %v6414_v40  ;;  %v3174_v32 = vsub.f32 1.0, %v3142_v7 }
 0x470   : > { %v2919_v51 = vmul.f32 %v6570_v63, %v2887_v59  ;;  %v2635_v44 = vmul.f32 0.3275911, %v6649_v30  ;;  %v3140_v57 = vmul.f32 %v4286_v6, %v2980_v55  ;;  %v6659_v54 = vmul.f32 0.70710677, %v6637_v14 }
 0x471   : > { %v2762_v5 = vadd.f32 -1.4531521, %v2730_v27  ;;  %v6663_v0 = vadd.f32 %v6288_v58, %v6095_v38  ;;  %v3235_v39 = vadd.f32 1.0, %v3203_v11  ;;  %v3100_v36 = vmul.f32 1.442695, %v3050_v23 }
 0x472   : > { %v6666_v26 = vmul.f32 0.5, %v6582_v50  ;;  %v2667_v40 = vadd.f32 1.0, %v2635_v44  ;;  %v3201_v53 = vmul.f32 %v3169_v29, %v6512_v37  ;;  %v2885_v2 = vadd.f32 -0.28449672, %v2853_v13 }
 0x473   : > { %v2794_v18 = vmul.f32 %v6639_v34, %v2762_v5  ;;  %vm2536_vm4 = vcmp.ge.f32.partialorder %v6594_v41, 0.0  ;;  %v2951_v6 = vadd.f32 0.2548296, %v2919_v51  ;;  %v3016_v3 = vsub.f32 0.0, %v6601_v22 }
 0x474   : > { %4295 = vrcp.f32 %v2667_v40  ;;  %v6673_v38 = vand.u32 2147483647, %v6659_v54  ;;  %v3206_v50 = vmul.f32 %v3174_v32, %v6525_v28  ;;  %v3172_v45 = vsub.f32 1.0, %v3140_v57 }
 0x475   : > { %v6675_v58 = vpop.eup %4289  ;;  %v2826_v10 = vadd.f32 1.4214138, %v2794_v18  ;;  %v6679_v37 = vmul.f32 0.70710677, %v6663_v0  ;;  %v6682_v7 = vmul.f32 %v3235_v39, %v6454_v43  ;;  %4297 = vpow2.f32 %v3100_v36 }
 0x476   : > { %v2728_v59 = vmul.f32 1.0614054, %v6675_v58  ;;  %v2633_v55 = vmul.f32 0.3275911, %v6673_v38  ;;  %v4292_v16 = vpop.eup %4291  ;;  %v3233_v11 = vadd.f32 1.0, %v3201_v53  ;;  %v2917_v23 = vmul.f32 %v6603_v4, %v2885_v2 }
 0x477   : > { %v2858_v29 = vmul.f32 %v6639_v34, %v2826_v10  ;;  %v6691_v28 = vsel %vm2536_vm4, 1.0, %v7239_v15  ;;  %v2983_v13 = vmul.f32 %v6570_v63, %v2951_v6  ;;  %v3048_v27 = vmul.f32 %v3016_v3, %v6601_v22  ;;  %v6704_v63 = vld [vmem:[%s7226_s7] ss:$0 sm:$0xff] }
 0x478   : > { %v2760_v43 = vadd.f32 -1.4531521, %v2728_v59  ;;  %v2665_v32 = vadd.f32 1.0, %v2633_v55  ;;  %v4294_v51 = vpop.eup %4293  ;;  %v3238_v44 = vadd.f32 1.0, %v3206_v50  ;;  %v3204_v57 = vmul.f32 %v3172_v45, %v6562_v25 }
 0x479   : > { %v3019_v5 = vsub.f32 0.0, %v6649_v30  ;;  %v6698_v39 = vand.u32 2147483647, %v6679_v37  ;;  %v2890_v36 = vadd.f32 -0.28449672, %v2858_v29  ;;  %v6708_v22 = vadd.f32 %v6704_v63, %v6293_v48 }
 0x47a   : > { %v2792_v41 = vmul.f32 %v6675_v58, %v2760_v43  ;;  %4299 = vrcp.f32 %v2665_v32  ;;  %v6711_v25 = vmul.f32 %v3233_v11, %v6478_v17  ;;  %v2949_v40 = vadd.f32 0.2548296, %v2917_v23 }
 0x47b   : > { %v6714_v53 = vmul.f32 0.5, %v6618_v33  ;;  %v2638_v2 = vmul.f32 0.3275911, %v6698_v39  ;;  %v3143_v18 = vmul.f32 %v4292_v16, %v2983_v13  ;;  %v3096_v3 = vmul.f32 1.442695, %v3048_v27 }
 0x47c   : > { %v2824_v6 = vadd.f32 1.4214138, %v2792_v41  ;;  %v6718_v50 = vmul.f32 0.70710677, %v6708_v22  ;;  %v6721_v45 = vmul.f32 %v3238_v44, %v6493_v20  ;;  %v3236_v48 = vadd.f32 1.0, %v3204_v57 }
 0x47d   : > { %vm2539_vm5 = vcmp.ge.f32.partialorder %v6632_v19, 0.0  ;;  %v2670_v17 = vadd.f32 1.0, %v2638_v2  ;;  %v2922_v33 = vmul.f32 %v6639_v34, %v2890_v36  ;;  %v3051_v55 = vmul.f32 %v3019_v5, %v6649_v30 }
 0x47e   : > { %v6724_v10 = vpop.eup %4295  ;;  %v2856_v59 = vmul.f32 %v6675_v58, %v2824_v6  ;;  %v6730_v16 = vand.u32 2147483647, %v6718_v50  ;;  %v2981_v11 = vmul.f32 %v6603_v4, %v2949_v40  ;;  %v6736_v19 = vadd.f32 %v6704_v63, %v6301_v31 }
 0x47f   : > { %v2731_v20 = vmul.f32 1.0614054, %v6724_v10  ;;  %4301 = vrcp.f32 %v2670_v17  ;;  %v4298_v23 = vpop.eup %4297  ;;  %v3175_v29 = vsub.f32 1.0, %v3143_v18  ;;  %v6739_v13 = vsel %vm2539_vm5, 1.0, %v7239_v15 }
 0x480   : > { %4303 = vpow2.f32 %v3096_v3  ;;  %v3017_v30 = vsub.f32 0.0, %v6673_v38  ;;  %v6743_v27 = vmul.f32 0.5, %v6637_v14  ;;  %vm2537_vm6 = vcmp.ge.f32.partialorder %v6659_v54, 0.0 }
 0x481   : > { %v2763_v43 = vadd.f32 -1.4531521, %v2731_v20  ;;  %v2636_v4 = vmul.f32 0.3275911, %v6730_v16  ;;  %v6748_v32 = vmul.f32 %v3236_v48, %v6531_v12  ;;  %v2954_v31 = vadd.f32 0.2548296, %v2922_v33 }
 0x482   : > { %v2888_v44 = vadd.f32 -0.28449672, %v2856_v59  ;;  %v3102_v57 = vmul.f32 1.442695, %v3051_v55  ;;  %v3141_v5 = vmul.f32 %v4294_v51, %v2981_v11  ;;  %v6752_v40 = vmul.f32 0.70710677, %v6736_v19 }
 0x483   : > { %v2795_v36 = vmul.f32 %v6724_v10, %v2763_v43  ;;  %v2668_v41 = vadd.f32 1.0, %v2636_v4  ;;  %v3207_v14 = vmul.f32 %v3175_v29, %v6597_v62  ;;  %v3049_v18 = vmul.f32 %v3017_v30, %v6673_v38 }
 0x484   : > { %v6754_v2 = vpop.eup %4299  ;;  %v6759_v6 = vmul.f32 0.5, %v6663_v0  ;;  %vm2542_vm7 = vcmp.ge.f32.partialorder %v6679_v37, 0.0  ;;  %v6765_v3 = vadd.f32 %v6704_v63, %v6311_v60  ;;  %v2986_v48 = vmul.f32 %v6639_v34, %v2954_v31 }
 0x485   : > { %v2827_v12 = vadd.f32 1.4214138, %v2795_v36  ;;  %v2729_v51 = vmul.f32 1.0614054, %v6754_v2  ;;  %4305 = vrcp.f32 %v2668_v41  ;;  %v2920_v17 = vmul.f32 %v6675_v58, %v2888_v44 }
 0x486   : > { %v6772_v62 = vsel %vm2537_vm6, 1.0, %v7239_v15  ;;  %v6775_v0 = vand.u32 2147483647, %v6752_v40  ;;  %v3173_v38 = vsub.f32 1.0, %v3141_v5  ;;  %4307 = vpow2.f32 %v3102_v57 }
 0x487   : > { %v2859_v37 = vmul.f32 %v6724_v10, %v2827_v12  ;;  %v2761_v33 = vadd.f32 -1.4531521, %v2729_v51  ;;  %v3239_v59 = vadd.f32 1.0, %v3207_v14  ;;  %v6779_v60 = vsel %vm2542_vm7, 1.0, %v7239_v15 }
 0x488   : > { %v3022_v34 = vsub.f32 0.0, %v6698_v39  ;;  %v2639_v55 = vmul.f32 0.3275911, %v6775_v0  ;;  %v3098_v29 = vmul.f32 1.442695, %v3049_v18  ;;  %v3146_v4 = vmul.f32 %v4298_v23, %v2986_v48 }
 0x489   : > { %v6783_v11 = vpop.eup %4301  ;;  %v2891_v54 = vadd.f32 -0.28449672, %v2859_v37  ;;  %v2793_v20 = vmul.f32 %v6754_v2, %v2761_v33  ;;  %v6787_v30 = vmul.f32 0.70710677, %v6765_v3  ;;  %v2952_v31 = vadd.f32 0.2548296, %v2920_v17 }
 0x48a   : > { %v4304_v43 = vpop.eup %4303  ;;  %v2734_v44 = vmul.f32 1.0614054, %v6783_v11  ;;  %v2671_v57 = vadd.f32 1.0, %v2639_v55  ;;  %v3205_v5 = vmul.f32 %v3173_v38, %v6626_v49  ;;  %v3020_v41 = vsub.f32 0.0, %v6730_v16 }
 0x48b   : > { %v2825_v36 = vadd.f32 1.4214138, %v2793_v20  ;;  %v6793_v14 = vand.u32 2147483647, %v6787_v30  ;;  %v2923_v12 = vmul.f32 %v6724_v10, %v2891_v54  ;;  %v3054_v51 = vmul.f32 %v3022_v34, %v6698_v39 }
 0x48c   : > { %v2766_v18 = vadd.f32 -1.4531521, %v2734_v44  ;;  %4309 = vrcp.f32 %v2671_v57  ;;  %v6798_v23 = vmul.f32 %v3239_v59, %v6567_v9  ;;  %v6804_v49 = vadd.f32 %v6704_v63, %v6339_v46 }
 0x48d   : > { %v2857_v48 = vmul.f32 %v6754_v2, %v2825_v36  ;;  %v2637_v17 = vmul.f32 0.3275911, %v6793_v14  ;;  %v3178_v38 = vsub.f32 1.0, %v3146_v4  ;;  %v2984_v37 = vmul.f32 %v6675_v58, %v2952_v31 }
 0x48e   : > { %v2798_v33 = vmul.f32 %v6783_v11, %v2766_v18  ;;  %v6809_v55 = vmul.f32 0.5, %v6708_v22  ;;  %v3237_v9 = vadd.f32 1.0, %v3205_v5  ;;  %vm2540_vm8 = vcmp.ge.f32.partialorder %v6718_v50, 0.0 }
 0x48f   : > { %v6811_v39 = vpop.eup %4305  ;;  %v3052_v59 = vmul.f32 %v3020_v41, %v6730_v16  ;;  %v2669_v34 = vadd.f32 1.0, %v2637_v17  ;;  %v2955_v54 = vadd.f32 0.2548296, %v2923_v12  ;;  %4311 = vpow2.f32 %v3098_v29 }
 0x490   : > { %v3108_v46 = vmul.f32 1.442695, %v3054_v51  ;;  %v2732_v20 = vmul.f32 1.0614054, %v6811_v39  ;;  %v4308_v4 = vpop.eup %4307  ;;  %v2889_v58 = vadd.f32 -0.28449672, %v2857_v48  ;;  %v3210_v44 = vmul.f32 %v3178_v38, %v6645_v21 }
 0x491   : > { %v2830_v31 = vadd.f32 1.4214138, %v2798_v33  ;;  %4313 = vrcp.f32 %v2669_v34  ;;  %v6817_v22 = vmul.f32 0.70710677, %v6804_v49  ;;  %v3144_v57 = vmul.f32 %v4304_v43, %v2984_v37 }
 0x492   : > { %v6821_v50 = vsel %vm2540_vm8, 1.0, %v7239_v15  ;;  %v2764_v16 = vadd.f32 -1.4531521, %v2732_v20  ;;  %v6824_v5 = vmul.f32 %v3237_v9, %v6578_v1  ;;  %v3104_v29 = vmul.f32 1.442695, %v3052_v59 }
 0x493   : > { %v6827_v36 = vand.u32 2147483647, %v6817_v22  ;;  %v6831_v41 = vadd.f32 %v6704_v63, %v6344_v56  ;;  %v2987_v12 = vmul.f32 %v6724_v10, %v2955_v54  ;;  %4315 = vpow2.f32 %v3108_v46 }
 0x494   : > { %v2796_v21 = vmul.f32 %v6811_v39, %v2764_v16  ;;  %v3023_v43 = vsub.f32 0.0, %v6775_v0  ;;  %v2921_v18 = vmul.f32 %v6754_v2, %v2889_v58  ;;  %v2862_v1 = vmul.f32 %v6783_v11, %v2830_v31 }
 0x495   : > { %vm2543_vm9 = vcmp.ge.f32.partialorder %v6752_v40, 0.0  ;;  %v2642_v51 = vmul.f32 0.3275911, %v6827_v36  ;;  %v3242_v17 = vadd.f32 1.0, %v3210_v44  ;;  %v3176_v56 = vsub.f32 1.0, %v3144_v57 }
 0x496   : > { %v6840_v48 = vpop.eup %4309  ;;  %v2828_v38 = vadd.f32 1.4214138, %v2796_v21  ;;  %v6843_v10 = vmul.f32 0.5, %v6736_v19  ;;  %4317 = vpow2.f32 %v3104_v29  ;;  %v6847_v9 = vmul.f32 0.70710677, %v6831_v41 }
 0x497   : > { %v2735_v37 = vmul.f32 1.0614054, %v6840_v48  ;;  %v2674_v33 = vadd.f32 1.0, %v2642_v51  ;;  %v3147_v59 = vmul.f32 %v4308_v4, %v2987_v12  ;;  %v6851_v34 = vsel %vm2543_vm9, 1.0, %v7239_v15 }
 0x498   : > { %v2860_v40 = vmul.f32 %v6811_v39, %v2828_v38  ;;  %v3055_v54 = vmul.f32 %v3023_v43, %v6775_v0  ;;  %v2953_v46 = vadd.f32 0.2548296, %v2921_v18  ;;  %v2894_v20 = vadd.f32 -0.28449672, %v2862_v1 }
 0x499   : > { %v2767_v58 = vadd.f32 -1.4531521, %v2735_v37  ;;  %4319 = vrcp.f32 %v2674_v33  ;;  %v4312_v19 = vpop.eup %4311  ;;  %v6855_v31 = vmul.f32 %v3242_v17, %v6607_v47  ;;  %v3208_v44 = vmul.f32 %v3176_v56, %v6691_v28 }
 0x49a   : > { %v6859_v57 = vmul.f32 0.5, %v6765_v3  ;;  %v3021_v4 = vsub.f32 0.0, %v6793_v14  ;;  %v2892_v29 = vadd.f32 -0.28449672, %v2860_v40  ;;  %vm2541_vm10 = vcmp.ge.f32.partialorder %v6787_v30, 0.0 }
 0x49b   : > { %v6862_v16 = vpop.eup %4313  ;;  %v2799_v0 = vmul.f32 %v6840_v48, %v2767_v58  ;;  %v6867_v12 = vand.u32 2147483647, %v6847_v9  ;;  %v3179_v21 = vsub.f32 1.0, %v3147_v59  ;;  %v3110_v47 = vmul.f32 1.442695, %v3055_v54 }
 0x49c   : > { %v2733_v43 = vmul.f32 1.0614054, %v6862_v16  ;;  %v6872_v28 = vadd.f32 %v6704_v63, %v6355_v42  ;;  %v2985_v3 = vmul.f32 %v6754_v2, %v2953_v46  ;;  %v2926_v18 = vmul.f32 %v6783_v11, %v2894_v20 }
 0x49d   : > { %v2831_v1 = vadd.f32 1.4214138, %v2799_v0  ;;  %v2640_v51 = vmul.f32 0.3275911, %v6867_v12  ;;  %v4316_v17 = vpop.eup %4315  ;;  %v3240_v30 = vadd.f32 1.0, %v3208_v44  ;;  %v6878_v56 = vsel %vm2541_vm10, 1.0, %v7239_v15 }
 0x49e   : > { %v2765_v38 = vadd.f32 -1.4531521, %v2733_v43  ;;  %v3053_v37 = vmul.f32 %v3021_v4, %v6793_v14  ;;  %v2924_v33 = vmul.f32 %v6811_v39, %v2892_v29  ;;  %v3026_v59 = vsub.f32 0.0, %v6827_v36 }
 0x49f   : > { %v2863_v42 = vmul.f32 %v6840_v48, %v2831_v1  ;;  %v2672_v2 = vadd.f32 1.0, %v2640_v51  ;;  %v3211_v40 = vmul.f32 %v3179_v21, %v6739_v13  ;;  %4321 = vpow2.f32 %v3110_v47 }
 0x4a0   : > { %v2797_v54 = vmul.f32 %v6862_v16, %v2765_v38  ;;  %v6887_v46 = vmul.f32 0.70710677, %v6872_v28  ;;  %v4318_v20 = vpop.eup %4317  ;;  %v3145_v58 = vmul.f32 %v4312_v19, %v2985_v3  ;;  %v2958_v44 = vadd.f32 0.2548296, %v2926_v18 }
 0x4a1   : > { %v2895_v0 = vadd.f32 -0.28449672, %v2863_v42  ;;  %4323 = vrcp.f32 %v2672_v2  ;;  %v3106_v4 = vmul.f32 1.442695, %v3053_v37  ;;  %v6890_v29 = vmul.f32 0.5, %v6804_v49  ;;  %v7272_v2 = vld [vmem:[#allocation8_spill] sm:$0xff] }
 0x4a2   : > { %v2829_v14 = vadd.f32 1.4214138, %v2797_v54  ;;  %v6894_v43 = vadd.f32 %v6704_v63, %v6363_v24  ;;  %v6899_v21 = vmul.f32 %v3240_v30, %v6666_v26  ;;  %v2956_v47 = vadd.f32 0.2548296, %v2924_v33 }
 0x4a3   : > { %v6896_v13 = vpop.eup %4319  ;;  %v3058_v19 = vmul.f32 %v3026_v59, %v6827_v36  ;;  %v2611_v3 = vand.u32 2147483647, %v6887_v46  ;;  %v2927_v18 = vmul.f32 %v6840_v48, %v2895_v0  ;;  %vm2546_vm11 = vcmp.ge.f32.partialorder %v6817_v22, 0.0  ;;  %v7273_v22 = vld [vmem:[#allocation5_spill] sm:$0xff] }
 0x4a4   : > { %v2861_v1 = vmul.f32 %v6862_v16, %v2829_v14  ;;  %v2738_v49 = vmul.f32 1.0614054, %v6896_v13  ;;  %v3243_v24 = vadd.f32 1.0, %v3211_v40  ;;  %v3177_v51 = vsub.f32 1.0, %v3145_v58 }
 0x4a5   : > { %v2990_v38 = vmul.f32 %v6783_v11, %v2958_v44  ;;  %v2643_v37 = vmul.f32 0.3275911, %v2611_v3  ;;  %4325 = vpow2.f32 %v3106_v4  ;;  %v6909_v36 = vmul.f32 0.70710677, %v6894_v43 }
 0x4a6   : > { %v2893_v26 = vadd.f32 -0.28449672, %v2861_v1  ;;  %v2770_v30 = vadd.f32 -1.4531521, %v2738_v49  ;;  %v2988_v33 = vmul.f32 %v6811_v39, %v2956_v47  ;;  %v3116_v42 = vmul.f32 1.442695, %v3058_v19 }
 0x4a7   : > { %v2675_v59 = vadd.f32 1.0, %v2643_v37  ;;  %v3288_v54 = vpack.c.bf16 %v7272_v2, %v6410_v35  ;;  %v2959_v0 = vadd.f32 0.2548296, %v2927_v18  ;;  %v6918_v11 = vsel %vm2546_vm11, 1.0, %v7239_v15  ;;  %v7274_v18 = vld [vmem:[#allocation4_spill] sm:$0xff] }
 0x4a8   : > { %v2925_v40 = vmul.f32 %v6862_v16, %v2893_v26  ;;  %v2802_v58 = vmul.f32 %v6896_v13, %v2770_v30  ;;  %v3209_v44 = vmul.f32 %v3177_v51, %v6772_v62  ;;  %v3150_v14 = vmul.f32 %v4316_v17, %v2990_v38  ;;  %v7276_v51 = vld [vmem:[#allocation6_spill] sm:$0xff] }
 0x4a9   : > { %vm2544_vm12 = vcmp.ge.f32.partialorder %v6847_v9, 0.0  ;;  %4327 = vrcp.f32 %v2675_v59  ;;  %4023 = vmatprep.mubr.bf16.mxu1 %v3288_v54  ;;  %v4322_v39 = vpop.eup %4321  ;;  %v6924_v35 = vmul.f32 %v3243_v24, %v6714_v53  ;;  %v6927_v19 = vand.u32 2147483647, %v6909_v36 }
 0x4aa   : > { %v2957_v4 = vadd.f32 0.2548296, %v2925_v40  ;;  %v2834_v47 = vadd.f32 1.4214138, %v2802_v58  ;;  %v7275_v1 = vpack.c.bf16 %v7273_v22, %v7274_v18  ;;  %v3148_v62 = vmul.f32 %v4318_v20, %v2988_v33 }
 0x4ab   : > { %v6932_v49 = vpop.eup %4323  ;;  %4329 = vpow2.f32 %v3116_v42  ;;  %v3024_v17 = vsub.f32 0.0, %v6867_v12  ;;  %v6937_v38 = vadd.f32 %v6704_v63, %v7276_v51  ;;  %v2991_v53 = vmul.f32 %v6840_v48, %v2959_v0 }
 0x4ac   : > { %4024 = vmatmul.mubr.bf16.vlgmr.msra.gmra.mrb[32].mxu1 %v7275_v1  ;;  %v2866_v24 = vmul.f32 %v6896_v13, %v2834_v47  ;;  %v2736_v37 = vmul.f32 1.0614054, %v6932_v49  ;;  %v2641_v26 = vmul.f32 0.3275911, %v6927_v19  ;;  %v3241_v30 = vadd.f32 1.0, %v3209_v44  ;;  %v7277_v47 = vld [vmem:[#allocation7_spill] sm:$0xff] }
 0x4ad   : > { %v3182_v59 = vsub.f32 1.0, %v3150_v14  ;;  %v3027_v2 = vsub.f32 0.0, %v2611_v3  ;;  %v6944_v20 = vmul.f32 0.70710677, %v6937_v38  ;;  %v2989_v33 = vmul.f32 %v6862_v16, %v2957_v4 }
 0x4ae   : > { %v2898_v42 = vadd.f32 -0.28449672, %v2866_v24  ;;  %v2768_v54 = vadd.f32 -1.4531521, %v2736_v37  ;;  %v2673_v40 = vadd.f32 1.0, %v2641_v26  ;;  %v3180_v58 = vsub.f32 1.0, %v3148_v62 }
 0x4af   : > { %v3056_v48 = vmul.f32 %v3024_v17, %v6867_v12  ;;  %v2614_v0 = vand.u32 2147483647, %v6944_v20  ;;  %v6951_v22 = vadd.f32 %v6704_v63, %v7277_v47  ;;  %v4326_v44 = vpop.eup %4325  ;;  %v3151_v14 = vmul.f32 %v4322_v39, %v2991_v53 }
 0x4b0   : > { %v2930_v18 = vmul.f32 %v6896_v13, %v2898_v42  ;;  %v2800_v1 = vmul.f32 %v6932_v49, %v2768_v54  ;;  %4331 = vrcp.f32 %v2673_v40  ;;  %v6958_v16 = vsel %vm2544_vm12, 1.0, %v7239_v15 }
 0x4b1   : > { %v6961_v12 = vmul.f32 0.5, %v6872_v28  ;;  %v3059_v4 = vmul.f32 %v3027_v2, %v2611_v3  ;;  %v2646_v62 = vmul.f32 0.3275911, %v2614_v0  ;;  %v6964_v17 = vmul.f32 %v3241_v30, %v6743_v27 }
 0x4b2   : > { %v3149_v51 = vmul.f32 %v4326_v44, %v2989_v33  ;;  %v2962_v39 = vadd.f32 0.2548296, %v2930_v18  ;;  %v2832_v53 = vadd.f32 1.4214138, %v2800_v1  ;;  %v3214_v37 = vmul.f32 %v3182_v59, %v6779_v60  ;;  %v7278_v1 = vld [vmem:[#allocation12_spill] sm:$0xff] }
 0x4b3   : > { %v6966_v24 = vpop.eup %4327  ;;  %v3112_v26 = vmul.f32 1.442695, %v3056_v48  ;;  %v2678_v42 = vadd.f32 1.0, %v2646_v62  ;;  %v6970_v9 = vmul.f32 0.70710677, %v6951_v22  ;;  %v3212_v28 = vmul.f32 %v3180_v58, %v6821_v50 }
 0x4b4   : > { %v3183_v54 = vsub.f32 1.0, %v3151_v14  ;;  %v2864_v3 = vmul.f32 %v6932_v49, %v2832_v53  ;;  %v2739_v27 = vmul.f32 1.0614054, %v6966_v24  ;;  %v3118_v2 = vmul.f32 1.442695, %v3059_v4 }
 0x4b5   : > { %v4330_v30 = vpop.eup %4329  ;;  %v3025_v33 = vsub.f32 0.0, %v6927_v19  ;;  %4333 = vrcp.f32 %v2678_v42  ;;  %v6977_v40 = vand.u32 2147483647, %v6970_v9  ;;  %v3181_v60 = vsub.f32 1.0, %v3149_v51 }
 0x4b6   : > { %v2994_v59 = vmul.f32 %v6896_v13, %v2962_v39  ;;  %v2896_v48 = vadd.f32 -0.28449672, %v2864_v3  ;;  %v2771_v47 = vadd.f32 -1.4531521, %v2739_v27  ;;  %v3246_v44 = vadd.f32 1.0, %v3214_v37 }
 0x4b7   : > { %4335 = vpow2.f32 %v3112_v26  ;;  %vm2547_vm13 = vcmp.ge.f32.partialorder %v6887_v46, 0.0  ;;  %v2644_v50 = vmul.f32 0.3275911, %v6977_v40  ;;  %v3244_v58 = vadd.f32 1.0, %v3212_v28 }
 0x4b8   : > { %v3215_v14 = vmul.f32 %v3183_v54, %v6851_v34  ;;  %v2803_v18 = vmul.f32 %v6966_v24, %v2771_v47  ;;  %v6986_v4 = vadd.f32 %v6704_v63, %v7278_v1  ;;  %v2928_v62 = vmul.f32 %v6932_v49, %v2896_v48  ;;  %v7279_v54 = vld [vmem:[#allocation14_spill] sm:$0xff] }
 0x4b9   : > { %4337 = vpow2.f32 %v3118_v2  ;;  %v3030_v13 = vsub.f32 0.0, %v2614_v0  ;;  %v2676_v51 = vadd.f32 1.0, %v2644_v50  ;;  %v3213_v53 = vmul.f32 %v3181_v60, %v6878_v56 }
 0x4ba   : > { %v6989_v39 = vpop.eup %4331  ;;  %v3154_v37 = vmul.f32 %v4330_v30, %v2994_v59  ;;  %v2835_v26 = vadd.f32 1.4214138, %v2803_v18  ;;  %v3057_v42 = vmul.f32 %v3025_v33, %v6927_v19  ;;  %v6995_v28 = vmul.f32 0.70710677, %v6986_v4 }
 0x4bb   : > { %v2737_v34 = vmul.f32 1.0614054, %v6989_v39  ;;  %4339 = vrcp.f32 %v2676_v51  ;;  %v6999_v3 = vadd.f32 %v6704_v63, %v7279_v54  ;;  %v7002_v27 = vmul.f32 %v3246_v44, %v6759_v6 }
 0x4bc   : > { %v3247_v2 = vadd.f32 1.0, %v3215_v14  ;;  %v2579_v56 = vsel %vm2547_vm13, 1.0, %v7239_v15  ;;  %v2867_v19 = vmul.f32 %v6966_v24, %v2835_v26  ;;  %v2960_v30 = vadd.f32 0.2548296, %v2928_v62 }
 0x4bd   : > { %v2769_v33 = vadd.f32 -1.4531521, %v2737_v34  ;;  %v3062_v60 = vmul.f32 %v3030_v13, %v2614_v0  ;;  %v7009_v59 = vand.u32 2147483647, %v6995_v28  ;;  %v7012_v48 = vmul.f32 %v3244_v58, %v6809_v55  ;;  %v7280_v58 = vld [vmem:[#allocation11_spill] sm:$0xff] }
 0x4be   : > { %v3186_v63 = vsub.f32 1.0, %v3154_v37  ;;  %v2899_v47 = vadd.f32 -0.28449672, %v2867_v19  ;;  %v3114_v6 = vmul.f32 1.442695, %v3057_v42  ;;  %v3245_v50 = vadd.f32 1.0, %v3213_v53 }
 0x4bf   : > { %v7014_v44 = vpop.eup %4333  ;;  %v2801_v46 = vmul.f32 %v6989_v39, %v2769_v33  ;;  %v2647_v14 = vmul.f32 0.3275911, %v7009_v59  ;;  %v7019_v18 = vmul.f32 0.70710677, %v6999_v3  ;;  %v7022_v0 = vmul.f32 %v3247_v2, %v6843_v10  ;;  %v7281_v33 = vld [vmem:[#allocation9_spill] sm:$0xff] }
 0x4c0   : > { %v2931_v1 = vmul.f32 %v6966_v24, %v2899_v47  ;;  %v2742_v55 = vmul.f32 1.0614054, %v7014_v44  ;;  %v3290_v62 = vpack.c.bf16 %v6556_v8, %v7280_v58  ;;  %v2992_v51 = vmul.f32 %v6932_v49, %v2960_v30 }
 0x4c1   : > { %v4336_v13 = vpop.eup %4335  ;;  %v2833_v53 = vadd.f32 1.4214138, %v2801_v46  ;;  %v3124_v37 = vmul.f32 1.442695, %v3062_v60  ;;  %v2679_v26 = vadd.f32 1.0, %v2647_v14  ;;  %v3218_v42 = vmul.f32 %v3186_v63, %v6918_v11  ;;  %v7282_v60 = vld [vmem:[#allocation13_spill] sm:$0xff] }
 0x4c2   : > { %v2963_v34 = vadd.f32 0.2548296, %v2931_v1  ;;  %4341 = vpow2.f32 %v3114_v6  ;;  %v2774_v54 = vadd.f32 -1.4531521, %v2742_v55  ;;  %4027 = vmatprep.mubr.bf16.mxu1 %v3290_v62  ;;  %v7031_v2 = vmul.f32 %v3245_v50, %v6859_v57 }
 0x4c3   : > { %v4338_v10 = vpop.eup %4337  ;;  %v2865_v19 = vmul.f32 %v6989_v39, %v2833_v53  ;;  %4343 = vrcp.f32 %v2679_v26  ;;  %v7035_v8 = vand.u32 2147483647, %v7019_v18  ;;  %vm2545_vm14 = vcmp.ge.f32.partialorder %v6909_v36, 0.0 }
 0x4c4   : > { %v2995_v49 = vmul.f32 %v6966_v24, %v2963_v34  ;;  %v2806_v11 = vmul.f32 %v7014_v44, %v2774_v54  ;;  %v3028_v30 = vsub.f32 0.0, %v6977_v40  ;;  %v3291_v63 = vpack.c.bf16 %v7282_v60, %v7281_v33 }
 0x4c5   : > { %v7043_v47 = vpop.eup %4339  ;;  %v3152_v57 = vmul.f32 %v4336_v13, %v2992_v51  ;;  %v2897_v6 = vadd.f32 -0.28449672, %v2865_v19  ;;  %4345 = vpow2.f32 %v3124_v37  ;;  %v2645_v50 = vmul.f32 0.3275911, %v7035_v8 }
 0x4c6   : > { %v3250_v46 = vadd.f32 1.0, %v3218_v42  ;;  %v3155_v14 = vmul.f32 %v4338_v10, %v2995_v49  ;;  %v2838_v1 = vadd.f32 1.4214138, %v2806_v11  ;;  %v2740_v24 = vmul.f32 1.0614054, %v7043_v47  ;;  %4028 = vmatmul.mubr.bf16.gmra.mrb[36].mxu1 %v3291_v63 }
 0x4c7   : > { %v2929_v55 = vmul.f32 %v6989_v39, %v2897_v6  ;;  %v3031_v58 = vsub.f32 0.0, %v7009_v59  ;;  %v2677_v62 = vadd.f32 1.0, %v2645_v50  ;;  %v3292_v53 = vpack.c.bf16 %v6711_v25, %v6654_v61 }
 0x4c8   : > { %v3187_v26 = vsub.f32 1.0, %v3155_v14  ;;  %v2870_v13 = vmul.f32 %v7014_v44, %v2838_v1  ;;  %v2772_v51 = vadd.f32 -1.4531521, %v2740_v24  ;;  %v3293_v37 = vpack.c.bf16 %v6682_v7, %v6621_v52 }
 0x4c9   : > { %v3184_v42 = vsub.f32 1.0, %v3152_v57  ;;  %v2961_v34 = vadd.f32 0.2548296, %v2929_v55  ;;  %4347 = vrcp.f32 %v2677_v62  ;;  %4031 = vmatprep.mubr.bf16.mxu1 %v3292_v53  ;;  %v3294_v54 = vpack.c.bf16 %v6824_v5, %v6748_v32 }
 0x4ca   : > { %v3219_v10 = vmul.f32 %v3187_v26, %v2579_v56  ;;  %v2902_v19 = vadd.f32 -0.28449672, %v2870_v13  ;;  %v2804_v49 = vmul.f32 %v7043_v47, %v2772_v51  ;;  %v3295_v61 = vpack.c.bf16 %v6798_v23, %v6721_v45 }
 0x4cb   : > { %v2993_v25 = vmul.f32 %v6989_v39, %v2961_v34  ;;  %v3060_v11 = vmul.f32 %v3028_v30, %v6977_v40  ;;  %v3296_v52 = vpack.c.bf16 %v6964_v17, %v6899_v21  ;;  %v3297_v7 = vpack.c.bf16 %v6924_v35, %v6855_v31 }
 0x4cc   : > { %v4342_v33 = vpop.eup %4341  ;;  %v3251_v60 = vadd.f32 1.0, %v3219_v10  ;;  %v2934_v32 = vmul.f32 %v7014_v44, %v2902_v19  ;;  %v2836_v5 = vadd.f32 1.4214138, %v2804_v49  ;;  %v3298_v56 = vpack.c.bf16 %v7031_v2, %v7012_v48 }
 0x4cd   : > { %v4344_v63 = vpop.eup %4343  ;;  %v3216_v45 = vmul.f32 %v3184_v42, %v6958_v16  ;;  %v3153_v23 = vmul.f32 %v4342_v33, %v2993_v25  ;;  %v3063_v40 = vmul.f32 %v3031_v58, %v7009_v59  ;;  %v3299_v21 = vpack.c.bf16 %v7022_v0, %v7002_v27 }
 0x4ce   : > { %v7073_v17 = vmul.f32 %v3250_v46, %v6890_v29  ;;  %v7076_v39 = vmul.f32 %v3251_v60, %v6961_v12  ;;  %v2868_v30 = vmul.f32 %v7043_v47, %v2836_v5  ;;  %v2743_v57 = vmul.f32 1.0614054, %v4344_v63  ;;  %4032 = vmatmul.mubr.bf16.gmra.mrb[40].mxu1 %v3293_v37 }
 0x4cf   : > { %v4346_v48 = vpop.eup %4345  ;;  %v2577_v16 = vsel %vm2545_vm14, 1.0, %v7239_v15  ;;  %v3185_v2 = vsub.f32 1.0, %v3153_v23  ;;  %v3120_v59 = vmul.f32 1.442695, %v3060_v11  ;;  %v3029_v6 = vsub.f32 0.0, %v7035_v8  ;;  %4035 = vmatprep.mubr.bf16.mxu1 %v3294_v54 }
 0x4d0   : > { %v2966_v50 = vadd.f32 0.2548296, %v2934_v32  ;;  %v2900_v29 = vadd.f32 -0.28449672, %v2868_v30  ;;  %v2775_v46 = vadd.f32 -1.4531521, %v2743_v57  ;;  %v3301_v12 = vpack.c.bf16 %v7076_v39, %v7073_v17 }
 0x4d1   : > { %v3248_v14 = vadd.f32 1.0, %v3216_v45  ;;  %v3217_v1 = vmul.f32 %v3185_v2, %v2577_v16  ;;  %v3126_v24 = vmul.f32 1.442695, %v3063_v40  ;;  %v2480_v62 = vmul.f32 0.5, %v6831_v41 }
 0x4d2   : > { %v2807_v55 = vmul.f32 %v4344_v63, %v2775_v46  ;;  %v2481_v36 = vmul.f32 0.5, %v6894_v43  ;;  %v2932_v26 = vmul.f32 %v7043_v47, %v2900_v29  ;;  %v2998_v13 = vmul.f32 %v7014_v44, %v2966_v50 }
 0x4d3   : > { %v4348_v58 = vpop.eup %4347  ;;  %v3249_v53 = vadd.f32 1.0, %v3217_v1  ;;  %4349 = vpow2.f32 %v3120_v59  ;;  %v3061_v37 = vmul.f32 %v3029_v6, %v7035_v8  ;;  %v3280_v42 = vmul.f32 %v3248_v14, %v2480_v62 }
 0x4d4   : > { %v2839_v51 = vadd.f32 1.4214138, %v2807_v55  ;;  %4351 = vpow2.f32 %v3126_v24  ;;  %v2741_v54 = vmul.f32 1.0614054, %v4348_v58  ;;  %v2964_v19 = vadd.f32 0.2548296, %v2932_v26 }
 0x4d5   : > { %v3281_v34 = vmul.f32 %v3249_v53, %v2481_v36  ;;  %v3158_v43 = vmul.f32 %v4346_v48, %v2998_v13  ;;  %v3122_v11 = vmul.f32 1.442695, %v3061_v37  ;;  %vm2550_vm15 = vcmp.ge.f32.partialorder %v6944_v20, 0.0  ;;  %v7113_v53 = vld [vmem:[#allocation2] ss:$0 sm:$0xff] }
 0x4d6   : > { %v2871_v10 = vmul.f32 %v4344_v63, %v2839_v51  ;;  %4036 = vmatmul.mubr.bf16.gmra.mrb[44].mxu1 %v3295_v61  ;;  %v2773_v49 = vadd.f32 -1.4531521, %v2741_v54  ;;  %v2996_v44 = vmul.f32 %v7043_v47, %v2964_v19  ;;  %v2582_v40 = vsel %vm2550_vm15, 1.0, %v7239_v15 }
 0x4d7   : > { %4039 = vmatprep.mubr.bf16.mxu1 %v3296_v52  ;;  %v3300_v41 = vpack.c.bf16 %v3281_v34, %v3280_v42  ;;  %v3190_v8 = vsub.f32 1.0, %v3158_v43  ;;  %4353 = vpow2.f32 %v3122_v11  ;;  %vm2551_vm1 = vcmp.ge.f32.partialorder %v6995_v28, 0.0 }
 0x4d8   : > { %v2903_v25 = vadd.f32 -0.28449672, %v2871_v10  ;;  %v2805_v33 = vmul.f32 %v4348_v58, %v2773_v49  ;;  %vm2548_vm2 = vcmp.ge.f32.partialorder %v6970_v9, 0.0  ;;  %v2486_v50 = vmul.f32 0.5, %v6937_v38 }
 0x4d9   : > { %v3222_v47 = vmul.f32 %v3190_v8, %v2582_v40  ;;  %v2487_v29 = vmul.f32 0.5, %v6986_v4  ;;  %vm2549_vm3 = vcmp.ge.f32.partialorder %v7019_v18, 0.0  ;;  %v2484_v4 = vmul.f32 0.5, %v6951_v22 }
 0x4da   : > { %v2935_v60 = vmul.f32 %v4344_v63, %v2903_v25  ;;  %v2837_v32 = vadd.f32 1.4214138, %v2805_v33  ;;  %v2581_v38 = vsel %vm2549_vm3, 1.0, %v7239_v15  ;;  %v2485_v36 = vmul.f32 0.5, %v6999_v3 }
 0x4db   : > { %v3254_v31 = vadd.f32 1.0, %v3222_v47  ;;  %vm3536_vm0 = vcmask 7168  }
 0x4dc   : > { %v2967_v5 = vadd.f32 0.2548296, %v2935_v60  ;;  %v2869_v45 = vmul.f32 %v4348_v58, %v2837_v32 }
 0x4dd   : > { %v4350_v23 = vpop.eup %4349  ;;  %v3286_v14 = vmul.f32 %v3254_v31, %v2486_v50 }
 0x4de   : > { %v2999_v61 = vmul.f32 %v4344_v63, %v2967_v5  ;;  %4040 = vmatmul.mubr.bf16.gmra.mrb[48].mxu1 %v3297_v7  ;;  %v4352_v52 = vpop.eup %4351  ;;  %v3156_v30 = vmul.f32 %v4350_v23, %v2996_v44  ;;  %v2901_v57 = vadd.f32 -0.28449672, %v2869_v45  ;;  %v2583_v63 = vsel %vm2551_vm1, 1.0, %v7239_v15 }
 0x4df   : > { %4043 = vmatprep.mubr.bf16.mxu1 %v3298_v56  ;;  %v2580_v56 = vsel %vm2548_vm2, 1.0, %v7239_v15 }
 0x4e0   : > { %v3159_v20 = vmul.f32 %v4352_v52, %v2999_v61  ;;  %v2933_v48 = vmul.f32 %v4348_v58, %v2901_v57  ;;  %v3188_v2 = vsub.f32 1.0, %v3156_v30 }
 0x4e1   : > { %v4354_v6 = vpop.eup %4353 }
 0x4e2   : > { %v3191_v16 = vsub.f32 1.0, %v3159_v20  ;;  %v2965_v59 = vadd.f32 0.2548296, %v2933_v48  ;;  %v3220_v9 = vmul.f32 %v3188_v2, %v2580_v56 }
 0x4e4   : > { %v3223_v35 = vmul.f32 %v3191_v16, %v2583_v63  ;;  %v2997_v7 = vmul.f32 %v4348_v58, %v2965_v59  ;;  %v3252_v58 = vadd.f32 1.0, %v3220_v9 }
 0x4e6   : > { %v3255_v28 = vadd.f32 1.0, %v3223_v35  ;;  %4044 = vmatmul.mubr.bf16.gmra.mrb[52].mxu1 %v3299_v21  ;;  %v3157_v46 = vmul.f32 %v4354_v6, %v2997_v7  ;;  %v3284_v18 = vmul.f32 %v3252_v58, %v2484_v4 }
 0x4e7   : > { %4047 = vmatprep.mubr.bf16.mxu1 %v3300_v41 }
 0x4e8   : > { %v3287_v1 = vmul.f32 %v3255_v28, %v2487_v29  ;;  %v3189_v24 = vsub.f32 1.0, %v3157_v46 }
 0x4ea   : > { %v3303_v55 = vpack.c.bf16 %v3287_v1, %v3286_v14  ;;  %v3221_v62 = vmul.f32 %v3189_v24, %v2581_v38 }
 0x4ec   : > { %v3253_v27 = vadd.f32 1.0, %v3221_v62 }
 0x4ee   : > { %4048 = vmatmul.mubr.bf16.gmra.mrb[56].mxu1 %v3301_v12  ;;  %v3285_v0 = vmul.f32 %v3253_v27, %v2485_v36 }
 0x4f0   : > { %v3302_v21 = vpack.c.bf16 %v3285_v0, %v3284_v18 }
 0x4f2   : > { %4051 = vmatprep.mubr.bf16.mxu1 %v3302_v21 }
 0x4f6   : > { %4052 = vmatmul.mubr.bf16.gmra.mrb[60].mxu1 %v3303_v55 }
 0x57f   : > { %v4025_v15 = vpop.f32.mrb[32].mxu1 }
 0x580   : > { %v3418_v22 = vadd.f32 %v4025_v15, %v7113_v53  ;;  %v3409_v3 = vpop.f32.mrb[33].mxu1 }
 0x581   : > { %v3410_v17 = vadd.f32 %v7113_v53, %v3409_v3  ;;  %v4026_v39 = vpop.f32.mrb[34].mxu1 }
 0x582   : > { %3539 = vst.msk [vmem:[%s7118_s11 + $0x10] sm:$0xff] %vm3536_vm0, %v3418_v22  ;;  %v3421_v12 = vadd.f32 %v4026_v39, %v7113_v53  ;;  %v3412_v26 = vpop.f32.mrb[35].mxu1 }
 0x583   : > { %3537 = vst.msk [vmem:[%s7118_s11] sm:$0xff] %vm3536_vm0, %v3410_v17  ;;  %v3413_v13 = vadd.f32 %v7113_v53, %v3412_v26 }
 0x584   : > { %3540 = vst.msk [vmem:[%s7118_s11 + $0x18] sm:$0xff] %vm3536_vm0, %v3421_v12 }
 0x585   : > { %3538 = vst.msk [vmem:[%s7118_s11 + $0x8] sm:$0xff] %vm3536_vm0, %v3413_v13 }
 0x599   : > { %v4029_v51 = vpop.f32.mrb[36].mxu1 }
 0x59a   : > { %v3434_v37 = vadd.f32 %v4029_v51, %v7113_v53  ;;  %v3425_v42 = vpop.f32.mrb[37].mxu1 }
 0x59b   : > { %v3426_v34 = vadd.f32 %v7113_v53, %v3425_v42  ;;  %v4030_v54 = vpop.f32.mrb[38].mxu1 }
 0x59c   : > { %3543 = vst.msk [vmem:[%s7118_s11 + $0x30] sm:$0xff] %vm3536_vm0, %v3434_v37  ;;  %v3437_v10 = vadd.f32 %v4030_v54, %v7113_v53  ;;  %v3428_v19 = vpop.f32.mrb[39].mxu1 }
 0x59d   : > { %3541 = vst.msk [vmem:[%s7118_s11 + $0x20] sm:$0xff] %vm3536_vm0, %v3426_v34  ;;  %v3429_v49 = vadd.f32 %v7113_v53, %v3428_v19 }
 0x59e   : > { %3544 = vst.msk [vmem:[%s7118_s11 + $0x38] sm:$0xff] %vm3536_vm0, %v3437_v10 }
 0x59f   : > { %3542 = vst.msk [vmem:[%s7118_s11 + $0x28] sm:$0xff] %vm3536_vm0, %v3429_v49 }
 0x5a1   : > { %v4033_v41 = vpop.f32.mrb[40].mxu1 }
 0x5a2   : > { %v3450_v43 = vadd.f32 %v4033_v41, %v7113_v53  ;;  %v3441_v25 = vpop.f32.mrb[41].mxu1 }
 0x5a3   : > { %v3442_v11 = vadd.f32 %v7113_v53, %v3441_v25  ;;  %v4034_v33 = vpop.f32.mrb[42].mxu1 }
 0x5a4   : > { %3547 = vst.msk [vmem:[%s7118_s11 + $0x50] sm:$0xff] %vm3536_vm0, %v3450_v43  ;;  %v3453_v60 = vadd.f32 %v4034_v33, %v7113_v53  ;;  %v3444_v44 = vpop.f32.mrb[43].mxu1 }
 0x5a5   : > { %3545 = vst.msk [vmem:[%s7118_s11 + $0x40] sm:$0xff] %vm3536_vm0, %v3442_v11  ;;  %v3445_v32 = vadd.f32 %v7113_v53, %v3444_v44 }
 0x5a6   : > { %3548 = vst.msk [vmem:[%s7118_s11 + $0x58] sm:$0xff] %vm3536_vm0, %v3453_v60 }
 0x5a7   : > { %3546 = vst.msk [vmem:[%s7118_s11 + $0x48] sm:$0xff] %vm3536_vm0, %v3445_v32 }
 0x5a9   : > { %v4037_v8 = vpop.f32.mrb[44].mxu1 }
 0x5aa   : > { %v3466_v5 = vadd.f32 %v4037_v8, %v7113_v53  ;;  %v3457_v45 = vpop.f32.mrb[45].mxu1 }
 0x5ab   : > { %v3458_v23 = vadd.f32 %v7113_v53, %v3457_v45  ;;  %v4038_v61 = vpop.f32.mrb[46].mxu1 }
 0x5ac   : > { %3551 = vst.msk [vmem:[%s7118_s11 + $0x70] sm:$0xff] %vm3536_vm0, %v3466_v5  ;;  %v3469_v52 = vadd.f32 %v4038_v61, %v7113_v53  ;;  %v3460_v40 = vpop.f32.mrb[47].mxu1 }
 0x5ad   : > { %3549 = vst.msk [vmem:[%s7118_s11 + $0x60] sm:$0xff] %vm3536_vm0, %v3458_v23  ;;  %v3461_v30 = vadd.f32 %v7113_v53, %v3460_v40 }
 0x5ae   : > { %3552 = vst.msk [vmem:[%s7118_s11 + $0x78] sm:$0xff] %vm3536_vm0, %v3469_v52 }
 0x5af   : > { %3550 = vst.msk [vmem:[%s7118_s11 + $0x68] sm:$0xff] %vm3536_vm0, %v3461_v30 }
 0x5b1   : > { %v4041_v57 = vpop.f32.mrb[48].mxu1 }
 0x5b2   : > { %v3482_v47 = vadd.f32 %v4041_v57, %v7113_v53  ;;  %v3473_v20 = vpop.f32.mrb[49].mxu1 }
 0x5b3   : > { %v3474_v48 = vadd.f32 %v7113_v53, %v3473_v20  ;;  %v4042_v16 = vpop.f32.mrb[50].mxu1 }
 0x5b4   : > { %3555 = vst.msk [vmem:[%s7118_s11 + $0x90] sm:$0xff] %vm3536_vm0, %v3482_v47  ;;  %v3485_v2 = vadd.f32 %v4042_v16, %v7113_v53  ;;  %v3476_v63 = vpop.f32.mrb[51].mxu1 }
 0x5b5   : > { %3553 = vst.msk [vmem:[%s7118_s11 + $0x80] sm:$0xff] %vm3536_vm0, %v3474_v48  ;;  %v3477_v59 = vadd.f32 %v7113_v53, %v3476_v63 }
 0x5b6   : > { %3556 = vst.msk [vmem:[%s7118_s11 + $0x98] sm:$0xff] %vm3536_vm0, %v3485_v2 }
 0x5b7   : > { %3554 = vst.msk [vmem:[%s7118_s11 + $0x88] sm:$0xff] %vm3536_vm0, %v3477_v59 }
 0x5b9   : > { %v4045_v31 = vpop.f32.mrb[52].mxu1 }
 0x5ba   : > { %v3498_v35 = vadd.f32 %v4045_v31, %v7113_v53  ;;  %v3489_v7 = vpop.f32.mrb[53].mxu1 }
 0x5bb   : > { %v3490_v6 = vadd.f32 %v7113_v53, %v3489_v7  ;;  %v4046_v50 = vpop.f32.mrb[54].mxu1 }
 0x5bc   : > { %3559 = vst.msk [vmem:[%s7118_s11 + $0xb0] sm:$0xff] %vm3536_vm0, %v3498_v35  ;;  %v3501_v56 = vadd.f32 %v4046_v50, %v7113_v53  ;;  %v3492_v29 = vpop.f32.mrb[55].mxu1 }
 0x5bd   : > { %3557 = vst.msk [vmem:[%s7118_s11 + $0xa0] sm:$0xff] %vm3536_vm0, %v3490_v6  ;;  %v3493_v28 = vadd.f32 %v7113_v53, %v3492_v29 }
 0x5be   : > { %3560 = vst.msk [vmem:[%s7118_s11 + $0xb8] sm:$0xff] %vm3536_vm0, %v3501_v56 }
 0x5bf   : > { %3558 = vst.msk [vmem:[%s7118_s11 + $0xa8] sm:$0xff] %vm3536_vm0, %v3493_v28 }
 0x5c1   : > { %v4049_v9 = vpop.f32.mrb[56].mxu1 }
 0x5c2   : > { %v3514_v46 = vadd.f32 %v4049_v9, %v7113_v53  ;;  %v3505_v14 = vpop.f32.mrb[57].mxu1 }
 0x5c3   : > { %v3506_v1 = vadd.f32 %v7113_v53, %v3505_v14  ;;  %v4050_v24 = vpop.f32.mrb[58].mxu1 }
 0x5c4   : > { %3563 = vst.msk [vmem:[%s7118_s11 + $0xd0] sm:$0xff] %vm3536_vm0, %v3514_v46  ;;  %v3517_v38 = vadd.f32 %v4050_v24, %v7113_v53  ;;  %v3508_v55 = vpop.f32.mrb[59].mxu1 }
 0x5c5   : > { %3561 = vst.msk [vmem:[%s7118_s11 + $0xc0] sm:$0xff] %vm3536_vm0, %v3506_v1  ;;  %v3509_v58 = vadd.f32 %v7113_v53, %v3508_v55 }
 0x5c6   : > { %3564 = vst.msk [vmem:[%s7118_s11 + $0xd8] sm:$0xff] %vm3536_vm0, %v3517_v38 }
 0x5c7   : > { %3562 = vst.msk [vmem:[%s7118_s11 + $0xc8] sm:$0xff] %vm3536_vm0, %v3509_v58 }
 0x5c9   : > { %v4053_v62 = vpop.f32.mrb[60].mxu1 }
 0x5ca   : > { %v3530_v4 = vadd.f32 %v4053_v62, %v7113_v53  ;;  %v3521_v36 = vpop.f32.mrb[61].mxu1 }
 0x5cb   : > { %v3522_v27 = vadd.f32 %v7113_v53, %v3521_v36  ;;  %v4054_v18 = vpop.f32.mrb[62].mxu1 }
 0x5cc   : > { %3567 = vst.msk [vmem:[%s7118_s11 + $0xf0] sm:$0xff] %vm3536_vm0, %v3530_v4  ;;  %v3533_v0 = vadd.f32 %v4054_v18, %v7113_v53  ;;  %v3524_v21 = vpop.f32.mrb[63].mxu1 }
 0x5cd   : > { %3565 = vst.msk [vmem:[%s7118_s11 + $0xe0] sm:$0xff] %vm3536_vm0, %v3522_v27  ;;  %v3525_v15 = vadd.f32 %v7113_v53, %v3524_v21 }
 0x5ce   : > { %3568 = vst.msk [vmem:[%s7118_s11 + $0xf8] sm:$0xff] %vm3536_vm0, %v3533_v0 }
 0x5cf   : > { %3566 = vst.msk [vmem:[%s7118_s11 + $0xe8] sm:$0xff] %vm3536_vm0, %v3525_v15 }
 0x5d0 PF: > { %s22_s15 = sadd.s32 1, %s4363_s15  }
 0x5d1   : > { %p19_p4 = scmp.ge.s32.totalorder %s22_s15, 4  }
 0x5d3   :  { %21 = sbr.rel (!%p19_p4) target bundleno = 3 (0x3), region = 93 }

</bundles_post_ra>
